<compile_context>
chip_gen: v5e
topology: v5e:2x2
jax: 0.10.0
libtpu: 0.0.40
codegen_flags: <defaults>
</compile_context>

<pallas_src>
import functools

import jax
import jax.numpy as jnp
import numpy as np
from jax.experimental import pallas as pl
from jax.experimental.pallas import tpu as pltpu


def _round_up(x, m):
    return ((x + m - 1) // m) * m


def _pick_k_tile(K, max_tk=1024):
    """Pick (tk, Kp) with tk a multiple of 128, Kp = tk * num_steps >= K."""
    k_al = _round_up(K, 128)
    if k_al <= max_tk:
        return k_al, k_al
    steps = -(-k_al // max_tk)
    tk = _round_up(-(-k_al // steps), 128)
    return tk, tk * steps


def _group_matrix_padded(oc, groups, ocp):
    """[ocp, ocp] block-diagonal group-membership matrix (padded cols zero)."""
    cg = oc // groups
    gm = np.zeros((ocp, ocp), dtype=np.float32)
    gm[:oc, :oc] = np.kron(np.eye(groups, dtype=np.float32),
                           np.ones((cg, cg), dtype=np.float32))
    return jnp.asarray(gm)


# ----------------------------------------------------------------------------
# Fused conv (as matmul) + GroupNorm + ReLU kernel
# ----------------------------------------------------------------------------

def _conv_gn_relu_kernel(a_ref, w_ref, gm_ref, g_ref, b_ref, o_ref, acc_ref,
                         *, inv_count, eps):
    # a_ref:  [1, Mp, tk]  bf16 im2col patches of one image
    # w_ref:  [tk, OCp]    bf16 weight slab
    # gm_ref: [OCp, OCp]   f32 block-diagonal group membership
    # g_ref/b_ref: [1, OCp] f32 affine params
    # o_ref:  [1, Mp, OCp] f32 output (resident across the K axis)
    # acc_ref: [Mp, OCp]   f32 VMEM accumulator
    k = pl.program_id(1)

    @pl.when(k == 0)
    def _():
        acc_ref[...] = jnp.zeros_like(acc_ref)

    acc_ref[...] += jnp.dot(a_ref[0], w_ref[...],
                            preferred_element_type=jnp.float32)

    @pl.when(k == pl.num_programs(1) - 1)
    def _():
        x = acc_ref[...]                                   # [Mp, OCp]
        s = jnp.sum(x, axis=0, keepdims=True)              # per-channel sum
        q = jnp.sum(x * x, axis=0, keepdims=True)          # per-channel sumsq
        gs = jnp.dot(s, gm_ref[...], preferred_element_type=jnp.float32)
        gq = jnp.dot(q, gm_ref[...], preferred_element_type=jnp.float32)
        mean = gs * inv_count
        var = jnp.maximum(gq * inv_count - mean * mean, 0.0)
        inv = jax.lax.rsqrt(var + eps)
        scale = inv * g_ref[...]
        shift = b_ref[...] - mean * scale
        o_ref[0] = jnp.maximum(x * scale + shift, 0.0)


def conv_gn_relu(x, w, gamma, beta, stride, padding, num_groups=8):
    """Fused Conv2d(bias=False) + GroupNorm(num_groups, eps=1e-5) + ReLU.

    x: NHWC f32.  w: PyTorch layout [OC, IC, KH, KW]."""
    N, H, W, C = x.shape
    OC, IC, KH, KW = w.shape
    sh, sw = stride
    ph, pw = padding
    xp = jnp.pad(x, ((0, 0), (ph, ph), (pw, pw), (0, 0)))
    OH = (H + 2 * ph - KH) // sh + 1
    OW = (W + 2 * pw - KW) // sw + 1

    # im2col glue: strided views stacked per tap, emitted directly in bf16.
    cols = []
    for i in range(KH):
        for j in range(KW):
            cols.append(
                xp[:, i:i + sh * (OH - 1) + 1:sh, j:j + sw * (OW - 1) + 1:sw, :])
    patches = jnp.stack(cols, axis=3)                      # [N, OH, OW, KH*KW, C]
    M = OH * OW
    K = KH * KW * IC
    patches = patches.reshape(N, M, K).astype(jnp.bfloat16)

    # Pad to MXU / lane-dense friendly sizes.
    OCp = _round_up(OC, 128)
    Mp = _round_up(M, 8)
    tk, Kp = _pick_k_tile(K)
    kt = Kp // tk

    patches = jnp.pad(patches, ((0, 0), (0, Mp - M), (0, Kp - K)))
    wm = jnp.transpose(w, (2, 3, 1, 0)).reshape(K, OC).astype(jnp.bfloat16)
    wm = jnp.pad(wm, ((0, Kp - K), (0, OCp - OC)))
    gm = _group_matrix_padded(OC, num_groups, OCp)
    g = jnp.pad(gamma.astype(jnp.float32), (0, OCp - OC)).reshape(1, OCp)
    b = jnp.pad(beta.astype(jnp.float32), (0, OCp - OC)).reshape(1, OCp)

    cg = OC // num_groups
    inv_count = 1.0 / float(cg * M)                        # real count (no padding)

    kernel = functools.partial(_conv_gn_relu_kernel,
                               inv_count=inv_count, eps=1e-5)
    out = pl.pallas_call(
        kernel,
        out_shape=jax.ShapeDtypeStruct((N, Mp, OCp), jnp.float32),
        grid_spec=pltpu.PrefetchScalarGridSpec(
            num_scalar_prefetch=0,
            grid=(N, kt),
            in_specs=[pl.BlockSpec((1, Mp, tk), lambda n, k: (n, 0, k)),
                      pl.BlockSpec((tk, OCp), lambda n, k: (k, 0)),
                      pl.BlockSpec((OCp, OCp), lambda n, k: (0, 0)),
                      pl.BlockSpec((1, OCp), lambda n, k: (0, 0)),
                      pl.BlockSpec((1, OCp), lambda n, k: (0, 0))],
            out_specs=pl.BlockSpec((1, Mp, OCp), lambda n, k: (n, 0, 0)),
            scratch_shapes=[pltpu.VMEM((Mp, OCp), jnp.float32)]),
        compiler_params=pltpu.CompilerParams(
            dimension_semantics=("parallel", "arbitrary"),
            vmem_limit_bytes=32 * 1024 * 1024),
        cost_estimate=pl.CostEstimate(
            flops=2 * N * Mp * Kp * OCp,
            transcendentals=N * OCp,
            bytes_accessed=2 * (N * Mp * Kp + Kp * OCp)
            + 4 * (N * Mp * OCp + OCp * OCp + 2 * OCp)),
    )(patches, wm, gm, g, b)

    return out[:, :M, :OC].reshape(N, OH, OW, OC)


def basic_conv2d(x, params, stride, padding, num_groups=8):
    return conv_gn_relu(x, params["w"], params["gamma"], params["beta"],
                        stride, padding, num_groups)


# ----------------------------------------------------------------------------
# MaxPool 3x3 / stride 2 (valid) on NHWC
# ----------------------------------------------------------------------------

def maxpool3x3_s2(x):
    """nn.MaxPool2d((3,3),(2,2)).  The 9 window taps are folded as pairwise
    maxima over strided views of the un-expanded input (fused by XLA)."""
    # TODO(synk): could be a trivial Pallas VPU kernel, but it is mem-bound
    # glue; the strided-view max avoids any [9, M, C] HBM materialization.
    N, H, W, C = x.shape
    OH = (H - 3) // 2 + 1
    OW = (W - 3) // 2 + 1
    out = None
    for i in range(3):
        for j in range(3):
            tap = x[:, i:i + 2 * (OH - 1) + 1:2, j:j + 2 * (OW - 1) + 1:2, :]
            out = tap if out is None else jnp.maximum(out, tap)
    return out


# ----------------------------------------------------------------------------
# Parameter init (deterministic, synthetic)
# ----------------------------------------------------------------------------

def init_basic_conv(key, in_c, out_c, kh, kw):
    k1, k2, k3 = jax.random.split(key, 3)
    fan_in = in_c * kh * kw
    w = jax.random.normal(k1, (out_c, in_c, kh, kw), jnp.float32) / jnp.sqrt(
        jnp.float32(fan_in))
    gamma = 1.0 + 0.1 * jax.random.normal(k2, (out_c,), jnp.float32)
    beta = 0.1 * jax.random.normal(k3, (out_c,), jnp.float32)
    return dict(w=w, gamma=gamma, beta=beta)


def init_stem_params(key, in_channels):
    keys = jax.random.split(key, 11)
    p = {}
    p["conv1a"] = init_basic_conv(keys[0], in_channels, 32, 3, 3)
    p["conv2a"] = init_basic_conv(keys[1], 32, 32, 3, 3)
    p["conv2b"] = init_basic_conv(keys[2], 32, 64, 3, 3)
    p["m3a_b1"] = init_basic_conv(keys[3], 64, 96, 3, 3)
    p["m4a_b0_0"] = init_basic_conv(keys[4], 160, 64, 1, 1)
    p["m4a_b0_1"] = init_basic_conv(keys[5], 64, 96, 3, 3)
    p["m4a_b1_0"] = init_basic_conv(keys[6], 160, 64, 1, 1)
    p["m4a_b1_1"] = init_basic_conv(keys[7], 64, 64, 1, 7)
    p["m4a_b1_2"] = init_basic_conv(keys[8], 64, 64, 7, 1)
    p["m4a_b1_3"] = init_basic_conv(keys[9], 64, 96, 3, 3)
    p["m5a_b0"] = init_basic_conv(keys[10], 192, 192, 3, 3)
    return p


# ----------------------------------------------------------------------------
# InceptionV4Stem forward
# ----------------------------------------------------------------------------

def inception_v4_stem(x_nchw, p):
    x = jnp.transpose(x_nchw, (0, 2, 3, 1))                    # NCHW -> NHWC

    x = basic_conv2d(x, p["conv1a"], (2, 2), (0, 0))
    x = basic_conv2d(x, p["conv2a"], (1, 1), (0, 0))
    x = basic_conv2d(x, p["conv2b"], (1, 1), (1, 1))

    x0 = maxpool3x3_s2(x)
    x1 = basic_conv2d(x, p["m3a_b1"], (2, 2), (0, 0))
    x = jnp.concatenate([x0, x1], axis=-1)                     # 64 + 96 = 160

    # mixed_4a: fuse the two parallel 1x1 convs (160->64 each) into a single
    # 160->128 conv + GroupNorm(16 groups).  Identical math to two separate
    # GroupNorm(8, 64) since the 8-channel groups never cross the 64/64 split.
    w_head = jnp.concatenate([p["m4a_b0_0"]["w"], p["m4a_b1_0"]["w"]], axis=0)
    g_head = jnp.concatenate([p["m4a_b0_0"]["gamma"], p["m4a_b1_0"]["gamma"]])
    b_head = jnp.concatenate([p["m4a_b0_0"]["beta"], p["m4a_b1_0"]["beta"]])
    head = conv_gn_relu(x, w_head, g_head, b_head, (1, 1), (0, 0),
                        num_groups=16)
    b0, b1 = head[..., :64], head[..., 64:]

    b0 = basic_conv2d(b0, p["m4a_b0_1"], (1, 1), (0, 0))
    b1 = basic_conv2d(b1, p["m4a_b1_1"], (1, 1), (0, 3))       # 1x7
    b1 = basic_conv2d(b1, p["m4a_b1_2"], (1, 1), (3, 0))       # 7x1
    b1 = basic_conv2d(b1, p["m4a_b1_3"], (1, 1), (0, 0))
    x = jnp.concatenate([b0, b1], axis=-1)                     # 96 + 96 = 192

    x0 = basic_conv2d(x, p["m5a_b0"], (2, 2), (0, 0))
    x1 = maxpool3x3_s2(x)
    x = jnp.concatenate([x0, x1], axis=-1)                     # 192 + 192 = 384

    return jnp.transpose(x, (0, 3, 1, 2))                      # NHWC -> NCHW


# ----------------------------------------------------------------------------
# Main
# ----------------------------------------------------------------------------

if __name__ == "__main__":
    key = jax.random.PRNGKey(0)
    pkey, xkey = jax.random.split(key)

    in_channels = 3
    params = init_stem_params(pkey, in_channels)

    # Small but valid shape for this stem (needs enough spatial extent to
    # survive the three stride-2 / no-padding reductions):
    # 35 -> 17 -> 15 -> 15 -> 7 -> 5 -> 2.
    x = jax.random.normal(xkey, (2, in_channels, 35, 35), jnp.float32)

    fwd = jax.jit(inception_v4_stem)
    out = fwd(x, params)
    out = jax.block_until_ready(out)

    assert out.shape == (2, 384, 2, 2), out.shape
    assert bool(jnp.all(jnp.isfinite(out)))
    print("KERNEL_OK")
</pallas_src>

<mosaic_0001>
module attributes {stable_mosaic.version = 11 : i64} {
  func.func @_conv_gn_relu_kernel(%arg0: i32, %arg1: i32, %arg2: memref<1x296x128xbf16, #tpu.memory_space<vmem>>, %arg3: memref<128x128xbf16, #tpu.memory_space<vmem>>, %arg4: memref<128x128xf32, #tpu.memory_space<vmem>>, %arg5: memref<1x128xf32, #tpu.memory_space<vmem>>, %arg6: memref<1x128xf32, #tpu.memory_space<vmem>>, %arg7: memref<1x296x128xf32, #tpu.memory_space<vmem>>, %arg8: memref<296x128xf32, #tpu.memory_space<vmem>>) attributes {dimension_semantics = [#tpu.dimension_semantics<parallel>, #tpu.dimension_semantics<arbitrary>], iteration_bounds = array<i64: 2, 1>, scalar_prefetch = 0 : i64, scratch_operands = 1 : i64, tpu.core_type = #tpu.core_type<tc>, window_params = [{transform_indices = @transform_0, window_bounds = array<i64: 1, 296, 128>}, {transform_indices = @transform_1, window_bounds = array<i64: 128, 128>}, {pipeline_mode = #tpu.pipeline_mode<synchronous>, transform_indices = @transform_2, window_bounds = array<i64: 128, 128>}, {pipeline_mode = #tpu.pipeline_mode<synchronous>, transform_indices = @transform_3, window_bounds = array<i64: 1, 128>}, {pipeline_mode = #tpu.pipeline_mode<synchronous>, transform_indices = @transform_4, window_bounds = array<i64: 1, 128>}, {transform_indices = @transform_5, window_bounds = array<i64: 1, 296, 128>}]} {
    %c0_i32 = arith.constant 0 : i32
    %0 = arith.cmpi eq, %arg1, %c0_i32 : i32
    %1 = arith.extui %0 : i1 to i32
    %c0_i32_0 = arith.constant 0 : i32
    %2 = arith.cmpi ne, %1, %c0_i32_0 : i32
    scf.if %2 {
      %cst_11 = arith.constant 0.000000e+00 : f32
      %13 = vector.broadcast %cst_11 : f32 to vector<296x128xf32>
      %c0_12 = arith.constant 0 : index
      %c0_13 = arith.constant 0 : index
      %14 = vector.load %arg8[%c0_12, %c0_13] : memref<296x128xf32, #tpu.memory_space<vmem>>, vector<296x128xf32>
      tpu.vector_store %arg8[%c0_12, %c0_13], %13 {strides = array<i32>} : memref<296x128xf32, #tpu.memory_space<vmem>>, vector<296x128xf32>,
    } else {
    }
    %c0 = arith.constant 0 : index
    %c0_1 = arith.constant 0 : index
    %3 = vector.load %arg8[%c0, %c0_1] : memref<296x128xf32, #tpu.memory_space<vmem>>, vector<296x128xf32>
    %c0_2 = arith.constant 0 : index
    %c0_3 = arith.constant 0 : index
    %c0_4 = arith.constant 0 : index
    %4 = vector.load %arg2[%c0_2, %c0_3, %c0_4] : memref<1x296x128xbf16, #tpu.memory_space<vmem>>, vector<1x296x128xbf16>
    %5 = vector.shape_cast %4 : vector<1x296x128xbf16> to vector<296x128xbf16>
    %c0_5 = arith.constant 0 : index
    %c0_6 = arith.constant 0 : index
    %6 = vector.load %arg3[%c0_5, %c0_6] : memref<128x128xbf16, #tpu.memory_space<vmem>>, vector<128x128xbf16>
    %cst = arith.constant dense<0.000000e+00> : vector<296x128xf32>
    %7 = tpu.matmul %5, %6, %cst {dimension_numbers = #tpu.dot_dimension_numbers<[1], [0], [0], [1], [0, 0, 1, 1], [], []>} : vector<296x128xbf16>, vector<128x128xbf16>, vector<296x128xf32> -> vector<296x128xf32>
    %8 = arith.addf %3, %7 : vector<296x128xf32>
    %c0_7 = arith.constant 0 : index
    %c0_8 = arith.constant 0 : index
    %9 = vector.load %arg8[%c0_7, %c0_8] : memref<296x128xf32, #tpu.memory_space<vmem>>, vector<296x128xf32>
    tpu.vector_store %arg8[%c0_7, %c0_8], %8 {strides = array<i32>} : memref<296x128xf32, #tpu.memory_space<vmem>>, vector<296x128xf32>,
    %c0_i32_9 = arith.constant 0 : i32
    %10 = arith.cmpi eq, %arg1, %c0_i32_9 : i32
    %11 = arith.extui %10 : i1 to i32
    %c0_i32_10 = arith.constant 0 : i32
    %12 = arith.cmpi ne, %11, %c0_i32_10 : i32
    scf.if %12 {
      %c0_11 = arith.constant 0 : index
      %c0_12 = arith.constant 0 : index
      %13 = vector.load %arg8[%c0_11, %c0_12] : memref<296x128xf32, #tpu.memory_space<vmem>>, vector<296x128xf32>
      %cst_13 = arith.constant dense<0.000000e+00> : vector<128xf32>
      %14 = vector.multi_reduction <add>, %13, %cst_13 [0] : vector<296x128xf32> to vector<128xf32>
      %15 = vector.shape_cast %14 : vector<128xf32> to vector<1x128xf32>
      %16 = arith.mulf %13, %13 : vector<296x128xf32>
      %cst_14 = arith.constant dense<0.000000e+00> : vector<128xf32>
      %17 = vector.multi_reduction <add>, %16, %cst_14 [0] : vector<296x128xf32> to vector<128xf32>
      %18 = vector.shape_cast %17 : vector<128xf32> to vector<1x128xf32>
      %c0_15 = arith.constant 0 : index
      %c0_16 = arith.constant 0 : index
      %19 = vector.load %arg4[%c0_15, %c0_16] : memref<128x128xf32, #tpu.memory_space<vmem>>, vector<128x128xf32>
      %cst_17 = arith.constant dense<0.000000e+00> : vector<1x128xf32>
      %20 = tpu.matmul %15, %19, %cst_17 {dimension_numbers = #tpu.dot_dimension_numbers<[1], [0], [0], [1], [0, 0, 1, 1], [], []>} : vector<1x128xf32>, vector<128x128xf32>, vector<1x128xf32> -> vector<1x128xf32>
      %c0_18 = arith.constant 0 : index
      %c0_19 = arith.constant 0 : index
      %21 = vector.load %arg4[%c0_18, %c0_19] : memref<128x128xf32, #tpu.memory_space<vmem>>, vector<128x128xf32>
      %cst_20 = arith.constant dense<0.000000e+00> : vector<1x128xf32>
      %22 = tpu.matmul %18, %21, %cst_20 {dimension_numbers = #tpu.dot_dimension_numbers<[1], [0], [0], [1], [0, 0, 1, 1], [], []>} : vector<1x128xf32>, vector<128x128xf32>, vector<1x128xf32> -> vector<1x128xf32>
      %cst_21 = arith.constant 8.6505193E-4 : f32
      %23 = vector.broadcast %cst_21 : f32 to vector<1x128xf32>
      %24 = arith.mulf %20, %23 : vector<1x128xf32>
      %cst_22 = arith.constant 8.6505193E-4 : f32
      %25 = vector.broadcast %cst_22 : f32 to vector<1x128xf32>
      %26 = arith.mulf %22, %25 : vector<1x128xf32>
      %27 = arith.mulf %24, %24 : vector<1x128xf32>
      %28 = arith.subf %26, %27 : vector<1x128xf32>
      %cst_23 = arith.constant 0.000000e+00 : f32
      %29 = vector.broadcast %cst_23 : f32 to vector<1x128xf32>
      %30 = arith.maximumf %28, %29 : vector<1x128xf32>
      %cst_24 = arith.constant 9.99999974E-6 : f32
      %31 = vector.broadcast %cst_24 : f32 to vector<1x128xf32>
      %32 = arith.addf %30, %31 : vector<1x128xf32>
      %33 = math.rsqrt %32 : vector<1x128xf32>
      %c0_25 = arith.constant 0 : index
      %c0_26 = arith.constant 0 : index
      %34 = vector.load %arg5[%c0_25, %c0_26] : memref<1x128xf32, #tpu.memory_space<vmem>>, vector<1x128xf32>
      %35 = arith.mulf %33, %34 : vector<1x128xf32>
      %c0_27 = arith.constant 0 : index
      %c0_28 = arith.constant 0 : index
      %36 = vector.load %arg6[%c0_27, %c0_28] : memref<1x128xf32, #tpu.memory_space<vmem>>, vector<1x128xf32>
      %37 = arith.mulf %24, %35 : vector<1x128xf32>
      %38 = arith.subf %36, %37 : vector<1x128xf32>
      %39 = vector.broadcast %35 : vector<1x128xf32> to vector<296x128xf32>
      %40 = arith.mulf %13, %39 : vector<296x128xf32>
      %41 = vector.broadcast %38 : vector<1x128xf32> to vector<296x128xf32>
      %42 = arith.addf %40, %41 : vector<296x128xf32>
      %cst_29 = arith.constant 0.000000e+00 : f32
      %43 = vector.broadcast %cst_29 : f32 to vector<296x128xf32>
      %44 = arith.maximumf %42, %43 : vector<296x128xf32>
      %c0_30 = arith.constant 0 : index
      %c0_31 = arith.constant 0 : index
      %c0_32 = arith.constant 0 : index
      %45 = vector.load %arg7[%c0_30, %c0_31, %c0_32] : memref<1x296x128xf32, #tpu.memory_space<vmem>>, vector<1x296x128xf32>
      %46 = vector.shape_cast %45 : vector<1x296x128xf32> to vector<296x128xf32>
      %47 = vector.shape_cast %44 : vector<296x128xf32> to vector<1x296x128xf32>
      tpu.vector_store %arg7[%c0_30, %c0_31, %c0_32], %47 {strides = array<i32>} : memref<1x296x128xf32, #tpu.memory_space<vmem>>, vector<1x296x128xf32>,
    } else {
    }
    return
  }
  func.func @transform_0(%arg0: i32, %arg1: i32) -> (i32, i32, i32) {
    %c0_i32 = arith.constant 0 : i32
    %c0_i32_0 = arith.constant 0 : i32
    return %arg0, %c0_i32, %arg1 : i32, i32, i32
  }
  func.func @transform_1(%arg0: i32, %arg1: i32) -> (i32, i32) {
    %c0_i32 = arith.constant 0 : i32
    %c0_i32_0 = arith.constant 0 : i32
    return %arg1, %c0_i32 : i32, i32
  }
  func.func @transform_2(%arg0: i32, %arg1: i32) -> (i32, i32) {
    %c0_i32 = arith.constant 0 : i32
    %c0_i32_0 = arith.constant 0 : i32
    %c0_i32_1 = arith.constant 0 : i32
    return %c0_i32, %c0_i32_0 : i32, i32
  }
  func.func @transform_3(%arg0: i32, %arg1: i32) -> (i32, i32) {
    %c0_i32 = arith.constant 0 : i32
    %c0_i32_0 = arith.constant 0 : i32
    %c0_i32_1 = arith.constant 0 : i32
    return %c0_i32, %c0_i32_0 : i32, i32
  }
  func.func @transform_4(%arg0: i32, %arg1: i32) -> (i32, i32) {
    %c0_i32 = arith.constant 0 : i32
    %c0_i32_0 = arith.constant 0 : i32
    %c0_i32_1 = arith.constant 0 : i32
    return %c0_i32, %c0_i32_0 : i32, i32
  }
  func.func @transform_5(%arg0: i32, %arg1: i32) -> (i32, i32, i32) {
    %c0_i32 = arith.constant 0 : i32
    %c0_i32_0 = arith.constant 0 : i32
    %c0_i32_1 = arith.constant 0 : i32
    return %arg0, %c0_i32, %c0_i32_0 : i32, i32, i32
  }
}

module attributes {stable_mosaic.version = 11 : i64} {
  func.func @_conv_gn_relu_kernel(%arg0: i32, %arg1: i32, %arg2: memref<1x232x384xbf16, #tpu.memory_space<vmem>>, %arg3: memref<384x128xbf16, #tpu.memory_space<vmem>>, %arg4: memref<128x128xf32, #tpu.memory_space<vmem>>, %arg5: memref<1x128xf32, #tpu.memory_space<vmem>>, %arg6: memref<1x128xf32, #tpu.memory_space<vmem>>, %arg7: memref<1x232x128xf32, #tpu.memory_space<vmem>>, %arg8: memref<232x128xf32, #tpu.memory_space<vmem>>) attributes {dimension_semantics = [#tpu.dimension_semantics<parallel>, #tpu.dimension_semantics<arbitrary>], iteration_bounds = array<i64: 2, 1>, scalar_prefetch = 0 : i64, scratch_operands = 1 : i64, tpu.core_type = #tpu.core_type<tc>, window_params = [{transform_indices = @transform_0, window_bounds = array<i64: 1, 232, 384>}, {transform_indices = @transform_1, window_bounds = array<i64: 384, 128>}, {pipeline_mode = #tpu.pipeline_mode<synchronous>, transform_indices = @transform_2, window_bounds = array<i64: 128, 128>}, {pipeline_mode = #tpu.pipeline_mode<synchronous>, transform_indices = @transform_3, window_bounds = array<i64: 1, 128>}, {pipeline_mode = #tpu.pipeline_mode<synchronous>, transform_indices = @transform_4, window_bounds = array<i64: 1, 128>}, {transform_indices = @transform_5, window_bounds = array<i64: 1, 232, 128>}]} {
    %c0_i32 = arith.constant 0 : i32
    %0 = arith.cmpi eq, %arg1, %c0_i32 : i32
    %1 = arith.extui %0 : i1 to i32
    %c0_i32_0 = arith.constant 0 : i32
    %2 = arith.cmpi ne, %1, %c0_i32_0 : i32
    scf.if %2 {
      %cst_11 = arith.constant 0.000000e+00 : f32
      %13 = vector.broadcast %cst_11 : f32 to vector<232x128xf32>
      %c0_12 = arith.constant 0 : index
      %c0_13 = arith.constant 0 : index
      %14 = vector.load %arg8[%c0_12, %c0_13] : memref<232x128xf32, #tpu.memory_space<vmem>>, vector<232x128xf32>
      tpu.vector_store %arg8[%c0_12, %c0_13], %13 {strides = array<i32>} : memref<232x128xf32, #tpu.memory_space<vmem>>, vector<232x128xf32>,
    } else {
    }
    %c0 = arith.constant 0 : index
    %c0_1 = arith.constant 0 : index
    %3 = vector.load %arg8[%c0, %c0_1] : memref<232x128xf32, #tpu.memory_space<vmem>>, vector<232x128xf32>
    %c0_2 = arith.constant 0 : index
    %c0_3 = arith.constant 0 : index
    %c0_4 = arith.constant 0 : index
    %4 = vector.load %arg2[%c0_2, %c0_3, %c0_4] : memref<1x232x384xbf16, #tpu.memory_space<vmem>>, vector<1x232x384xbf16>
    %5 = vector.shape_cast %4 : vector<1x232x384xbf16> to vector<232x384xbf16>
    %c0_5 = arith.constant 0 : index
    %c0_6 = arith.constant 0 : index
    %6 = vector.load %arg3[%c0_5, %c0_6] : memref<384x128xbf16, #tpu.memory_space<vmem>>, vector<384x128xbf16>
    %cst = arith.constant dense<0.000000e+00> : vector<232x128xf32>
    %7 = tpu.matmul %5, %6, %cst {dimension_numbers = #tpu.dot_dimension_numbers<[1], [0], [0], [1], [0, 0, 1, 1], [], []>} : vector<232x384xbf16>, vector<384x128xbf16>, vector<232x128xf32> -> vector<232x128xf32>
    %8 = arith.addf %3, %7 : vector<232x128xf32>
    %c0_7 = arith.constant 0 : index
    %c0_8 = arith.constant 0 : index
    %9 = vector.load %arg8[%c0_7, %c0_8] : memref<232x128xf32, #tpu.memory_space<vmem>>, vector<232x128xf32>
    tpu.vector_store %arg8[%c0_7, %c0_8], %8 {strides = array<i32>} : memref<232x128xf32, #tpu.memory_space<vmem>>, vector<232x128xf32>,
    %c0_i32_9 = arith.constant 0 : i32
    %10 = arith.cmpi eq, %arg1, %c0_i32_9 : i32
    %11 = arith.extui %10 : i1 to i32
    %c0_i32_10 = arith.constant 0 : i32
    %12 = arith.cmpi ne, %11, %c0_i32_10 : i32
    scf.if %12 {
      %c0_11 = arith.constant 0 : index
      %c0_12 = arith.constant 0 : index
      %13 = vector.load %arg8[%c0_11, %c0_12] : memref<232x128xf32, #tpu.memory_space<vmem>>, vector<232x128xf32>
      %cst_13 = arith.constant dense<0.000000e+00> : vector<128xf32>
      %14 = vector.multi_reduction <add>, %13, %cst_13 [0] : vector<232x128xf32> to vector<128xf32>
      %15 = vector.shape_cast %14 : vector<128xf32> to vector<1x128xf32>
      %16 = arith.mulf %13, %13 : vector<232x128xf32>
      %cst_14 = arith.constant dense<0.000000e+00> : vector<128xf32>
      %17 = vector.multi_reduction <add>, %16, %cst_14 [0] : vector<232x128xf32> to vector<128xf32>
      %18 = vector.shape_cast %17 : vector<128xf32> to vector<1x128xf32>
      %c0_15 = arith.constant 0 : index
      %c0_16 = arith.constant 0 : index
      %19 = vector.load %arg4[%c0_15, %c0_16] : memref<128x128xf32, #tpu.memory_space<vmem>>, vector<128x128xf32>
      %cst_17 = arith.constant dense<0.000000e+00> : vector<1x128xf32>
      %20 = tpu.matmul %15, %19, %cst_17 {dimension_numbers = #tpu.dot_dimension_numbers<[1], [0], [0], [1], [0, 0, 1, 1], [], []>} : vector<1x128xf32>, vector<128x128xf32>, vector<1x128xf32> -> vector<1x128xf32>
      %c0_18 = arith.constant 0 : index
      %c0_19 = arith.constant 0 : index
      %21 = vector.load %arg4[%c0_18, %c0_19] : memref<128x128xf32, #tpu.memory_space<vmem>>, vector<128x128xf32>
      %cst_20 = arith.constant dense<0.000000e+00> : vector<1x128xf32>
      %22 = tpu.matmul %18, %21, %cst_20 {dimension_numbers = #tpu.dot_dimension_numbers<[1], [0], [0], [1], [0, 0, 1, 1], [], []>} : vector<1x128xf32>, vector<128x128xf32>, vector<1x128xf32> -> vector<1x128xf32>
      %cst_21 = arith.constant 0.00111111114 : f32
      %23 = vector.broadcast %cst_21 : f32 to vector<1x128xf32>
      %24 = arith.mulf %20, %23 : vector<1x128xf32>
      %cst_22 = arith.constant 0.00111111114 : f32
      %25 = vector.broadcast %cst_22 : f32 to vector<1x128xf32>
      %26 = arith.mulf %22, %25 : vector<1x128xf32>
      %27 = arith.mulf %24, %24 : vector<1x128xf32>
      %28 = arith.subf %26, %27 : vector<1x128xf32>
      %cst_23 = arith.constant 0.000000e+00 : f32
      %29 = vector.broadcast %cst_23 : f32 to vector<1x128xf32>
      %30 = arith.maximumf %28, %29 : vector<1x128xf32>
      %cst_24 = arith.constant 9.99999974E-6 : f32
      %31 = vector.broadcast %cst_24 : f32 to vector<1x128xf32>
      %32 = arith.addf %30, %31 : vector<1x128xf32>
      %33 = math.rsqrt %32 : vector<1x128xf32>
      %c0_25 = arith.constant 0 : index
      %c0_26 = arith.constant 0 : index
      %34 = vector.load %arg5[%c0_25, %c0_26] : memref<1x128xf32, #tpu.memory_space<vmem>>, vector<1x128xf32>
      %35 = arith.mulf %33, %34 : vector<1x128xf32>
      %c0_27 = arith.constant 0 : index
      %c0_28 = arith.constant 0 : index
      %36 = vector.load %arg6[%c0_27, %c0_28] : memref<1x128xf32, #tpu.memory_space<vmem>>, vector<1x128xf32>
      %37 = arith.mulf %24, %35 : vector<1x128xf32>
      %38 = arith.subf %36, %37 : vector<1x128xf32>
      %39 = vector.broadcast %35 : vector<1x128xf32> to vector<232x128xf32>
      %40 = arith.mulf %13, %39 : vector<232x128xf32>
      %41 = vector.broadcast %38 : vector<1x128xf32> to vector<232x128xf32>
      %42 = arith.addf %40, %41 : vector<232x128xf32>
      %cst_29 = arith.constant 0.000000e+00 : f32
      %43 = vector.broadcast %cst_29 : f32 to vector<232x128xf32>
      %44 = arith.maximumf %42, %43 : vector<232x128xf32>
      %c0_30 = arith.constant 0 : index
      %c0_31 = arith.constant 0 : index
      %c0_32 = arith.constant 0 : index
      %45 = vector.load %arg7[%c0_30, %c0_31, %c0_32] : memref<1x232x128xf32, #tpu.memory_space<vmem>>, vector<1x232x128xf32>
      %46 = vector.shape_cast %45 : vector<1x232x128xf32> to vector<232x128xf32>
      %47 = vector.shape_cast %44 : vector<232x128xf32> to vector<1x232x128xf32>
      tpu.vector_store %arg7[%c0_30, %c0_31, %c0_32], %47 {strides = array<i32>} : memref<1x232x128xf32, #tpu.memory_space<vmem>>, vector<1x232x128xf32>,
    } else {
    }
    return
  }
  func.func @transform_0(%arg0: i32, %arg1: i32) -> (i32, i32, i32) {
    %c0_i32 = arith.constant 0 : i32
    %c0_i32_0 = arith.constant 0 : i32
    return %arg0, %c0_i32, %arg1 : i32, i32, i32
  }
  func.func @transform_1(%arg0: i32, %arg1: i32) -> (i32, i32) {
    %c0_i32 = arith.constant 0 : i32
    %c0_i32_0 = arith.constant 0 : i32
    return %arg1, %c0_i32 : i32, i32
  }
  func.func @transform_2(%arg0: i32, %arg1: i32) -> (i32, i32) {
    %c0_i32 = arith.constant 0 : i32
    %c0_i32_0 = arith.constant 0 : i32
    %c0_i32_1 = arith.constant 0 : i32
    return %c0_i32, %c0_i32_0 : i32, i32
  }
  func.func @transform_3(%arg0: i32, %arg1: i32) -> (i32, i32) {
    %c0_i32 = arith.constant 0 : i32
    %c0_i32_0 = arith.constant 0 : i32
    %c0_i32_1 = arith.constant 0 : i32
    return %c0_i32, %c0_i32_0 : i32, i32
  }
  func.func @transform_4(%arg0: i32, %arg1: i32) -> (i32, i32) {
    %c0_i32 = arith.constant 0 : i32
    %c0_i32_0 = arith.constant 0 : i32
    %c0_i32_1 = arith.constant 0 : i32
    return %c0_i32, %c0_i32_0 : i32, i32
  }
  func.func @transform_5(%arg0: i32, %arg1: i32) -> (i32, i32, i32) {
    %c0_i32 = arith.constant 0 : i32
    %c0_i32_0 = arith.constant 0 : i32
    %c0_i32_1 = arith.constant 0 : i32
    return %arg0, %c0_i32, %c0_i32_0 : i32, i32, i32
  }
}

module attributes {stable_mosaic.version = 11 : i64} {
  func.func @_conv_gn_relu_kernel(%arg0: i32, %arg1: i32, %arg2: memref<1x232x384xbf16, #tpu.memory_space<vmem>>, %arg3: memref<384x128xbf16, #tpu.memory_space<vmem>>, %arg4: memref<128x128xf32, #tpu.memory_space<vmem>>, %arg5: memref<1x128xf32, #tpu.memory_space<vmem>>, %arg6: memref<1x128xf32, #tpu.memory_space<vmem>>, %arg7: memref<1x232x128xf32, #tpu.memory_space<vmem>>, %arg8: memref<232x128xf32, #tpu.memory_space<vmem>>) attributes {dimension_semantics = [#tpu.dimension_semantics<parallel>, #tpu.dimension_semantics<arbitrary>], iteration_bounds = array<i64: 2, 1>, scalar_prefetch = 0 : i64, scratch_operands = 1 : i64, tpu.core_type = #tpu.core_type<tc>, window_params = [{transform_indices = @transform_0, window_bounds = array<i64: 1, 232, 384>}, {transform_indices = @transform_1, window_bounds = array<i64: 384, 128>}, {pipeline_mode = #tpu.pipeline_mode<synchronous>, transform_indices = @transform_2, window_bounds = array<i64: 128, 128>}, {pipeline_mode = #tpu.pipeline_mode<synchronous>, transform_indices = @transform_3, window_bounds = array<i64: 1, 128>}, {pipeline_mode = #tpu.pipeline_mode<synchronous>, transform_indices = @transform_4, window_bounds = array<i64: 1, 128>}, {transform_indices = @transform_5, window_bounds = array<i64: 1, 232, 128>}]} {
    %c0_i32 = arith.constant 0 : i32
    %0 = arith.cmpi eq, %arg1, %c0_i32 : i32
    %1 = arith.extui %0 : i1 to i32
    %c0_i32_0 = arith.constant 0 : i32
    %2 = arith.cmpi ne, %1, %c0_i32_0 : i32
    scf.if %2 {
      %cst_11 = arith.constant 0.000000e+00 : f32
      %13 = vector.broadcast %cst_11 : f32 to vector<232x128xf32>
      %c0_12 = arith.constant 0 : index
      %c0_13 = arith.constant 0 : index
      %14 = vector.load %arg8[%c0_12, %c0_13] : memref<232x128xf32, #tpu.memory_space<vmem>>, vector<232x128xf32>
      tpu.vector_store %arg8[%c0_12, %c0_13], %13 {strides = array<i32>} : memref<232x128xf32, #tpu.memory_space<vmem>>, vector<232x128xf32>,
    } else {
    }
    %c0 = arith.constant 0 : index
    %c0_1 = arith.constant 0 : index
    %3 = vector.load %arg8[%c0, %c0_1] : memref<232x128xf32, #tpu.memory_space<vmem>>, vector<232x128xf32>
    %c0_2 = arith.constant 0 : index
    %c0_3 = arith.constant 0 : index
    %c0_4 = arith.constant 0 : index
    %4 = vector.load %arg2[%c0_2, %c0_3, %c0_4] : memref<1x232x384xbf16, #tpu.memory_space<vmem>>, vector<1x232x384xbf16>
    %5 = vector.shape_cast %4 : vector<1x232x384xbf16> to vector<232x384xbf16>
    %c0_5 = arith.constant 0 : index
    %c0_6 = arith.constant 0 : index
    %6 = vector.load %arg3[%c0_5, %c0_6] : memref<384x128xbf16, #tpu.memory_space<vmem>>, vector<384x128xbf16>
    %cst = arith.constant dense<0.000000e+00> : vector<232x128xf32>
    %7 = tpu.matmul %5, %6, %cst {dimension_numbers = #tpu.dot_dimension_numbers<[1], [0], [0], [1], [0, 0, 1, 1], [], []>} : vector<232x384xbf16>, vector<384x128xbf16>, vector<232x128xf32> -> vector<232x128xf32>
    %8 = arith.addf %3, %7 : vector<232x128xf32>
    %c0_7 = arith.constant 0 : index
    %c0_8 = arith.constant 0 : index
    %9 = vector.load %arg8[%c0_7, %c0_8] : memref<232x128xf32, #tpu.memory_space<vmem>>, vector<232x128xf32>
    tpu.vector_store %arg8[%c0_7, %c0_8], %8 {strides = array<i32>} : memref<232x128xf32, #tpu.memory_space<vmem>>, vector<232x128xf32>,
    %c0_i32_9 = arith.constant 0 : i32
    %10 = arith.cmpi eq, %arg1, %c0_i32_9 : i32
    %11 = arith.extui %10 : i1 to i32
    %c0_i32_10 = arith.constant 0 : i32
    %12 = arith.cmpi ne, %11, %c0_i32_10 : i32
    scf.if %12 {
      %c0_11 = arith.constant 0 : index
      %c0_12 = arith.constant 0 : index
      %13 = vector.load %arg8[%c0_11, %c0_12] : memref<232x128xf32, #tpu.memory_space<vmem>>, vector<232x128xf32>
      %cst_13 = arith.constant dense<0.000000e+00> : vector<128xf32>
      %14 = vector.multi_reduction <add>, %13, %cst_13 [0] : vector<232x128xf32> to vector<128xf32>
      %15 = vector.shape_cast %14 : vector<128xf32> to vector<1x128xf32>
      %16 = arith.mulf %13, %13 : vector<232x128xf32>
      %cst_14 = arith.constant dense<0.000000e+00> : vector<128xf32>
      %17 = vector.multi_reduction <add>, %16, %cst_14 [0] : vector<232x128xf32> to vector<128xf32>
      %18 = vector.shape_cast %17 : vector<128xf32> to vector<1x128xf32>
      %c0_15 = arith.constant 0 : index
      %c0_16 = arith.constant 0 : index
      %19 = vector.load %arg4[%c0_15, %c0_16] : memref<128x128xf32, #tpu.memory_space<vmem>>, vector<128x128xf32>
      %cst_17 = arith.constant dense<0.000000e+00> : vector<1x128xf32>
      %20 = tpu.matmul %15, %19, %cst_17 {dimension_numbers = #tpu.dot_dimension_numbers<[1], [0], [0], [1], [0, 0, 1, 1], [], []>} : vector<1x128xf32>, vector<128x128xf32>, vector<1x128xf32> -> vector<1x128xf32>
      %c0_18 = arith.constant 0 : index
      %c0_19 = arith.constant 0 : index
      %21 = vector.load %arg4[%c0_18, %c0_19] : memref<128x128xf32, #tpu.memory_space<vmem>>, vector<128x128xf32>
      %cst_20 = arith.constant dense<0.000000e+00> : vector<1x128xf32>
      %22 = tpu.matmul %18, %21, %cst_20 {dimension_numbers = #tpu.dot_dimension_numbers<[1], [0], [0], [1], [0, 0, 1, 1], [], []>} : vector<1x128xf32>, vector<128x128xf32>, vector<1x128xf32> -> vector<1x128xf32>
      %cst_21 = arith.constant 5.55555569E-4 : f32
      %23 = vector.broadcast %cst_21 : f32 to vector<1x128xf32>
      %24 = arith.mulf %20, %23 : vector<1x128xf32>
      %cst_22 = arith.constant 5.55555569E-4 : f32
      %25 = vector.broadcast %cst_22 : f32 to vector<1x128xf32>
      %26 = arith.mulf %22, %25 : vector<1x128xf32>
      %27 = arith.mulf %24, %24 : vector<1x128xf32>
      %28 = arith.subf %26, %27 : vector<1x128xf32>
      %cst_23 = arith.constant 0.000000e+00 : f32
      %29 = vector.broadcast %cst_23 : f32 to vector<1x128xf32>
      %30 = arith.maximumf %28, %29 : vector<1x128xf32>
      %cst_24 = arith.constant 9.99999974E-6 : f32
      %31 = vector.broadcast %cst_24 : f32 to vector<1x128xf32>
      %32 = arith.addf %30, %31 : vector<1x128xf32>
      %33 = math.rsqrt %32 : vector<1x128xf32>
      %c0_25 = arith.constant 0 : index
      %c0_26 = arith.constant 0 : index
      %34 = vector.load %arg5[%c0_25, %c0_26] : memref<1x128xf32, #tpu.memory_space<vmem>>, vector<1x128xf32>
      %35 = arith.mulf %33, %34 : vector<1x128xf32>
      %c0_27 = arith.constant 0 : index
      %c0_28 = arith.constant 0 : index
      %36 = vector.load %arg6[%c0_27, %c0_28] : memref<1x128xf32, #tpu.memory_space<vmem>>, vector<1x128xf32>
      %37 = arith.mulf %24, %35 : vector<1x128xf32>
      %38 = arith.subf %36, %37 : vector<1x128xf32>
      %39 = vector.broadcast %35 : vector<1x128xf32> to vector<232x128xf32>
      %40 = arith.mulf %13, %39 : vector<232x128xf32>
      %41 = vector.broadcast %38 : vector<1x128xf32> to vector<232x128xf32>
      %42 = arith.addf %40, %41 : vector<232x128xf32>
      %cst_29 = arith.constant 0.000000e+00 : f32
      %43 = vector.broadcast %cst_29 : f32 to vector<232x128xf32>
      %44 = arith.maximumf %42, %43 : vector<232x128xf32>
      %c0_30 = arith.constant 0 : index
      %c0_31 = arith.constant 0 : index
      %c0_32 = arith.constant 0 : index
      %45 = vector.load %arg7[%c0_30, %c0_31, %c0_32] : memref<1x232x128xf32, #tpu.memory_space<vmem>>, vector<1x232x128xf32>
      %46 = vector.shape_cast %45 : vector<1x232x128xf32> to vector<232x128xf32>
      %47 = vector.shape_cast %44 : vector<232x128xf32> to vector<1x232x128xf32>
      tpu.vector_store %arg7[%c0_30, %c0_31, %c0_32], %47 {strides = array<i32>} : memref<1x232x128xf32, #tpu.memory_space<vmem>>, vector<1x232x128xf32>,
    } else {
    }
    return
  }
  func.func @transform_0(%arg0: i32, %arg1: i32) -> (i32, i32, i32) {
    %c0_i32 = arith.constant 0 : i32
    %c0_i32_0 = arith.constant 0 : i32
    return %arg0, %c0_i32, %arg1 : i32, i32, i32
  }
  func.func @transform_1(%arg0: i32, %arg1: i32) -> (i32, i32) {
    %c0_i32 = arith.constant 0 : i32
    %c0_i32_0 = arith.constant 0 : i32
    return %arg1, %c0_i32 : i32, i32
  }
  func.func @transform_2(%arg0: i32, %arg1: i32) -> (i32, i32) {
    %c0_i32 = arith.constant 0 : i32
    %c0_i32_0 = arith.constant 0 : i32
    %c0_i32_1 = arith.constant 0 : i32
    return %c0_i32, %c0_i32_0 : i32, i32
  }
  func.func @transform_3(%arg0: i32, %arg1: i32) -> (i32, i32) {
    %c0_i32 = arith.constant 0 : i32
    %c0_i32_0 = arith.constant 0 : i32
    %c0_i32_1 = arith.constant 0 : i32
    return %c0_i32, %c0_i32_0 : i32, i32
  }
  func.func @transform_4(%arg0: i32, %arg1: i32) -> (i32, i32) {
    %c0_i32 = arith.constant 0 : i32
    %c0_i32_0 = arith.constant 0 : i32
    %c0_i32_1 = arith.constant 0 : i32
    return %c0_i32, %c0_i32_0 : i32, i32
  }
  func.func @transform_5(%arg0: i32, %arg1: i32) -> (i32, i32, i32) {
    %c0_i32 = arith.constant 0 : i32
    %c0_i32_0 = arith.constant 0 : i32
    %c0_i32_1 = arith.constant 0 : i32
    return %arg0, %c0_i32, %c0_i32_0 : i32, i32, i32
  }
}

module attributes {stable_mosaic.version = 11 : i64} {
  func.func @_conv_gn_relu_kernel(%arg0: i32, %arg1: i32, %arg2: memref<1x56x640xbf16, #tpu.memory_space<vmem>>, %arg3: memref<640x128xbf16, #tpu.memory_space<vmem>>, %arg4: memref<128x128xf32, #tpu.memory_space<vmem>>, %arg5: memref<1x128xf32, #tpu.memory_space<vmem>>, %arg6: memref<1x128xf32, #tpu.memory_space<vmem>>, %arg7: memref<1x56x128xf32, #tpu.memory_space<vmem>>, %arg8: memref<56x128xf32, #tpu.memory_space<vmem>>) attributes {dimension_semantics = [#tpu.dimension_semantics<parallel>, #tpu.dimension_semantics<arbitrary>], iteration_bounds = array<i64: 2, 1>, scalar_prefetch = 0 : i64, scratch_operands = 1 : i64, tpu.core_type = #tpu.core_type<tc>, window_params = [{transform_indices = @transform_0, window_bounds = array<i64: 1, 56, 640>}, {transform_indices = @transform_1, window_bounds = array<i64: 640, 128>}, {pipeline_mode = #tpu.pipeline_mode<synchronous>, transform_indices = @transform_2, window_bounds = array<i64: 128, 128>}, {pipeline_mode = #tpu.pipeline_mode<synchronous>, transform_indices = @transform_3, window_bounds = array<i64: 1, 128>}, {pipeline_mode = #tpu.pipeline_mode<synchronous>, transform_indices = @transform_4, window_bounds = array<i64: 1, 128>}, {transform_indices = @transform_5, window_bounds = array<i64: 1, 56, 128>}]} {
    %c0_i32 = arith.constant 0 : i32
    %0 = arith.cmpi eq, %arg1, %c0_i32 : i32
    %1 = arith.extui %0 : i1 to i32
    %c0_i32_0 = arith.constant 0 : i32
    %2 = arith.cmpi ne, %1, %c0_i32_0 : i32
    scf.if %2 {
      %cst_11 = arith.constant 0.000000e+00 : f32
      %13 = vector.broadcast %cst_11 : f32 to vector<56x128xf32>
      %c0_12 = arith.constant 0 : index
      %c0_13 = arith.constant 0 : index
      %14 = vector.load %arg8[%c0_12, %c0_13] : memref<56x128xf32, #tpu.memory_space<vmem>>, vector<56x128xf32>
      tpu.vector_store %arg8[%c0_12, %c0_13], %13 {strides = array<i32>} : memref<56x128xf32, #tpu.memory_space<vmem>>, vector<56x128xf32>,
    } else {
    }
    %c0 = arith.constant 0 : index
    %c0_1 = arith.constant 0 : index
    %3 = vector.load %arg8[%c0, %c0_1] : memref<56x128xf32, #tpu.memory_space<vmem>>, vector<56x128xf32>
    %c0_2 = arith.constant 0 : index
    %c0_3 = arith.constant 0 : index
    %c0_4 = arith.constant 0 : index
    %4 = vector.load %arg2[%c0_2, %c0_3, %c0_4] : memref<1x56x640xbf16, #tpu.memory_space<vmem>>, vector<1x56x640xbf16>
    %5 = vector.shape_cast %4 : vector<1x56x640xbf16> to vector<56x640xbf16>
    %c0_5 = arith.constant 0 : index
    %c0_6 = arith.constant 0 : index
    %6 = vector.load %arg3[%c0_5, %c0_6] : memref<640x128xbf16, #tpu.memory_space<vmem>>, vector<640x128xbf16>
    %cst = arith.constant dense<0.000000e+00> : vector<56x128xf32>
    %7 = tpu.matmul %5, %6, %cst {dimension_numbers = #tpu.dot_dimension_numbers<[1], [0], [0], [1], [0, 0, 1, 1], [], []>} : vector<56x640xbf16>, vector<640x128xbf16>, vector<56x128xf32> -> vector<56x128xf32>
    %8 = arith.addf %3, %7 : vector<56x128xf32>
    %c0_7 = arith.constant 0 : index
    %c0_8 = arith.constant 0 : index
    %9 = vector.load %arg8[%c0_7, %c0_8] : memref<56x128xf32, #tpu.memory_space<vmem>>, vector<56x128xf32>
    tpu.vector_store %arg8[%c0_7, %c0_8], %8 {strides = array<i32>} : memref<56x128xf32, #tpu.memory_space<vmem>>, vector<56x128xf32>,
    %c0_i32_9 = arith.constant 0 : i32
    %10 = arith.cmpi eq, %arg1, %c0_i32_9 : i32
    %11 = arith.extui %10 : i1 to i32
    %c0_i32_10 = arith.constant 0 : i32
    %12 = arith.cmpi ne, %11, %c0_i32_10 : i32
    scf.if %12 {
      %c0_11 = arith.constant 0 : index
      %c0_12 = arith.constant 0 : index
      %13 = vector.load %arg8[%c0_11, %c0_12] : memref<56x128xf32, #tpu.memory_space<vmem>>, vector<56x128xf32>
      %cst_13 = arith.constant dense<0.000000e+00> : vector<128xf32>
      %14 = vector.multi_reduction <add>, %13, %cst_13 [0] : vector<56x128xf32> to vector<128xf32>
      %15 = vector.shape_cast %14 : vector<128xf32> to vector<1x128xf32>
      %16 = arith.mulf %13, %13 : vector<56x128xf32>
      %cst_14 = arith.constant dense<0.000000e+00> : vector<128xf32>
      %17 = vector.multi_reduction <add>, %16, %cst_14 [0] : vector<56x128xf32> to vector<128xf32>
      %18 = vector.shape_cast %17 : vector<128xf32> to vector<1x128xf32>
      %c0_15 = arith.constant 0 : index
      %c0_16 = arith.constant 0 : index
      %19 = vector.load %arg4[%c0_15, %c0_16] : memref<128x128xf32, #tpu.memory_space<vmem>>, vector<128x128xf32>
      %cst_17 = arith.constant dense<0.000000e+00> : vector<1x128xf32>
      %20 = tpu.matmul %15, %19, %cst_17 {dimension_numbers = #tpu.dot_dimension_numbers<[1], [0], [0], [1], [0, 0, 1, 1], [], []>} : vector<1x128xf32>, vector<128x128xf32>, vector<1x128xf32> -> vector<1x128xf32>
      %c0_18 = arith.constant 0 : index
      %c0_19 = arith.constant 0 : index
      %21 = vector.load %arg4[%c0_18, %c0_19] : memref<128x128xf32, #tpu.memory_space<vmem>>, vector<128x128xf32>
      %cst_20 = arith.constant dense<0.000000e+00> : vector<1x128xf32>
      %22 = tpu.matmul %18, %21, %cst_20 {dimension_numbers = #tpu.dot_dimension_numbers<[1], [0], [0], [1], [0, 0, 1, 1], [], []>} : vector<1x128xf32>, vector<128x128xf32>, vector<1x128xf32> -> vector<1x128xf32>
      %cst_21 = arith.constant 0.00170068024 : f32
      %23 = vector.broadcast %cst_21 : f32 to vector<1x128xf32>
      %24 = arith.mulf %20, %23 : vector<1x128xf32>
      %cst_22 = arith.constant 0.00170068024 : f32
      %25 = vector.broadcast %cst_22 : f32 to vector<1x128xf32>
      %26 = arith.mulf %22, %25 : vector<1x128xf32>
      %27 = arith.mulf %24, %24 : vector<1x128xf32>
      %28 = arith.subf %26, %27 : vector<1x128xf32>
      %cst_23 = arith.constant 0.000000e+00 : f32
      %29 = vector.broadcast %cst_23 : f32 to vector<1x128xf32>
      %30 = arith.maximumf %28, %29 : vector<1x128xf32>
      %cst_24 = arith.constant 9.99999974E-6 : f32
      %31 = vector.broadcast %cst_24 : f32 to vector<1x128xf32>
      %32 = arith.addf %30, %31 : vector<1x128xf32>
      %33 = math.rsqrt %32 : vector<1x128xf32>
      %c0_25 = arith.constant 0 : index
      %c0_26 = arith.constant 0 : index
      %34 = vector.load %arg5[%c0_25, %c0_26] : memref<1x128xf32, #tpu.memory_space<vmem>>, vector<1x128xf32>
      %35 = arith.mulf %33, %34 : vector<1x128xf32>
      %c0_27 = arith.constant 0 : index
      %c0_28 = arith.constant 0 : index
      %36 = vector.load %arg6[%c0_27, %c0_28] : memref<1x128xf32, #tpu.memory_space<vmem>>, vector<1x128xf32>
      %37 = arith.mulf %24, %35 : vector<1x128xf32>
      %38 = arith.subf %36, %37 : vector<1x128xf32>
      %39 = vector.broadcast %35 : vector<1x128xf32> to vector<56x128xf32>
      %40 = arith.mulf %13, %39 : vector<56x128xf32>
      %41 = vector.broadcast %38 : vector<1x128xf32> to vector<56x128xf32>
      %42 = arith.addf %40, %41 : vector<56x128xf32>
      %cst_29 = arith.constant 0.000000e+00 : f32
      %43 = vector.broadcast %cst_29 : f32 to vector<56x128xf32>
      %44 = arith.maximumf %42, %43 : vector<56x128xf32>
      %c0_30 = arith.constant 0 : index
      %c0_31 = arith.constant 0 : index
      %c0_32 = arith.constant 0 : index
      %45 = vector.load %arg7[%c0_30, %c0_31, %c0_32] : memref<1x56x128xf32, #tpu.memory_space<vmem>>, vector<1x56x128xf32>
      %46 = vector.shape_cast %45 : vector<1x56x128xf32> to vector<56x128xf32>
      %47 = vector.shape_cast %44 : vector<56x128xf32> to vector<1x56x128xf32>
      tpu.vector_store %arg7[%c0_30, %c0_31, %c0_32], %47 {strides = array<i32>} : memref<1x56x128xf32, #tpu.memory_space<vmem>>, vector<1x56x128xf32>,
    } else {
    }
    return
  }
  func.func @transform_0(%arg0: i32, %arg1: i32) -> (i32, i32, i32) {
    %c0_i32 = arith.constant 0 : i32
    %c0_i32_0 = arith.constant 0 : i32
    return %arg0, %c0_i32, %arg1 : i32, i32, i32
  }
  func.func @transform_1(%arg0: i32, %arg1: i32) -> (i32, i32) {
    %c0_i32 = arith.constant 0 : i32
    %c0_i32_0 = arith.constant 0 : i32
    return %arg1, %c0_i32 : i32, i32
  }
  func.func @transform_2(%arg0: i32, %arg1: i32) -> (i32, i32) {
    %c0_i32 = arith.constant 0 : i32
    %c0_i32_0 = arith.constant 0 : i32
    %c0_i32_1 = arith.constant 0 : i32
    return %c0_i32, %c0_i32_0 : i32, i32
  }
  func.func @transform_3(%arg0: i32, %arg1: i32) -> (i32, i32) {
    %c0_i32 = arith.constant 0 : i32
    %c0_i32_0 = arith.constant 0 : i32
    %c0_i32_1 = arith.constant 0 : i32
    return %c0_i32, %c0_i32_0 : i32, i32
  }
  func.func @transform_4(%arg0: i32, %arg1: i32) -> (i32, i32) {
    %c0_i32 = arith.constant 0 : i32
    %c0_i32_0 = arith.constant 0 : i32
    %c0_i32_1 = arith.constant 0 : i32
    return %c0_i32, %c0_i32_0 : i32, i32
  }
  func.func @transform_5(%arg0: i32, %arg1: i32) -> (i32, i32, i32) {
    %c0_i32 = arith.constant 0 : i32
    %c0_i32_0 = arith.constant 0 : i32
    %c0_i32_1 = arith.constant 0 : i32
    return %arg0, %c0_i32, %c0_i32_0 : i32, i32, i32
  }
}

module attributes {stable_mosaic.version = 11 : i64} {
  func.func @_conv_gn_relu_kernel(%arg0: i32, %arg1: i32, %arg2: memref<1x56x256xbf16, #tpu.memory_space<vmem>>, %arg3: memref<256x128xbf16, #tpu.memory_space<vmem>>, %arg4: memref<128x128xf32, #tpu.memory_space<vmem>>, %arg5: memref<1x128xf32, #tpu.memory_space<vmem>>, %arg6: memref<1x128xf32, #tpu.memory_space<vmem>>, %arg7: memref<1x56x128xf32, #tpu.memory_space<vmem>>, %arg8: memref<56x128xf32, #tpu.memory_space<vmem>>) attributes {dimension_semantics = [#tpu.dimension_semantics<parallel>, #tpu.dimension_semantics<arbitrary>], iteration_bounds = array<i64: 2, 1>, scalar_prefetch = 0 : i64, scratch_operands = 1 : i64, tpu.core_type = #tpu.core_type<tc>, window_params = [{transform_indices = @transform_0, window_bounds = array<i64: 1, 56, 256>}, {transform_indices = @transform_1, window_bounds = array<i64: 256, 128>}, {pipeline_mode = #tpu.pipeline_mode<synchronous>, transform_indices = @transform_2, window_bounds = array<i64: 128, 128>}, {pipeline_mode = #tpu.pipeline_mode<synchronous>, transform_indices = @transform_3, window_bounds = array<i64: 1, 128>}, {pipeline_mode = #tpu.pipeline_mode<synchronous>, transform_indices = @transform_4, window_bounds = array<i64: 1, 128>}, {transform_indices = @transform_5, window_bounds = array<i64: 1, 56, 128>}]} {
    %c0_i32 = arith.constant 0 : i32
    %0 = arith.cmpi eq, %arg1, %c0_i32 : i32
    %1 = arith.extui %0 : i1 to i32
    %c0_i32_0 = arith.constant 0 : i32
    %2 = arith.cmpi ne, %1, %c0_i32_0 : i32
    scf.if %2 {
      %cst_11 = arith.constant 0.000000e+00 : f32
      %13 = vector.broadcast %cst_11 : f32 to vector<56x128xf32>
      %c0_12 = arith.constant 0 : index
      %c0_13 = arith.constant 0 : index
      %14 = vector.load %arg8[%c0_12, %c0_13] : memref<56x128xf32, #tpu.memory_space<vmem>>, vector<56x128xf32>
      tpu.vector_store %arg8[%c0_12, %c0_13], %13 {strides = array<i32>} : memref<56x128xf32, #tpu.memory_space<vmem>>, vector<56x128xf32>,
    } else {
    }
    %c0 = arith.constant 0 : index
    %c0_1 = arith.constant 0 : index
    %3 = vector.load %arg8[%c0, %c0_1] : memref<56x128xf32, #tpu.memory_space<vmem>>, vector<56x128xf32>
    %c0_2 = arith.constant 0 : index
    %c0_3 = arith.constant 0 : index
    %c0_4 = arith.constant 0 : index
    %4 = vector.load %arg2[%c0_2, %c0_3, %c0_4] : memref<1x56x256xbf16, #tpu.memory_space<vmem>>, vector<1x56x256xbf16>
    %5 = vector.shape_cast %4 : vector<1x56x256xbf16> to vector<56x256xbf16>
    %c0_5 = arith.constant 0 : index
    %c0_6 = arith.constant 0 : index
    %6 = vector.load %arg3[%c0_5, %c0_6] : memref<256x128xbf16, #tpu.memory_space<vmem>>, vector<256x128xbf16>
    %cst = arith.constant dense<0.000000e+00> : vector<56x128xf32>
    %7 = tpu.matmul %5, %6, %cst {dimension_numbers = #tpu.dot_dimension_numbers<[1], [0], [0], [1], [0, 0, 1, 1], [], []>} : vector<56x256xbf16>, vector<256x128xbf16>, vector<56x128xf32> -> vector<56x128xf32>
    %8 = arith.addf %3, %7 : vector<56x128xf32>
    %c0_7 = arith.constant 0 : index
    %c0_8 = arith.constant 0 : index
    %9 = vector.load %arg8[%c0_7, %c0_8] : memref<56x128xf32, #tpu.memory_space<vmem>>, vector<56x128xf32>
    tpu.vector_store %arg8[%c0_7, %c0_8], %8 {strides = array<i32>} : memref<56x128xf32, #tpu.memory_space<vmem>>, vector<56x128xf32>,
    %c0_i32_9 = arith.constant 0 : i32
    %10 = arith.cmpi eq, %arg1, %c0_i32_9 : i32
    %11 = arith.extui %10 : i1 to i32
    %c0_i32_10 = arith.constant 0 : i32
    %12 = arith.cmpi ne, %11, %c0_i32_10 : i32
    scf.if %12 {
      %c0_11 = arith.constant 0 : index
      %c0_12 = arith.constant 0 : index
      %13 = vector.load %arg8[%c0_11, %c0_12] : memref<56x128xf32, #tpu.memory_space<vmem>>, vector<56x128xf32>
      %cst_13 = arith.constant dense<0.000000e+00> : vector<128xf32>
      %14 = vector.multi_reduction <add>, %13, %cst_13 [0] : vector<56x128xf32> to vector<128xf32>
      %15 = vector.shape_cast %14 : vector<128xf32> to vector<1x128xf32>
      %16 = arith.mulf %13, %13 : vector<56x128xf32>
      %cst_14 = arith.constant dense<0.000000e+00> : vector<128xf32>
      %17 = vector.multi_reduction <add>, %16, %cst_14 [0] : vector<56x128xf32> to vector<128xf32>
      %18 = vector.shape_cast %17 : vector<128xf32> to vector<1x128xf32>
      %c0_15 = arith.constant 0 : index
      %c0_16 = arith.constant 0 : index
      %19 = vector.load %arg4[%c0_15, %c0_16] : memref<128x128xf32, #tpu.memory_space<vmem>>, vector<128x128xf32>
      %cst_17 = arith.constant dense<0.000000e+00> : vector<1x128xf32>
      %20 = tpu.matmul %15, %19, %cst_17 {dimension_numbers = #tpu.dot_dimension_numbers<[1], [0], [0], [1], [0, 0, 1, 1], [], []>} : vector<1x128xf32>, vector<128x128xf32>, vector<1x128xf32> -> vector<1x128xf32>
      %c0_18 = arith.constant 0 : index
      %c0_19 = arith.constant 0 : index
      %21 = vector.load %arg4[%c0_18, %c0_19] : memref<128x128xf32, #tpu.memory_space<vmem>>, vector<128x128xf32>
      %cst_20 = arith.constant dense<0.000000e+00> : vector<1x128xf32>
      %22 = tpu.matmul %18, %21, %cst_20 {dimension_numbers = #tpu.dot_dimension_numbers<[1], [0], [0], [1], [0, 0, 1, 1], [], []>} : vector<1x128xf32>, vector<128x128xf32>, vector<1x128xf32> -> vector<1x128xf32>
      %cst_21 = arith.constant 0.00255102036 : f32
      %23 = vector.broadcast %cst_21 : f32 to vector<1x128xf32>
      %24 = arith.mulf %20, %23 : vector<1x128xf32>
      %cst_22 = arith.constant 0.00255102036 : f32
      %25 = vector.broadcast %cst_22 : f32 to vector<1x128xf32>
      %26 = arith.mulf %22, %25 : vector<1x128xf32>
      %27 = arith.mulf %24, %24 : vector<1x128xf32>
      %28 = arith.subf %26, %27 : vector<1x128xf32>
      %cst_23 = arith.constant 0.000000e+00 : f32
      %29 = vector.broadcast %cst_23 : f32 to vector<1x128xf32>
      %30 = arith.maximumf %28, %29 : vector<1x128xf32>
      %cst_24 = arith.constant 9.99999974E-6 : f32
      %31 = vector.broadcast %cst_24 : f32 to vector<1x128xf32>
      %32 = arith.addf %30, %31 : vector<1x128xf32>
      %33 = math.rsqrt %32 : vector<1x128xf32>
      %c0_25 = arith.constant 0 : index
      %c0_26 = arith.constant 0 : index
      %34 = vector.load %arg5[%c0_25, %c0_26] : memref<1x128xf32, #tpu.memory_space<vmem>>, vector<1x128xf32>
      %35 = arith.mulf %33, %34 : vector<1x128xf32>
      %c0_27 = arith.constant 0 : index
      %c0_28 = arith.constant 0 : index
      %36 = vector.load %arg6[%c0_27, %c0_28] : memref<1x128xf32, #tpu.memory_space<vmem>>, vector<1x128xf32>
      %37 = arith.mulf %24, %35 : vector<1x128xf32>
      %38 = arith.subf %36, %37 : vector<1x128xf32>
      %39 = vector.broadcast %35 : vector<1x128xf32> to vector<56x128xf32>
      %40 = arith.mulf %13, %39 : vector<56x128xf32>
      %41 = vector.broadcast %38 : vector<1x128xf32> to vector<56x128xf32>
      %42 = arith.addf %40, %41 : vector<56x128xf32>
      %cst_29 = arith.constant 0.000000e+00 : f32
      %43 = vector.broadcast %cst_29 : f32 to vector<56x128xf32>
      %44 = arith.maximumf %42, %43 : vector<56x128xf32>
      %c0_30 = arith.constant 0 : index
      %c0_31 = arith.constant 0 : index
      %c0_32 = arith.constant 0 : index
      %45 = vector.load %arg7[%c0_30, %c0_31, %c0_32] : memref<1x56x128xf32, #tpu.memory_space<vmem>>, vector<1x56x128xf32>
      %46 = vector.shape_cast %45 : vector<1x56x128xf32> to vector<56x128xf32>
      %47 = vector.shape_cast %44 : vector<56x128xf32> to vector<1x56x128xf32>
      tpu.vector_store %arg7[%c0_30, %c0_31, %c0_32], %47 {strides = array<i32>} : memref<1x56x128xf32, #tpu.memory_space<vmem>>, vector<1x56x128xf32>,
    } else {
    }
    return
  }
  func.func @transform_0(%arg0: i32, %arg1: i32) -> (i32, i32, i32) {
    %c0_i32 = arith.constant 0 : i32
    %c0_i32_0 = arith.constant 0 : i32
    return %arg0, %c0_i32, %arg1 : i32, i32, i32
  }
  func.func @transform_1(%arg0: i32, %arg1: i32) -> (i32, i32) {
    %c0_i32 = arith.constant 0 : i32
    %c0_i32_0 = arith.constant 0 : i32
    return %arg1, %c0_i32 : i32, i32
  }
  func.func @transform_2(%arg0: i32, %arg1: i32) -> (i32, i32) {
    %c0_i32 = arith.constant 0 : i32
    %c0_i32_0 = arith.constant 0 : i32
    %c0_i32_1 = arith.constant 0 : i32
    return %c0_i32, %c0_i32_0 : i32, i32
  }
  func.func @transform_3(%arg0: i32, %arg1: i32) -> (i32, i32) {
    %c0_i32 = arith.constant 0 : i32
    %c0_i32_0 = arith.constant 0 : i32
    %c0_i32_1 = arith.constant 0 : i32
    return %c0_i32, %c0_i32_0 : i32, i32
  }
  func.func @transform_4(%arg0: i32, %arg1: i32) -> (i32, i32) {
    %c0_i32 = arith.constant 0 : i32
    %c0_i32_0 = arith.constant 0 : i32
    %c0_i32_1 = arith.constant 0 : i32
    return %c0_i32, %c0_i32_0 : i32, i32
  }
  func.func @transform_5(%arg0: i32, %arg1: i32) -> (i32, i32, i32) {
    %c0_i32 = arith.constant 0 : i32
    %c0_i32_0 = arith.constant 0 : i32
    %c0_i32_1 = arith.constant 0 : i32
    return %arg0, %c0_i32, %c0_i32_0 : i32, i32, i32
  }
}

module attributes {stable_mosaic.version = 11 : i64} {
  func.func @_conv_gn_relu_kernel(%arg0: i32, %arg1: i32, %arg2: memref<1x32x640xbf16, #tpu.memory_space<vmem>>, %arg3: memref<640x128xbf16, #tpu.memory_space<vmem>>, %arg4: memref<128x128xf32, #tpu.memory_space<vmem>>, %arg5: memref<1x128xf32, #tpu.memory_space<vmem>>, %arg6: memref<1x128xf32, #tpu.memory_space<vmem>>, %arg7: memref<1x32x128xf32, #tpu.memory_space<vmem>>, %arg8: memref<32x128xf32, #tpu.memory_space<vmem>>) attributes {dimension_semantics = [#tpu.dimension_semantics<parallel>, #tpu.dimension_semantics<arbitrary>], iteration_bounds = array<i64: 2, 1>, scalar_prefetch = 0 : i64, scratch_operands = 1 : i64, tpu.core_type = #tpu.core_type<tc>, window_params = [{transform_indices = @transform_0, window_bounds = array<i64: 1, 32, 640>}, {transform_indices = @transform_1, window_bounds = array<i64: 640, 128>}, {pipeline_mode = #tpu.pipeline_mode<synchronous>, transform_indices = @transform_2, window_bounds = array<i64: 128, 128>}, {pipeline_mode = #tpu.pipeline_mode<synchronous>, transform_indices = @transform_3, window_bounds = array<i64: 1, 128>}, {pipeline_mode = #tpu.pipeline_mode<synchronous>, transform_indices = @transform_4, window_bounds = array<i64: 1, 128>}, {transform_indices = @transform_5, window_bounds = array<i64: 1, 32, 128>}]} {
    %c0_i32 = arith.constant 0 : i32
    %0 = arith.cmpi eq, %arg1, %c0_i32 : i32
    %1 = arith.extui %0 : i1 to i32
    %c0_i32_0 = arith.constant 0 : i32
    %2 = arith.cmpi ne, %1, %c0_i32_0 : i32
    scf.if %2 {
      %cst_11 = arith.constant 0.000000e+00 : f32
      %13 = vector.broadcast %cst_11 : f32 to vector<32x128xf32>
      %c0_12 = arith.constant 0 : index
      %c0_13 = arith.constant 0 : index
      %14 = vector.load %arg8[%c0_12, %c0_13] : memref<32x128xf32, #tpu.memory_space<vmem>>, vector<32x128xf32>
      tpu.vector_store %arg8[%c0_12, %c0_13], %13 {strides = array<i32>} : memref<32x128xf32, #tpu.memory_space<vmem>>, vector<32x128xf32>,
    } else {
    }
    %c0 = arith.constant 0 : index
    %c0_1 = arith.constant 0 : index
    %3 = vector.load %arg8[%c0, %c0_1] : memref<32x128xf32, #tpu.memory_space<vmem>>, vector<32x128xf32>
    %c0_2 = arith.constant 0 : index
    %c0_3 = arith.constant 0 : index
    %c0_4 = arith.constant 0 : index
    %4 = vector.load %arg2[%c0_2, %c0_3, %c0_4] : memref<1x32x640xbf16, #tpu.memory_space<vmem>>, vector<1x32x640xbf16>
    %5 = vector.shape_cast %4 : vector<1x32x640xbf16> to vector<32x640xbf16>
    %c0_5 = arith.constant 0 : index
    %c0_6 = arith.constant 0 : index
    %6 = vector.load %arg3[%c0_5, %c0_6] : memref<640x128xbf16, #tpu.memory_space<vmem>>, vector<640x128xbf16>
    %cst = arith.constant dense<0.000000e+00> : vector<32x128xf32>
    %7 = tpu.matmul %5, %6, %cst {dimension_numbers = #tpu.dot_dimension_numbers<[1], [0], [0], [1], [0, 0, 1, 1], [], []>} : vector<32x640xbf16>, vector<640x128xbf16>, vector<32x128xf32> -> vector<32x128xf32>
    %8 = arith.addf %3, %7 : vector<32x128xf32>
    %c0_7 = arith.constant 0 : index
    %c0_8 = arith.constant 0 : index
    %9 = vector.load %arg8[%c0_7, %c0_8] : memref<32x128xf32, #tpu.memory_space<vmem>>, vector<32x128xf32>
    tpu.vector_store %arg8[%c0_7, %c0_8], %8 {strides = array<i32>} : memref<32x128xf32, #tpu.memory_space<vmem>>, vector<32x128xf32>,
    %c0_i32_9 = arith.constant 0 : i32
    %10 = arith.cmpi eq, %arg1, %c0_i32_9 : i32
    %11 = arith.extui %10 : i1 to i32
    %c0_i32_10 = arith.constant 0 : i32
    %12 = arith.cmpi ne, %11, %c0_i32_10 : i32
    scf.if %12 {
      %c0_11 = arith.constant 0 : index
      %c0_12 = arith.constant 0 : index
      %13 = vector.load %arg8[%c0_11, %c0_12] : memref<32x128xf32, #tpu.memory_space<vmem>>, vector<32x128xf32>
      %cst_13 = arith.constant dense<0.000000e+00> : vector<128xf32>
      %14 = vector.multi_reduction <add>, %13, %cst_13 [0] : vector<32x128xf32> to vector<128xf32>
      %15 = vector.shape_cast %14 : vector<128xf32> to vector<1x128xf32>
      %16 = arith.mulf %13, %13 : vector<32x128xf32>
      %cst_14 = arith.constant dense<0.000000e+00> : vector<128xf32>
      %17 = vector.multi_reduction <add>, %16, %cst_14 [0] : vector<32x128xf32> to vector<128xf32>
      %18 = vector.shape_cast %17 : vector<128xf32> to vector<1x128xf32>
      %c0_15 = arith.constant 0 : index
      %c0_16 = arith.constant 0 : index
      %19 = vector.load %arg4[%c0_15, %c0_16] : memref<128x128xf32, #tpu.memory_space<vmem>>, vector<128x128xf32>
      %cst_17 = arith.constant dense<0.000000e+00> : vector<1x128xf32>
      %20 = tpu.matmul %15, %19, %cst_17 {dimension_numbers = #tpu.dot_dimension_numbers<[1], [0], [0], [1], [0, 0, 1, 1], [], []>} : vector<1x128xf32>, vector<128x128xf32>, vector<1x128xf32> -> vector<1x128xf32>
      %c0_18 = arith.constant 0 : index
      %c0_19 = arith.constant 0 : index
      %21 = vector.load %arg4[%c0_18, %c0_19] : memref<128x128xf32, #tpu.memory_space<vmem>>, vector<128x128xf32>
      %cst_20 = arith.constant dense<0.000000e+00> : vector<1x128xf32>
      %22 = tpu.matmul %18, %21, %cst_20 {dimension_numbers = #tpu.dot_dimension_numbers<[1], [0], [0], [1], [0, 0, 1, 1], [], []>} : vector<1x128xf32>, vector<128x128xf32>, vector<1x128xf32> -> vector<1x128xf32>
      %cst_21 = arith.constant 0.00333333341 : f32
      %23 = vector.broadcast %cst_21 : f32 to vector<1x128xf32>
      %24 = arith.mulf %20, %23 : vector<1x128xf32>
      %cst_22 = arith.constant 0.00333333341 : f32
      %25 = vector.broadcast %cst_22 : f32 to vector<1x128xf32>
      %26 = arith.mulf %22, %25 : vector<1x128xf32>
      %27 = arith.mulf %24, %24 : vector<1x128xf32>
      %28 = arith.subf %26, %27 : vector<1x128xf32>
      %cst_23 = arith.constant 0.000000e+00 : f32
      %29 = vector.broadcast %cst_23 : f32 to vector<1x128xf32>
      %30 = arith.maximumf %28, %29 : vector<1x128xf32>
      %cst_24 = arith.constant 9.99999974E-6 : f32
      %31 = vector.broadcast %cst_24 : f32 to vector<1x128xf32>
      %32 = arith.addf %30, %31 : vector<1x128xf32>
      %33 = math.rsqrt %32 : vector<1x128xf32>
      %c0_25 = arith.constant 0 : index
      %c0_26 = arith.constant 0 : index
      %34 = vector.load %arg5[%c0_25, %c0_26] : memref<1x128xf32, #tpu.memory_space<vmem>>, vector<1x128xf32>
      %35 = arith.mulf %33, %34 : vector<1x128xf32>
      %c0_27 = arith.constant 0 : index
      %c0_28 = arith.constant 0 : index
      %36 = vector.load %arg6[%c0_27, %c0_28] : memref<1x128xf32, #tpu.memory_space<vmem>>, vector<1x128xf32>
      %37 = arith.mulf %24, %35 : vector<1x128xf32>
      %38 = arith.subf %36, %37 : vector<1x128xf32>
      %39 = vector.broadcast %35 : vector<1x128xf32> to vector<32x128xf32>
      %40 = arith.mulf %13, %39 : vector<32x128xf32>
      %41 = vector.broadcast %38 : vector<1x128xf32> to vector<32x128xf32>
      %42 = arith.addf %40, %41 : vector<32x128xf32>
      %cst_29 = arith.constant 0.000000e+00 : f32
      %43 = vector.broadcast %cst_29 : f32 to vector<32x128xf32>
      %44 = arith.maximumf %42, %43 : vector<32x128xf32>
      %c0_30 = arith.constant 0 : index
      %c0_31 = arith.constant 0 : index
      %c0_32 = arith.constant 0 : index
      %45 = vector.load %arg7[%c0_30, %c0_31, %c0_32] : memref<1x32x128xf32, #tpu.memory_space<vmem>>, vector<1x32x128xf32>
      %46 = vector.shape_cast %45 : vector<1x32x128xf32> to vector<32x128xf32>
      %47 = vector.shape_cast %44 : vector<32x128xf32> to vector<1x32x128xf32>
      tpu.vector_store %arg7[%c0_30, %c0_31, %c0_32], %47 {strides = array<i32>} : memref<1x32x128xf32, #tpu.memory_space<vmem>>, vector<1x32x128xf32>,
    } else {
    }
    return
  }
  func.func @transform_0(%arg0: i32, %arg1: i32) -> (i32, i32, i32) {
    %c0_i32 = arith.constant 0 : i32
    %c0_i32_0 = arith.constant 0 : i32
    return %arg0, %c0_i32, %arg1 : i32, i32, i32
  }
  func.func @transform_1(%arg0: i32, %arg1: i32) -> (i32, i32) {
    %c0_i32 = arith.constant 0 : i32
    %c0_i32_0 = arith.constant 0 : i32
    return %arg1, %c0_i32 : i32, i32
  }
  func.func @transform_2(%arg0: i32, %arg1: i32) -> (i32, i32) {
    %c0_i32 = arith.constant 0 : i32
    %c0_i32_0 = arith.constant 0 : i32
    %c0_i32_1 = arith.constant 0 : i32
    return %c0_i32, %c0_i32_0 : i32, i32
  }
  func.func @transform_3(%arg0: i32, %arg1: i32) -> (i32, i32) {
    %c0_i32 = arith.constant 0 : i32
    %c0_i32_0 = arith.constant 0 : i32
    %c0_i32_1 = arith.constant 0 : i32
    return %c0_i32, %c0_i32_0 : i32, i32
  }
  func.func @transform_4(%arg0: i32, %arg1: i32) -> (i32, i32) {
    %c0_i32 = arith.constant 0 : i32
    %c0_i32_0 = arith.constant 0 : i32
    %c0_i32_1 = arith.constant 0 : i32
    return %c0_i32, %c0_i32_0 : i32, i32
  }
  func.func @transform_5(%arg0: i32, %arg1: i32) -> (i32, i32, i32) {
    %c0_i32 = arith.constant 0 : i32
    %c0_i32_0 = arith.constant 0 : i32
    %c0_i32_1 = arith.constant 0 : i32
    return %arg0, %c0_i32, %c0_i32_0 : i32, i32, i32
  }
}

module attributes {stable_mosaic.version = 11 : i64} {
  func.func @_conv_gn_relu_kernel(%arg0: i32, %arg1: i32, %arg2: memref<1x56x512xbf16, #tpu.memory_space<vmem>>, %arg3: memref<512x128xbf16, #tpu.memory_space<vmem>>, %arg4: memref<128x128xf32, #tpu.memory_space<vmem>>, %arg5: memref<1x128xf32, #tpu.memory_space<vmem>>, %arg6: memref<1x128xf32, #tpu.memory_space<vmem>>, %arg7: memref<1x56x128xf32, #tpu.memory_space<vmem>>, %arg8: memref<56x128xf32, #tpu.memory_space<vmem>>) attributes {dimension_semantics = [#tpu.dimension_semantics<parallel>, #tpu.dimension_semantics<arbitrary>], iteration_bounds = array<i64: 2, 1>, scalar_prefetch = 0 : i64, scratch_operands = 1 : i64, tpu.core_type = #tpu.core_type<tc>, window_params = [{transform_indices = @transform_0, window_bounds = array<i64: 1, 56, 512>}, {transform_indices = @transform_1, window_bounds = array<i64: 512, 128>}, {pipeline_mode = #tpu.pipeline_mode<synchronous>, transform_indices = @transform_2, window_bounds = array<i64: 128, 128>}, {pipeline_mode = #tpu.pipeline_mode<synchronous>, transform_indices = @transform_3, window_bounds = array<i64: 1, 128>}, {pipeline_mode = #tpu.pipeline_mode<synchronous>, transform_indices = @transform_4, window_bounds = array<i64: 1, 128>}, {transform_indices = @transform_5, window_bounds = array<i64: 1, 56, 128>}]} {
    %c0_i32 = arith.constant 0 : i32
    %0 = arith.cmpi eq, %arg1, %c0_i32 : i32
    %1 = arith.extui %0 : i1 to i32
    %c0_i32_0 = arith.constant 0 : i32
    %2 = arith.cmpi ne, %1, %c0_i32_0 : i32
    scf.if %2 {
      %cst_11 = arith.constant 0.000000e+00 : f32
      %13 = vector.broadcast %cst_11 : f32 to vector<56x128xf32>
      %c0_12 = arith.constant 0 : index
      %c0_13 = arith.constant 0 : index
      %14 = vector.load %arg8[%c0_12, %c0_13] : memref<56x128xf32, #tpu.memory_space<vmem>>, vector<56x128xf32>
      tpu.vector_store %arg8[%c0_12, %c0_13], %13 {strides = array<i32>} : memref<56x128xf32, #tpu.memory_space<vmem>>, vector<56x128xf32>,
    } else {
    }
    %c0 = arith.constant 0 : index
    %c0_1 = arith.constant 0 : index
    %3 = vector.load %arg8[%c0, %c0_1] : memref<56x128xf32, #tpu.memory_space<vmem>>, vector<56x128xf32>
    %c0_2 = arith.constant 0 : index
    %c0_3 = arith.constant 0 : index
    %c0_4 = arith.constant 0 : index
    %4 = vector.load %arg2[%c0_2, %c0_3, %c0_4] : memref<1x56x512xbf16, #tpu.memory_space<vmem>>, vector<1x56x512xbf16>
    %5 = vector.shape_cast %4 : vector<1x56x512xbf16> to vector<56x512xbf16>
    %c0_5 = arith.constant 0 : index
    %c0_6 = arith.constant 0 : index
    %6 = vector.load %arg3[%c0_5, %c0_6] : memref<512x128xbf16, #tpu.memory_space<vmem>>, vector<512x128xbf16>
    %cst = arith.constant dense<0.000000e+00> : vector<56x128xf32>
    %7 = tpu.matmul %5, %6, %cst {dimension_numbers = #tpu.dot_dimension_numbers<[1], [0], [0], [1], [0, 0, 1, 1], [], []>} : vector<56x512xbf16>, vector<512x128xbf16>, vector<56x128xf32> -> vector<56x128xf32>
    %8 = arith.addf %3, %7 : vector<56x128xf32>
    %c0_7 = arith.constant 0 : index
    %c0_8 = arith.constant 0 : index
    %9 = vector.load %arg8[%c0_7, %c0_8] : memref<56x128xf32, #tpu.memory_space<vmem>>, vector<56x128xf32>
    tpu.vector_store %arg8[%c0_7, %c0_8], %8 {strides = array<i32>} : memref<56x128xf32, #tpu.memory_space<vmem>>, vector<56x128xf32>,
    %c0_i32_9 = arith.constant 0 : i32
    %10 = arith.cmpi eq, %arg1, %c0_i32_9 : i32
    %11 = arith.extui %10 : i1 to i32
    %c0_i32_10 = arith.constant 0 : i32
    %12 = arith.cmpi ne, %11, %c0_i32_10 : i32
    scf.if %12 {
      %c0_11 = arith.constant 0 : index
      %c0_12 = arith.constant 0 : index
      %13 = vector.load %arg8[%c0_11, %c0_12] : memref<56x128xf32, #tpu.memory_space<vmem>>, vector<56x128xf32>
      %cst_13 = arith.constant dense<0.000000e+00> : vector<128xf32>
      %14 = vector.multi_reduction <add>, %13, %cst_13 [0] : vector<56x128xf32> to vector<128xf32>
      %15 = vector.shape_cast %14 : vector<128xf32> to vector<1x128xf32>
      %16 = arith.mulf %13, %13 : vector<56x128xf32>
      %cst_14 = arith.constant dense<0.000000e+00> : vector<128xf32>
      %17 = vector.multi_reduction <add>, %16, %cst_14 [0] : vector<56x128xf32> to vector<128xf32>
      %18 = vector.shape_cast %17 : vector<128xf32> to vector<1x128xf32>
      %c0_15 = arith.constant 0 : index
      %c0_16 = arith.constant 0 : index
      %19 = vector.load %arg4[%c0_15, %c0_16] : memref<128x128xf32, #tpu.memory_space<vmem>>, vector<128x128xf32>
      %cst_17 = arith.constant dense<0.000000e+00> : vector<1x128xf32>
      %20 = tpu.matmul %15, %19, %cst_17 {dimension_numbers = #tpu.dot_dimension_numbers<[1], [0], [0], [1], [0, 0, 1, 1], [], []>} : vector<1x128xf32>, vector<128x128xf32>, vector<1x128xf32> -> vector<1x128xf32>
      %c0_18 = arith.constant 0 : index
      %c0_19 = arith.constant 0 : index
      %21 = vector.load %arg4[%c0_18, %c0_19] : memref<128x128xf32, #tpu.memory_space<vmem>>, vector<128x128xf32>
      %cst_20 = arith.constant dense<0.000000e+00> : vector<1x128xf32>
      %22 = tpu.matmul %18, %21, %cst_20 {dimension_numbers = #tpu.dot_dimension_numbers<[1], [0], [0], [1], [0, 0, 1, 1], [], []>} : vector<1x128xf32>, vector<128x128xf32>, vector<1x128xf32> -> vector<1x128xf32>
      %cst_21 = arith.constant 0.00255102036 : f32
      %23 = vector.broadcast %cst_21 : f32 to vector<1x128xf32>
      %24 = arith.mulf %20, %23 : vector<1x128xf32>
      %cst_22 = arith.constant 0.00255102036 : f32
      %25 = vector.broadcast %cst_22 : f32 to vector<1x128xf32>
      %26 = arith.mulf %22, %25 : vector<1x128xf32>
      %27 = arith.mulf %24, %24 : vector<1x128xf32>
      %28 = arith.subf %26, %27 : vector<1x128xf32>
      %cst_23 = arith.constant 0.000000e+00 : f32
      %29 = vector.broadcast %cst_23 : f32 to vector<1x128xf32>
      %30 = arith.maximumf %28, %29 : vector<1x128xf32>
      %cst_24 = arith.constant 9.99999974E-6 : f32
      %31 = vector.broadcast %cst_24 : f32 to vector<1x128xf32>
      %32 = arith.addf %30, %31 : vector<1x128xf32>
      %33 = math.rsqrt %32 : vector<1x128xf32>
      %c0_25 = arith.constant 0 : index
      %c0_26 = arith.constant 0 : index
      %34 = vector.load %arg5[%c0_25, %c0_26] : memref<1x128xf32, #tpu.memory_space<vmem>>, vector<1x128xf32>
      %35 = arith.mulf %33, %34 : vector<1x128xf32>
      %c0_27 = arith.constant 0 : index
      %c0_28 = arith.constant 0 : index
      %36 = vector.load %arg6[%c0_27, %c0_28] : memref<1x128xf32, #tpu.memory_space<vmem>>, vector<1x128xf32>
      %37 = arith.mulf %24, %35 : vector<1x128xf32>
      %38 = arith.subf %36, %37 : vector<1x128xf32>
      %39 = vector.broadcast %35 : vector<1x128xf32> to vector<56x128xf32>
      %40 = arith.mulf %13, %39 : vector<56x128xf32>
      %41 = vector.broadcast %38 : vector<1x128xf32> to vector<56x128xf32>
      %42 = arith.addf %40, %41 : vector<56x128xf32>
      %cst_29 = arith.constant 0.000000e+00 : f32
      %43 = vector.broadcast %cst_29 : f32 to vector<56x128xf32>
      %44 = arith.maximumf %42, %43 : vector<56x128xf32>
      %c0_30 = arith.constant 0 : index
      %c0_31 = arith.constant 0 : index
      %c0_32 = arith.constant 0 : index
      %45 = vector.load %arg7[%c0_30, %c0_31, %c0_32] : memref<1x56x128xf32, #tpu.memory_space<vmem>>, vector<1x56x128xf32>
      %46 = vector.shape_cast %45 : vector<1x56x128xf32> to vector<56x128xf32>
      %47 = vector.shape_cast %44 : vector<56x128xf32> to vector<1x56x128xf32>
      tpu.vector_store %arg7[%c0_30, %c0_31, %c0_32], %47 {strides = array<i32>} : memref<1x56x128xf32, #tpu.memory_space<vmem>>, vector<1x56x128xf32>,
    } else {
    }
    return
  }
  func.func @transform_0(%arg0: i32, %arg1: i32) -> (i32, i32, i32) {
    %c0_i32 = arith.constant 0 : i32
    %c0_i32_0 = arith.constant 0 : i32
    return %arg0, %c0_i32, %arg1 : i32, i32, i32
  }
  func.func @transform_1(%arg0: i32, %arg1: i32) -> (i32, i32) {
    %c0_i32 = arith.constant 0 : i32
    %c0_i32_0 = arith.constant 0 : i32
    return %arg1, %c0_i32 : i32, i32
  }
  func.func @transform_2(%arg0: i32, %arg1: i32) -> (i32, i32) {
    %c0_i32 = arith.constant 0 : i32
    %c0_i32_0 = arith.constant 0 : i32
    %c0_i32_1 = arith.constant 0 : i32
    return %c0_i32, %c0_i32_0 : i32, i32
  }
  func.func @transform_3(%arg0: i32, %arg1: i32) -> (i32, i32) {
    %c0_i32 = arith.constant 0 : i32
    %c0_i32_0 = arith.constant 0 : i32
    %c0_i32_1 = arith.constant 0 : i32
    return %c0_i32, %c0_i32_0 : i32, i32
  }
  func.func @transform_4(%arg0: i32, %arg1: i32) -> (i32, i32) {
    %c0_i32 = arith.constant 0 : i32
    %c0_i32_0 = arith.constant 0 : i32
    %c0_i32_1 = arith.constant 0 : i32
    return %c0_i32, %c0_i32_0 : i32, i32
  }
  func.func @transform_5(%arg0: i32, %arg1: i32) -> (i32, i32, i32) {
    %c0_i32 = arith.constant 0 : i32
    %c0_i32_0 = arith.constant 0 : i32
    %c0_i32_1 = arith.constant 0 : i32
    return %arg0, %c0_i32, %c0_i32_0 : i32, i32, i32
  }
}

module attributes {stable_mosaic.version = 11 : i64} {
  func.func @_conv_gn_relu_kernel(%arg0: i32, %arg1: i32, %arg2: memref<1x8x896xbf16, #tpu.memory_space<vmem>>, %arg3: memref<896x256xbf16, #tpu.memory_space<vmem>>, %arg4: memref<256x256xf32, #tpu.memory_space<vmem>>, %arg5: memref<1x256xf32, #tpu.memory_space<vmem>>, %arg6: memref<1x256xf32, #tpu.memory_space<vmem>>, %arg7: memref<1x8x256xf32, #tpu.memory_space<vmem>>, %arg8: memref<8x256xf32, #tpu.memory_space<vmem>>) attributes {dimension_semantics = [#tpu.dimension_semantics<parallel>, #tpu.dimension_semantics<arbitrary>], iteration_bounds = array<i64: 2, 2>, scalar_prefetch = 0 : i64, scratch_operands = 1 : i64, tpu.core_type = #tpu.core_type<tc>, window_params = [{transform_indices = @transform_0, window_bounds = array<i64: 1, 8, 896>}, {transform_indices = @transform_1, window_bounds = array<i64: 896, 256>}, {pipeline_mode = #tpu.pipeline_mode<synchronous>, transform_indices = @transform_2, window_bounds = array<i64: 256, 256>}, {pipeline_mode = #tpu.pipeline_mode<synchronous>, transform_indices = @transform_3, window_bounds = array<i64: 1, 256>}, {pipeline_mode = #tpu.pipeline_mode<synchronous>, transform_indices = @transform_4, window_bounds = array<i64: 1, 256>}, {transform_indices = @transform_5, window_bounds = array<i64: 1, 8, 256>}]} {
    %c0_i32 = arith.constant 0 : i32
    %0 = arith.cmpi eq, %arg1, %c0_i32 : i32
    %1 = arith.extui %0 : i1 to i32
    %c0_i32_0 = arith.constant 0 : i32
    %2 = arith.cmpi ne, %1, %c0_i32_0 : i32
    scf.if %2 {
      %cst_10 = arith.constant 0.000000e+00 : f32
      %13 = vector.broadcast %cst_10 : f32 to vector<8x256xf32>
      %c0_11 = arith.constant 0 : index
      %c0_12 = arith.constant 0 : index
      %14 = vector.load %arg8[%c0_11, %c0_12] : memref<8x256xf32, #tpu.memory_space<vmem>>, vector<8x256xf32>
      tpu.vector_store %arg8[%c0_11, %c0_12], %13 {strides = array<i32>} : memref<8x256xf32, #tpu.memory_space<vmem>>, vector<8x256xf32>,
    } else {
    }
    %c0 = arith.constant 0 : index
    %c0_1 = arith.constant 0 : index
    %3 = vector.load %arg8[%c0, %c0_1] : memref<8x256xf32, #tpu.memory_space<vmem>>, vector<8x256xf32>
    %c0_2 = arith.constant 0 : index
    %c0_3 = arith.constant 0 : index
    %c0_4 = arith.constant 0 : index
    %4 = vector.load %arg2[%c0_2, %c0_3, %c0_4] : memref<1x8x896xbf16, #tpu.memory_space<vmem>>, vector<1x8x896xbf16>
    %5 = vector.shape_cast %4 : vector<1x8x896xbf16> to vector<8x896xbf16>
    %c0_5 = arith.constant 0 : index
    %c0_6 = arith.constant 0 : index
    %6 = vector.load %arg3[%c0_5, %c0_6] : memref<896x256xbf16, #tpu.memory_space<vmem>>, vector<896x256xbf16>
    %cst = arith.constant dense<0.000000e+00> : vector<8x256xf32>
    %7 = tpu.matmul %5, %6, %cst {dimension_numbers = #tpu.dot_dimension_numbers<[1], [0], [0], [1], [0, 0, 1, 1], [], []>} : vector<8x896xbf16>, vector<896x256xbf16>, vector<8x256xf32> -> vector<8x256xf32>
    %8 = arith.addf %3, %7 : vector<8x256xf32>
    %c0_7 = arith.constant 0 : index
    %c0_8 = arith.constant 0 : index
    %9 = vector.load %arg8[%c0_7, %c0_8] : memref<8x256xf32, #tpu.memory_space<vmem>>, vector<8x256xf32>
    tpu.vector_store %arg8[%c0_7, %c0_8], %8 {strides = array<i32>} : memref<8x256xf32, #tpu.memory_space<vmem>>, vector<8x256xf32>,
    %c1_i32 = arith.constant 1 : i32
    %10 = arith.cmpi eq, %arg1, %c1_i32 : i32
    %11 = arith.extui %10 : i1 to i32
    %c0_i32_9 = arith.constant 0 : i32
    %12 = arith.cmpi ne, %11, %c0_i32_9 : i32
    scf.if %12 {
      %c0_10 = arith.constant 0 : index
      %c0_11 = arith.constant 0 : index
      %13 = vector.load %arg8[%c0_10, %c0_11] : memref<8x256xf32, #tpu.memory_space<vmem>>, vector<8x256xf32>
      %cst_12 = arith.constant dense<0.000000e+00> : vector<256xf32>
      %14 = vector.multi_reduction <add>, %13, %cst_12 [0] : vector<8x256xf32> to vector<256xf32>
      %15 = vector.shape_cast %14 : vector<256xf32> to vector<1x256xf32>
      %16 = arith.mulf %13, %13 : vector<8x256xf32>
      %cst_13 = arith.constant dense<0.000000e+00> : vector<256xf32>
      %17 = vector.multi_reduction <add>, %16, %cst_13 [0] : vector<8x256xf32> to vector<256xf32>
      %18 = vector.shape_cast %17 : vector<256xf32> to vector<1x256xf32>
      %c0_14 = arith.constant 0 : index
      %c0_15 = arith.constant 0 : index
      %19 = vector.load %arg4[%c0_14, %c0_15] : memref<256x256xf32, #tpu.memory_space<vmem>>, vector<256x256xf32>
      %cst_16 = arith.constant dense<0.000000e+00> : vector<1x256xf32>
      %20 = tpu.matmul %15, %19, %cst_16 {dimension_numbers = #tpu.dot_dimension_numbers<[1], [0], [0], [1], [0, 0, 1, 1], [], []>} : vector<1x256xf32>, vector<256x256xf32>, vector<1x256xf32> -> vector<1x256xf32>
      %c0_17 = arith.constant 0 : index
      %c0_18 = arith.constant 0 : index
      %21 = vector.load %arg4[%c0_17, %c0_18] : memref<256x256xf32, #tpu.memory_space<vmem>>, vector<256x256xf32>
      %cst_19 = arith.constant dense<0.000000e+00> : vector<1x256xf32>
      %22 = tpu.matmul %18, %21, %cst_19 {dimension_numbers = #tpu.dot_dimension_numbers<[1], [0], [0], [1], [0, 0, 1, 1], [], []>} : vector<1x256xf32>, vector<256x256xf32>, vector<1x256xf32> -> vector<1x256xf32>
      %cst_20 = arith.constant 0.010416667 : f32
      %23 = vector.broadcast %cst_20 : f32 to vector<1x256xf32>
      %24 = arith.mulf %20, %23 : vector<1x256xf32>
      %cst_21 = arith.constant 0.010416667 : f32
      %25 = vector.broadcast %cst_21 : f32 to vector<1x256xf32>
      %26 = arith.mulf %22, %25 : vector<1x256xf32>
      %27 = arith.mulf %24, %24 : vector<1x256xf32>
      %28 = arith.subf %26, %27 : vector<1x256xf32>
      %cst_22 = arith.constant 0.000000e+00 : f32
      %29 = vector.broadcast %cst_22 : f32 to vector<1x256xf32>
      %30 = arith.maximumf %28, %29 : vector<1x256xf32>
      %cst_23 = arith.constant 9.99999974E-6 : f32
      %31 = vector.broadcast %cst_23 : f32 to vector<1x256xf32>
      %32 = arith.addf %30, %31 : vector<1x256xf32>
      %33 = math.rsqrt %32 : vector<1x256xf32>
      %c0_24 = arith.constant 0 : index
      %c0_25 = arith.constant 0 : index
      %34 = vector.load %arg5[%c0_24, %c0_25] : memref<1x256xf32, #tpu.memory_space<vmem>>, vector<1x256xf32>
      %35 = arith.mulf %33, %34 : vector<1x256xf32>
      %c0_26 = arith.constant 0 : index
      %c0_27 = arith.constant 0 : index
      %36 = vector.load %arg6[%c0_26, %c0_27] : memref<1x256xf32, #tpu.memory_space<vmem>>, vector<1x256xf32>
      %37 = arith.mulf %24, %35 : vector<1x256xf32>
      %38 = arith.subf %36, %37 : vector<1x256xf32>
      %39 = vector.broadcast %35 : vector<1x256xf32> to vector<8x256xf32>
      %40 = arith.mulf %13, %39 : vector<8x256xf32>
      %41 = vector.broadcast %38 : vector<1x256xf32> to vector<8x256xf32>
      %42 = arith.addf %40, %41 : vector<8x256xf32>
      %cst_28 = arith.constant 0.000000e+00 : f32
      %43 = vector.broadcast %cst_28 : f32 to vector<8x256xf32>
      %44 = arith.maximumf %42, %43 : vector<8x256xf32>
      %c0_29 = arith.constant 0 : index
      %c0_30 = arith.constant 0 : index
      %c0_31 = arith.constant 0 : index
      %45 = vector.load %arg7[%c0_29, %c0_30, %c0_31] : memref<1x8x256xf32, #tpu.memory_space<vmem>>, vector<1x8x256xf32>
      %46 = vector.shape_cast %45 : vector<1x8x256xf32> to vector<8x256xf32>
      %47 = vector.shape_cast %44 : vector<8x256xf32> to vector<1x8x256xf32>
      tpu.vector_store %arg7[%c0_29, %c0_30, %c0_31], %47 {strides = array<i32>} : memref<1x8x256xf32, #tpu.memory_space<vmem>>, vector<1x8x256xf32>,
    } else {
    }
    return
  }
  func.func @transform_0(%arg0: i32, %arg1: i32) -> (i32, i32, i32) {
    %c0_i32 = arith.constant 0 : i32
    %c0_i32_0 = arith.constant 0 : i32
    return %arg0, %c0_i32, %arg1 : i32, i32, i32
  }
  func.func @transform_1(%arg0: i32, %arg1: i32) -> (i32, i32) {
    %c0_i32 = arith.constant 0 : i32
    %c0_i32_0 = arith.constant 0 : i32
    return %arg1, %c0_i32 : i32, i32
  }
  func.func @transform_2(%arg0: i32, %arg1: i32) -> (i32, i32) {
    %c0_i32 = arith.constant 0 : i32
    %c0_i32_0 = arith.constant 0 : i32
    %c0_i32_1 = arith.constant 0 : i32
    return %c0_i32, %c0_i32_0 : i32, i32
  }
  func.func @transform_3(%arg0: i32, %arg1: i32) -> (i32, i32) {
    %c0_i32 = arith.constant 0 : i32
    %c0_i32_0 = arith.constant 0 : i32
    %c0_i32_1 = arith.constant 0 : i32
    return %c0_i32, %c0_i32_0 : i32, i32
  }
  func.func @transform_4(%arg0: i32, %arg1: i32) -> (i32, i32) {
    %c0_i32 = arith.constant 0 : i32
    %c0_i32_0 = arith.constant 0 : i32
    %c0_i32_1 = arith.constant 0 : i32
    return %c0_i32, %c0_i32_0 : i32, i32
  }
  func.func @transform_5(%arg0: i32, %arg1: i32) -> (i32, i32, i32) {
    %c0_i32 = arith.constant 0 : i32
    %c0_i32_0 = arith.constant 0 : i32
    %c0_i32_1 = arith.constant 0 : i32
    return %arg0, %c0_i32, %c0_i32_0 : i32, i32, i32
  }
}

</mosaic_0001>

<bundles_post_ra>
// kernel: inception_v4_stem.10
= control target key start
LH: loop header
LB: loop body
LE: loop exit
PB: predicated region body
PF: predicated region fallthrough
CT: control target
= control target key end

     0   :  { %s1459_s18 = smov 0   ;;  %s1461_s19 = smov 0   ;;  %s1938_s0 = inlined_call_operand.vmem [shape: bf16[2,296,128], index: 0, kind: input, shape index: {}]   ;;  %s1939_s1 = inlined_call_operand.vmem [shape: bf16[128,128], index: 1, kind: input, shape index: {}]   ;;  %s1940_s2 = inlined_call_operand.vmem [shape: f32[128,128], index: 2, kind: input, shape index: {}]   ;;  %s1941_s3 = inlined_call_operand.vmem [shape: f32[1,128], index: 3, kind: input, shape index: {}]   ;;  %s1942_s4 = inlined_call_operand.vmem [shape: f32[1,128], index: 4, kind: input, shape index: {}]   ;;  %s1943_s5 = inlined_call_operand.vmem [shape: f32[2,296,128], index: 5, kind: output, shape index: {}]  }
   0x1   :  { %s1463_s20 = smov 0  }
   0x2 LB: > { %s27_s21 = sadd.s32 1, %s1423_s19  ;;  %p1218_p0 = scmp.ge.s32.totalorder %s1427_s20, 1  ;;  %s1427_s20 = sphi %s1463_s20, %s15_s20   ;;  %s1423_s19 = sphi %s1461_s19, %s1945_s19   ;;  %s1419_s18 = sphi %s1459_s18, %s1944_s18  }
   0x3   : > { %p29_p1 = scmp.ge.s32.totalorder %s27_s21, 2  ;;  %p215_p2 = scmp.lt.s32.totalorder %s1427_s20, 3 }
   0x5   : > { %s1947_s21 = smov (%p29_p1, %s27_s21), 0  ;;  %p216_p3 = pnand %p1218_p0, %p215_p2 }
   0x6   : > { %p251_p4 = scmp.lt.s32.totalorder (!%p216_p3), %s1419_s18, 1 }
   0x7   : > { %219 = sbr.rel (%p216_p3) target bundleno = 519 (0x207), region = 40 }
   0xc   : > { %v1352_v0 = vld [vmem:[%s1939_s1 + $0x38] sm:$0xff]  ;;  %v1351_v1 = vld [vmem:[%s1939_s1 + $0x30] sm:$0xff]  ;;  %v1350_v2 = vld [vmem:[%s1939_s1 + $0x28] sm:$0xff]  ;;  %s1949_s18 = smov (!%p251_p4, %s1419_s18), 1 }
   0xd   : > { %561 = vmatpush.bf16.msra.mxu0 %v1352_v0  ;;  %1353 = vmatpush.bf16.msra.mxu1 %v1352_v0  ;;  %v1349_v3 = vld [vmem:[%s1939_s1 + $0x20] sm:$0xff]  ;;  %v1348_v4 = vld [vmem:[%s1939_s1 + $0x18] sm:$0xff]  ;;  %v1347_v5 = vld [vmem:[%s1939_s1 + $0x10] sm:$0xff]  ;;  %s1377_s11 = smul.u32 148, %s1949_s18 }
   0xe   : > { %1354 = vmatpush.bf16.msra.mxu2 %v1352_v0  ;;  %1355 = vmatpush.bf16.msra.mxu3 %v1352_v0  ;;  %v1346_v6 = vld [vmem:[%s1939_s1 + $0x8] sm:$0xff]  ;;  %v1345_v7 = vld [vmem:[%s1939_s1] sm:$0xff]  ;;  %v914_v40 = vld [vmem:[%s1940_s2 + $0x78] sm:$0xff] }
   0xf   : > { %s1511_s16 = scalar_lea.vmem %s1938_s0, %s1377_s11  ;;  %v913_v49 = vld [vmem:[%s1940_s2 + $0x70] sm:$0xff]  ;;  %v912_v0 = vld [vmem:[%s1940_s2 + $0x68] sm:$0xff]  ;;  %s1378_s11 = smul.u32 296, %s1949_s18 }
  0x10   : > { %v1327_v8 = vld [vmem:[%s1511_s16] sm:$0xff]  ;;  %v1332_v9 = vld [vmem:[%s1511_s16 + $0x28] sm:$0xff]  ;;  %v1337_v10 = vld [vmem:[%s1511_s16 + $0x50] sm:$0xff] }
  0x11   : > { %562 = vmatpush.bf16.msra.mxu0 %v1351_v1  ;;  %1356 = vmatpush.bf16.msra.mxu1 %v1351_v1  ;;  %v1328_v11 = vld [vmem:[%s1511_s16 + $0x8] sm:$0xff]  ;;  %v1333_v12 = vld [vmem:[%s1511_s16 + $0x30] sm:$0xff]  ;;  %v1338_v14 = vld [vmem:[%s1511_s16 + $0x58] sm:$0xff]  ;;  %s1798_s13 = scalar_lea.vmem %s1943_s5, %s1378_s11 }
  0x12   : > { %1357 = vmatpush.bf16.msra.mxu2 %v1351_v1  ;;  %1358 = vmatpush.bf16.msra.mxu3 %v1351_v1  ;;  %v1341_v13 = vld [vmem:[%s1511_s16 + $0x70] sm:$0xff]  ;;  %v1334_v16 = vld [vmem:[%s1511_s16 + $0x38] sm:$0xff]  ;;  %v1339_v18 = vld [vmem:[%s1511_s16 + $0x60] sm:$0xff] }
  0x13   : > { %v1329_v15 = vld [vmem:[%s1511_s16 + $0x10] sm:$0xff]  ;;  %v1342_v17 = vld [vmem:[%s1511_s16 + $0x78] sm:$0xff]  ;;  %v1335_v20 = vld [vmem:[%s1511_s16 + $0x40] sm:$0xff] }
  0x14   : > { %v1330_v19 = vld [vmem:[%s1511_s16 + $0x18] sm:$0xff]  ;;  %v1343_v21 = vld [vmem:[%s1511_s16 + $0x80] sm:$0xff]  ;;  %v1340_v22 = vld [vmem:[%s1511_s16 + $0x68] sm:$0xff] }
  0x15   : > { %563 = vmatpush.bf16.msra.mxu0 %v1350_v2  ;;  %1359 = vmatpush.bf16.msra.mxu1 %v1350_v2  ;;  %v1331_v23 = vld [vmem:[%s1511_s16 + $0x20] sm:$0xff]  ;;  %v1336_v24 = vld [vmem:[%s1511_s16 + $0x48] sm:$0xff]  ;;  %v384_v26 = vld [vmem:[%s1511_s16 + $0x90] sm:$0xf] }
  0x16   : > { %1360 = vmatpush.bf16.msra.mxu2 %v1350_v2  ;;  %1361 = vmatpush.bf16.msra.mxu3 %v1350_v2  ;;  %v1344_v25 = vld [vmem:[%s1511_s16 + $0x88] sm:$0xff]  ;;  %v474_v27 = vunpack.c.l.b16 %v384_v26  ;;  %v911_v1 = vld [vmem:[%s1940_s2 + $0x60] sm:$0xff] }
  0x18   : > { %v493_v28 = vpack.c.b16 %v474_v27, %v474_v27 }
  0x19   : > { %564 = vmatpush.bf16.msra.mxu0 %v1349_v3  ;;  %1362 = vmatpush.bf16.msra.mxu1 %v1349_v3 }
  0x1a   : > { %1363 = vmatpush.bf16.msra.mxu2 %v1349_v3  ;;  %1364 = vmatpush.bf16.msra.mxu3 %v1349_v3 }
  0x1d   : > { %565 = vmatpush.bf16.msra.mxu0 %v1348_v4  ;;  %1365 = vmatpush.bf16.msra.mxu1 %v1348_v4 }
  0x1e   : > { %1366 = vmatpush.bf16.msra.mxu2 %v1348_v4  ;;  %1367 = vmatpush.bf16.msra.mxu3 %v1348_v4 }
  0x21   : > { %566 = vmatpush.bf16.msra.mxu0 %v1347_v5  ;;  %1368 = vmatpush.bf16.msra.mxu1 %v1347_v5 }
  0x22   : > { %1369 = vmatpush.bf16.msra.mxu2 %v1347_v5  ;;  %1370 = vmatpush.bf16.msra.mxu3 %v1347_v5 }
  0x25   : > { %567 = vmatpush.bf16.msra.mxu0 %v1346_v6  ;;  %1371 = vmatpush.bf16.msra.mxu1 %v1346_v6 }
  0x26   : > { %1372 = vmatpush.bf16.msra.mxu2 %v1346_v6  ;;  %1373 = vmatpush.bf16.msra.mxu3 %v1346_v6 }
  0x29   : > { %568 = vmatpush.bf16.msra.mxu0 %v1345_v7  ;;  %1374 = vmatpush.bf16.msra.mxu1 %v1345_v7 }
  0x2a   : > { %1375 = vmatpush.bf16.msra.mxu2 %v1345_v7  ;;  %1376 = vmatpush.bf16.msra.mxu3 %v1345_v7 }
  0x2c   : > { %569 = vmatmul.bf16.vlgmr.msra.gmra.mxu0 %v1327_v8  ;;  %594 = vmatmul.bf16.vlgmr.msra.gmra.mxu1 %v1332_v9 }
  0x2d   : > { %619 = vmatmul.bf16.vlgmr.msra.gmra.mxu2 %v1337_v10  ;;  %639 = vmatmul.bf16.vlgmr.msra.gmra.mxu3 %v1341_v13 }
  0x2e   : > { %915 = vmatpush.msrb.mxu1 %v914_v40  ;;  %935 = vmatpush.msrb.mxu2 %v914_v40 }
  0x30   : > { %916 = vmatpush.msrb.mxu1 %v913_v49  ;;  %936 = vmatpush.msrb.mxu2 %v913_v49 }
  0x32   : > { %917 = vmatpush.msrb.mxu1 %v912_v0  ;;  %937 = vmatpush.msrb.mxu2 %v912_v0 }
  0x34   : > { %918 = vmatpush.msrb.mxu1 %v911_v1  ;;  %938 = vmatpush.msrb.mxu2 %v911_v1 }
  0x3c   : > { %574 = vmatmul.bf16.gmra.mxu0 %v1328_v11  ;;  %599 = vmatmul.bf16.gmra.mxu1 %v1333_v12 }
  0x3d   : > { %624 = vmatmul.bf16.gmra.mxu2 %v1338_v14  ;;  %644 = vmatmul.bf16.gmra.mxu3 %v1342_v17 }
  0x4c   : > { %579 = vmatmul.bf16.gmra.mxu0 %v1329_v15  ;;  %604 = vmatmul.bf16.gmra.mxu1 %v1334_v16 }
  0x4d   : > { %629 = vmatmul.bf16.gmra.mxu2 %v1339_v18  ;;  %649 = vmatmul.bf16.gmra.mxu3 %v1343_v21 }
  0x5c   : > { %584 = vmatmul.bf16.gmra.mxu0 %v1330_v19  ;;  %609 = vmatmul.bf16.gmra.mxu1 %v1335_v20 }
  0x5d   : > { %634 = vmatmul.bf16.gmra.mxu2 %v1340_v22  ;;  %654 = vmatmul.bf16.gmra.mxu3 %v1344_v25 }
  0x6c   : > { %589 = vmatmul.bf16.gmra.mxu0 %v1331_v23  ;;  %614 = vmatmul.bf16.gmra.mxu1 %v1336_v24 }
  0x6d   : > { %659 = vmatmul.bf16.gmra.mxu3 %v493_v28  ;;  %v910_v28 = vld [vmem:[%s1940_s2 + $0x58] sm:$0xff] }
  0x6e   : > { %919 = vmatpush.msrb.mxu1 %v910_v28  ;;  %939 = vmatpush.msrb.mxu2 %v910_v28 }
  0xa9   : > { %v1532_v29 = vpop.f32.mrf.mxu0  ;;  %v1534_v30 = vpop.f32.mrf.mxu1 }
  0xaa   : > { %v820_v54 = vmul.f32 %v1532_v29, %v1532_v29  ;;  %v830_v25 = vmul.f32 %v1534_v30, %v1534_v30 }
  0xb0   : > { %v1544_v35 = vpop.f32.mrf.mxu3  ;;  %v1557_v41 = vpop.f32.mrf.mxu2 }
  0xb1   : > { %v1536_v31 = vpop.f32.mrf.mxu0  ;;  %v1538_v32 = vpop.f32.mrf.mxu1 }
  0xb2   : > { %v821_v50 = vmul.f32 %v1536_v31, %v1536_v31  ;;  %v778_v55 = vadd.f32 %v1536_v31, %v1532_v29  ;;  %v831_v49 = vmul.f32 %v1538_v32, %v1538_v32 }
  0xb4   : > { %v857_v57 = vadd.f32 %v821_v50, %v820_v54 }
  0xb8   : > { %v1550_v38 = vpop.f32.mrf.mxu3  ;;  %v1565_v45 = vpop.f32.mrf.mxu2 }
  0xb9   : > { %v1540_v33 = vpop.f32.mrf.mxu0  ;;  %v1542_v34 = vpop.f32.mrf.mxu1 }
  0xba   : > { %v822_v56 = vmul.f32 %v1540_v33, %v1540_v33  ;;  %v779_v58 = vadd.f32 %v778_v55, %v1540_v33  ;;  %v909_v55 = vld [vmem:[%s1940_s2 + $0x50] sm:$0xff] }
  0xbb   : > { %920 = vmatpush.msrb.mxu1 %v909_v55  ;;  %940 = vmatpush.msrb.mxu2 %v909_v55 }
  0xbc   : > { %v858_v61 = vadd.f32 %v857_v57, %v822_v56  ;;  %v908_v56 = vld [vmem:[%s1940_s2 + $0x48] sm:$0xff]  ;;  %v832_v57 = vmul.f32 %v1542_v34, %v1542_v34 }
  0xbd   : > { %921 = vmatpush.msrb.mxu1 %v908_v56  ;;  %941 = vmatpush.msrb.mxu2 %v908_v56 }
  0xc0   : > { %v1559_v42 = vpop.f32.mrf.mxu3  ;;  %v1582_v53 = vpop.f32.mrf.mxu2 }
  0xc1   : > { %v1546_v36 = vpop.f32.mrf.mxu0  ;;  %v1548_v37 = vpop.f32.mrf.mxu1 }
  0xc2   : > { %v823_v59 = vmul.f32 %v1546_v36, %v1546_v36  ;;  %v780_v62 = vadd.f32 %v779_v58, %v1546_v36 }
  0xc4   : > { %v859_v2 = vadd.f32 %v858_v61, %v823_v59 }
  0xc8   : > { %v1567_v46 = vpop.f32.mrf.mxu3  ;;  %v1614_v10 = vpop.f32.mrf.mxu2 }
  0xc9   : > { %v1552_v39 = vpop.f32.mrf.mxu0  ;;  %v1563_v44 = vpop.f32.mrf.mxu1 }
  0xca   : > { %v824_v63 = vmul.f32 %v1552_v39, %v1552_v39  ;;  %v781_v3 = vadd.f32 %v780_v62, %v1552_v39 }
  0xcc   : > { %v860_v7 = vadd.f32 %v859_v2, %v824_v63  ;;  %v833_v63 = vmul.f32 %v1548_v37, %v1548_v37  ;;  %v834_v2 = vmul.f32 %v1563_v44, %v1563_v44 }
  0xd0   : > { %v1578_v51 = vpop.f32.mrf.mxu3  ;;  %v1638_v40 = vpop.f32.mrf.mxu2 }
  0xd1   : > { %v1561_v43 = vpop.f32.mrf.mxu0  ;;  %v1571_v48 = vpop.f32.mrf.mxu1 }
  0xd2   : > { %v825_v4 = vmul.f32 %v1561_v43, %v1561_v43  ;;  %v782_v8 = vadd.f32 %v781_v3, %v1561_v43 }
  0xd4   : > { %v861_v11 = vadd.f32 %v860_v7, %v825_v4  ;;  %v835_v7 = vmul.f32 %v1571_v48, %v1571_v48 }
  0xd8   : > { %v1607_v5 = vpop.f32.mrf.mxu3 }
  0xd9   : > { %v1569_v47 = vpop.f32.mrf.mxu0  ;;  %v1593_v60 = vpop.f32.mrf.mxu1 }
  0xda   : > { %v826_v9 = vmul.f32 %v1569_v47, %v1569_v47  ;;  %v783_v12 = vadd.f32 %v782_v8, %v1569_v47 }
  0xdc   : > { %v862_v14 = vadd.f32 %v861_v11, %v826_v9  ;;  %v1665_v11 = vpop.f32.mrf.mxu2 }
  0xe0   : > { %v1625_v20 = vpop.f32.mrf.mxu3 }
  0xe1   : > { %v1580_v52 = vpop.f32.mrf.mxu0  ;;  %v1622_v17 = vpop.f32.mrf.mxu1 }
  0xe2   : > { %v827_v13 = vmul.f32 %v1580_v52, %v1580_v52  ;;  %v784_v15 = vadd.f32 %v783_v12, %v1580_v52  ;;  %v836_v12 = vmul.f32 %v1593_v60, %v1593_v60 }
  0xe4   : > { %v863_v18 = vadd.f32 %v862_v14, %v827_v13 }
  0xe8   : > { %v1652_v61 = vpop.f32.mrf.mxu3 }
  0xe9   : > { %v1609_v6 = vpop.f32.mrf.mxu0  ;;  %v1654_v62 = vpop.f32.mrf.mxu1 }
  0xea   : > { %v828_v16 = vmul.f32 %v1609_v6, %v1609_v6  ;;  %v785_v19 = vadd.f32 %v784_v15, %v1609_v6 }
  0xec   : > { %v864_v22 = vadd.f32 %v863_v18, %v828_v16  ;;  %v837_v16 = vmul.f32 %v1622_v17, %v1622_v17 }
  0xf0   : > { %v1670_v15 = vpop.f32.mrf.mxu3 }
  0xf1   : > { %v1627_v21 = vpop.f32.mrf.mxu0 }
  0xf2   : > { %v786_v23 = vadd.f32 %v785_v19, %v1627_v21  ;;  %v829_v24 = vmul.f32 %v1627_v21, %v1627_v21 }
  0xf4   : > { %v787_v26 = vadd.f32 %v786_v23, %v1534_v30  ;;  %v865_v27 = vadd.f32 %v864_v22, %v829_v24  ;;  %v1675_v22 = vpop.f32.mrf.mxu1  ;;  %v838_v24 = vmul.f32 %v1654_v62, %v1654_v62 }
  0xf6   : > { %v788_v50 = vadd.f32 %v787_v26, %v1538_v32  ;;  %v866_v54 = vadd.f32 %v865_v27, %v830_v25  ;;  %v907_v26 = vld [vmem:[%s1940_s2 + $0x40] sm:$0xff] }
  0xf7   : > { %922 = vmatpush.msrb.mxu1 %v907_v26  ;;  %942 = vmatpush.msrb.mxu2 %v907_v26  ;;  %v845_v26 = vmul.f32 %v1665_v11, %v1665_v11 }
  0xf8   : > { %v789_v58 = vadd.f32 %v788_v50, %v1542_v34  ;;  %v867_v59 = vadd.f32 %v866_v54, %v831_v49  ;;  %v839_v49 = vmul.f32 %v1675_v22, %v1675_v22  ;;  %v906_v50 = vld [vmem:[%s1940_s2 + $0x38] sm:$0xff]  ;;  %v840_v54 = vmul.f32 %v1557_v41, %v1557_v41 }
  0xf9   : > { %923 = vmatpush.msrb.mxu1 %v906_v50  ;;  %943 = vmatpush.msrb.mxu2 %v906_v50 }
  0xfa   : > { %v790_v0 = vadd.f32 %v789_v58, %v1548_v37  ;;  %v868_v1 = vadd.f32 %v867_v59, %v832_v57  ;;  %v905_v57 = vld [vmem:[%s1940_s2 + $0x30] sm:$0xff]  ;;  %v904_v58 = vld [vmem:[%s1940_s2 + $0x28] sm:$0xff]  ;;  %v662_v59 = vpop.f32.mrf.mxu3 }
  0xfb   : > { %924 = vmatpush.msrb.mxu1 %v905_v57  ;;  %944 = vmatpush.msrb.mxu2 %v905_v57  ;;  %v848_v59 = vmul.f32 %v1544_v35, %v1544_v35 }
  0xfc   : > { %v869_v3 = vadd.f32 %v868_v1, %v833_v63  ;;  %v791_v4 = vadd.f32 %v790_v0, %v1563_v44  ;;  %v1698_v63 = vpop.f32.mrf.mxu2  ;;  %v841_v0 = vmul.f32 %v1565_v45, %v1565_v45 }
  0xfd   : > { %925 = vmatpush.msrb.mxu1 %v904_v58  ;;  %945 = vmatpush.msrb.mxu2 %v904_v58 }
  0xfe   : > { %v792_v8 = vadd.f32 %v791_v4, %v1571_v48  ;;  %v870_v9 = vadd.f32 %v869_v3, %v834_v2  ;;  %v842_v3 = vmul.f32 %v1582_v53, %v1582_v53 }
 0x100   : > { %v793_v13 = vadd.f32 %v792_v8, %v1593_v60  ;;  %v871_v14 = vadd.f32 %v870_v9, %v835_v7  ;;  %v903_v8 = vld [vmem:[%s1940_s2 + $0x20] sm:$0xff]  ;;  %v843_v9 = vmul.f32 %v1614_v10, %v1614_v10 }
 0x101   : > { %926 = vmatpush.msrb.mxu1 %v903_v8  ;;  %946 = vmatpush.msrb.mxu2 %v903_v8 }
 0x102   : > { %v794_v18 = vadd.f32 %v793_v13, %v1622_v17  ;;  %v872_v19 = vadd.f32 %v871_v14, %v836_v12  ;;  %v902_v14 = vld [vmem:[%s1940_s2 + $0x18] sm:$0xff] }
 0x103   : > { %927 = vmatpush.msrb.mxu1 %v902_v14  ;;  %947 = vmatpush.msrb.mxu2 %v902_v14 }
 0x104   : > { %v795_v23 = vadd.f32 %v794_v18, %v1654_v62  ;;  %v873_v25 = vadd.f32 %v872_v19, %v837_v16  ;;  %v901_v16 = vld [vmem:[%s1940_s2 + $0x10] sm:$0xff]  ;;  %v844_v18 = vmul.f32 %v1638_v40, %v1638_v40 }
 0x105   : > { %948 = vmatpush.msrb.mxu2 %v901_v16  ;;  %928 = vmatpush.msrb.mxu1 %v901_v16  ;;  %v852_v16 = vmul.f32 %v1578_v51, %v1578_v51 }
 0x106   : > { %v874_v27 = vadd.f32 %v873_v25, %v838_v24  ;;  %v796_v28 = vadd.f32 %v795_v23, %v1675_v22  ;;  %v900_v24 = vld [vmem:[%s1940_s2 + $0x8] sm:$0xff] }
 0x107   : > { %949 = vmatpush.msrb.mxu2 %v900_v24  ;;  %929 = vmatpush.msrb.mxu1 %v900_v24 }
 0x108   : > { %v797_v55 = vadd.f32 %v796_v28, %v1557_v41  ;;  %v875_v56 = vadd.f32 %v874_v27, %v839_v49  ;;  %v899_v28 = vld [vmem:[%s1940_s2] sm:$0xff]  ;;  %v1730_v49 = vpop.f32.mrf.mxu2 }
 0x109   : > { %950 = vmatpush.msrb.mxu2 %v899_v28  ;;  %930 = vmatpush.msrb.mxu1 %v899_v28  ;;  %v847_v58 = vmul.f32 %v1730_v49, %v1730_v49 }
 0x10a   : > { %v798_v1 = vadd.f32 %v797_v55, %v1565_v45  ;;  %v876_v2 = vadd.f32 %v875_v56, %v840_v54  ;;  %v846_v55 = vmul.f32 %v1698_v63, %v1698_v63 }
 0x10c   : > { %v877_v4 = vadd.f32 %v876_v2, %v841_v0  ;;  %v799_v7 = vadd.f32 %v798_v1, %v1582_v53  ;;  %v849_v2 = vmul.f32 %v1550_v38, %v1550_v38 }
 0x10e   : > { %v800_v12 = vadd.f32 %v799_v7, %v1614_v10  ;;  %v878_v13 = vadd.f32 %v877_v4, %v842_v3  ;;  %v850_v7 = vmul.f32 %v1559_v42, %v1559_v42 }
 0x110   : > { %v801_v19 = vadd.f32 %v800_v12, %v1638_v40  ;;  %v879_v23 = vadd.f32 %v878_v13, %v843_v9  ;;  %v851_v12 = vmul.f32 %v1567_v46, %v1567_v46 }
 0x112   : > { %v802_v25 = vadd.f32 %v801_v19, %v1665_v11  ;;  %v880_v27 = vadd.f32 %v879_v23, %v844_v18  ;;  %v853_v23 = vmul.f32 %v1607_v5, %v1607_v5 }
 0x114   : > { %v881_v50 = vadd.f32 %v880_v27, %v845_v26  ;;  %v803_v54 = vadd.f32 %v802_v25, %v1698_v63  ;;  %v854_v27 = vmul.f32 %v1625_v20, %v1625_v20 }
 0x116   : > { %v882_v56 = vadd.f32 %v881_v50, %v846_v55  ;;  %v804_v57 = vadd.f32 %v803_v54, %v1730_v49  ;;  %v855_v55 = vmul.f32 %v1652_v61, %v1652_v61 }
 0x118   : > { %v805_v0 = vadd.f32 %v804_v57, %v1544_v35  ;;  %v883_v1 = vadd.f32 %v882_v56, %v847_v58  ;;  %v856_v56 = vmul.f32 %v1670_v15, %v1670_v15 }
 0x11a   : > { %v806_v3 = vadd.f32 %v805_v0, %v1550_v38  ;;  %v884_v4 = vadd.f32 %v883_v1, %v848_v59 }
 0x11c   : > { %v807_v8 = vadd.f32 %v806_v3, %v1559_v42  ;;  %v885_v9 = vadd.f32 %v884_v4, %v849_v2 }
 0x11e   : > { %v886_v13 = vadd.f32 %v885_v9, %v850_v7  ;;  %v808_v14 = vadd.f32 %v807_v8, %v1567_v46 }
 0x120   : > { %v809_v18 = vadd.f32 %v808_v14, %v1578_v51  ;;  %v887_v19 = vadd.f32 %v886_v13, %v851_v12 }
 0x122   : > { %v810_v24 = vadd.f32 %v809_v18, %v1607_v5  ;;  %v888_v25 = vadd.f32 %v887_v19, %v852_v16 }
 0x124   : > { %v811_v26 = vadd.f32 %v810_v24, %v1625_v20  ;;  %v889_v28 = vadd.f32 %v888_v25, %v853_v23 }
 0x126   : > { %v890_v50 = vadd.f32 %v889_v28, %v854_v27  ;;  %v812_v54 = vadd.f32 %v811_v26, %v1652_v61 }
 0x128   : > { %v891_v57 = vadd.f32 %v890_v50, %v855_v55  ;;  %v813_v58 = vadd.f32 %v812_v54, %v1670_v15 }
 0x12a   : > { %v814_v59 = vrot.slane %v813_v58, 4  ;;  %v892_v0 = vadd.f32 %v891_v57, %v856_v56 }
 0x12c   : > { %v815_v1 = vadd.f32 %v814_v59, %v813_v58  ;;  %v893_v2 = vrot.slane %v892_v0, 4 }
 0x12e   : > { %v816_v3 = vrot.slane %v815_v1, 2  ;;  %v894_v4 = vadd.f32 %v893_v2, %v892_v0  ;;  %v971_v0 = vld [vmem:[%s1941_s3] sm:$0x1] }
 0x130   : > { %v817_v7 = vadd.f32 %v816_v3, %v815_v1  ;;  %v895_v8 = vrot.slane %v894_v4, 2  ;;  %v973_v3 = vld [vmem:[%s1942_s4] sm:$0x1] }
 0x132   : > { %v818_v9 = vrot.slane %v817_v7, 1  ;;  %v896_v12 = vadd.f32 %v895_v8, %v894_v4 }
 0x134   : > { %v819_v13 = vadd.f32 %v818_v9, %v817_v7  ;;  %v897_v14 = vrot.slane %v896_v12, 1 }
 0x136   : > { %931 = vmatmul.f32.vlgmr.msrb.gmra.mxu1 %v819_v13  ;;  %v898_v16 = vadd.f32 %v897_v14, %v896_v12 }
 0x138   : > { %951 = vmatmul.f32.vlgmr.msrb.gmra.mxu2 %v898_v16 }
 0x1b3   : > { %v932_v18 = vpop.f32.mrf.mxu1 }
 0x1b4   : > { %v955_v19 = vmul.f32 0.00086505193, %v932_v18 }
 0x1b6   : > { %v957_v24 = vmul.f32 %v955_v19, %v955_v19 }
 0x1bb   : > { %v952_v23 = vpop.f32.mrf.mxu2 }
 0x1bc   : > { %v956_v25 = vmul.f32 0.00086505193, %v952_v23 }
 0x1be   : > { %v958_v26 = vsub.f32 %v956_v25, %v957_v24 }
 0x1c0   : > { %v959_v27 = vmax.f32 %v958_v26, 0.0 }
 0x1c2   : > { %v960_v28 = vadd.f32 1e-05, %v959_v27 }
 0x1c4   : > { %1403 = vrsqrt.f32 %v960_v28  ;;  %vm967_vm1 = vweird.f32 %v960_v28 }
 0x1ca   : > { %v1404_v50 = vpop.eup %1403 }
 0x1cb   : > { %v962_v54 = vmul.f32 %v1404_v50, %v960_v28  ;;  %vm968_vm0 = vweird.f32 %v1404_v50 }
 0x1cc   : > { %vm969_vm2 = vmor %vm967_vm1, %vm968_vm0 }
 0x1cd   : > { %v963_v55 = vmul.f32 %v1404_v50, %v962_v54 }
 0x1cf   : > { %v964_v56 = vmul.f32 0.5, %v963_v55 }
 0x1d1   : > { %v965_v57 = vsub.f32 1.5, %v964_v56 }
 0x1d3   : > { %v966_v58 = vmul.f32 %v1404_v50, %v965_v57 }
 0x1d5   : > { %v970_v59 = vsel %vm969_vm2, %v1404_v50, %v966_v58 }
 0x1d6   : > { %v972_v1 = vmul.f32 %v971_v0, %v970_v59 }
 0x1d8   : > { %v974_v2 = vmul.f32 %v972_v1, %v955_v19  ;;  %v1771_v7 = vperm.slane %v972_v1, 0 }
 0x1da   : > { %v975_v4 = vsub.f32 %v973_v3, %v974_v2  ;;  %v977_v9 = vmul.f32 %v1771_v7, %v1532_v29  ;;  %v978_v12 = vmul.f32 %v1771_v7, %v1536_v31  ;;  %v979_v13 = vmul.f32 %v1771_v7, %v1540_v33 }
 0x1db   : > { %v980_v14 = vmul.f32 %v1771_v7, %v1546_v36  ;;  %v981_v16 = vmul.f32 %v1771_v7, %v1552_v39  ;;  %v982_v29 = vmul.f32 %v1771_v7, %v1561_v43  ;;  %v983_v33 = vmul.f32 %v1771_v7, %v1569_v47 }
 0x1dc   : > { %v1773_v8 = vperm.slane %v975_v4, 0  ;;  %v984_v36 = vmul.f32 %v1771_v7, %v1580_v52  ;;  %v985_v39 = vmul.f32 %v1771_v7, %v1609_v6  ;;  %v986_v28 = vmul.f32 %v1771_v7, %v1627_v21 }
 0x1dd   : > { %v987_v52 = vmul.f32 %v1771_v7, %v1534_v30  ;;  %v988_v56 = vmul.f32 %v1771_v7, %v1538_v32  ;;  %v989_v21 = vmul.f32 %v1771_v7, %v1542_v34  ;;  %v990_v30 = vmul.f32 %v1771_v7, %v1548_v37 }
 0x1de   : > { %v1017_v18 = vadd.f32 %v1773_v8, %v977_v9  ;;  %v1018_v19 = vadd.f32 %v1773_v8, %v978_v12  ;;  %v1019_v23 = vadd.f32 %v1773_v8, %v979_v13  ;;  %v1020_v31 = vadd.f32 %v1773_v8, %v980_v14 }
 0x1df   : > { %v1021_v24 = vadd.f32 %v1773_v8, %v981_v16  ;;  %v1022_v43 = vadd.f32 %v1773_v8, %v982_v29  ;;  %v1023_v25 = vadd.f32 %v1773_v8, %v983_v33  ;;  %v1024_v50 = vadd.f32 %v1773_v8, %v984_v36 }
 0x1e0   : > { %v1054_v47 = vmax.f32 %v1017_v18, 0.0  ;;  %v1055_v26 = vmax.f32 %v1018_v19, 0.0  ;;  %v1056_v27 = vmax.f32 %v1019_v23, 0.0  ;;  %v1057_v54 = vmax.f32 %v1020_v31, 0.0 }
 0x1e1   : > { %v1025_v6 = vadd.f32 %v1773_v8, %v985_v39  ;;  %v1058_v55 = vmax.f32 %v1021_v24, 0.0  ;;  %v1026_v57 = vadd.f32 %v1773_v8, %v986_v28  ;;  %v1059_v58 = vmax.f32 %v1022_v43, 0.0 }
 0x1e2   : > { %1091 = vst [vmem:[%s1798_s13] sm:$0xff] %v1054_v47  ;;  %v1027_v59 = vadd.f32 %v1773_v8, %v987_v52  ;;  %v1060_v0 = vmax.f32 %v1023_v25, 0.0  ;;  %v1028_v1 = vadd.f32 %v1773_v8, %v988_v56  ;;  %v1061_v2 = vmax.f32 %v1024_v50, 0.0 }
 0x1e3   : > { %1092 = vst [vmem:[%s1798_s13 + $0x8] sm:$0xff] %v1055_v26  ;;  %v991_v32 = vmul.f32 %v1771_v7, %v1563_v44  ;;  %v1029_v3 = vadd.f32 %v1773_v8, %v989_v21  ;;  %v1062_v4 = vmax.f32 %v1025_v6, 0.0  ;;  %v992_v34 = vmul.f32 %v1771_v7, %v1571_v48 }
 0x1e4   : > { %1093 = vst [vmem:[%s1798_s13 + $0x10] sm:$0xff] %v1056_v27  ;;  %v1030_v9 = vadd.f32 %v1773_v8, %v990_v30  ;;  %v1063_v12 = vmax.f32 %v1026_v57, 0.0  ;;  %v993_v37 = vmul.f32 %v1771_v7, %v1593_v60  ;;  %v1064_v14 = vmax.f32 %v1027_v59, 0.0 }
 0x1e5   : > { %1094 = vst [vmem:[%s1798_s13 + $0x18] sm:$0xff] %v1057_v54  ;;  %v1031_v13 = vadd.f32 %v1773_v8, %v991_v32  ;;  %v994_v44 = vmul.f32 %v1771_v7, %v1622_v17  ;;  %v1032_v16 = vadd.f32 %v1773_v8, %v992_v34  ;;  %v1065_v18 = vmax.f32 %v1028_v1, 0.0 }
 0x1e6   : > { %1095 = vst [vmem:[%s1798_s13 + $0x20] sm:$0xff] %v1058_v55  ;;  %v995_v48 = vmul.f32 %v1771_v7, %v1654_v62  ;;  %v1033_v19 = vadd.f32 %v1773_v8, %v993_v37  ;;  %v1066_v23 = vmax.f32 %v1029_v3, 0.0  ;;  %v996_v60 = vmul.f32 %v1771_v7, %v1675_v22 }
 0x1e7   : > { %1096 = vst [vmem:[%s1798_s13 + $0x28] sm:$0xff] %v1059_v58  ;;  %v1034_v29 = vadd.f32 %v1773_v8, %v994_v44  ;;  %v1067_v31 = vmax.f32 %v1030_v9, 0.0  ;;  %v997_v17 = vmul.f32 %v1771_v7, %v1557_v41  ;;  %v1068_v24 = vmax.f32 %v1031_v13, 0.0 }
 0x1e8   : > { %1097 = vst [vmem:[%s1798_s13 + $0x30] sm:$0xff] %v1060_v0  ;;  %v1035_v33 = vadd.f32 %v1773_v8, %v995_v48  ;;  %v998_v62 = vmul.f32 %v1771_v7, %v1565_v45  ;;  %v1036_v36 = vadd.f32 %v1773_v8, %v996_v60  ;;  %v1069_v39 = vmax.f32 %v1032_v16, 0.0 }
 0x1e9   : > { %1098 = vst [vmem:[%s1798_s13 + $0x38] sm:$0xff] %v1061_v2  ;;  %v999_v22 = vmul.f32 %v1771_v7, %v1582_v53  ;;  %v1037_v43 = vadd.f32 %v1773_v8, %v997_v17  ;;  %v1070_v25 = vmax.f32 %v1033_v19, 0.0  ;;  %v1000_v41 = vmul.f32 %v1771_v7, %v1614_v10 }
 0x1ea   : > { %1099 = vst [vmem:[%s1798_s13 + $0x40] sm:$0xff] %v1062_v4  ;;  %v1038_v47 = vadd.f32 %v1773_v8, %v998_v62  ;;  %v1071_v26 = vmax.f32 %v1034_v29, 0.0  ;;  %v1001_v45 = vmul.f32 %v1771_v7, %v1638_v40  ;;  %v1072_v28 = vmax.f32 %v1035_v33, 0.0 }
 0x1eb   : > { %1100 = vst [vmem:[%s1798_s13 + $0x48] sm:$0xff] %v1063_v12  ;;  %v1039_v27 = vadd.f32 %v1773_v8, %v999_v22  ;;  %v1002_v53 = vmul.f32 %v1771_v7, %v1665_v11  ;;  %v1040_v50 = vadd.f32 %v1773_v8, %v1000_v41  ;;  %v1073_v54 = vmax.f32 %v1036_v36, 0.0 }
 0x1ec   : > { %1101 = vst [vmem:[%s1798_s13 + $0x50] sm:$0xff] %v1064_v14  ;;  %v1003_v10 = vmul.f32 %v1771_v7, %v1698_v63  ;;  %v1041_v52 = vadd.f32 %v1773_v8, %v1001_v45  ;;  %v1074_v6 = vmax.f32 %v1037_v43, 0.0  ;;  %v1004_v40 = vmul.f32 %v1771_v7, %v1730_v49 }
 0x1ed   : > { %1102 = vst [vmem:[%s1798_s13 + $0x58] sm:$0xff] %v1065_v18  ;;  %v1042_v55 = vadd.f32 %v1773_v8, %v1002_v53  ;;  %v1075_v56 = vmax.f32 %v1038_v47, 0.0  ;;  %v1005_v11 = vmul.f32 %v1771_v7, %v1544_v35  ;;  %v1076_v58 = vmax.f32 %v1039_v27, 0.0 }
 0x1ee   : > { %1103 = vst [vmem:[%s1798_s13 + $0x60] sm:$0xff] %v1066_v23  ;;  %v1043_v57 = vadd.f32 %v1773_v8, %v1003_v10  ;;  %v1006_v63 = vmul.f32 %v1771_v7, %v1550_v38  ;;  %v1044_v21 = vadd.f32 %v1773_v8, %v1004_v40  ;;  %v1077_v59 = vmax.f32 %v1040_v50, 0.0 }
 0x1ef   : > { %1104 = vst [vmem:[%s1798_s13 + $0x68] sm:$0xff] %v1067_v31  ;;  %v1007_v49 = vmul.f32 %v1771_v7, %v1559_v42  ;;  %v1045_v0 = vadd.f32 %v1773_v8, %v1005_v11  ;;  %v1078_v30 = vmax.f32 %v1041_v52, 0.0  ;;  %v1008_v35 = vmul.f32 %v1771_v7, %v1567_v46 }
 0x1f0   : > { %1105 = vst [vmem:[%s1798_s13 + $0x70] sm:$0xff] %v1068_v24  ;;  %v1046_v1 = vadd.f32 %v1773_v8, %v1006_v63  ;;  %v1079_v2 = vmax.f32 %v1042_v55, 0.0  ;;  %v1009_v38 = vmul.f32 %v1771_v7, %v1578_v51  ;;  %v1080_v3 = vmax.f32 %v1043_v57, 0.0 }
 0x1f1   : > { %1106 = vst [vmem:[%s1798_s13 + $0x78] sm:$0xff] %v1069_v39  ;;  %v1047_v32 = vadd.f32 %v1773_v8, %v1007_v49  ;;  %v1010_v42 = vmul.f32 %v1771_v7, %v1607_v5  ;;  %v1048_v4 = vadd.f32 %v1773_v8, %v1008_v35  ;;  %v1081_v34 = vmax.f32 %v1044_v21, 0.0 }
 0x1f2   : > { %1107 = vst [vmem:[%s1798_s13 + $0x80] sm:$0xff] %v1070_v25  ;;  %v1011_v46 = vmul.f32 %v1771_v7, %v1625_v20  ;;  %v1049_v9 = vadd.f32 %v1773_v8, %v1009_v38  ;;  %v1082_v51 = vmax.f32 %v1045_v0, 0.0  ;;  %v1012_v12 = vmul.f32 %v1771_v7, %v1652_v61 }
 0x1f3   : > { %1108 = vst [vmem:[%s1798_s13 + $0x88] sm:$0xff] %v1071_v26  ;;  %v1050_v37 = vadd.f32 %v1773_v8, %v1010_v42  ;;  %v1083_v5 = vmax.f32 %v1046_v1, 0.0  ;;  %v1013_v13 = vmul.f32 %v1771_v7, %v1670_v15  ;;  %v1084_v14 = vmax.f32 %v1047_v32, 0.0 }
 0x1f4   : > { %1109 = vst [vmem:[%s1798_s13 + $0x90] sm:$0xff] %v1072_v28  ;;  %v1051_v20 = vadd.f32 %v1773_v8, %v1011_v46  ;;  %v1052_v44 = vadd.f32 %v1773_v8, %v1012_v12  ;;  %v1085_v61 = vmax.f32 %v1048_v4, 0.0  ;;  %v1086_v18 = vmax.f32 %v1049_v9, 0.0 }
 0x1f5   : > { %1110 = vst [vmem:[%s1798_s13 + $0x98] sm:$0xff] %v1073_v54  ;;  %v1053_v16 = vadd.f32 %v1773_v8, %v1013_v13  ;;  %v1087_v48 = vmax.f32 %v1050_v37, 0.0 }
 0x1f6   : > { %1111 = vst [vmem:[%s1798_s13 + $0xa0] sm:$0xff] %v1074_v6  ;;  %v1088_v15 = vmax.f32 %v1051_v20, 0.0  ;;  %v1089_v7 = vmax.f32 %v1052_v44, 0.0 }
 0x1f7   : > { %1112 = vst [vmem:[%s1798_s13 + $0xa8] sm:$0xff] %v1075_v56  ;;  %v1090_v19 = vmax.f32 %v1053_v16, 0.0 }
 0x1f8   : > { %1113 = vst [vmem:[%s1798_s13 + $0xb0] sm:$0xff] %v1076_v58 }
 0x1f9   : > { %1114 = vst [vmem:[%s1798_s13 + $0xb8] sm:$0xff] %v1077_v59 }
 0x1fa   : > { %1115 = vst [vmem:[%s1798_s13 + $0xc0] sm:$0xff] %v1078_v30 }
 0x1fb   : > { %1116 = vst [vmem:[%s1798_s13 + $0xc8] sm:$0xff] %v1079_v2 }
 0x1fc   : > { %1117 = vst [vmem:[%s1798_s13 + $0xd0] sm:$0xff] %v1080_v3 }
 0x1fd   : > { %1118 = vst [vmem:[%s1798_s13 + $0xd8] sm:$0xff] %v1081_v34 }
 0x1fe   : > { %1119 = vst [vmem:[%s1798_s13 + $0xe0] sm:$0xff] %v1082_v51 }
 0x1ff   : > { %1120 = vst [vmem:[%s1798_s13 + $0xe8] sm:$0xff] %v1083_v5 }
 0x200   : > { %1121 = vst [vmem:[%s1798_s13 + $0xf0] sm:$0xff] %v1084_v14 }
 0x201   : > { %1122 = vst [vmem:[%s1798_s13 + $0xf8] sm:$0xff] %v1085_v61 }
 0x202   : > { %1123 = vst [vmem:[%s1798_s13 + $0x100] sm:$0xff] %v1086_v18 }
 0x203   : > { %1124 = vst [vmem:[%s1798_s13 + $0x108] sm:$0xff] %v1087_v48 }
 0x204   : > { %1125 = vst [vmem:[%s1798_s13 + $0x110] sm:$0xff] %v1088_v15 }
 0x205   : > { %1126 = vst [vmem:[%s1798_s13 + $0x118] sm:$0xff] %v1089_v7 }
 0x206   : > { %1127 = vst [vmem:[%s1798_s13 + $0x120] sm:$0xff] %v1090_v19 }
 0x207 PF: > { %s15_s20 = sadd.s32 1, %s1427_s20   ;;  %s1944_s18 = smov %s1423_s19 }
 0x208   : > { %p12_p5 = scmp.ge.s32.totalorder %s15_s20, 4   ;;  %s1945_s19 = smov %s1947_s21 }
 0x20a   :  { %14 = sbr.rel (!%p12_p5) target bundleno = 2 (0x2), region = 81 }

// kernel: inception_v4_stem.11
= control target key start
LH: loop header
LB: loop body
LE: loop exit
PB: predicated region body
PF: predicated region fallthrough
CT: control target
= control target key end

     0   :  { %s1986_s18 = smov 0   ;;  %s1988_s19 = smov 0   ;;  %s2692_s0 = inlined_call_operand.vmem [shape: bf16[2,232,384], index: 0, kind: input, shape index: {}]   ;;  %s2693_s1 = inlined_call_operand.vmem [shape: bf16[384,128], index: 1, kind: input, shape index: {}]   ;;  %s2694_s2 = inlined_call_operand.vmem [shape: f32[128,128], index: 2, kind: input, shape index: {}]   ;;  %s2695_s3 = inlined_call_operand.vmem [shape: f32[1,128], index: 3, kind: input, shape index: {}]   ;;  %s2696_s4 = inlined_call_operand.vmem [shape: f32[1,128], index: 4, kind: input, shape index: {}]   ;;  %s2697_s5 = inlined_call_operand.vmem [shape: f32[2,232,128], index: 5, kind: output, shape index: {}]  }
   0x1   :  { %s1990_s20 = smov 0  }
   0x2 LB: > { %s27_s21 = sadd.s32 1, %s1950_s19  ;;  %p1545_p0 = scmp.ge.s32.totalorder %s1954_s20, 1  ;;  %s1954_s20 = sphi %s1990_s20, %s15_s20   ;;  %s1950_s19 = sphi %s1988_s19, %s2711_s19   ;;  %s1946_s18 = sphi %s1986_s18, %s2710_s18  }
   0x3   : > { %p29_p1 = scmp.ge.s32.totalorder %s27_s21, 2  ;;  %p217_p2 = scmp.lt.s32.totalorder %s1954_s20, 3 }
   0x5   : > { %s2713_s21 = smov (%p29_p1, %s27_s21), 0  ;;  %p218_p3 = pnand %p1545_p0, %p217_p2 }
   0x7   : > { %221 = sbr.rel (%p218_p3) target bundleno = 595 (0x253), region = 40 }
   0xc   : > { %v1863_v0 = vld [vmem:[%s2693_s1 + $0x38] sm:$0xff]  ;;  %v1862_v3 = vld [vmem:[%s2693_s1 + $0x30] sm:$0xff]  ;;  %v1861_v6 = vld [vmem:[%s2693_s1 + $0x28] sm:$0xff]  ;;  %p255_p4 = scmp.lt.s32.totalorder %s1946_s18, 1 }
   0xd   : > { %v2012_v1 = vld [vmem:[%s2693_s1 + $0x78] sm:$0xff]  ;;  %822 = vmatpush.bf16.msra.mxu0 %v1863_v0  ;;  %1880 = vmatpush.bf16.msra.mxu3 %v1863_v0  ;;  %v2027_v4 = vld [vmem:[%s2693_s1 + $0x70] sm:$0xff]  ;;  %v1869_v7 = vld [vmem:[%s2693_s1 + $0x68] sm:$0xff] }
   0xe   : > { %v2017_v2 = vld [vmem:[%s2693_s1 + $0xb8] sm:$0xff]  ;;  %905 = vmatpush.bf16.msra.mxu1 %v2012_v1  ;;  %v2032_v5 = vld [vmem:[%s2693_s1 + $0xb0] sm:$0xff]  ;;  %v2045_v8 = vld [vmem:[%s2693_s1 + $0xa8] sm:$0xff]  ;;  %s2715_s18 = smov (!%p255_p4, %s1946_s18), 1 }
   0xf   : > { %988 = vmatpush.bf16.msra.mxu2 %v2017_v2  ;;  %v1860_v9 = vld [vmem:[%s2693_s1 + $0x20] sm:$0xff]  ;;  %v1859_v12 = vld [vmem:[%s2693_s1 + $0x18] sm:$0xff]  ;;  %v1858_v15 = vld [vmem:[%s2693_s1 + $0x10] sm:$0xff]  ;;  %s1904_s8 = smul.u32 348, %s2715_s18 }
  0x10   : > { %v2055_v10 = vld [vmem:[%s2693_s1 + $0x60] sm:$0xff]  ;;  %v1867_v13 = vld [vmem:[%s2693_s1 + $0x58] sm:$0xff]  ;;  %v1866_v16 = vld [vmem:[%s2693_s1 + $0x50] sm:$0xff]  ;;  %s1905_s26 = smul.u32 232, %s2715_s18 }
  0x11   : > { %823 = vmatpush.bf16.msra.mxu0 %v1862_v3  ;;  %1881 = vmatpush.bf16.msra.mxu3 %v1862_v3  ;;  %v2060_v11 = vld [vmem:[%s2693_s1 + $0xa0] sm:$0xff]  ;;  %v2076_v14 = vld [vmem:[%s2693_s1 + $0x98] sm:$0xff]  ;;  %v2089_v17 = vld [vmem:[%s2693_s1 + $0x90] sm:$0xff]  ;;  %s2097_s17 = scalar_lea.vmem %s2692_s0, %s1904_s8 }
  0x12   : > { %906 = vmatpush.bf16.msra.mxu1 %v2027_v4  ;;  %v1857_v18 = vld [vmem:[%s2693_s1 + $0x8] sm:$0xff]  ;;  %v1856_v21 = vld [vmem:[%s2693_s1] sm:$0xff]  ;;  %v1552_v29 = vld [vmem:[%s2097_s17 + $0xc] sm:$0xf0]  ;;  %s2584_s28 = scalar_lea.vmem %s2697_s5, %s1905_s26 }
  0x13   : > { %989 = vmatpush.bf16.msra.mxu2 %v2032_v5  ;;  %v1865_v19 = vld [vmem:[%s2693_s1 + $0x48] sm:$0xff]  ;;  %v1864_v22 = vld [vmem:[%s2693_s1 + $0x40] sm:$0xff]  ;;  %v1816_v31 = vld [vmem:[%s2097_s17 + $0x10] sm:$0xf0] }
  0x14   : > { %v2106_v20 = vld [vmem:[%s2693_s1 + $0x88] sm:$0xff]  ;;  %v2117_v23 = vld [vmem:[%s2693_s1 + $0x80] sm:$0xff]  ;;  %v1562_v36 = vld [vmem:[%s2097_s17 + $0x18] sm:$0xf] }
  0x15   : > { %824 = vmatpush.bf16.msra.mxu0 %v1861_v6  ;;  %1882 = vmatpush.bf16.msra.mxu3 %v1861_v6  ;;  %v1550_v24 = vld [vmem:[%s2097_s17] sm:$0xf]  ;;  %v1815_v25 = vld [vmem:[%s2097_s17 + $0x8] sm:$0xf0]  ;;  %v1814_v28 = vld [vmem:[%s2097_s17 + $0x4] sm:$0xf] }
  0x16   : > { %907 = vmatpush.bf16.msra.mxu1 %v1869_v7  ;;  %v1694_v26 = vld [vmem:[%s2097_s17 + $0x120] sm:$0xf]  ;;  %v1851_v27 = vld [vmem:[%s2097_s17 + $0x128] sm:$0xf0]  ;;  %v1558_v30 = vld [vmem:[%s2097_s17 + $0x8] sm:$0xf]  ;;  %v1551_v32 = vor.u32 %v1815_v25, %v1550_v24  ;;  %v1555_v34 = vor.u32 %v1814_v28, %v1552_v29 }
  0x17   : > { %990 = vmatpush.bf16.msra.mxu2 %v2045_v8  ;;  %v1695_v33 = vor.u32 %v1851_v27, %v1694_v26  ;;  %v1559_v35 = vor.u32 %v1816_v31, %v1558_v30  ;;  %v1818_v37 = vld [vmem:[%s2097_s17 + $0x20] sm:$0xf0]  ;;  %v1706_v38 = vld [vmem:[%s2097_s17 + $0x138] sm:$0xf]  ;;  %v1817_v40 = vld [vmem:[%s2097_s17 + $0x1c] sm:$0xf] }
  0x18   : > { %v1854_v39 = vld [vmem:[%s2097_s17 + $0x140] sm:$0xf0]  ;;  %v1564_v41 = vld [vmem:[%s2097_s17 + $0x24] sm:$0xf0]  ;;  %v1570_v42 = vld [vmem:[%s2097_s17 + $0x20] sm:$0xf]  ;;  %v1563_v44 = vor.u32 %v1818_v37, %v1562_v36 }
  0x19   : > { %825 = vmatpush.bf16.msra.mxu0 %v1860_v9  ;;  %1883 = vmatpush.bf16.msra.mxu3 %v1860_v9  ;;  %v1819_v43 = vld [vmem:[%s2097_s17 + $0x28] sm:$0xf0]  ;;  %v1707_v45 = vor.u32 %v1854_v39, %v1706_v38  ;;  %v1567_v46 = vor.u32 %v1817_v40, %v1564_v41  ;;  %v2141_v48 = vld [vmem:[%s2097_s17 + $0x150] sm:$0xff]  ;;  %v1821_v51 = vld [vmem:[%s2097_s17 + $0x38] sm:$0xf0] }
  0x1a   : > { %908 = vmatpush.bf16.msra.mxu1 %v2055_v10  ;;  %v1571_v47 = vor.u32 %v1819_v43, %v1570_v42  ;;  %v585_v49 = vunpack.c.l.b16 %v2141_v48  ;;  %v1574_v50 = vld [vmem:[%s2097_s17 + $0x30] sm:$0xf]  ;;  %v1820_v52 = vld [vmem:[%s2097_s17 + $0x34] sm:$0xf]  ;;  %v1576_v53 = vld [vmem:[%s2097_s17 + $0x3c] sm:$0xf0] }
  0x1b   : > { %991 = vmatpush.bf16.msra.mxu2 %v2060_v11  ;;  %v1582_v54 = vld [vmem:[%s2097_s17 + $0x38] sm:$0xf]  ;;  %v1822_v55 = vld [vmem:[%s2097_s17 + $0x40] sm:$0xf0]  ;;  %v1575_v56 = vor.u32 %v1821_v51, %v1574_v50  ;;  %v1579_v58 = vor.u32 %v1820_v52, %v1576_v53  ;;  %v1586_v60 = vld [vmem:[%s2097_s17 + $0x48] sm:$0xf] }
  0x1c   : > { %v630_v57 = vpack.c.b16 %v585_v49, %v585_v49  ;;  %v1583_v59 = vor.u32 %v1822_v55, %v1582_v54  ;;  %v1824_v61 = vld [vmem:[%s2097_s17 + $0x50] sm:$0xf0]  ;;  %v1823_v62 = vld [vmem:[%s2097_s17 + $0x4c] sm:$0xf]  ;;  %v1850_v63 = vld [vmem:[%s2097_s17 + $0x124] sm:$0xf] }
  0x1d   : > { %826 = vmatpush.bf16.msra.mxu0 %v1859_v12  ;;  %1884 = vmatpush.bf16.msra.mxu3 %v1859_v12  ;;  %v1696_v0 = vld [vmem:[%s2097_s17 + $0x12c] sm:$0xf0]  ;;  %v1825_v3 = vld [vmem:[%s2097_s17 + $0x58] sm:$0xf0]  ;;  %v1827_v9 = vld [vmem:[%s2097_s17 + $0x68] sm:$0xf0] }
  0x1e   : > { %909 = vmatpush.bf16.msra.mxu1 %v1867_v13  ;;  %v1708_v12 = vld [vmem:[%s2097_s17 + $0x144] sm:$0xf0]  ;;  %v1829_v24 = vld [vmem:[%s2097_s17 + $0x7c] sm:$0xf]  ;;  %v1831_v26 = vld [vmem:[%s2097_s17 + $0x88] sm:$0xf0] }
  0x1f   : > { %992 = vmatpush.bf16.msra.mxu2 %v2076_v14  ;;  %v1612_v25 = vld [vmem:[%s2097_s17 + $0x84] sm:$0xf0]  ;;  %v1622_v31 = vld [vmem:[%s2097_s17 + $0x90] sm:$0xf]  ;;  %v1624_v36 = vld [vmem:[%s2097_s17 + $0x9c] sm:$0xf0] }
  0x20   : > { %v1615_v29 = vor.u32 %v1829_v24, %v1612_v25  ;;  %v1630_v37 = vld [vmem:[%s2097_s17 + $0x98] sm:$0xf]  ;;  %v1834_v38 = vld [vmem:[%s2097_s17 + $0xa0] sm:$0xf0]  ;;  %v1634_v43 = vld [vmem:[%s2097_s17 + $0xa8] sm:$0xf] }
  0x21   : > { %827 = vmatpush.bf16.msra.mxu0 %v1858_v15  ;;  %1885 = vmatpush.bf16.msra.mxu3 %v1858_v15  ;;  %v1606_v15 = vld [vmem:[%s2097_s17 + $0x68] sm:$0xf]  ;;  %v1631_v42 = vor.u32 %v1834_v38, %v1630_v37  ;;  %v1642_v49 = vld [vmem:[%s2097_s17 + $0xb0] sm:$0xf]  ;;  %v1837_v50 = vld [vmem:[%s2097_s17 + $0xb8] sm:$0xf0] }
  0x22   : > { %910 = vmatpush.bf16.msra.mxu1 %v1866_v16  ;;  %v1643_v54 = vor.u32 %v1837_v50, %v1642_v49  ;;  %v394_v55 = vld [vmem:[%s2097_s17 + $0x158] sm:$0xf]  ;;  %v1846_v38 = vld [vmem:[%s2097_s17 + $0x100] sm:$0xf0] }
  0x23   : > { %993 = vmatpush.bf16.msra.mxu2 %v2089_v17  ;;  %v1678_v37 = vld [vmem:[%s2097_s17 + $0xf8] sm:$0xf] }
  0x25   : > { %828 = vmatpush.bf16.msra.mxu0 %v1857_v18  ;;  %1886 = vmatpush.bf16.msra.mxu3 %v1857_v18 }
  0x26   : > { %911 = vmatpush.bf16.msra.mxu1 %v1865_v19 }
  0x27   : > { %994 = vmatpush.bf16.msra.mxu2 %v2106_v20 }
  0x29   : > { %829 = vmatpush.bf16.msra.mxu0 %v1856_v21  ;;  %1887 = vmatpush.bf16.msra.mxu3 %v1856_v21  ;;  %v1610_v21 = vld [vmem:[%s2097_s17 + $0x78] sm:$0xf] }
  0x2a   : > { %912 = vmatpush.bf16.msra.mxu1 %v1864_v22 }
  0x2b   : > { %995 = vmatpush.bf16.msra.mxu2 %v2117_v23 }
  0x2c   : > { %830 = vmatmul.bf16.vlgmr.msra.gmra.mxu0 %v1551_v32  ;;  %890 = vmatmul.bf16.vlgmr.msra.gmra.mxu3 %v1695_v33  ;;  %v1833_v32 = vld [vmem:[%s2097_s17 + $0x98] sm:$0xf0]  ;;  %v1832_v33 = vld [vmem:[%s2097_s17 + $0x94] sm:$0xf] }
  0x2d   : > { %1888 = vmatpush.bf16.msrb.mxu3 %v2012_v1  ;;  %913 = vmatmul.bf16.vlgmr.msra.gmra.mxu1 %v1555_v34  ;;  %v1588_v1 = vld [vmem:[%s2097_s17 + $0x54] sm:$0xf0]  ;;  %v1702_v34 = vld [vmem:[%s2097_s17 + $0x128] sm:$0xf]  ;;  %v1623_v39 = vor.u32 %v1833_v32, %v1622_v31  ;;  %v1627_v41 = vor.u32 %v1832_v33, %v1624_v36  ;;  %v1670_v33 = vld [vmem:[%s2097_s17 + $0xf0] sm:$0xf] }
  0x2e   : > { %996 = vmatmul.bf16.vlgmr.msra.gmra.mxu2 %v1559_v35  ;;  %v1591_v6 = vor.u32 %v1823_v62, %v1588_v1  ;;  %v1852_v35 = vld [vmem:[%s2097_s17 + $0x130] sm:$0xf0]  ;;  %v1672_v36 = vld [vmem:[%s2097_s17 + $0xfc] sm:$0xf0] }
  0x2f   : > { %v1703_v40 = vor.u32 %v1852_v35, %v1702_v34  ;;  %v1840_v62 = vld [vmem:[%s2097_s17 + $0xd0] sm:$0xf0]  ;;  %v1845_v34 = vld [vmem:[%s2097_s17 + $0xf8] sm:$0xf0] }
  0x30   : > { %v1844_v35 = vld [vmem:[%s2097_s17 + $0xf4] sm:$0xf] }
  0x31   : > { %1889 = vmatpush.bf16.msrb.mxu3 %v2027_v4  ;;  %v1587_v4 = vor.u32 %v1824_v61, %v1586_v60  ;;  %v1648_v60 = vld [vmem:[%s2097_s17 + $0xcc] sm:$0xf0]  ;;  %v1654_v61 = vld [vmem:[%s2097_s17 + $0xc8] sm:$0xf] }
  0x35   : > { %1890 = vmatpush.bf16.msrb.mxu3 %v1869_v7 }
  0x39   : > { %1891 = vmatpush.bf16.msrb.mxu3 %v2055_v10  ;;  %v1826_v10 = vld [vmem:[%s2097_s17 + $0x64] sm:$0xf] }
  0x3c   : > { %835 = vmatmul.bf16.gmra.mxu0 %v1563_v44  ;;  %895 = vmatmul.bf16.gmra.mxu3 %v1707_v45  ;;  %v1836_v44 = vld [vmem:[%s2097_s17 + $0xb0] sm:$0xf0]  ;;  %v1835_v45 = vld [vmem:[%s2097_s17 + $0xac] sm:$0xf] }
  0x3d   : > { %1892 = vmatpush.bf16.msrb.mxu3 %v1867_v13  ;;  %918 = vmatmul.bf16.gmra.mxu1 %v1567_v46  ;;  %v1600_v13 = vld [vmem:[%s2097_s17 + $0x6c] sm:$0xf0]  ;;  %v1714_v46 = vld [vmem:[%s2097_s17 + $0x140] sm:$0xf]  ;;  %v1635_v51 = vor.u32 %v1836_v44, %v1634_v43  ;;  %v1675_v44 = vor.u32 %v1844_v35, %v1672_v36 }
  0x3e   : > { %1001 = vmatmul.bf16.gmra.mxu2 %v1571_v47  ;;  %v1603_v18 = vor.u32 %v1826_v10, %v1600_v13  ;;  %v1855_v47 = vld [vmem:[%s2097_s17 + $0x148] sm:$0xf0]  ;;  %v1842_v13 = vld [vmem:[%s2097_s17 + $0xe0] sm:$0xf0] }
  0x3f   : > { %v1715_v52 = vor.u32 %v1855_v47, %v1714_v46 }
  0x41   : > { %1893 = vmatpush.bf16.msrb.mxu3 %v1866_v16 }
  0x45   : > { %1894 = vmatpush.bf16.msrb.mxu3 %v1865_v19 }
  0x49   : > { %1895 = vmatpush.bf16.msrb.mxu3 %v1864_v22  ;;  %v1830_v22 = vld [vmem:[%s2097_s17 + $0x80] sm:$0xf0] }
  0x4a   : > { %v1611_v27 = vor.u32 %v1830_v22, %v1610_v21 }
  0x4c   : > { %840 = vmatmul.bf16.gmra.mxu0 %v1575_v56  ;;  %900 = vmatmul.bf16.gmra.mxu3 %v630_v57  ;;  %v587_v56 = vunpack.c.l.b16 %v394_v55  ;;  %v1646_v57 = vld [vmem:[%s2097_s17 + $0xc0] sm:$0xf]  ;;  %v1848_v55 = vld [vmem:[%s2097_s17 + $0x110] sm:$0xf0] }
  0x4d   : > { %1896 = vmatpush.bf16.msra.mxu3 %v2017_v2  ;;  %923 = vmatmul.bf16.gmra.mxu1 %v1579_v58  ;;  %v1594_v2 = vld [vmem:[%s2097_s17 + $0x50] sm:$0xf]  ;;  %v1839_v58 = vld [vmem:[%s2097_s17 + $0xc8] sm:$0xf0] }
  0x4e   : > { %1006 = vmatmul.bf16.gmra.mxu2 %v1583_v59  ;;  %v1595_v7 = vor.u32 %v1825_v3, %v1594_v2  ;;  %v1838_v59 = vld [vmem:[%s2097_s17 + $0xc4] sm:$0xf]  ;;  %v1655_v3 = vor.u32 %v1840_v62, %v1654_v61 }
  0x4f   : > { %v1651_v2 = vor.u32 %v1838_v59, %v1648_v60  ;;  %v1849_v59 = vld [vmem:[%s2097_s17 + $0x118] sm:$0xf0] }
  0x51   : > { %1897 = vmatpush.bf16.msra.mxu3 %v2032_v5  ;;  %v1699_v5 = vor.u32 %v1850_v63, %v1696_v0  ;;  %v1647_v63 = vor.u32 %v1839_v58, %v1646_v57  ;;  %v632_v0 = vpack.c.b16 %v587_v56, %v587_v56  ;;  %v1847_v56 = vld [vmem:[%s2097_s17 + $0x10c] sm:$0xf]  ;;  %v1684_v57 = vld [vmem:[%s2097_s17 + $0x114] sm:$0xf0]  ;;  %v1690_v58 = vld [vmem:[%s2097_s17 + $0x110] sm:$0xf] }
  0x55   : > { %1898 = vmatpush.bf16.msra.mxu3 %v2045_v8  ;;  %v1598_v8 = vld [vmem:[%s2097_s17 + $0x60] sm:$0xf] }
  0x56   : > { %v1599_v16 = vor.u32 %v1827_v9, %v1598_v8 }
  0x59   : > { %1899 = vmatpush.bf16.msra.mxu3 %v2060_v11  ;;  %v1853_v11 = vld [vmem:[%s2097_s17 + $0x13c] sm:$0xf] }
  0x5c   : > { %845 = vmatmul.bf16.gmra.mxu0 %v1587_v4  ;;  %973 = vmatmul.bf16.vlgmr.msrb.gmra.mxu3 %v1699_v5 }
  0x5d   : > { %1900 = vmatpush.bf16.msra.mxu3 %v2076_v14  ;;  %928 = vmatmul.bf16.gmra.mxu1 %v1591_v6  ;;  %v1828_v14 = vld [vmem:[%s2097_s17 + $0x70] sm:$0xf0] }
  0x5e   : > { %1011 = vmatmul.bf16.gmra.mxu2 %v1595_v7  ;;  %v1607_v19 = vor.u32 %v1828_v14, %v1606_v15  ;;  %v1841_v15 = vld [vmem:[%s2097_s17 + $0xdc] sm:$0xf]  ;;  %v1660_v14 = vld [vmem:[%s2097_s17 + $0xe4] sm:$0xf0] }
  0x5f   : > { %v1663_v24 = vor.u32 %v1841_v15, %v1660_v14 }
  0x61   : > { %1901 = vmatpush.bf16.msra.mxu3 %v2089_v17  ;;  %v1711_v17 = vor.u32 %v1853_v11, %v1708_v12  ;;  %v1658_v12 = vld [vmem:[%s2097_s17 + $0xd8] sm:$0xf] }
  0x65   : > { %1902 = vmatpush.bf16.msra.mxu3 %v2106_v20  ;;  %v586_v20 = vunpack.c.h.b16 %v2141_v48  ;;  %v1636_v48 = vld [vmem:[%s2097_s17 + $0xb4] sm:$0xf0] }
  0x66   : > { %v1639_v53 = vor.u32 %v1835_v45, %v1636_v48  ;;  %v1679_v45 = vor.u32 %v1846_v38, %v1678_v37 }
  0x67   : > { %v631_v28 = vpack.c.b16 %v586_v20, %v586_v20  ;;  %v1659_v20 = vor.u32 %v1842_v13, %v1658_v12 }
  0x69   : > { %1903 = vmatpush.bf16.msra.mxu3 %v2117_v23  ;;  %v1618_v23 = vld [vmem:[%s2097_s17 + $0x80] sm:$0xf] }
  0x6a   : > { %v1619_v30 = vor.u32 %v1831_v26, %v1618_v23 }
  0x6c   : > { %850 = vmatmul.bf16.gmra.mxu0 %v1599_v16  ;;  %978 = vmatmul.bf16.gmra.mxu3 %v1711_v17  ;;  %v1666_v16 = vld [vmem:[%s2097_s17 + $0xe0] sm:$0xf]  ;;  %v1843_v17 = vld [vmem:[%s2097_s17 + $0xe8] sm:$0xf0] }
  0x6d   : > { %933 = vmatmul.bf16.gmra.mxu1 %v1603_v18  ;;  %v1667_v25 = vor.u32 %v1843_v17, %v1666_v16 }
  0x6e   : > { %1016 = vmatmul.bf16.gmra.mxu2 %v1607_v19 }
  0x7c   : > { %855 = vmatmul.bf16.gmra.mxu0 %v1611_v27  ;;  %983 = vmatmul.bf16.gmra.mxu3 %v631_v28 }
  0x7d   : > { %938 = vmatmul.bf16.gmra.mxu1 %v1615_v29 }
  0x7e   : > { %1021 = vmatmul.bf16.gmra.mxu2 %v1619_v30 }
  0x8c   : > { %860 = vmatmul.bf16.gmra.mxu0 %v1623_v39  ;;  %1056 = vmatmul.bf16.vlgmr.msra.gmra.mxu3 %v1703_v40 }
  0x8d   : > { %943 = vmatmul.bf16.gmra.mxu1 %v1627_v41  ;;  %v1671_v41 = vor.u32 %v1845_v34, %v1670_v33 }
  0x8e   : > { %1026 = vmatmul.bf16.gmra.mxu2 %v1631_v42 }
  0x9c   : > { %865 = vmatmul.bf16.gmra.mxu0 %v1635_v51  ;;  %1061 = vmatmul.bf16.gmra.mxu3 %v1715_v52 }
  0x9d   : > { %948 = vmatmul.bf16.gmra.mxu1 %v1639_v53 }
  0x9e   : > { %1031 = vmatmul.bf16.gmra.mxu2 %v1643_v54  ;;  %v1682_v54 = vld [vmem:[%s2097_s17 + $0x108] sm:$0xf] }
  0x9f   : > { %v1683_v62 = vor.u32 %v1848_v55, %v1682_v54 }
  0xa9   : > { %v831_v1 = vpop.f32.mrf.mxu0 }
  0xaa   : > { %v914_v4 = vpop.f32.mrf.mxu1 }
  0xab   : > { %v915_v5 = vadd.f32 %v914_v4, %v831_v1  ;;  %v1687_v1 = vor.u32 %v1847_v56, %v1684_v57 }
  0xac   : > { %870 = vmatmul.bf16.gmra.mxu0 %v1647_v63  ;;  %1066 = vmatmul.bf16.gmra.mxu3 %v632_v0 }
  0xad   : > { %953 = vmatmul.bf16.gmra.mxu1 %v1651_v2  ;;  %v1691_v2 = vor.u32 %v1849_v59, %v1690_v58 }
  0xae   : > { %1036 = vmatmul.bf16.gmra.mxu2 %v1655_v3 }
  0xaf   : > { %v2204_v6 = vpop.f32.mrf.mxu3 }
  0xb1   : > { %v997_v7 = vpop.f32.mrf.mxu2  ;;  %v833_v9 = vpop.f32.mrf.mxu0 }
  0xb2   : > { %v2206_v8 = vadd.f32 %v997_v7, %v915_v5  ;;  %v916_v10 = vpop.f32.mrf.mxu1 }
  0xb3   : > { %v917_v11 = vadd.f32 %v916_v10, %v833_v9 }
  0xb7   : > { %v2214_v18 = vpop.f32.mrf.mxu3 }
  0xb9   : > { %v999_v19 = vpop.f32.mrf.mxu2  ;;  %v836_v22 = vpop.f32.mrf.mxu0 }
  0xba   : > { %v2216_v21 = vadd.f32 %v999_v19, %v917_v11  ;;  %v919_v23 = vpop.f32.mrf.mxu1 }
  0xbb   : > { %v920_v26 = vadd.f32 %v919_v23, %v836_v22 }
  0xbc   : > { %875 = vmatmul.bf16.gmra.mxu0 %v1659_v20 }
  0xbd   : > { %958 = vmatmul.bf16.gmra.mxu1 %v1663_v24 }
  0xbe   : > { %1041 = vmatmul.bf16.gmra.mxu2 %v1667_v25 }
  0xbf   : > { %v2218_v27 = vpop.f32.mrf.mxu3 }
  0xc1   : > { %v1002_v28 = vpop.f32.mrf.mxu2  ;;  %v838_v30 = vpop.f32.mrf.mxu0 }
  0xc2   : > { %v2220_v29 = vadd.f32 %v1002_v28, %v920_v26  ;;  %v921_v31 = vpop.f32.mrf.mxu1 }
  0xc3   : > { %v922_v32 = vadd.f32 %v921_v31, %v838_v30 }
  0xc7   : > { %v898_v39 = vpop.f32.mrf.mxu3 }
  0xc9   : > { %v1004_v40 = vpop.f32.mrf.mxu2  ;;  %v841_v43 = vpop.f32.mrf.mxu0 }
  0xca   : > { %v2228_v42 = vadd.f32 %v1004_v40, %v922_v32  ;;  %v924_v46 = vpop.f32.mrf.mxu1 }
  0xcb   : > { %v925_v47 = vadd.f32 %v924_v46, %v841_v43 }
  0xcc   : > { %880 = vmatmul.bf16.gmra.mxu0 %v1671_v41 }
  0xcd   : > { %963 = vmatmul.bf16.gmra.mxu1 %v1675_v44 }
  0xce   : > { %1046 = vmatmul.bf16.gmra.mxu2 %v1679_v45 }
  0xcf   : > { %v901_v48 = vpop.f32.mrf.mxu3 }
  0xd1   : > { %v1007_v49 = vpop.f32.mrf.mxu2  ;;  %v843_v51 = vpop.f32.mrf.mxu0 }
  0xd2   : > { %v2230_v50 = vadd.f32 %v1007_v49, %v925_v47  ;;  %v926_v52 = vpop.f32.mrf.mxu1 }
  0xd3   : > { %v927_v53 = vadd.f32 %v926_v52, %v843_v51 }
  0xd4   : > { %2702 = vst [vmem:[#allocation3_spill] sm:$0xff] %v2230_v50 }
  0xd7   : > { %v903_v60 = vpop.f32.mrf.mxu3 }
  0xd9   : > { %v1009_v61 = vpop.f32.mrf.mxu2  ;;  %v846_v0 = vpop.f32.mrf.mxu0 }
  0xda   : > { %v2238_v63 = vadd.f32 %v1009_v61, %v927_v53  ;;  %v929_v3 = vpop.f32.mrf.mxu1 }
  0xdb   : > { %v930_v4 = vadd.f32 %v929_v3, %v846_v0 }
  0xdc   : > { %2703 = vst [vmem:[#allocation4_spill] sm:$0xff] %v2238_v63  ;;  %885 = vmatmul.bf16.gmra.mxu0 %v1683_v62 }
  0xdd   : > { %968 = vmatmul.bf16.gmra.mxu1 %v1687_v1 }
  0xde   : > { %1051 = vmatmul.bf16.gmra.mxu2 %v1691_v2 }
  0xdf   : > { %v974_v5 = vpop.f32.mrf.mxu3 }
  0xe0   : > { %v975_v7 = vadd.f32 %v974_v5, %v2204_v6 }
  0xe1   : > { %v1012_v9 = vpop.f32.mrf.mxu2  ;;  %v848_v11 = vpop.f32.mrf.mxu0 }
  0xe2   : > { %v2241_v10 = vadd.f32 %v1012_v9, %v930_v4  ;;  %v931_v12 = vpop.f32.mrf.mxu1 }
  0xe3   : > { %v932_v13 = vadd.f32 %v931_v12, %v848_v11  ;;  %v2290_v12 = vld [vmem:[%s2694_s2 + $0x78] sm:$0xff] }
  0xe4   : > { %2704 = vst [vmem:[#allocation5_spill] sm:$0xff] %v2241_v10  ;;  %1274 = vmatpush.msrb.mxu3 %v2290_v12 }
  0xe7   : > { %v976_v15 = vpop.f32.mrf.mxu3 }
  0xe8   : > { %v977_v14 = vadd.f32 %v976_v15, %v2214_v18 }
  0xe9   : > { %v1014_v16 = vpop.f32.mrf.mxu2  ;;  %v851_v19 = vpop.f32.mrf.mxu0 }
  0xea   : > { %v2244_v17 = vadd.f32 %v1014_v16, %v932_v13  ;;  %v934_v20 = vpop.f32.mrf.mxu1  ;;  %v2296_v13 = vld [vmem:[%s2694_s2 + $0x70] sm:$0xff] }
  0xeb   : > { %v935_v22 = vadd.f32 %v934_v20, %v851_v19  ;;  %1275 = vmatpush.msrb.mxu3 %v2296_v13  ;;  %v2306_v19 = vld [vmem:[%s2694_s2 + $0x68] sm:$0xff] }
  0xec   : > { %2705 = vst [vmem:[#allocation6_spill] sm:$0xff] %v2244_v17 }
  0xed   : > { %1276 = vmatpush.msrb.mxu3 %v2306_v19 }
  0xef   : > { %v979_v24 = vpop.f32.mrf.mxu3 }
  0xf0   : > { %v980_v25 = vadd.f32 %v979_v24, %v2218_v27  ;;  %v2316_v24 = vld [vmem:[%s2694_s2 + $0x60] sm:$0xff] }
  0xf1   : > { %v1017_v23 = vpop.f32.mrf.mxu2  ;;  %v853_v26 = vpop.f32.mrf.mxu0  ;;  %1277 = vmatpush.msrb.mxu3 %v2316_v24 }
  0xf2   : > { %v2247_v6 = vadd.f32 %v1017_v23, %v935_v22  ;;  %v936_v28 = vpop.f32.mrf.mxu1  ;;  %v2328_v23 = vld [vmem:[%s2694_s2 + $0x50] sm:$0xff] }
  0xf3   : > { %v937_v30 = vadd.f32 %v936_v28, %v853_v26 }
  0xf7   : > { %v981_v31 = vpop.f32.mrf.mxu3 }
  0xf8   : > { %v982_v32 = vadd.f32 %v981_v31, %v898_v39 }
  0xf9   : > { %v1019_v33 = vpop.f32.mrf.mxu2  ;;  %v856_v18 = vpop.f32.mrf.mxu0 }
  0xfa   : > { %v2249_v34 = vadd.f32 %v1019_v33, %v937_v30  ;;  %v939_v35 = vpop.f32.mrf.mxu1  ;;  %v2336_v30 = vld [vmem:[%s2694_s2 + $0x48] sm:$0xff]  ;;  %v2346_v33 = vld [vmem:[%s2694_s2 + $0x40] sm:$0xff] }
  0xfb   : > { %v940_v36 = vadd.f32 %v939_v35, %v856_v18  ;;  %v1196_v18 = vmul.f32 %v2216_v21, %v2216_v21  ;;  %v2354_v35 = vld [vmem:[%s2694_s2 + $0x38] sm:$0xff] }
  0xff   : > { %v984_v37 = vpop.f32.mrf.mxu3 }
 0x100   : > { %v985_v38 = vadd.f32 %v984_v37, %v901_v48  ;;  %v1161_v37 = vadd.f32 %v2216_v21, %v2206_v8 }
 0x101   : > { %v1022_v40 = vpop.f32.mrf.mxu2  ;;  %v858_v27 = vpop.f32.mrf.mxu0 }
 0x102   : > { %v2251_v41 = vadd.f32 %v1022_v40, %v940_v36  ;;  %v941_v43 = vpop.f32.mrf.mxu1  ;;  %v1195_v36 = vmul.f32 %v2206_v8, %v2206_v8  ;;  %v2366_v40 = vld [vmem:[%s2694_s2 + $0x30] sm:$0xff] }
 0x103   : > { %v942_v44 = vadd.f32 %v941_v43, %v858_v27  ;;  %v1162_v43 = vadd.f32 %v1161_v37, %v2220_v29  ;;  %v1201_v37 = vmul.f32 %v2241_v10, %v2241_v10 }
 0x104   : > { %v1224_v27 = vadd.f32 %v1196_v18, %v1195_v36 }
 0x107   : > { %v986_v45 = vpop.f32.mrf.mxu3 }
 0x109   : > { %v1024_v46 = vpop.f32.mrf.mxu2  ;;  %v861_v49 = vpop.f32.mrf.mxu0 }
 0x10a   : > { %v2253_v47 = vadd.f32 %v1024_v46, %v942_v44  ;;  %v944_v39 = vpop.f32.mrf.mxu1  ;;  %v1198_v44 = vmul.f32 %v2228_v42, %v2228_v42  ;;  %v2377_v46 = vld [vmem:[%s2694_s2 + $0x28] sm:$0xff] }
 0x10b   : > { %v945_v51 = vadd.f32 %v944_v39, %v861_v49  ;;  %v1163_v39 = vadd.f32 %v1162_v43, %v2228_v42 }
 0x10f   : > { %v1057_v52 = vpop.f32.mrf.mxu3 }
 0x110   : > { %v2255_v54 = vadd.f32 %v1057_v52, %v975_v7 }
 0x111   : > { %v1027_v53 = vpop.f32.mrf.mxu2  ;;  %v2259_v48 = vpop.f32.mrf.mxu0 }
 0x112   : > { %v2257_v55 = vadd.f32 %v1027_v53, %v945_v51  ;;  %v2261_v56 = vpop.f32.mrf.mxu1  ;;  %v1199_v51 = vmul.f32 %v2230_v50, %v2230_v50 }
 0x117   : > { %v1059_v57 = vpop.f32.mrf.mxu3 }
 0x118   : > { %v2265_v59 = vadd.f32 %v1059_v57, %v977_v14  ;;  %v2390_v57 = vld [vmem:[%s2694_s2 + $0x20] sm:$0xff] }
 0x119   : > { %v2263_v58 = vpop.f32.mrf.mxu2  ;;  %v2267_v60 = vpop.f32.mrf.mxu0 }
 0x11a   : > { %v2269_v61 = vpop.f32.mrf.mxu1 }
 0x11f   : > { %v1062_v62 = vpop.f32.mrf.mxu3 }
 0x120   : > { %v2273_v1 = vadd.f32 %v1062_v62, %v980_v25  ;;  %v2322_v25 = vld [vmem:[%s2694_s2 + $0x58] sm:$0xff] }
 0x121   : > { %v2271_v0 = vpop.f32.mrf.mxu2  ;;  %v2275_v2 = vpop.f32.mrf.mxu0  ;;  %1278 = vmatpush.msrb.mxu3 %v2322_v25 }
 0x122   : > { %v2277_v3 = vpop.f32.mrf.mxu1 }
 0x123   : > { %1279 = vmatpush.msrb.mxu3 %v2328_v23 }
 0x125   : > { %1280 = vmatpush.msrb.mxu3 %v2336_v30 }
 0x127   : > { %v1064_v4 = vpop.f32.mrf.mxu3  ;;  %1281 = vmatpush.msrb.mxu3 %v2346_v33 }
 0x128   : > { %v2281_v7 = vadd.f32 %v1064_v4, %v982_v32  ;;  %v1164_v4 = vadd.f32 %v1163_v39, %v2230_v50  ;;  %v2419_v39 = vld [vmem:[%s2694_s2 + $0x8] sm:$0xff]  ;;  %v947_v50 = vadd.f32 %v2261_v56, %v2259_v48 }
 0x129   : > { %v2279_v5 = vpop.f32.mrf.mxu2  ;;  %v2283_v9 = vpop.f32.mrf.mxu0  ;;  %1282 = vmatpush.msrb.mxu3 %v2354_v35 }
 0x12a   : > { %v2285_v11 = vpop.f32.mrf.mxu1  ;;  %v1165_v36 = vadd.f32 %v1164_v4, %v2238_v63  ;;  %v1203_v4 = vmul.f32 %v2247_v6, %v2247_v6 }
 0x12b   : > { %1283 = vmatpush.msrb.mxu3 %v2366_v40 }
 0x12c   : > { %v1166_v43 = vadd.f32 %v1165_v36, %v2241_v10  ;;  %v2428_v36 = vld [vmem:[%s2694_s2] sm:$0xff] }
 0x12d   : > { %1284 = vmatpush.msrb.mxu3 %v2377_v46 }
 0x12f   : > { %v1067_v15 = vpop.f32.mrf.mxu3  ;;  %1285 = vmatpush.msrb.mxu3 %v2390_v57 }
 0x130   : > { %v2301_v16 = vadd.f32 %v1067_v15, %v985_v38  ;;  %v1197_v38 = vmul.f32 %v2220_v29, %v2220_v29  ;;  %v1200_v15 = vmul.f32 %v2238_v63, %v2238_v63 }
 0x131   : > { %v2299_v14 = vpop.f32.mrf.mxu2  ;;  %v2308_v20 = vpop.f32.mrf.mxu0 }
 0x132   : > { %v2311_v22 = vpop.f32.mrf.mxu1  ;;  %v1225_v49 = vadd.f32 %v1224_v27, %v1197_v38  ;;  %v2408_v38 = vld [vmem:[%s2694_s2 + $0x10] sm:$0xff] }
 0x134   : > { %v1226_v62 = vadd.f32 %v1225_v49, %v1198_v44  ;;  %v1202_v44 = vmul.f32 %v2244_v17, %v2244_v17 }
 0x136   : > { %v1227_v18 = vadd.f32 %v1226_v62, %v1199_v51  ;;  %v1167_v62 = vadd.f32 %v1166_v43, %v2244_v17  ;;  %v1205_v17 = vmul.f32 %v2251_v41, %v2251_v41 }
 0x137   : > { %v1069_v26 = vpop.f32.mrf.mxu3 }
 0x138   : > { %v2399_v26 = vld [vmem:[%s2694_s2 + $0x18] sm:$0xff]  ;;  %v1228_v27 = vadd.f32 %v1227_v18, %v1200_v15  ;;  %v1168_v63 = vadd.f32 %v1167_v62, %v2247_v6 }
 0x139   : > { %v2331_v28 = vpop.f32.mrf.mxu2  ;;  %v2338_v31 = vpop.f32.mrf.mxu0  ;;  %1286 = vmatpush.msrb.mxu3 %v2399_v26 }
 0x13a   : > { %v2341_v32 = vpop.f32.mrf.mxu1  ;;  %v1229_v51 = vadd.f32 %v1228_v27, %v1201_v37  ;;  %v1204_v37 = vmul.f32 %v2249_v34, %v2249_v34  ;;  %v1169_v43 = vadd.f32 %v1168_v63, %v2249_v34 }
 0x13b   : > { %1287 = vmatpush.msrb.mxu3 %v2408_v38 }
 0x13c   : > { %v1230_v10 = vadd.f32 %v1229_v51, %v1202_v44  ;;  %v950_v44 = vadd.f32 %v2269_v61, %v2267_v60  ;;  %v1170_v62 = vadd.f32 %v1169_v43, %v2251_v41  ;;  %v1207_v60 = vmul.f32 %v2257_v55, %v2257_v55 }
 0x13d   : > { %1288 = vmatpush.msrb.mxu3 %v2419_v39 }
 0x13e   : > { %v1231_v27 = vadd.f32 %v1230_v10, %v1203_v4  ;;  %v2447_v10 = vadd.f32 %v2263_v58, %v947_v50  ;;  %v1171_v48 = vadd.f32 %v1170_v62, %v2253_v47  ;;  %v2454_v61 = vadd.f32 %v2271_v0, %v950_v44 }
 0x13f   : > { %1289 = vmatpush.msrb.mxu3 %v2428_v36  ;;  %v955_v50 = vadd.f32 %v2285_v11, %v2283_v9  ;;  %v957_v11 = vadd.f32 %v2311_v22, %v2308_v20 }
 0x140   : > { %v1232_v51 = vadd.f32 %v1231_v27, %v1204_v37  ;;  %v1208_v37 = vmul.f32 %v2447_v10, %v2447_v10 }
 0x141   : > { %v2372_v45 = vpop.f32.mrf.mxu2  ;;  %v2382_v52 = vpop.f32.mrf.mxu0  ;;  %1294 = vmatpush.msra.mxu3 %v2290_v12  ;;  %v1206_v12 = vmul.f32 %v2253_v47, %v2253_v47  ;;  %v2472_v9 = vadd.f32 %v2299_v14, %v955_v50  ;;  %v2484_v14 = vadd.f32 %v2331_v28, %v957_v11 }
 0x142   : > { %v2385_v53 = vpop.f32.mrf.mxu1  ;;  %v1233_v4 = vadd.f32 %v1232_v51, %v1205_v17  ;;  %v1172_v17 = vadd.f32 %v1171_v48, %v2257_v55 }
 0x143   : > { %1295 = vmatpush.msra.mxu3 %v2296_v13  ;;  %v952_v13 = vadd.f32 %v2277_v3, %v2275_v2  ;;  %v1209_v3 = vmul.f32 %v2454_v61, %v2454_v61  ;;  %v1211_v20 = vmul.f32 %v2472_v9, %v2472_v9  ;;  %v962_v62 = vadd.f32 %v2385_v53, %v2382_v52 }
 0x144   : > { %v1173_v2 = vadd.f32 %v1172_v17, %v2447_v10 }
 0x145   : > { %1296 = vmatpush.msra.mxu3 %v2306_v19  ;;  %v1234_v19 = vadd.f32 %v1233_v4, %v1206_v12  ;;  %v2465_v27 = vadd.f32 %v2279_v5, %v952_v13  ;;  %v960_v5 = vadd.f32 %v2341_v32, %v2338_v31  ;;  %v1212_v4 = vmul.f32 %v2484_v14, %v2484_v14 }
 0x147   : > { %1297 = vmatpush.msra.mxu3 %v2316_v24  ;;  %v1235_v0 = vadd.f32 %v1234_v19, %v1207_v60  ;;  %v1210_v43 = vmul.f32 %v2465_v27, %v2465_v27  ;;  %v2491_v32 = vadd.f32 %v2372_v45, %v960_v5 }
 0x149   : > { %v2414_v49 = vpop.f32.mrf.mxu2  ;;  %v881_v15 = vpop.f32.mrf.mxu0  ;;  %1298 = vmatpush.msra.mxu3 %v2322_v25  ;;  %v1236_v24 = vadd.f32 %v1235_v0, %v1208_v37  ;;  %v1174_v25 = vadd.f32 %v1173_v2, %v2454_v61  ;;  %v1213_v45 = vmul.f32 %v2491_v32, %v2491_v32 }
 0x14a   : > { %v964_v18 = vpop.f32.mrf.mxu1  ;;  %v2500_v48 = vadd.f32 %v2414_v49, %v962_v62 }
 0x14b   : > { %1299 = vmatpush.msra.mxu3 %v2328_v23  ;;  %v1237_v51 = vadd.f32 %v1236_v24, %v1209_v3  ;;  %v1175_v23 = vadd.f32 %v1174_v25, %v2465_v27 }
 0x14c   : > { %v1214_v49 = vmul.f32 %v2500_v48, %v2500_v48 }
 0x14d   : > { %1300 = vmatpush.msra.mxu3 %v2336_v30  ;;  %v965_v30 = vadd.f32 %v964_v18, %v881_v15  ;;  %v1238_v12 = vadd.f32 %v1237_v51, %v1210_v43  ;;  %v1176_v28 = vadd.f32 %v1175_v23, %v2472_v9  ;;  %v1219_v51 = vmul.f32 %v2255_v54, %v2255_v54 }
 0x14f   : > { %1301 = vmatpush.msra.mxu3 %v2346_v33  ;;  %v1239_v60 = vadd.f32 %v1238_v12, %v1211_v20  ;;  %v1177_v33 = vadd.f32 %v1176_v28, %v2484_v14  ;;  %v1222_v12 = vmul.f32 %v2281_v7, %v2281_v7 }
 0x151   : > { %v1047_v63 = vpop.f32.mrf.mxu2  ;;  %v883_v56 = vpop.f32.mrf.mxu0  ;;  %1302 = vmatpush.msra.mxu3 %v2354_v35  ;;  %v1240_v35 = vadd.f32 %v1239_v60, %v1212_v4  ;;  %v1178_v13 = vadd.f32 %v1177_v33, %v2491_v32  ;;  %v1223_v60 = vmul.f32 %v2301_v16, %v2301_v16 }
 0x152   : > { %v966_v58 = vpop.f32.mrf.mxu1  ;;  %v2506_v52 = vadd.f32 %v1047_v63, %v965_v30 }
 0x153   : > { %1303 = vmatpush.msra.mxu3 %v2366_v40  ;;  %v967_v53 = vadd.f32 %v966_v58, %v883_v56  ;;  %v1241_v40 = vadd.f32 %v1240_v35, %v1213_v45  ;;  %v1179_v19 = vadd.f32 %v1178_v13, %v2500_v48 }
 0x154   : > { %v1215_v63 = vmul.f32 %v2506_v52, %v2506_v52 }
 0x155   : > { %1304 = vmatpush.msra.mxu3 %v2377_v46  ;;  %v1242_v17 = vadd.f32 %v1241_v40, %v1214_v49  ;;  %v1180_v37 = vadd.f32 %v1179_v19, %v2506_v52 }
 0x157   : > { %1305 = vmatpush.msra.mxu3 %v2390_v57  ;;  %v1243_v57 = vadd.f32 %v1242_v17, %v1215_v63 }
 0x159   : > { %v1049_v44 = vpop.f32.mrf.mxu2  ;;  %v886_v22 = vpop.f32.mrf.mxu0  ;;  %1306 = vmatpush.msra.mxu3 %v2399_v26 }
 0x15a   : > { %v969_v31 = vpop.f32.mrf.mxu1  ;;  %v2512_v50 = vadd.f32 %v1049_v44, %v967_v53 }
 0x15b   : > { %v970_v15 = vadd.f32 %v969_v31, %v886_v22  ;;  %1307 = vmatpush.msra.mxu3 %v2408_v38 }
 0x15c   : > { %v1216_v0 = vmul.f32 %v2512_v50, %v2512_v50  ;;  %v1181_v2 = vadd.f32 %v1180_v37, %v2512_v50 }
 0x15d   : > { %1308 = vmatpush.msra.mxu3 %v2419_v39  ;;  %v1220_v39 = vmul.f32 %v2265_v59, %v2265_v59 }
 0x15e   : > { %v1244_v24 = vadd.f32 %v1243_v57, %v1216_v0 }
 0x15f   : > { %1309 = vmatpush.msra.mxu3 %v2428_v36  ;;  %v1221_v36 = vmul.f32 %v2273_v1, %v2273_v1 }
 0x161   : > { %v1052_v18 = vpop.f32.mrf.mxu2  ;;  %v888_v58 = vpop.f32.mrf.mxu0 }
 0x162   : > { %v2518_v56 = vadd.f32 %v1052_v18, %v970_v15  ;;  %v971_v46 = vpop.f32.mrf.mxu1 }
 0x163   : > { %v972_v11 = vadd.f32 %v971_v46, %v888_v58 }
 0x164   : > { %v1217_v3 = vmul.f32 %v2518_v56, %v2518_v56  ;;  %v1182_v26 = vadd.f32 %v1181_v2, %v2518_v56 }
 0x166   : > { %v1245_v43 = vadd.f32 %v1244_v24, %v1217_v3 }
 0x169   : > { %v1054_v5 = vpop.f32.mrf.mxu2 }
 0x16a   : > { %v2530_v25 = vadd.f32 %v1054_v5, %v972_v11 }
 0x16c   : > { %v1183_v38 = vadd.f32 %v1182_v26, %v2530_v25  ;;  %v1218_v44 = vmul.f32 %v2530_v25, %v2530_v25 }
 0x16e   : > { %v1184_v23 = vadd.f32 %v1183_v38, %v2255_v54  ;;  %v1246_v20 = vadd.f32 %v1245_v43, %v1218_v44 }
 0x170   : > { %v1185_v22 = vadd.f32 %v1184_v23, %v2265_v59  ;;  %v1247_v31 = vadd.f32 %v1246_v20, %v1219_v51 }
 0x172   : > { %v1186_v62 = vadd.f32 %v1185_v22, %v2273_v1  ;;  %v1248_v30 = vadd.f32 %v1247_v31, %v1220_v39  ;;  %v1330_v39 = vld [vmem:[%s2695_s3] sm:$0x1] }
 0x174   : > { %v1187_v28 = vadd.f32 %v1186_v62, %v2281_v7  ;;  %v1249_v4 = vadd.f32 %v1248_v30, %v1221_v36  ;;  %v1332_v62 = vld [vmem:[%s2696_s4] sm:$0x1] }
 0x176   : > { %v1250_v33 = vadd.f32 %v1249_v4, %v1222_v12  ;;  %v1188_v45 = vadd.f32 %v1187_v28, %v2301_v16 }
 0x178   : > { %v1189_v53 = vrot.slane %v1188_v45, 4  ;;  %v1251_v15 = vadd.f32 %v1250_v33, %v1223_v60 }
 0x17a   : > { %v1190_v18 = vadd.f32 %v1189_v53, %v1188_v45  ;;  %v1252_v35 = vrot.slane %v1251_v15, 4  ;;  %v2706_v53 = vld [vmem:[#allocation3_spill] sm:$0xff] }
 0x17c   : > { %v1191_v13 = vrot.slane %v1190_v18, 2  ;;  %v1253_v49 = vadd.f32 %v1252_v35, %v1251_v15 }
 0x17e   : > { %v1192_v40 = vadd.f32 %v1191_v13, %v1190_v18  ;;  %v1254_v19 = vrot.slane %v1253_v49, 2 }
 0x180   : > { %v1193_v63 = vrot.slane %v1192_v40, 1  ;;  %v1255_v46 = vadd.f32 %v1254_v19, %v1253_v49 }
 0x182   : > { %v1194_v58 = vadd.f32 %v1193_v63, %v1192_v40  ;;  %v1256_v17 = vrot.slane %v1255_v46, 1  ;;  %v2708_v40 = vld [vmem:[#allocation5_spill] sm:$0xff] }
 0x184   : > { %1290 = vmatmul.f32.vlgmr.msrb.gmra.mxu3 %v1194_v58  ;;  %v1257_v37 = vadd.f32 %v1256_v17, %v1255_v46 }
 0x18c   : > { %1310 = vmatmul.f32.vlgmr.msra.gmra.mxu3 %v1257_v37 }
 0x207   : > { %v1291_v0 = vpop.f32.mrf.mxu3 }
 0x208   : > { %v1314_v57 = vmul.f32 0.0011111111, %v1291_v0 }
 0x20a   : > { %v1316_v3 = vmul.f32 %v1314_v57, %v1314_v57 }
 0x20f   : > { %v1311_v2 = vpop.f32.mrf.mxu3 }
 0x210   : > { %v1315_v11 = vmul.f32 0.0011111111, %v1311_v2 }
 0x212   : > { %v1317_v5 = vsub.f32 %v1315_v11, %v1316_v3 }
 0x214   : > { %v1318_v24 = vmax.f32 %v1317_v5, 0.0 }
 0x216   : > { %v1319_v26 = vadd.f32 1e-05, %v1318_v24 }
 0x218   : > { %1930 = vrsqrt.f32 %v1319_v26  ;;  %vm1326_vm1 = vweird.f32 %v1319_v26 }
 0x21e   : > { %v1931_v43 = vpop.eup %1930 }
 0x21f   : > { %v1321_v38 = vmul.f32 %v1931_v43, %v1319_v26  ;;  %vm1327_vm0 = vweird.f32 %v1931_v43 }
 0x220   : > { %vm1328_vm2 = vmor %vm1326_vm1, %vm1327_vm0 }
 0x221   : > { %v1322_v44 = vmul.f32 %v1931_v43, %v1321_v38 }
 0x223   : > { %v1323_v51 = vmul.f32 0.5, %v1322_v44 }
 0x225   : > { %v1324_v23 = vsub.f32 1.5, %v1323_v51 }
 0x227   : > { %v1325_v20 = vmul.f32 %v1931_v43, %v1324_v23 }
 0x229   : > { %v1329_v22 = vsel %vm1328_vm2, %v1931_v43, %v1325_v20 }
 0x22a   : > { %v1331_v31 = vmul.f32 %v1330_v39, %v1329_v22 }
 0x22c   : > { %v1333_v36 = vmul.f32 %v1331_v31, %v1314_v57  ;;  %v2557_v12 = vperm.slane %v1331_v31, 0 }
 0x22e   : > { %v1334_v30 = vsub.f32 %v1332_v62, %v1333_v36  ;;  %v1336_v4 = vmul.f32 %v2557_v12, %v2206_v8  ;;  %v1337_v60 = vmul.f32 %v2557_v12, %v2216_v21  ;;  %v1338_v33 = vmul.f32 %v2557_v12, %v2220_v29  ;;  %v2707_v8 = vld [vmem:[#allocation4_spill] sm:$0xff] }
 0x22f   : > { %v1339_v45 = vmul.f32 %v2557_v12, %v2228_v42  ;;  %v1340_v15 = vmul.f32 %v2557_v12, %v2706_v53  ;;  %v1341_v49 = vmul.f32 %v2557_v12, %v2707_v8  ;;  %v1342_v29 = vmul.f32 %v2557_v12, %v2708_v40  ;;  %v2709_v42 = vld [vmem:[#allocation6_spill] sm:$0xff] }
 0x230   : > { %v2559_v28 = vperm.slane %v1334_v30, 0  ;;  %v1343_v63 = vmul.f32 %v2557_v12, %v2709_v42  ;;  %v1344_v58 = vmul.f32 %v2557_v12, %v2247_v6  ;;  %v1345_v2 = vmul.f32 %v2557_v12, %v2249_v34 }
 0x231   : > { %v1346_v5 = vmul.f32 %v2557_v12, %v2251_v41  ;;  %v1347_v26 = vmul.f32 %v2557_v12, %v2253_v47  ;;  %v1348_v34 = vmul.f32 %v2557_v12, %v2257_v55  ;;  %v1349_v41 = vmul.f32 %v2557_v12, %v2447_v10 }
 0x232   : > { %v1368_v18 = vadd.f32 %v2559_v28, %v1336_v4  ;;  %v1369_v35 = vadd.f32 %v2559_v28, %v1337_v60  ;;  %v1370_v13 = vadd.f32 %v2559_v28, %v1338_v33  ;;  %v1371_v21 = vadd.f32 %v2559_v28, %v1339_v45 }
 0x233   : > { %v1372_v19 = vadd.f32 %v2559_v28, %v1340_v15  ;;  %v1373_v46 = vadd.f32 %v2559_v28, %v1341_v49  ;;  %v1374_v17 = vadd.f32 %v2559_v28, %v1342_v29  ;;  %v1375_v3 = vadd.f32 %v2559_v28, %v1343_v63 }
 0x234   : > { %v1397_v37 = vmax.f32 %v1368_v18, 0.0  ;;  %v1398_v0 = vmax.f32 %v1369_v35, 0.0  ;;  %v1399_v57 = vmax.f32 %v1370_v13, 0.0  ;;  %v1400_v11 = vmax.f32 %v1371_v21, 0.0 }
 0x235   : > { %v1376_v6 = vadd.f32 %v2559_v28, %v1344_v58  ;;  %v1401_v24 = vmax.f32 %v1372_v19, 0.0  ;;  %v1377_v43 = vadd.f32 %v2559_v28, %v1345_v2  ;;  %v1402_v38 = vmax.f32 %v1373_v46, 0.0 }
 0x236   : > { %1426 = vst [vmem:[%s2584_s28] sm:$0xff] %v1397_v37  ;;  %v1378_v44 = vadd.f32 %v2559_v28, %v1346_v5  ;;  %v1403_v51 = vmax.f32 %v1374_v17, 0.0  ;;  %v1379_v23 = vadd.f32 %v2559_v28, %v1347_v26  ;;  %v1404_v20 = vmax.f32 %v1375_v3, 0.0 }
 0x237   : > { %1427 = vst [vmem:[%s2584_s28 + $0x8] sm:$0xff] %v1398_v0  ;;  %v1350_v47 = vmul.f32 %v2557_v12, %v2454_v61  ;;  %v1380_v39 = vadd.f32 %v2559_v28, %v1348_v34  ;;  %v1405_v22 = vmax.f32 %v1376_v6, 0.0  ;;  %v1351_v55 = vmul.f32 %v2557_v12, %v2465_v27 }
 0x238   : > { %1428 = vst [vmem:[%s2584_s28 + $0x10] sm:$0xff] %v1399_v57  ;;  %v1381_v31 = vadd.f32 %v2559_v28, %v1349_v41  ;;  %v1406_v36 = vmax.f32 %v1377_v43, 0.0  ;;  %v1352_v10 = vmul.f32 %v2557_v12, %v2472_v9  ;;  %v1407_v30 = vmax.f32 %v1378_v44, 0.0 }
 0x239   : > { %1429 = vst [vmem:[%s2584_s28 + $0x18] sm:$0xff] %v1400_v11  ;;  %v1382_v62 = vadd.f32 %v2559_v28, %v1350_v47  ;;  %v1353_v61 = vmul.f32 %v2557_v12, %v2484_v14  ;;  %v1383_v4 = vadd.f32 %v2559_v28, %v1351_v55  ;;  %v1408_v60 = vmax.f32 %v1379_v23, 0.0 }
 0x23a   : > { %1430 = vst [vmem:[%s2584_s28 + $0x20] sm:$0xff] %v1401_v24  ;;  %v1354_v27 = vmul.f32 %v2557_v12, %v2491_v32  ;;  %v1384_v33 = vadd.f32 %v2559_v28, %v1352_v10  ;;  %v1409_v45 = vmax.f32 %v1380_v39, 0.0  ;;  %v1355_v9 = vmul.f32 %v2557_v12, %v2500_v48 }
 0x23b   : > { %1431 = vst [vmem:[%s2584_s28 + $0x28] sm:$0xff] %v1402_v38  ;;  %v1385_v53 = vadd.f32 %v2559_v28, %v1353_v61  ;;  %v1410_v15 = vmax.f32 %v1381_v31, 0.0  ;;  %v1356_v14 = vmul.f32 %v2557_v12, %v2506_v52  ;;  %v1411_v35 = vmax.f32 %v1382_v62, 0.0 }
 0x23c   : > { %1432 = vst [vmem:[%s2584_s28 + $0x30] sm:$0xff] %v1403_v51  ;;  %v1386_v18 = vadd.f32 %v2559_v28, %v1354_v27  ;;  %v1357_v32 = vmul.f32 %v2557_v12, %v2512_v50  ;;  %v1387_v13 = vadd.f32 %v2559_v28, %v1355_v9  ;;  %v1412_v8 = vmax.f32 %v1383_v4, 0.0 }
 0x23d   : > { %1433 = vst [vmem:[%s2584_s28 + $0x38] sm:$0xff] %v1404_v20  ;;  %v1358_v48 = vmul.f32 %v2557_v12, %v2518_v56  ;;  %v1388_v49 = vadd.f32 %v2559_v28, %v1356_v14  ;;  %v1413_v21 = vmax.f32 %v1384_v33, 0.0  ;;  %v1359_v52 = vmul.f32 %v2557_v12, %v2530_v25 }
 0x23e   : > { %1434 = vst [vmem:[%s2584_s28 + $0x40] sm:$0xff] %v1405_v22  ;;  %v1389_v40 = vadd.f32 %v2559_v28, %v1357_v32  ;;  %v1414_v29 = vmax.f32 %v1385_v53, 0.0  ;;  %v1360_v50 = vmul.f32 %v2557_v12, %v2255_v54  ;;  %v1415_v42 = vmax.f32 %v1386_v18, 0.0 }
 0x23f   : > { %1435 = vst [vmem:[%s2584_s28 + $0x48] sm:$0xff] %v1406_v36  ;;  %v1390_v19 = vadd.f32 %v2559_v28, %v1358_v48  ;;  %v1361_v56 = vmul.f32 %v2557_v12, %v2265_v59  ;;  %v1391_v63 = vadd.f32 %v2559_v28, %v1359_v52  ;;  %v1416_v58 = vmax.f32 %v1387_v13, 0.0 }
 0x240   : > { %1436 = vst [vmem:[%s2584_s28 + $0x50] sm:$0xff] %v1407_v30  ;;  %v1362_v25 = vmul.f32 %v2557_v12, %v2273_v1  ;;  %v1392_v46 = vadd.f32 %v2559_v28, %v1360_v50  ;;  %v1417_v54 = vmax.f32 %v1388_v49, 0.0  ;;  %v1363_v17 = vmul.f32 %v2557_v12, %v2281_v7 }
 0x241   : > { %1437 = vst [vmem:[%s2584_s28 + $0x58] sm:$0xff] %v1408_v60  ;;  %v1393_v37 = vadd.f32 %v2559_v28, %v1361_v56  ;;  %v1418_v59 = vmax.f32 %v1389_v40, 0.0  ;;  %v1364_v0 = vmul.f32 %v2557_v12, %v2301_v16  ;;  %v1419_v57 = vmax.f32 %v1390_v19, 0.0 }
 0x242   : > { %1438 = vst [vmem:[%s2584_s28 + $0x60] sm:$0xff] %v1409_v45  ;;  %v1394_v1 = vadd.f32 %v2559_v28, %v1362_v25  ;;  %v1395_v2 = vadd.f32 %v2559_v28, %v1363_v17  ;;  %v1420_v7 = vmax.f32 %v1391_v63, 0.0  ;;  %v1421_v11 = vmax.f32 %v1392_v46, 0.0 }
 0x243   : > { %1439 = vst [vmem:[%s2584_s28 + $0x68] sm:$0xff] %v1410_v15  ;;  %v1396_v3 = vadd.f32 %v2559_v28, %v1364_v0  ;;  %v1422_v5 = vmax.f32 %v1393_v37, 0.0 }
 0x244   : > { %1440 = vst [vmem:[%s2584_s28 + $0x70] sm:$0xff] %v1411_v35  ;;  %v1423_v16 = vmax.f32 %v1394_v1, 0.0  ;;  %v1424_v12 = vmax.f32 %v1395_v2, 0.0 }
 0x245   : > { %1441 = vst [vmem:[%s2584_s28 + $0x78] sm:$0xff] %v1412_v8  ;;  %v1425_v6 = vmax.f32 %v1396_v3, 0.0 }
 0x246   : > { %1442 = vst [vmem:[%s2584_s28 + $0x80] sm:$0xff] %v1413_v21 }
 0x247   : > { %1443 = vst [vmem:[%s2584_s28 + $0x88] sm:$0xff] %v1414_v29 }
 0x248   : > { %1444 = vst [vmem:[%s2584_s28 + $0x90] sm:$0xff] %v1415_v42 }
 0x249   : > { %1445 = vst [vmem:[%s2584_s28 + $0x98] sm:$0xff] %v1416_v58 }
 0x24a   : > { %1446 = vst [vmem:[%s2584_s28 + $0xa0] sm:$0xff] %v1417_v54 }
 0x24b   : > { %1447 = vst [vmem:[%s2584_s28 + $0xa8] sm:$0xff] %v1418_v59 }
 0x24c   : > { %1448 = vst [vmem:[%s2584_s28 + $0xb0] sm:$0xff] %v1419_v57 }
 0x24d   : > { %1449 = vst [vmem:[%s2584_s28 + $0xb8] sm:$0xff] %v1420_v7 }
 0x24e   : > { %1450 = vst [vmem:[%s2584_s28 + $0xc0] sm:$0xff] %v1421_v11 }
 0x24f   : > { %1451 = vst [vmem:[%s2584_s28 + $0xc8] sm:$0xff] %v1422_v5 }
 0x250   : > { %1452 = vst [vmem:[%s2584_s28 + $0xd0] sm:$0xff] %v1423_v16 }
 0x251   : > { %1453 = vst [vmem:[%s2584_s28 + $0xd8] sm:$0xff] %v1424_v12 }
 0x252   : > { %1454 = vst [vmem:[%s2584_s28 + $0xe0] sm:$0xff] %v1425_v6 }
 0x253 PF: > { %s15_s20 = sadd.s32 1, %s1954_s20   ;;  %s2710_s18 = smov %s1950_s19 }
 0x254   : > { %p12_p5 = scmp.ge.s32.totalorder %s15_s20, 4   ;;  %s2711_s19 = smov %s2713_s21 }
 0x256   :  { %14 = sbr.rel (!%p12_p5) target bundleno = 2 (0x2), region = 81 }

// kernel: inception_v4_stem.12
= control target key start
LH: loop header
LB: loop body
LE: loop exit
PB: predicated region body
PF: predicated region fallthrough
CT: control target
= control target key end

     0   :  { %s1986_s18 = smov 0   ;;  %s1988_s19 = smov 0   ;;  %s2692_s0 = inlined_call_operand.vmem [shape: bf16[2,232,384], index: 0, kind: input, shape index: {}]   ;;  %s2693_s1 = inlined_call_operand.vmem [shape: bf16[384,128], index: 1, kind: input, shape index: {}]   ;;  %s2694_s2 = inlined_call_operand.vmem [shape: f32[128,128], index: 2, kind: input, shape index: {}]   ;;  %s2695_s3 = inlined_call_operand.vmem [shape: f32[1,128], index: 3, kind: input, shape index: {}]   ;;  %s2696_s4 = inlined_call_operand.vmem [shape: f32[1,128], index: 4, kind: input, shape index: {}]   ;;  %s2697_s5 = inlined_call_operand.vmem [shape: f32[2,232,128], index: 5, kind: output, shape index: {}]  }
   0x1   :  { %s1990_s20 = smov 0  }
   0x2 LB: > { %s27_s21 = sadd.s32 1, %s1950_s19  ;;  %p1545_p0 = scmp.ge.s32.totalorder %s1954_s20, 1  ;;  %s1954_s20 = sphi %s1990_s20, %s15_s20   ;;  %s1950_s19 = sphi %s1988_s19, %s2711_s19   ;;  %s1946_s18 = sphi %s1986_s18, %s2710_s18  }
   0x3   : > { %p29_p1 = scmp.ge.s32.totalorder %s27_s21, 2  ;;  %p217_p2 = scmp.lt.s32.totalorder %s1954_s20, 3 }
   0x5   : > { %s2713_s21 = smov (%p29_p1, %s27_s21), 0  ;;  %p218_p3 = pnand %p1545_p0, %p217_p2 }
   0x7   : > { %221 = sbr.rel (%p218_p3) target bundleno = 595 (0x253), region = 40 }
   0xc   : > { %v1863_v0 = vld [vmem:[%s2693_s1 + $0x38] sm:$0xff]  ;;  %v1862_v3 = vld [vmem:[%s2693_s1 + $0x30] sm:$0xff]  ;;  %v1861_v6 = vld [vmem:[%s2693_s1 + $0x28] sm:$0xff]  ;;  %p255_p4 = scmp.lt.s32.totalorder %s1946_s18, 1 }
   0xd   : > { %v2012_v1 = vld [vmem:[%s2693_s1 + $0x78] sm:$0xff]  ;;  %822 = vmatpush.bf16.msra.mxu0 %v1863_v0  ;;  %1880 = vmatpush.bf16.msra.mxu3 %v1863_v0  ;;  %v2027_v4 = vld [vmem:[%s2693_s1 + $0x70] sm:$0xff]  ;;  %v1869_v7 = vld [vmem:[%s2693_s1 + $0x68] sm:$0xff] }
   0xe   : > { %v2017_v2 = vld [vmem:[%s2693_s1 + $0xb8] sm:$0xff]  ;;  %905 = vmatpush.bf16.msra.mxu1 %v2012_v1  ;;  %v2032_v5 = vld [vmem:[%s2693_s1 + $0xb0] sm:$0xff]  ;;  %v2045_v8 = vld [vmem:[%s2693_s1 + $0xa8] sm:$0xff]  ;;  %s2715_s18 = smov (!%p255_p4, %s1946_s18), 1 }
   0xf   : > { %988 = vmatpush.bf16.msra.mxu2 %v2017_v2  ;;  %v1860_v9 = vld [vmem:[%s2693_s1 + $0x20] sm:$0xff]  ;;  %v1859_v12 = vld [vmem:[%s2693_s1 + $0x18] sm:$0xff]  ;;  %v1858_v15 = vld [vmem:[%s2693_s1 + $0x10] sm:$0xff]  ;;  %s1904_s8 = smul.u32 348, %s2715_s18 }
  0x10   : > { %v2055_v10 = vld [vmem:[%s2693_s1 + $0x60] sm:$0xff]  ;;  %v1867_v13 = vld [vmem:[%s2693_s1 + $0x58] sm:$0xff]  ;;  %v1866_v16 = vld [vmem:[%s2693_s1 + $0x50] sm:$0xff]  ;;  %s1905_s26 = smul.u32 232, %s2715_s18 }
  0x11   : > { %823 = vmatpush.bf16.msra.mxu0 %v1862_v3  ;;  %1881 = vmatpush.bf16.msra.mxu3 %v1862_v3  ;;  %v2060_v11 = vld [vmem:[%s2693_s1 + $0xa0] sm:$0xff]  ;;  %v2076_v14 = vld [vmem:[%s2693_s1 + $0x98] sm:$0xff]  ;;  %v2089_v17 = vld [vmem:[%s2693_s1 + $0x90] sm:$0xff]  ;;  %s2097_s17 = scalar_lea.vmem %s2692_s0, %s1904_s8 }
  0x12   : > { %906 = vmatpush.bf16.msra.mxu1 %v2027_v4  ;;  %v1857_v18 = vld [vmem:[%s2693_s1 + $0x8] sm:$0xff]  ;;  %v1856_v21 = vld [vmem:[%s2693_s1] sm:$0xff]  ;;  %v1552_v29 = vld [vmem:[%s2097_s17 + $0xc] sm:$0xf0]  ;;  %s2584_s28 = scalar_lea.vmem %s2697_s5, %s1905_s26 }
  0x13   : > { %989 = vmatpush.bf16.msra.mxu2 %v2032_v5  ;;  %v1865_v19 = vld [vmem:[%s2693_s1 + $0x48] sm:$0xff]  ;;  %v1864_v22 = vld [vmem:[%s2693_s1 + $0x40] sm:$0xff]  ;;  %v1816_v31 = vld [vmem:[%s2097_s17 + $0x10] sm:$0xf0] }
  0x14   : > { %v2106_v20 = vld [vmem:[%s2693_s1 + $0x88] sm:$0xff]  ;;  %v2117_v23 = vld [vmem:[%s2693_s1 + $0x80] sm:$0xff]  ;;  %v1562_v36 = vld [vmem:[%s2097_s17 + $0x18] sm:$0xf] }
  0x15   : > { %824 = vmatpush.bf16.msra.mxu0 %v1861_v6  ;;  %1882 = vmatpush.bf16.msra.mxu3 %v1861_v6  ;;  %v1550_v24 = vld [vmem:[%s2097_s17] sm:$0xf]  ;;  %v1815_v25 = vld [vmem:[%s2097_s17 + $0x8] sm:$0xf0]  ;;  %v1814_v28 = vld [vmem:[%s2097_s17 + $0x4] sm:$0xf] }
  0x16   : > { %907 = vmatpush.bf16.msra.mxu1 %v1869_v7  ;;  %v1694_v26 = vld [vmem:[%s2097_s17 + $0x120] sm:$0xf]  ;;  %v1851_v27 = vld [vmem:[%s2097_s17 + $0x128] sm:$0xf0]  ;;  %v1558_v30 = vld [vmem:[%s2097_s17 + $0x8] sm:$0xf]  ;;  %v1551_v32 = vor.u32 %v1815_v25, %v1550_v24  ;;  %v1555_v34 = vor.u32 %v1814_v28, %v1552_v29 }
  0x17   : > { %990 = vmatpush.bf16.msra.mxu2 %v2045_v8  ;;  %v1695_v33 = vor.u32 %v1851_v27, %v1694_v26  ;;  %v1559_v35 = vor.u32 %v1816_v31, %v1558_v30  ;;  %v1818_v37 = vld [vmem:[%s2097_s17 + $0x20] sm:$0xf0]  ;;  %v1706_v38 = vld [vmem:[%s2097_s17 + $0x138] sm:$0xf]  ;;  %v1817_v40 = vld [vmem:[%s2097_s17 + $0x1c] sm:$0xf] }
  0x18   : > { %v1854_v39 = vld [vmem:[%s2097_s17 + $0x140] sm:$0xf0]  ;;  %v1564_v41 = vld [vmem:[%s2097_s17 + $0x24] sm:$0xf0]  ;;  %v1570_v42 = vld [vmem:[%s2097_s17 + $0x20] sm:$0xf]  ;;  %v1563_v44 = vor.u32 %v1818_v37, %v1562_v36 }
  0x19   : > { %825 = vmatpush.bf16.msra.mxu0 %v1860_v9  ;;  %1883 = vmatpush.bf16.msra.mxu3 %v1860_v9  ;;  %v1819_v43 = vld [vmem:[%s2097_s17 + $0x28] sm:$0xf0]  ;;  %v1707_v45 = vor.u32 %v1854_v39, %v1706_v38  ;;  %v1567_v46 = vor.u32 %v1817_v40, %v1564_v41  ;;  %v2141_v48 = vld [vmem:[%s2097_s17 + $0x150] sm:$0xff]  ;;  %v1821_v51 = vld [vmem:[%s2097_s17 + $0x38] sm:$0xf0] }
  0x1a   : > { %908 = vmatpush.bf16.msra.mxu1 %v2055_v10  ;;  %v1571_v47 = vor.u32 %v1819_v43, %v1570_v42  ;;  %v585_v49 = vunpack.c.l.b16 %v2141_v48  ;;  %v1574_v50 = vld [vmem:[%s2097_s17 + $0x30] sm:$0xf]  ;;  %v1820_v52 = vld [vmem:[%s2097_s17 + $0x34] sm:$0xf]  ;;  %v1576_v53 = vld [vmem:[%s2097_s17 + $0x3c] sm:$0xf0] }
  0x1b   : > { %991 = vmatpush.bf16.msra.mxu2 %v2060_v11  ;;  %v1582_v54 = vld [vmem:[%s2097_s17 + $0x38] sm:$0xf]  ;;  %v1822_v55 = vld [vmem:[%s2097_s17 + $0x40] sm:$0xf0]  ;;  %v1575_v56 = vor.u32 %v1821_v51, %v1574_v50  ;;  %v1579_v58 = vor.u32 %v1820_v52, %v1576_v53  ;;  %v1586_v60 = vld [vmem:[%s2097_s17 + $0x48] sm:$0xf] }
  0x1c   : > { %v630_v57 = vpack.c.b16 %v585_v49, %v585_v49  ;;  %v1583_v59 = vor.u32 %v1822_v55, %v1582_v54  ;;  %v1824_v61 = vld [vmem:[%s2097_s17 + $0x50] sm:$0xf0]  ;;  %v1823_v62 = vld [vmem:[%s2097_s17 + $0x4c] sm:$0xf]  ;;  %v1850_v63 = vld [vmem:[%s2097_s17 + $0x124] sm:$0xf] }
  0x1d   : > { %826 = vmatpush.bf16.msra.mxu0 %v1859_v12  ;;  %1884 = vmatpush.bf16.msra.mxu3 %v1859_v12  ;;  %v1696_v0 = vld [vmem:[%s2097_s17 + $0x12c] sm:$0xf0]  ;;  %v1825_v3 = vld [vmem:[%s2097_s17 + $0x58] sm:$0xf0]  ;;  %v1827_v9 = vld [vmem:[%s2097_s17 + $0x68] sm:$0xf0] }
  0x1e   : > { %909 = vmatpush.bf16.msra.mxu1 %v1867_v13  ;;  %v1708_v12 = vld [vmem:[%s2097_s17 + $0x144] sm:$0xf0]  ;;  %v1829_v24 = vld [vmem:[%s2097_s17 + $0x7c] sm:$0xf]  ;;  %v1831_v26 = vld [vmem:[%s2097_s17 + $0x88] sm:$0xf0] }
  0x1f   : > { %992 = vmatpush.bf16.msra.mxu2 %v2076_v14  ;;  %v1612_v25 = vld [vmem:[%s2097_s17 + $0x84] sm:$0xf0]  ;;  %v1622_v31 = vld [vmem:[%s2097_s17 + $0x90] sm:$0xf]  ;;  %v1624_v36 = vld [vmem:[%s2097_s17 + $0x9c] sm:$0xf0] }
  0x20   : > { %v1615_v29 = vor.u32 %v1829_v24, %v1612_v25  ;;  %v1630_v37 = vld [vmem:[%s2097_s17 + $0x98] sm:$0xf]  ;;  %v1834_v38 = vld [vmem:[%s2097_s17 + $0xa0] sm:$0xf0]  ;;  %v1634_v43 = vld [vmem:[%s2097_s17 + $0xa8] sm:$0xf] }
  0x21   : > { %827 = vmatpush.bf16.msra.mxu0 %v1858_v15  ;;  %1885 = vmatpush.bf16.msra.mxu3 %v1858_v15  ;;  %v1606_v15 = vld [vmem:[%s2097_s17 + $0x68] sm:$0xf]  ;;  %v1631_v42 = vor.u32 %v1834_v38, %v1630_v37  ;;  %v1642_v49 = vld [vmem:[%s2097_s17 + $0xb0] sm:$0xf]  ;;  %v1837_v50 = vld [vmem:[%s2097_s17 + $0xb8] sm:$0xf0] }
  0x22   : > { %910 = vmatpush.bf16.msra.mxu1 %v1866_v16  ;;  %v1643_v54 = vor.u32 %v1837_v50, %v1642_v49  ;;  %v394_v55 = vld [vmem:[%s2097_s17 + $0x158] sm:$0xf]  ;;  %v1846_v38 = vld [vmem:[%s2097_s17 + $0x100] sm:$0xf0] }
  0x23   : > { %993 = vmatpush.bf16.msra.mxu2 %v2089_v17  ;;  %v1678_v37 = vld [vmem:[%s2097_s17 + $0xf8] sm:$0xf] }
  0x25   : > { %828 = vmatpush.bf16.msra.mxu0 %v1857_v18  ;;  %1886 = vmatpush.bf16.msra.mxu3 %v1857_v18 }
  0x26   : > { %911 = vmatpush.bf16.msra.mxu1 %v1865_v19 }
  0x27   : > { %994 = vmatpush.bf16.msra.mxu2 %v2106_v20 }
  0x29   : > { %829 = vmatpush.bf16.msra.mxu0 %v1856_v21  ;;  %1887 = vmatpush.bf16.msra.mxu3 %v1856_v21  ;;  %v1610_v21 = vld [vmem:[%s2097_s17 + $0x78] sm:$0xf] }
  0x2a   : > { %912 = vmatpush.bf16.msra.mxu1 %v1864_v22 }
  0x2b   : > { %995 = vmatpush.bf16.msra.mxu2 %v2117_v23 }
  0x2c   : > { %830 = vmatmul.bf16.vlgmr.msra.gmra.mxu0 %v1551_v32  ;;  %890 = vmatmul.bf16.vlgmr.msra.gmra.mxu3 %v1695_v33  ;;  %v1833_v32 = vld [vmem:[%s2097_s17 + $0x98] sm:$0xf0]  ;;  %v1832_v33 = vld [vmem:[%s2097_s17 + $0x94] sm:$0xf] }
  0x2d   : > { %1888 = vmatpush.bf16.msrb.mxu3 %v2012_v1  ;;  %913 = vmatmul.bf16.vlgmr.msra.gmra.mxu1 %v1555_v34  ;;  %v1588_v1 = vld [vmem:[%s2097_s17 + $0x54] sm:$0xf0]  ;;  %v1702_v34 = vld [vmem:[%s2097_s17 + $0x128] sm:$0xf]  ;;  %v1623_v39 = vor.u32 %v1833_v32, %v1622_v31  ;;  %v1627_v41 = vor.u32 %v1832_v33, %v1624_v36  ;;  %v1670_v33 = vld [vmem:[%s2097_s17 + $0xf0] sm:$0xf] }
  0x2e   : > { %996 = vmatmul.bf16.vlgmr.msra.gmra.mxu2 %v1559_v35  ;;  %v1591_v6 = vor.u32 %v1823_v62, %v1588_v1  ;;  %v1852_v35 = vld [vmem:[%s2097_s17 + $0x130] sm:$0xf0]  ;;  %v1672_v36 = vld [vmem:[%s2097_s17 + $0xfc] sm:$0xf0] }
  0x2f   : > { %v1703_v40 = vor.u32 %v1852_v35, %v1702_v34  ;;  %v1840_v62 = vld [vmem:[%s2097_s17 + $0xd0] sm:$0xf0]  ;;  %v1845_v34 = vld [vmem:[%s2097_s17 + $0xf8] sm:$0xf0] }
  0x30   : > { %v1844_v35 = vld [vmem:[%s2097_s17 + $0xf4] sm:$0xf] }
  0x31   : > { %1889 = vmatpush.bf16.msrb.mxu3 %v2027_v4  ;;  %v1587_v4 = vor.u32 %v1824_v61, %v1586_v60  ;;  %v1648_v60 = vld [vmem:[%s2097_s17 + $0xcc] sm:$0xf0]  ;;  %v1654_v61 = vld [vmem:[%s2097_s17 + $0xc8] sm:$0xf] }
  0x35   : > { %1890 = vmatpush.bf16.msrb.mxu3 %v1869_v7 }
  0x39   : > { %1891 = vmatpush.bf16.msrb.mxu3 %v2055_v10  ;;  %v1826_v10 = vld [vmem:[%s2097_s17 + $0x64] sm:$0xf] }
  0x3c   : > { %835 = vmatmul.bf16.gmra.mxu0 %v1563_v44  ;;  %895 = vmatmul.bf16.gmra.mxu3 %v1707_v45  ;;  %v1836_v44 = vld [vmem:[%s2097_s17 + $0xb0] sm:$0xf0]  ;;  %v1835_v45 = vld [vmem:[%s2097_s17 + $0xac] sm:$0xf] }
  0x3d   : > { %1892 = vmatpush.bf16.msrb.mxu3 %v1867_v13  ;;  %918 = vmatmul.bf16.gmra.mxu1 %v1567_v46  ;;  %v1600_v13 = vld [vmem:[%s2097_s17 + $0x6c] sm:$0xf0]  ;;  %v1714_v46 = vld [vmem:[%s2097_s17 + $0x140] sm:$0xf]  ;;  %v1635_v51 = vor.u32 %v1836_v44, %v1634_v43  ;;  %v1675_v44 = vor.u32 %v1844_v35, %v1672_v36 }
  0x3e   : > { %1001 = vmatmul.bf16.gmra.mxu2 %v1571_v47  ;;  %v1603_v18 = vor.u32 %v1826_v10, %v1600_v13  ;;  %v1855_v47 = vld [vmem:[%s2097_s17 + $0x148] sm:$0xf0]  ;;  %v1842_v13 = vld [vmem:[%s2097_s17 + $0xe0] sm:$0xf0] }
  0x3f   : > { %v1715_v52 = vor.u32 %v1855_v47, %v1714_v46 }
  0x41   : > { %1893 = vmatpush.bf16.msrb.mxu3 %v1866_v16 }
  0x45   : > { %1894 = vmatpush.bf16.msrb.mxu3 %v1865_v19 }
  0x49   : > { %1895 = vmatpush.bf16.msrb.mxu3 %v1864_v22  ;;  %v1830_v22 = vld [vmem:[%s2097_s17 + $0x80] sm:$0xf0] }
  0x4a   : > { %v1611_v27 = vor.u32 %v1830_v22, %v1610_v21 }
  0x4c   : > { %840 = vmatmul.bf16.gmra.mxu0 %v1575_v56  ;;  %900 = vmatmul.bf16.gmra.mxu3 %v630_v57  ;;  %v587_v56 = vunpack.c.l.b16 %v394_v55  ;;  %v1646_v57 = vld [vmem:[%s2097_s17 + $0xc0] sm:$0xf]  ;;  %v1848_v55 = vld [vmem:[%s2097_s17 + $0x110] sm:$0xf0] }
  0x4d   : > { %1896 = vmatpush.bf16.msra.mxu3 %v2017_v2  ;;  %923 = vmatmul.bf16.gmra.mxu1 %v1579_v58  ;;  %v1594_v2 = vld [vmem:[%s2097_s17 + $0x50] sm:$0xf]  ;;  %v1839_v58 = vld [vmem:[%s2097_s17 + $0xc8] sm:$0xf0] }
  0x4e   : > { %1006 = vmatmul.bf16.gmra.mxu2 %v1583_v59  ;;  %v1595_v7 = vor.u32 %v1825_v3, %v1594_v2  ;;  %v1838_v59 = vld [vmem:[%s2097_s17 + $0xc4] sm:$0xf]  ;;  %v1655_v3 = vor.u32 %v1840_v62, %v1654_v61 }
  0x4f   : > { %v1651_v2 = vor.u32 %v1838_v59, %v1648_v60  ;;  %v1849_v59 = vld [vmem:[%s2097_s17 + $0x118] sm:$0xf0] }
  0x51   : > { %1897 = vmatpush.bf16.msra.mxu3 %v2032_v5  ;;  %v1699_v5 = vor.u32 %v1850_v63, %v1696_v0  ;;  %v1647_v63 = vor.u32 %v1839_v58, %v1646_v57  ;;  %v632_v0 = vpack.c.b16 %v587_v56, %v587_v56  ;;  %v1847_v56 = vld [vmem:[%s2097_s17 + $0x10c] sm:$0xf]  ;;  %v1684_v57 = vld [vmem:[%s2097_s17 + $0x114] sm:$0xf0]  ;;  %v1690_v58 = vld [vmem:[%s2097_s17 + $0x110] sm:$0xf] }
  0x55   : > { %1898 = vmatpush.bf16.msra.mxu3 %v2045_v8  ;;  %v1598_v8 = vld [vmem:[%s2097_s17 + $0x60] sm:$0xf] }
  0x56   : > { %v1599_v16 = vor.u32 %v1827_v9, %v1598_v8 }
  0x59   : > { %1899 = vmatpush.bf16.msra.mxu3 %v2060_v11  ;;  %v1853_v11 = vld [vmem:[%s2097_s17 + $0x13c] sm:$0xf] }
  0x5c   : > { %845 = vmatmul.bf16.gmra.mxu0 %v1587_v4  ;;  %973 = vmatmul.bf16.vlgmr.msrb.gmra.mxu3 %v1699_v5 }
  0x5d   : > { %1900 = vmatpush.bf16.msra.mxu3 %v2076_v14  ;;  %928 = vmatmul.bf16.gmra.mxu1 %v1591_v6  ;;  %v1828_v14 = vld [vmem:[%s2097_s17 + $0x70] sm:$0xf0] }
  0x5e   : > { %1011 = vmatmul.bf16.gmra.mxu2 %v1595_v7  ;;  %v1607_v19 = vor.u32 %v1828_v14, %v1606_v15  ;;  %v1841_v15 = vld [vmem:[%s2097_s17 + $0xdc] sm:$0xf]  ;;  %v1660_v14 = vld [vmem:[%s2097_s17 + $0xe4] sm:$0xf0] }
  0x5f   : > { %v1663_v24 = vor.u32 %v1841_v15, %v1660_v14 }
  0x61   : > { %1901 = vmatpush.bf16.msra.mxu3 %v2089_v17  ;;  %v1711_v17 = vor.u32 %v1853_v11, %v1708_v12  ;;  %v1658_v12 = vld [vmem:[%s2097_s17 + $0xd8] sm:$0xf] }
  0x65   : > { %1902 = vmatpush.bf16.msra.mxu3 %v2106_v20  ;;  %v586_v20 = vunpack.c.h.b16 %v2141_v48  ;;  %v1636_v48 = vld [vmem:[%s2097_s17 + $0xb4] sm:$0xf0] }
  0x66   : > { %v1639_v53 = vor.u32 %v1835_v45, %v1636_v48  ;;  %v1679_v45 = vor.u32 %v1846_v38, %v1678_v37 }
  0x67   : > { %v631_v28 = vpack.c.b16 %v586_v20, %v586_v20  ;;  %v1659_v20 = vor.u32 %v1842_v13, %v1658_v12 }
  0x69   : > { %1903 = vmatpush.bf16.msra.mxu3 %v2117_v23  ;;  %v1618_v23 = vld [vmem:[%s2097_s17 + $0x80] sm:$0xf] }
  0x6a   : > { %v1619_v30 = vor.u32 %v1831_v26, %v1618_v23 }
  0x6c   : > { %850 = vmatmul.bf16.gmra.mxu0 %v1599_v16  ;;  %978 = vmatmul.bf16.gmra.mxu3 %v1711_v17  ;;  %v1666_v16 = vld [vmem:[%s2097_s17 + $0xe0] sm:$0xf]  ;;  %v1843_v17 = vld [vmem:[%s2097_s17 + $0xe8] sm:$0xf0] }
  0x6d   : > { %933 = vmatmul.bf16.gmra.mxu1 %v1603_v18  ;;  %v1667_v25 = vor.u32 %v1843_v17, %v1666_v16 }
  0x6e   : > { %1016 = vmatmul.bf16.gmra.mxu2 %v1607_v19 }
  0x7c   : > { %855 = vmatmul.bf16.gmra.mxu0 %v1611_v27  ;;  %983 = vmatmul.bf16.gmra.mxu3 %v631_v28 }
  0x7d   : > { %938 = vmatmul.bf16.gmra.mxu1 %v1615_v29 }
  0x7e   : > { %1021 = vmatmul.bf16.gmra.mxu2 %v1619_v30 }
  0x8c   : > { %860 = vmatmul.bf16.gmra.mxu0 %v1623_v39  ;;  %1056 = vmatmul.bf16.vlgmr.msra.gmra.mxu3 %v1703_v40 }
  0x8d   : > { %943 = vmatmul.bf16.gmra.mxu1 %v1627_v41  ;;  %v1671_v41 = vor.u32 %v1845_v34, %v1670_v33 }
  0x8e   : > { %1026 = vmatmul.bf16.gmra.mxu2 %v1631_v42 }
  0x9c   : > { %865 = vmatmul.bf16.gmra.mxu0 %v1635_v51  ;;  %1061 = vmatmul.bf16.gmra.mxu3 %v1715_v52 }
  0x9d   : > { %948 = vmatmul.bf16.gmra.mxu1 %v1639_v53 }
  0x9e   : > { %1031 = vmatmul.bf16.gmra.mxu2 %v1643_v54  ;;  %v1682_v54 = vld [vmem:[%s2097_s17 + $0x108] sm:$0xf] }
  0x9f   : > { %v1683_v62 = vor.u32 %v1848_v55, %v1682_v54 }
  0xa9   : > { %v831_v1 = vpop.f32.mrf.mxu0 }
  0xaa   : > { %v914_v4 = vpop.f32.mrf.mxu1 }
  0xab   : > { %v915_v5 = vadd.f32 %v914_v4, %v831_v1  ;;  %v1687_v1 = vor.u32 %v1847_v56, %v1684_v57 }
  0xac   : > { %870 = vmatmul.bf16.gmra.mxu0 %v1647_v63  ;;  %1066 = vmatmul.bf16.gmra.mxu3 %v632_v0 }
  0xad   : > { %953 = vmatmul.bf16.gmra.mxu1 %v1651_v2  ;;  %v1691_v2 = vor.u32 %v1849_v59, %v1690_v58 }
  0xae   : > { %1036 = vmatmul.bf16.gmra.mxu2 %v1655_v3 }
  0xaf   : > { %v2204_v6 = vpop.f32.mrf.mxu3 }
  0xb1   : > { %v997_v7 = vpop.f32.mrf.mxu2  ;;  %v833_v9 = vpop.f32.mrf.mxu0 }
  0xb2   : > { %v2206_v8 = vadd.f32 %v997_v7, %v915_v5  ;;  %v916_v10 = vpop.f32.mrf.mxu1 }
  0xb3   : > { %v917_v11 = vadd.f32 %v916_v10, %v833_v9 }
  0xb7   : > { %v2214_v18 = vpop.f32.mrf.mxu3 }
  0xb9   : > { %v999_v19 = vpop.f32.mrf.mxu2  ;;  %v836_v22 = vpop.f32.mrf.mxu0 }
  0xba   : > { %v2216_v21 = vadd.f32 %v999_v19, %v917_v11  ;;  %v919_v23 = vpop.f32.mrf.mxu1 }
  0xbb   : > { %v920_v26 = vadd.f32 %v919_v23, %v836_v22 }
  0xbc   : > { %875 = vmatmul.bf16.gmra.mxu0 %v1659_v20 }
  0xbd   : > { %958 = vmatmul.bf16.gmra.mxu1 %v1663_v24 }
  0xbe   : > { %1041 = vmatmul.bf16.gmra.mxu2 %v1667_v25 }
  0xbf   : > { %v2218_v27 = vpop.f32.mrf.mxu3 }
  0xc1   : > { %v1002_v28 = vpop.f32.mrf.mxu2  ;;  %v838_v30 = vpop.f32.mrf.mxu0 }
  0xc2   : > { %v2220_v29 = vadd.f32 %v1002_v28, %v920_v26  ;;  %v921_v31 = vpop.f32.mrf.mxu1 }
  0xc3   : > { %v922_v32 = vadd.f32 %v921_v31, %v838_v30 }
  0xc7   : > { %v898_v39 = vpop.f32.mrf.mxu3 }
  0xc9   : > { %v1004_v40 = vpop.f32.mrf.mxu2  ;;  %v841_v43 = vpop.f32.mrf.mxu0 }
  0xca   : > { %v2228_v42 = vadd.f32 %v1004_v40, %v922_v32  ;;  %v924_v46 = vpop.f32.mrf.mxu1 }
  0xcb   : > { %v925_v47 = vadd.f32 %v924_v46, %v841_v43 }
  0xcc   : > { %880 = vmatmul.bf16.gmra.mxu0 %v1671_v41 }
  0xcd   : > { %963 = vmatmul.bf16.gmra.mxu1 %v1675_v44 }
  0xce   : > { %1046 = vmatmul.bf16.gmra.mxu2 %v1679_v45 }
  0xcf   : > { %v901_v48 = vpop.f32.mrf.mxu3 }
  0xd1   : > { %v1007_v49 = vpop.f32.mrf.mxu2  ;;  %v843_v51 = vpop.f32.mrf.mxu0 }
  0xd2   : > { %v2230_v50 = vadd.f32 %v1007_v49, %v925_v47  ;;  %v926_v52 = vpop.f32.mrf.mxu1 }
  0xd3   : > { %v927_v53 = vadd.f32 %v926_v52, %v843_v51 }
  0xd4   : > { %2702 = vst [vmem:[#allocation3_spill] sm:$0xff] %v2230_v50 }
  0xd7   : > { %v903_v60 = vpop.f32.mrf.mxu3 }
  0xd9   : > { %v1009_v61 = vpop.f32.mrf.mxu2  ;;  %v846_v0 = vpop.f32.mrf.mxu0 }
  0xda   : > { %v2238_v63 = vadd.f32 %v1009_v61, %v927_v53  ;;  %v929_v3 = vpop.f32.mrf.mxu1 }
  0xdb   : > { %v930_v4 = vadd.f32 %v929_v3, %v846_v0 }
  0xdc   : > { %2703 = vst [vmem:[#allocation4_spill] sm:$0xff] %v2238_v63  ;;  %885 = vmatmul.bf16.gmra.mxu0 %v1683_v62 }
  0xdd   : > { %968 = vmatmul.bf16.gmra.mxu1 %v1687_v1 }
  0xde   : > { %1051 = vmatmul.bf16.gmra.mxu2 %v1691_v2 }
  0xdf   : > { %v974_v5 = vpop.f32.mrf.mxu3 }
  0xe0   : > { %v975_v7 = vadd.f32 %v974_v5, %v2204_v6 }
  0xe1   : > { %v1012_v9 = vpop.f32.mrf.mxu2  ;;  %v848_v11 = vpop.f32.mrf.mxu0 }
  0xe2   : > { %v2241_v10 = vadd.f32 %v1012_v9, %v930_v4  ;;  %v931_v12 = vpop.f32.mrf.mxu1 }
  0xe3   : > { %v932_v13 = vadd.f32 %v931_v12, %v848_v11  ;;  %v2290_v12 = vld [vmem:[%s2694_s2 + $0x78] sm:$0xff] }
  0xe4   : > { %2704 = vst [vmem:[#allocation5_spill] sm:$0xff] %v2241_v10  ;;  %1274 = vmatpush.msrb.mxu3 %v2290_v12 }
  0xe7   : > { %v976_v15 = vpop.f32.mrf.mxu3 }
  0xe8   : > { %v977_v14 = vadd.f32 %v976_v15, %v2214_v18 }
  0xe9   : > { %v1014_v16 = vpop.f32.mrf.mxu2  ;;  %v851_v19 = vpop.f32.mrf.mxu0 }
  0xea   : > { %v2244_v17 = vadd.f32 %v1014_v16, %v932_v13  ;;  %v934_v20 = vpop.f32.mrf.mxu1  ;;  %v2296_v13 = vld [vmem:[%s2694_s2 + $0x70] sm:$0xff] }
  0xeb   : > { %v935_v22 = vadd.f32 %v934_v20, %v851_v19  ;;  %1275 = vmatpush.msrb.mxu3 %v2296_v13  ;;  %v2306_v19 = vld [vmem:[%s2694_s2 + $0x68] sm:$0xff] }
  0xec   : > { %2705 = vst [vmem:[#allocation6_spill] sm:$0xff] %v2244_v17 }
  0xed   : > { %1276 = vmatpush.msrb.mxu3 %v2306_v19 }
  0xef   : > { %v979_v24 = vpop.f32.mrf.mxu3 }
  0xf0   : > { %v980_v25 = vadd.f32 %v979_v24, %v2218_v27  ;;  %v2316_v24 = vld [vmem:[%s2694_s2 + $0x60] sm:$0xff] }
  0xf1   : > { %v1017_v23 = vpop.f32.mrf.mxu2  ;;  %v853_v26 = vpop.f32.mrf.mxu0  ;;  %1277 = vmatpush.msrb.mxu3 %v2316_v24 }
  0xf2   : > { %v2247_v6 = vadd.f32 %v1017_v23, %v935_v22  ;;  %v936_v28 = vpop.f32.mrf.mxu1  ;;  %v2328_v23 = vld [vmem:[%s2694_s2 + $0x50] sm:$0xff] }
  0xf3   : > { %v937_v30 = vadd.f32 %v936_v28, %v853_v26 }
  0xf7   : > { %v981_v31 = vpop.f32.mrf.mxu3 }
  0xf8   : > { %v982_v32 = vadd.f32 %v981_v31, %v898_v39 }
  0xf9   : > { %v1019_v33 = vpop.f32.mrf.mxu2  ;;  %v856_v18 = vpop.f32.mrf.mxu0 }
  0xfa   : > { %v2249_v34 = vadd.f32 %v1019_v33, %v937_v30  ;;  %v939_v35 = vpop.f32.mrf.mxu1  ;;  %v2336_v30 = vld [vmem:[%s2694_s2 + $0x48] sm:$0xff]  ;;  %v2346_v33 = vld [vmem:[%s2694_s2 + $0x40] sm:$0xff] }
  0xfb   : > { %v940_v36 = vadd.f32 %v939_v35, %v856_v18  ;;  %v1196_v18 = vmul.f32 %v2216_v21, %v2216_v21  ;;  %v2354_v35 = vld [vmem:[%s2694_s2 + $0x38] sm:$0xff] }
  0xff   : > { %v984_v37 = vpop.f32.mrf.mxu3 }
 0x100   : > { %v985_v38 = vadd.f32 %v984_v37, %v901_v48  ;;  %v1161_v37 = vadd.f32 %v2216_v21, %v2206_v8 }
 0x101   : > { %v1022_v40 = vpop.f32.mrf.mxu2  ;;  %v858_v27 = vpop.f32.mrf.mxu0 }
 0x102   : > { %v2251_v41 = vadd.f32 %v1022_v40, %v940_v36  ;;  %v941_v43 = vpop.f32.mrf.mxu1  ;;  %v1195_v36 = vmul.f32 %v2206_v8, %v2206_v8  ;;  %v2366_v40 = vld [vmem:[%s2694_s2 + $0x30] sm:$0xff] }
 0x103   : > { %v942_v44 = vadd.f32 %v941_v43, %v858_v27  ;;  %v1162_v43 = vadd.f32 %v1161_v37, %v2220_v29  ;;  %v1201_v37 = vmul.f32 %v2241_v10, %v2241_v10 }
 0x104   : > { %v1224_v27 = vadd.f32 %v1196_v18, %v1195_v36 }
 0x107   : > { %v986_v45 = vpop.f32.mrf.mxu3 }
 0x109   : > { %v1024_v46 = vpop.f32.mrf.mxu2  ;;  %v861_v49 = vpop.f32.mrf.mxu0 }
 0x10a   : > { %v2253_v47 = vadd.f32 %v1024_v46, %v942_v44  ;;  %v944_v39 = vpop.f32.mrf.mxu1  ;;  %v1198_v44 = vmul.f32 %v2228_v42, %v2228_v42  ;;  %v2377_v46 = vld [vmem:[%s2694_s2 + $0x28] sm:$0xff] }
 0x10b   : > { %v945_v51 = vadd.f32 %v944_v39, %v861_v49  ;;  %v1163_v39 = vadd.f32 %v1162_v43, %v2228_v42 }
 0x10f   : > { %v1057_v52 = vpop.f32.mrf.mxu3 }
 0x110   : > { %v2255_v54 = vadd.f32 %v1057_v52, %v975_v7 }
 0x111   : > { %v1027_v53 = vpop.f32.mrf.mxu2  ;;  %v2259_v48 = vpop.f32.mrf.mxu0 }
 0x112   : > { %v2257_v55 = vadd.f32 %v1027_v53, %v945_v51  ;;  %v2261_v56 = vpop.f32.mrf.mxu1  ;;  %v1199_v51 = vmul.f32 %v2230_v50, %v2230_v50 }
 0x117   : > { %v1059_v57 = vpop.f32.mrf.mxu3 }
 0x118   : > { %v2265_v59 = vadd.f32 %v1059_v57, %v977_v14  ;;  %v2390_v57 = vld [vmem:[%s2694_s2 + $0x20] sm:$0xff] }
 0x119   : > { %v2263_v58 = vpop.f32.mrf.mxu2  ;;  %v2267_v60 = vpop.f32.mrf.mxu0 }
 0x11a   : > { %v2269_v61 = vpop.f32.mrf.mxu1 }
 0x11f   : > { %v1062_v62 = vpop.f32.mrf.mxu3 }
 0x120   : > { %v2273_v1 = vadd.f32 %v1062_v62, %v980_v25  ;;  %v2322_v25 = vld [vmem:[%s2694_s2 + $0x58] sm:$0xff] }
 0x121   : > { %v2271_v0 = vpop.f32.mrf.mxu2  ;;  %v2275_v2 = vpop.f32.mrf.mxu0  ;;  %1278 = vmatpush.msrb.mxu3 %v2322_v25 }
 0x122   : > { %v2277_v3 = vpop.f32.mrf.mxu1 }
 0x123   : > { %1279 = vmatpush.msrb.mxu3 %v2328_v23 }
 0x125   : > { %1280 = vmatpush.msrb.mxu3 %v2336_v30 }
 0x127   : > { %v1064_v4 = vpop.f32.mrf.mxu3  ;;  %1281 = vmatpush.msrb.mxu3 %v2346_v33 }
 0x128   : > { %v2281_v7 = vadd.f32 %v1064_v4, %v982_v32  ;;  %v1164_v4 = vadd.f32 %v1163_v39, %v2230_v50  ;;  %v2419_v39 = vld [vmem:[%s2694_s2 + $0x8] sm:$0xff]  ;;  %v947_v50 = vadd.f32 %v2261_v56, %v2259_v48 }
 0x129   : > { %v2279_v5 = vpop.f32.mrf.mxu2  ;;  %v2283_v9 = vpop.f32.mrf.mxu0  ;;  %1282 = vmatpush.msrb.mxu3 %v2354_v35 }
 0x12a   : > { %v2285_v11 = vpop.f32.mrf.mxu1  ;;  %v1165_v36 = vadd.f32 %v1164_v4, %v2238_v63  ;;  %v1203_v4 = vmul.f32 %v2247_v6, %v2247_v6 }
 0x12b   : > { %1283 = vmatpush.msrb.mxu3 %v2366_v40 }
 0x12c   : > { %v1166_v43 = vadd.f32 %v1165_v36, %v2241_v10  ;;  %v2428_v36 = vld [vmem:[%s2694_s2] sm:$0xff] }
 0x12d   : > { %1284 = vmatpush.msrb.mxu3 %v2377_v46 }
 0x12f   : > { %v1067_v15 = vpop.f32.mrf.mxu3  ;;  %1285 = vmatpush.msrb.mxu3 %v2390_v57 }
 0x130   : > { %v2301_v16 = vadd.f32 %v1067_v15, %v985_v38  ;;  %v1197_v38 = vmul.f32 %v2220_v29, %v2220_v29  ;;  %v1200_v15 = vmul.f32 %v2238_v63, %v2238_v63 }
 0x131   : > { %v2299_v14 = vpop.f32.mrf.mxu2  ;;  %v2308_v20 = vpop.f32.mrf.mxu0 }
 0x132   : > { %v2311_v22 = vpop.f32.mrf.mxu1  ;;  %v1225_v49 = vadd.f32 %v1224_v27, %v1197_v38  ;;  %v2408_v38 = vld [vmem:[%s2694_s2 + $0x10] sm:$0xff] }
 0x134   : > { %v1226_v62 = vadd.f32 %v1225_v49, %v1198_v44  ;;  %v1202_v44 = vmul.f32 %v2244_v17, %v2244_v17 }
 0x136   : > { %v1227_v18 = vadd.f32 %v1226_v62, %v1199_v51  ;;  %v1167_v62 = vadd.f32 %v1166_v43, %v2244_v17  ;;  %v1205_v17 = vmul.f32 %v2251_v41, %v2251_v41 }
 0x137   : > { %v1069_v26 = vpop.f32.mrf.mxu3 }
 0x138   : > { %v2399_v26 = vld [vmem:[%s2694_s2 + $0x18] sm:$0xff]  ;;  %v1228_v27 = vadd.f32 %v1227_v18, %v1200_v15  ;;  %v1168_v63 = vadd.f32 %v1167_v62, %v2247_v6 }
 0x139   : > { %v2331_v28 = vpop.f32.mrf.mxu2  ;;  %v2338_v31 = vpop.f32.mrf.mxu0  ;;  %1286 = vmatpush.msrb.mxu3 %v2399_v26 }
 0x13a   : > { %v2341_v32 = vpop.f32.mrf.mxu1  ;;  %v1229_v51 = vadd.f32 %v1228_v27, %v1201_v37  ;;  %v1204_v37 = vmul.f32 %v2249_v34, %v2249_v34  ;;  %v1169_v43 = vadd.f32 %v1168_v63, %v2249_v34 }
 0x13b   : > { %1287 = vmatpush.msrb.mxu3 %v2408_v38 }
 0x13c   : > { %v1230_v10 = vadd.f32 %v1229_v51, %v1202_v44  ;;  %v950_v44 = vadd.f32 %v2269_v61, %v2267_v60  ;;  %v1170_v62 = vadd.f32 %v1169_v43, %v2251_v41  ;;  %v1207_v60 = vmul.f32 %v2257_v55, %v2257_v55 }
 0x13d   : > { %1288 = vmatpush.msrb.mxu3 %v2419_v39 }
 0x13e   : > { %v1231_v27 = vadd.f32 %v1230_v10, %v1203_v4  ;;  %v2447_v10 = vadd.f32 %v2263_v58, %v947_v50  ;;  %v1171_v48 = vadd.f32 %v1170_v62, %v2253_v47  ;;  %v2454_v61 = vadd.f32 %v2271_v0, %v950_v44 }
 0x13f   : > { %1289 = vmatpush.msrb.mxu3 %v2428_v36  ;;  %v955_v50 = vadd.f32 %v2285_v11, %v2283_v9  ;;  %v957_v11 = vadd.f32 %v2311_v22, %v2308_v20 }
 0x140   : > { %v1232_v51 = vadd.f32 %v1231_v27, %v1204_v37  ;;  %v1208_v37 = vmul.f32 %v2447_v10, %v2447_v10 }
 0x141   : > { %v2372_v45 = vpop.f32.mrf.mxu2  ;;  %v2382_v52 = vpop.f32.mrf.mxu0  ;;  %1294 = vmatpush.msra.mxu3 %v2290_v12  ;;  %v1206_v12 = vmul.f32 %v2253_v47, %v2253_v47  ;;  %v2472_v9 = vadd.f32 %v2299_v14, %v955_v50  ;;  %v2484_v14 = vadd.f32 %v2331_v28, %v957_v11 }
 0x142   : > { %v2385_v53 = vpop.f32.mrf.mxu1  ;;  %v1233_v4 = vadd.f32 %v1232_v51, %v1205_v17  ;;  %v1172_v17 = vadd.f32 %v1171_v48, %v2257_v55 }
 0x143   : > { %1295 = vmatpush.msra.mxu3 %v2296_v13  ;;  %v952_v13 = vadd.f32 %v2277_v3, %v2275_v2  ;;  %v1209_v3 = vmul.f32 %v2454_v61, %v2454_v61  ;;  %v1211_v20 = vmul.f32 %v2472_v9, %v2472_v9  ;;  %v962_v62 = vadd.f32 %v2385_v53, %v2382_v52 }
 0x144   : > { %v1173_v2 = vadd.f32 %v1172_v17, %v2447_v10 }
 0x145   : > { %1296 = vmatpush.msra.mxu3 %v2306_v19  ;;  %v1234_v19 = vadd.f32 %v1233_v4, %v1206_v12  ;;  %v2465_v27 = vadd.f32 %v2279_v5, %v952_v13  ;;  %v960_v5 = vadd.f32 %v2341_v32, %v2338_v31  ;;  %v1212_v4 = vmul.f32 %v2484_v14, %v2484_v14 }
 0x147   : > { %1297 = vmatpush.msra.mxu3 %v2316_v24  ;;  %v1235_v0 = vadd.f32 %v1234_v19, %v1207_v60  ;;  %v1210_v43 = vmul.f32 %v2465_v27, %v2465_v27  ;;  %v2491_v32 = vadd.f32 %v2372_v45, %v960_v5 }
 0x149   : > { %v2414_v49 = vpop.f32.mrf.mxu2  ;;  %v881_v15 = vpop.f32.mrf.mxu0  ;;  %1298 = vmatpush.msra.mxu3 %v2322_v25  ;;  %v1236_v24 = vadd.f32 %v1235_v0, %v1208_v37  ;;  %v1174_v25 = vadd.f32 %v1173_v2, %v2454_v61  ;;  %v1213_v45 = vmul.f32 %v2491_v32, %v2491_v32 }
 0x14a   : > { %v964_v18 = vpop.f32.mrf.mxu1  ;;  %v2500_v48 = vadd.f32 %v2414_v49, %v962_v62 }
 0x14b   : > { %1299 = vmatpush.msra.mxu3 %v2328_v23  ;;  %v1237_v51 = vadd.f32 %v1236_v24, %v1209_v3  ;;  %v1175_v23 = vadd.f32 %v1174_v25, %v2465_v27 }
 0x14c   : > { %v1214_v49 = vmul.f32 %v2500_v48, %v2500_v48 }
 0x14d   : > { %1300 = vmatpush.msra.mxu3 %v2336_v30  ;;  %v965_v30 = vadd.f32 %v964_v18, %v881_v15  ;;  %v1238_v12 = vadd.f32 %v1237_v51, %v1210_v43  ;;  %v1176_v28 = vadd.f32 %v1175_v23, %v2472_v9  ;;  %v1219_v51 = vmul.f32 %v2255_v54, %v2255_v54 }
 0x14f   : > { %1301 = vmatpush.msra.mxu3 %v2346_v33  ;;  %v1239_v60 = vadd.f32 %v1238_v12, %v1211_v20  ;;  %v1177_v33 = vadd.f32 %v1176_v28, %v2484_v14  ;;  %v1222_v12 = vmul.f32 %v2281_v7, %v2281_v7 }
 0x151   : > { %v1047_v63 = vpop.f32.mrf.mxu2  ;;  %v883_v56 = vpop.f32.mrf.mxu0  ;;  %1302 = vmatpush.msra.mxu3 %v2354_v35  ;;  %v1240_v35 = vadd.f32 %v1239_v60, %v1212_v4  ;;  %v1178_v13 = vadd.f32 %v1177_v33, %v2491_v32  ;;  %v1223_v60 = vmul.f32 %v2301_v16, %v2301_v16 }
 0x152   : > { %v966_v58 = vpop.f32.mrf.mxu1  ;;  %v2506_v52 = vadd.f32 %v1047_v63, %v965_v30 }
 0x153   : > { %1303 = vmatpush.msra.mxu3 %v2366_v40  ;;  %v967_v53 = vadd.f32 %v966_v58, %v883_v56  ;;  %v1241_v40 = vadd.f32 %v1240_v35, %v1213_v45  ;;  %v1179_v19 = vadd.f32 %v1178_v13, %v2500_v48 }
 0x154   : > { %v1215_v63 = vmul.f32 %v2506_v52, %v2506_v52 }
 0x155   : > { %1304 = vmatpush.msra.mxu3 %v2377_v46  ;;  %v1242_v17 = vadd.f32 %v1241_v40, %v1214_v49  ;;  %v1180_v37 = vadd.f32 %v1179_v19, %v2506_v52 }
 0x157   : > { %1305 = vmatpush.msra.mxu3 %v2390_v57  ;;  %v1243_v57 = vadd.f32 %v1242_v17, %v1215_v63 }
 0x159   : > { %v1049_v44 = vpop.f32.mrf.mxu2  ;;  %v886_v22 = vpop.f32.mrf.mxu0  ;;  %1306 = vmatpush.msra.mxu3 %v2399_v26 }
 0x15a   : > { %v969_v31 = vpop.f32.mrf.mxu1  ;;  %v2512_v50 = vadd.f32 %v1049_v44, %v967_v53 }
 0x15b   : > { %v970_v15 = vadd.f32 %v969_v31, %v886_v22  ;;  %1307 = vmatpush.msra.mxu3 %v2408_v38 }
 0x15c   : > { %v1216_v0 = vmul.f32 %v2512_v50, %v2512_v50  ;;  %v1181_v2 = vadd.f32 %v1180_v37, %v2512_v50 }
 0x15d   : > { %1308 = vmatpush.msra.mxu3 %v2419_v39  ;;  %v1220_v39 = vmul.f32 %v2265_v59, %v2265_v59 }
 0x15e   : > { %v1244_v24 = vadd.f32 %v1243_v57, %v1216_v0 }
 0x15f   : > { %1309 = vmatpush.msra.mxu3 %v2428_v36  ;;  %v1221_v36 = vmul.f32 %v2273_v1, %v2273_v1 }
 0x161   : > { %v1052_v18 = vpop.f32.mrf.mxu2  ;;  %v888_v58 = vpop.f32.mrf.mxu0 }
 0x162   : > { %v2518_v56 = vadd.f32 %v1052_v18, %v970_v15  ;;  %v971_v46 = vpop.f32.mrf.mxu1 }
 0x163   : > { %v972_v11 = vadd.f32 %v971_v46, %v888_v58 }
 0x164   : > { %v1217_v3 = vmul.f32 %v2518_v56, %v2518_v56  ;;  %v1182_v26 = vadd.f32 %v1181_v2, %v2518_v56 }
 0x166   : > { %v1245_v43 = vadd.f32 %v1244_v24, %v1217_v3 }
 0x169   : > { %v1054_v5 = vpop.f32.mrf.mxu2 }
 0x16a   : > { %v2530_v25 = vadd.f32 %v1054_v5, %v972_v11 }
 0x16c   : > { %v1183_v38 = vadd.f32 %v1182_v26, %v2530_v25  ;;  %v1218_v44 = vmul.f32 %v2530_v25, %v2530_v25 }
 0x16e   : > { %v1184_v23 = vadd.f32 %v1183_v38, %v2255_v54  ;;  %v1246_v20 = vadd.f32 %v1245_v43, %v1218_v44 }
 0x170   : > { %v1185_v22 = vadd.f32 %v1184_v23, %v2265_v59  ;;  %v1247_v31 = vadd.f32 %v1246_v20, %v1219_v51 }
 0x172   : > { %v1186_v62 = vadd.f32 %v1185_v22, %v2273_v1  ;;  %v1248_v30 = vadd.f32 %v1247_v31, %v1220_v39  ;;  %v1330_v39 = vld [vmem:[%s2695_s3] sm:$0x1] }
 0x174   : > { %v1187_v28 = vadd.f32 %v1186_v62, %v2281_v7  ;;  %v1249_v4 = vadd.f32 %v1248_v30, %v1221_v36  ;;  %v1332_v62 = vld [vmem:[%s2696_s4] sm:$0x1] }
 0x176   : > { %v1250_v33 = vadd.f32 %v1249_v4, %v1222_v12  ;;  %v1188_v45 = vadd.f32 %v1187_v28, %v2301_v16 }
 0x178   : > { %v1189_v53 = vrot.slane %v1188_v45, 4  ;;  %v1251_v15 = vadd.f32 %v1250_v33, %v1223_v60 }
 0x17a   : > { %v1190_v18 = vadd.f32 %v1189_v53, %v1188_v45  ;;  %v1252_v35 = vrot.slane %v1251_v15, 4  ;;  %v2706_v53 = vld [vmem:[#allocation3_spill] sm:$0xff] }
 0x17c   : > { %v1191_v13 = vrot.slane %v1190_v18, 2  ;;  %v1253_v49 = vadd.f32 %v1252_v35, %v1251_v15 }
 0x17e   : > { %v1192_v40 = vadd.f32 %v1191_v13, %v1190_v18  ;;  %v1254_v19 = vrot.slane %v1253_v49, 2 }
 0x180   : > { %v1193_v63 = vrot.slane %v1192_v40, 1  ;;  %v1255_v46 = vadd.f32 %v1254_v19, %v1253_v49 }
 0x182   : > { %v1194_v58 = vadd.f32 %v1193_v63, %v1192_v40  ;;  %v1256_v17 = vrot.slane %v1255_v46, 1  ;;  %v2708_v40 = vld [vmem:[#allocation5_spill] sm:$0xff] }
 0x184   : > { %1290 = vmatmul.f32.vlgmr.msrb.gmra.mxu3 %v1194_v58  ;;  %v1257_v37 = vadd.f32 %v1256_v17, %v1255_v46 }
 0x18c   : > { %1310 = vmatmul.f32.vlgmr.msra.gmra.mxu3 %v1257_v37 }
 0x207   : > { %v1291_v0 = vpop.f32.mrf.mxu3 }
 0x208   : > { %v1314_v57 = vmul.f32 0.00055555557, %v1291_v0 }
 0x20a   : > { %v1316_v3 = vmul.f32 %v1314_v57, %v1314_v57 }
 0x20f   : > { %v1311_v2 = vpop.f32.mrf.mxu3 }
 0x210   : > { %v1315_v11 = vmul.f32 0.00055555557, %v1311_v2 }
 0x212   : > { %v1317_v5 = vsub.f32 %v1315_v11, %v1316_v3 }
 0x214   : > { %v1318_v24 = vmax.f32 %v1317_v5, 0.0 }
 0x216   : > { %v1319_v26 = vadd.f32 1e-05, %v1318_v24 }
 0x218   : > { %1930 = vrsqrt.f32 %v1319_v26  ;;  %vm1326_vm1 = vweird.f32 %v1319_v26 }
 0x21e   : > { %v1931_v43 = vpop.eup %1930 }
 0x21f   : > { %v1321_v38 = vmul.f32 %v1931_v43, %v1319_v26  ;;  %vm1327_vm0 = vweird.f32 %v1931_v43 }
 0x220   : > { %vm1328_vm2 = vmor %vm1326_vm1, %vm1327_vm0 }
 0x221   : > { %v1322_v44 = vmul.f32 %v1931_v43, %v1321_v38 }
 0x223   : > { %v1323_v51 = vmul.f32 0.5, %v1322_v44 }
 0x225   : > { %v1324_v23 = vsub.f32 1.5, %v1323_v51 }
 0x227   : > { %v1325_v20 = vmul.f32 %v1931_v43, %v1324_v23 }
 0x229   : > { %v1329_v22 = vsel %vm1328_vm2, %v1931_v43, %v1325_v20 }
 0x22a   : > { %v1331_v31 = vmul.f32 %v1330_v39, %v1329_v22 }
 0x22c   : > { %v1333_v36 = vmul.f32 %v1331_v31, %v1314_v57  ;;  %v2557_v12 = vperm.slane %v1331_v31, 0 }
 0x22e   : > { %v1334_v30 = vsub.f32 %v1332_v62, %v1333_v36  ;;  %v1336_v4 = vmul.f32 %v2557_v12, %v2206_v8  ;;  %v1337_v60 = vmul.f32 %v2557_v12, %v2216_v21  ;;  %v1338_v33 = vmul.f32 %v2557_v12, %v2220_v29  ;;  %v2707_v8 = vld [vmem:[#allocation4_spill] sm:$0xff] }
 0x22f   : > { %v1339_v45 = vmul.f32 %v2557_v12, %v2228_v42  ;;  %v1340_v15 = vmul.f32 %v2557_v12, %v2706_v53  ;;  %v1341_v49 = vmul.f32 %v2557_v12, %v2707_v8  ;;  %v1342_v29 = vmul.f32 %v2557_v12, %v2708_v40  ;;  %v2709_v42 = vld [vmem:[#allocation6_spill] sm:$0xff] }
 0x230   : > { %v2559_v28 = vperm.slane %v1334_v30, 0  ;;  %v1343_v63 = vmul.f32 %v2557_v12, %v2709_v42  ;;  %v1344_v58 = vmul.f32 %v2557_v12, %v2247_v6  ;;  %v1345_v2 = vmul.f32 %v2557_v12, %v2249_v34 }
 0x231   : > { %v1346_v5 = vmul.f32 %v2557_v12, %v2251_v41  ;;  %v1347_v26 = vmul.f32 %v2557_v12, %v2253_v47  ;;  %v1348_v34 = vmul.f32 %v2557_v12, %v2257_v55  ;;  %v1349_v41 = vmul.f32 %v2557_v12, %v2447_v10 }
 0x232   : > { %v1368_v18 = vadd.f32 %v2559_v28, %v1336_v4  ;;  %v1369_v35 = vadd.f32 %v2559_v28, %v1337_v60  ;;  %v1370_v13 = vadd.f32 %v2559_v28, %v1338_v33  ;;  %v1371_v21 = vadd.f32 %v2559_v28, %v1339_v45 }
 0x233   : > { %v1372_v19 = vadd.f32 %v2559_v28, %v1340_v15  ;;  %v1373_v46 = vadd.f32 %v2559_v28, %v1341_v49  ;;  %v1374_v17 = vadd.f32 %v2559_v28, %v1342_v29  ;;  %v1375_v3 = vadd.f32 %v2559_v28, %v1343_v63 }
 0x234   : > { %v1397_v37 = vmax.f32 %v1368_v18, 0.0  ;;  %v1398_v0 = vmax.f32 %v1369_v35, 0.0  ;;  %v1399_v57 = vmax.f32 %v1370_v13, 0.0  ;;  %v1400_v11 = vmax.f32 %v1371_v21, 0.0 }
 0x235   : > { %v1376_v6 = vadd.f32 %v2559_v28, %v1344_v58  ;;  %v1401_v24 = vmax.f32 %v1372_v19, 0.0  ;;  %v1377_v43 = vadd.f32 %v2559_v28, %v1345_v2  ;;  %v1402_v38 = vmax.f32 %v1373_v46, 0.0 }
 0x236   : > { %1426 = vst [vmem:[%s2584_s28] sm:$0xff] %v1397_v37  ;;  %v1378_v44 = vadd.f32 %v2559_v28, %v1346_v5  ;;  %v1403_v51 = vmax.f32 %v1374_v17, 0.0  ;;  %v1379_v23 = vadd.f32 %v2559_v28, %v1347_v26  ;;  %v1404_v20 = vmax.f32 %v1375_v3, 0.0 }
 0x237   : > { %1427 = vst [vmem:[%s2584_s28 + $0x8] sm:$0xff] %v1398_v0  ;;  %v1350_v47 = vmul.f32 %v2557_v12, %v2454_v61  ;;  %v1380_v39 = vadd.f32 %v2559_v28, %v1348_v34  ;;  %v1405_v22 = vmax.f32 %v1376_v6, 0.0  ;;  %v1351_v55 = vmul.f32 %v2557_v12, %v2465_v27 }
 0x238   : > { %1428 = vst [vmem:[%s2584_s28 + $0x10] sm:$0xff] %v1399_v57  ;;  %v1381_v31 = vadd.f32 %v2559_v28, %v1349_v41  ;;  %v1406_v36 = vmax.f32 %v1377_v43, 0.0  ;;  %v1352_v10 = vmul.f32 %v2557_v12, %v2472_v9  ;;  %v1407_v30 = vmax.f32 %v1378_v44, 0.0 }
 0x239   : > { %1429 = vst [vmem:[%s2584_s28 + $0x18] sm:$0xff] %v1400_v11  ;;  %v1382_v62 = vadd.f32 %v2559_v28, %v1350_v47  ;;  %v1353_v61 = vmul.f32 %v2557_v12, %v2484_v14  ;;  %v1383_v4 = vadd.f32 %v2559_v28, %v1351_v55  ;;  %v1408_v60 = vmax.f32 %v1379_v23, 0.0 }
 0x23a   : > { %1430 = vst [vmem:[%s2584_s28 + $0x20] sm:$0xff] %v1401_v24  ;;  %v1354_v27 = vmul.f32 %v2557_v12, %v2491_v32  ;;  %v1384_v33 = vadd.f32 %v2559_v28, %v1352_v10  ;;  %v1409_v45 = vmax.f32 %v1380_v39, 0.0  ;;  %v1355_v9 = vmul.f32 %v2557_v12, %v2500_v48 }
 0x23b   : > { %1431 = vst [vmem:[%s2584_s28 + $0x28] sm:$0xff] %v1402_v38  ;;  %v1385_v53 = vadd.f32 %v2559_v28, %v1353_v61  ;;  %v1410_v15 = vmax.f32 %v1381_v31, 0.0  ;;  %v1356_v14 = vmul.f32 %v2557_v12, %v2506_v52  ;;  %v1411_v35 = vmax.f32 %v1382_v62, 0.0 }
 0x23c   : > { %1432 = vst [vmem:[%s2584_s28 + $0x30] sm:$0xff] %v1403_v51  ;;  %v1386_v18 = vadd.f32 %v2559_v28, %v1354_v27  ;;  %v1357_v32 = vmul.f32 %v2557_v12, %v2512_v50  ;;  %v1387_v13 = vadd.f32 %v2559_v28, %v1355_v9  ;;  %v1412_v8 = vmax.f32 %v1383_v4, 0.0 }
 0x23d   : > { %1433 = vst [vmem:[%s2584_s28 + $0x38] sm:$0xff] %v1404_v20  ;;  %v1358_v48 = vmul.f32 %v2557_v12, %v2518_v56  ;;  %v1388_v49 = vadd.f32 %v2559_v28, %v1356_v14  ;;  %v1413_v21 = vmax.f32 %v1384_v33, 0.0  ;;  %v1359_v52 = vmul.f32 %v2557_v12, %v2530_v25 }
 0x23e   : > { %1434 = vst [vmem:[%s2584_s28 + $0x40] sm:$0xff] %v1405_v22  ;;  %v1389_v40 = vadd.f32 %v2559_v28, %v1357_v32  ;;  %v1414_v29 = vmax.f32 %v1385_v53, 0.0  ;;  %v1360_v50 = vmul.f32 %v2557_v12, %v2255_v54  ;;  %v1415_v42 = vmax.f32 %v1386_v18, 0.0 }
 0x23f   : > { %1435 = vst [vmem:[%s2584_s28 + $0x48] sm:$0xff] %v1406_v36  ;;  %v1390_v19 = vadd.f32 %v2559_v28, %v1358_v48  ;;  %v1361_v56 = vmul.f32 %v2557_v12, %v2265_v59  ;;  %v1391_v63 = vadd.f32 %v2559_v28, %v1359_v52  ;;  %v1416_v58 = vmax.f32 %v1387_v13, 0.0 }
 0x240   : > { %1436 = vst [vmem:[%s2584_s28 + $0x50] sm:$0xff] %v1407_v30  ;;  %v1362_v25 = vmul.f32 %v2557_v12, %v2273_v1  ;;  %v1392_v46 = vadd.f32 %v2559_v28, %v1360_v50  ;;  %v1417_v54 = vmax.f32 %v1388_v49, 0.0  ;;  %v1363_v17 = vmul.f32 %v2557_v12, %v2281_v7 }
 0x241   : > { %1437 = vst [vmem:[%s2584_s28 + $0x58] sm:$0xff] %v1408_v60  ;;  %v1393_v37 = vadd.f32 %v2559_v28, %v1361_v56  ;;  %v1418_v59 = vmax.f32 %v1389_v40, 0.0  ;;  %v1364_v0 = vmul.f32 %v2557_v12, %v2301_v16  ;;  %v1419_v57 = vmax.f32 %v1390_v19, 0.0 }
 0x242   : > { %1438 = vst [vmem:[%s2584_s28 + $0x60] sm:$0xff] %v1409_v45  ;;  %v1394_v1 = vadd.f32 %v2559_v28, %v1362_v25  ;;  %v1395_v2 = vadd.f32 %v2559_v28, %v1363_v17  ;;  %v1420_v7 = vmax.f32 %v1391_v63, 0.0  ;;  %v1421_v11 = vmax.f32 %v1392_v46, 0.0 }
 0x243   : > { %1439 = vst [vmem:[%s2584_s28 + $0x68] sm:$0xff] %v1410_v15  ;;  %v1396_v3 = vadd.f32 %v2559_v28, %v1364_v0  ;;  %v1422_v5 = vmax.f32 %v1393_v37, 0.0 }
 0x244   : > { %1440 = vst [vmem:[%s2584_s28 + $0x70] sm:$0xff] %v1411_v35  ;;  %v1423_v16 = vmax.f32 %v1394_v1, 0.0  ;;  %v1424_v12 = vmax.f32 %v1395_v2, 0.0 }
 0x245   : > { %1441 = vst [vmem:[%s2584_s28 + $0x78] sm:$0xff] %v1412_v8  ;;  %v1425_v6 = vmax.f32 %v1396_v3, 0.0 }
 0x246   : > { %1442 = vst [vmem:[%s2584_s28 + $0x80] sm:$0xff] %v1413_v21 }
 0x247   : > { %1443 = vst [vmem:[%s2584_s28 + $0x88] sm:$0xff] %v1414_v29 }
 0x248   : > { %1444 = vst [vmem:[%s2584_s28 + $0x90] sm:$0xff] %v1415_v42 }
 0x249   : > { %1445 = vst [vmem:[%s2584_s28 + $0x98] sm:$0xff] %v1416_v58 }
 0x24a   : > { %1446 = vst [vmem:[%s2584_s28 + $0xa0] sm:$0xff] %v1417_v54 }
 0x24b   : > { %1447 = vst [vmem:[%s2584_s28 + $0xa8] sm:$0xff] %v1418_v59 }
 0x24c   : > { %1448 = vst [vmem:[%s2584_s28 + $0xb0] sm:$0xff] %v1419_v57 }
 0x24d   : > { %1449 = vst [vmem:[%s2584_s28 + $0xb8] sm:$0xff] %v1420_v7 }
 0x24e   : > { %1450 = vst [vmem:[%s2584_s28 + $0xc0] sm:$0xff] %v1421_v11 }
 0x24f   : > { %1451 = vst [vmem:[%s2584_s28 + $0xc8] sm:$0xff] %v1422_v5 }
 0x250   : > { %1452 = vst [vmem:[%s2584_s28 + $0xd0] sm:$0xff] %v1423_v16 }
 0x251   : > { %1453 = vst [vmem:[%s2584_s28 + $0xd8] sm:$0xff] %v1424_v12 }
 0x252   : > { %1454 = vst [vmem:[%s2584_s28 + $0xe0] sm:$0xff] %v1425_v6 }
 0x253 PF: > { %s15_s20 = sadd.s32 1, %s1954_s20   ;;  %s2710_s18 = smov %s1950_s19 }
 0x254   : > { %p12_p5 = scmp.ge.s32.totalorder %s15_s20, 4   ;;  %s2711_s19 = smov %s2713_s21 }
 0x256   :  { %14 = sbr.rel (!%p12_p5) target bundleno = 2 (0x2), region = 81 }

// kernel: inception_v4_stem.14
= control target key start
LH: loop header
LB: loop body
LE: loop exit
PB: predicated region body
PF: predicated region fallthrough
CT: control target
= control target key end

     0   :  { %s987_s18 = smov 0   ;;  %s989_s19 = smov 0   ;;  %s1172_s0 = inlined_call_operand.vmem [shape: bf16[2,56,256], index: 0, kind: input, shape index: {}]   ;;  %s1173_s1 = inlined_call_operand.vmem [shape: bf16[256,128], index: 1, kind: input, shape index: {}]   ;;  %s1174_s2 = inlined_call_operand.vmem [shape: f32[128,128], index: 2, kind: input, shape index: {}]   ;;  %s1175_s3 = inlined_call_operand.vmem [shape: f32[1,128], index: 3, kind: input, shape index: {}]   ;;  %s1176_s4 = inlined_call_operand.vmem [shape: f32[1,128], index: 4, kind: input, shape index: {}]   ;;  %s1177_s5 = inlined_call_operand.vmem [shape: f32[2,56,128], index: 5, kind: output, shape index: {}]  }
   0x1   :  { %s991_s20 = smov 0  }
   0x2 LB: > { %s27_s21 = sadd.s32 1, %s951_s19  ;;  %p775_p0 = scmp.ge.s32.totalorder %s955_s20, 1  ;;  %s955_s20 = sphi %s991_s20, %s15_s20   ;;  %s951_s19 = sphi %s989_s19, %s1179_s19   ;;  %s947_s18 = sphi %s987_s18, %s1178_s18  }
   0x3   : > { %p29_p1 = scmp.ge.s32.totalorder %s27_s21, 2  ;;  %p217_p2 = scmp.lt.s32.totalorder %s955_s20, 3 }
   0x5   : > { %s1181_s21 = smov (%p29_p1, %s27_s21), 0  ;;  %p218_p3 = pnand %p775_p0, %p217_p2 }
   0x6   : > { %p255_p4 = scmp.lt.s32.totalorder (!%p218_p3), %s947_s18, 1 }
   0x7   : > { %221 = sbr.rel (%p218_p3) target bundleno = 396 (0x18c), region = 40 }
   0xc   : > { %v881_v0 = vld [vmem:[%s1173_s1 + $0x38] sm:$0xff]  ;;  %v880_v2 = vld [vmem:[%s1173_s1 + $0x30] sm:$0xff]  ;;  %v879_v4 = vld [vmem:[%s1173_s1 + $0x28] sm:$0xff]  ;;  %s1183_s18 = smov (!%p255_p4, %s947_s18), 1 }
   0xd   : > { %v889_v1 = vld [vmem:[%s1173_s1 + $0x78] sm:$0xff]  ;;  %465 = vmatpush.bf16.msra.mxu0 %v881_v0  ;;  %890 = vmatpush.bf16.msra.mxu2 %v881_v0  ;;  %v888_v3 = vld [vmem:[%s1173_s1 + $0x70] sm:$0xff]  ;;  %v887_v5 = vld [vmem:[%s1173_s1 + $0x68] sm:$0xff]  ;;  %s906_s23 = smul.u32 56, %s1183_s18 }
   0xe   : > { %493 = vmatpush.bf16.msra.mxu1 %v889_v1  ;;  %898 = vmatpush.bf16.msra.mxu3 %v889_v1  ;;  %v878_v6 = vld [vmem:[%s1173_s1 + $0x20] sm:$0xff]  ;;  %v877_v8 = vld [vmem:[%s1173_s1 + $0x18] sm:$0xff]  ;;  %v876_v10 = vld [vmem:[%s1173_s1 + $0x10] sm:$0xff] }
   0xf   : > { %v886_v7 = vld [vmem:[%s1173_s1 + $0x60] sm:$0xff]  ;;  %v885_v9 = vld [vmem:[%s1173_s1 + $0x58] sm:$0xff]  ;;  %v884_v11 = vld [vmem:[%s1173_s1 + $0x50] sm:$0xff]  ;;  %s1056_s30 = scalar_lea.vmem %s1172_s0, %s906_s23  ;;  %s274_s10 = scalar_lea.vmem %s1177_s5, %s906_s23 }
  0x10   : > { %v875_v12 = vld [vmem:[%s1173_s1 + $0x8] sm:$0xff]  ;;  %v874_v14 = vld [vmem:[%s1173_s1] sm:$0xff]  ;;  %v299_v28 = vld [vmem:[%s1056_s30 + $0x30] sm:$0xff] }
  0x11   : > { %466 = vmatpush.bf16.msra.mxu0 %v880_v2  ;;  %891 = vmatpush.bf16.msra.mxu2 %v880_v2  ;;  %v883_v13 = vld [vmem:[%s1173_s1 + $0x48] sm:$0xff]  ;;  %v882_v15 = vld [vmem:[%s1173_s1 + $0x40] sm:$0xff]  ;;  %v351_v29 = vunpack.c.l.b16 %v299_v28  ;;  %v788_v30 = vld [vmem:[%s1056_s30 + $0x10] sm:$0xf]  ;;  %v352_v32 = vunpack.c.h.b16 %v299_v28 }
  0x12   : > { %494 = vmatpush.bf16.msra.mxu1 %v888_v3  ;;  %899 = vmatpush.bf16.msra.mxu3 %v888_v3  ;;  %v780_v16 = vld [vmem:[%s1056_s30] sm:$0xf]  ;;  %v869_v17 = vld [vmem:[%s1056_s30 + $0x4] sm:$0xf0]  ;;  %v868_v20 = vld [vmem:[%s1056_s30 + $0x4] sm:$0xf] }
  0x13   : > { %v796_v18 = vld [vmem:[%s1056_s30 + $0x20] sm:$0xf]  ;;  %v873_v19 = vld [vmem:[%s1056_s30 + $0x24] sm:$0xf0]  ;;  %v782_v21 = vld [vmem:[%s1056_s30 + $0x8] sm:$0xf0]  ;;  %v781_v24 = vor.u32 %v869_v17, %v780_v16  ;;  %v359_v36 = vpack.c.b16 %v351_v29, %v351_v29  ;;  %v360_v38 = vpack.c.b16 %v352_v32, %v352_v32 }
  0x14   : > { %v872_v22 = vld [vmem:[%s1056_s30 + $0x24] sm:$0xf]  ;;  %v798_v23 = vld [vmem:[%s1056_s30 + $0x28] sm:$0xf0]  ;;  %v797_v25 = vor.u32 %v873_v19, %v796_v18  ;;  %v785_v26 = vor.u32 %v868_v20, %v782_v21  ;;  %v871_v31 = vld [vmem:[%s1056_s30 + $0x14] sm:$0xf0] }
  0x15   : > { %467 = vmatpush.bf16.msra.mxu0 %v879_v4  ;;  %892 = vmatpush.bf16.msra.mxu2 %v879_v4  ;;  %v801_v27 = vor.u32 %v872_v22, %v798_v23  ;;  %v870_v33 = vld [vmem:[%s1056_s30 + $0x14] sm:$0xf]  ;;  %v790_v34 = vld [vmem:[%s1056_s30 + $0x18] sm:$0xf0]  ;;  %v789_v35 = vor.u32 %v871_v31, %v788_v30  ;;  %v589_v41 = vld [vmem:[%s1174_s2 + $0x68] sm:$0xff] }
  0x16   : > { %495 = vmatpush.bf16.msra.mxu1 %v887_v5  ;;  %900 = vmatpush.bf16.msra.mxu3 %v887_v5  ;;  %v793_v37 = vor.u32 %v870_v33, %v790_v34  ;;  %v591_v39 = vld [vmem:[%s1174_s2 + $0x78] sm:$0xff]  ;;  %v590_v40 = vld [vmem:[%s1174_s2 + $0x70] sm:$0xff]  ;;  %v588_v42 = vld [vmem:[%s1174_s2 + $0x60] sm:$0xff] }
  0x17   : > { %v587_v43 = vld [vmem:[%s1174_s2 + $0x58] sm:$0xff]  ;;  %v586_v44 = vld [vmem:[%s1174_s2 + $0x50] sm:$0xff]  ;;  %v585_v45 = vld [vmem:[%s1174_s2 + $0x48] sm:$0xff] }
  0x18   : > { %v584_v46 = vld [vmem:[%s1174_s2 + $0x40] sm:$0xff]  ;;  %v583_v48 = vld [vmem:[%s1174_s2 + $0x38] sm:$0xff]  ;;  %v582_v50 = vld [vmem:[%s1174_s2 + $0x30] sm:$0xff] }
  0x19   : > { %468 = vmatpush.bf16.msra.mxu0 %v878_v6  ;;  %893 = vmatpush.bf16.msra.mxu2 %v878_v6  ;;  %v581_v51 = vld [vmem:[%s1174_s2 + $0x28] sm:$0xff]  ;;  %v580_v52 = vld [vmem:[%s1174_s2 + $0x20] sm:$0xff]  ;;  %v579_v54 = vld [vmem:[%s1174_s2 + $0x18] sm:$0xff] }
  0x1a   : > { %496 = vmatpush.bf16.msra.mxu1 %v886_v7  ;;  %901 = vmatpush.bf16.msra.mxu3 %v886_v7  ;;  %v578_v57 = vld [vmem:[%s1174_s2 + $0x10] sm:$0xff]  ;;  %v577_v59 = vld [vmem:[%s1174_s2 + $0x8] sm:$0xff]  ;;  %v576_v60 = vld [vmem:[%s1174_s2] sm:$0xff] }
  0x1d   : > { %469 = vmatpush.bf16.msra.mxu0 %v877_v8  ;;  %894 = vmatpush.bf16.msra.mxu2 %v877_v8 }
  0x1e   : > { %497 = vmatpush.bf16.msra.mxu1 %v885_v9  ;;  %902 = vmatpush.bf16.msra.mxu3 %v885_v9 }
  0x21   : > { %470 = vmatpush.bf16.msra.mxu0 %v876_v10  ;;  %895 = vmatpush.bf16.msra.mxu2 %v876_v10 }
  0x22   : > { %498 = vmatpush.bf16.msra.mxu1 %v884_v11  ;;  %903 = vmatpush.bf16.msra.mxu3 %v884_v11 }
  0x25   : > { %471 = vmatpush.bf16.msra.mxu0 %v875_v12  ;;  %896 = vmatpush.bf16.msra.mxu2 %v875_v12 }
  0x26   : > { %499 = vmatpush.bf16.msra.mxu1 %v883_v13  ;;  %904 = vmatpush.bf16.msra.mxu3 %v883_v13 }
  0x29   : > { %472 = vmatpush.bf16.msra.mxu0 %v874_v14  ;;  %897 = vmatpush.bf16.msra.mxu2 %v874_v14 }
  0x2a   : > { %500 = vmatpush.bf16.msra.mxu1 %v882_v15  ;;  %905 = vmatpush.bf16.msra.mxu3 %v882_v15 }
  0x2c   : > { %473 = vmatmul.bf16.vlgmr.msra.gmra.mxu0 %v781_v24  ;;  %483 = vmatmul.bf16.vlgmr.msra.gmra.mxu2 %v797_v25 }
  0x2d   : > { %501 = vmatmul.bf16.vlgmr.msra.gmra.mxu1 %v785_v26  ;;  %511 = vmatmul.bf16.vlgmr.msra.gmra.mxu3 %v801_v27 }
  0x2e   : > { %592 = vmatpush.msrb.mxu2 %v591_v39  ;;  %612 = vmatpush.msrb.mxu3 %v591_v39 }
  0x30   : > { %593 = vmatpush.msrb.mxu2 %v590_v40  ;;  %613 = vmatpush.msrb.mxu3 %v590_v40 }
  0x32   : > { %594 = vmatpush.msrb.mxu2 %v589_v41  ;;  %614 = vmatpush.msrb.mxu3 %v589_v41 }
  0x34   : > { %595 = vmatpush.msrb.mxu2 %v588_v42  ;;  %615 = vmatpush.msrb.mxu3 %v588_v42 }
  0x36   : > { %596 = vmatpush.msrb.mxu2 %v587_v43  ;;  %616 = vmatpush.msrb.mxu3 %v587_v43 }
  0x38   : > { %597 = vmatpush.msrb.mxu2 %v586_v44  ;;  %617 = vmatpush.msrb.mxu3 %v586_v44 }
  0x3a   : > { %598 = vmatpush.msrb.mxu2 %v585_v45  ;;  %618 = vmatpush.msrb.mxu3 %v585_v45 }
  0x3c   : > { %478 = vmatmul.bf16.gmra.mxu0 %v789_v35  ;;  %488 = vmatmul.bf16.gmra.mxu2 %v359_v36 }
  0x3d   : > { %506 = vmatmul.bf16.gmra.mxu1 %v793_v37  ;;  %516 = vmatmul.bf16.gmra.mxu3 %v360_v38 }
  0x3e   : > { %599 = vmatpush.msrb.mxu2 %v584_v46  ;;  %619 = vmatpush.msrb.mxu3 %v584_v46 }
  0x40   : > { %600 = vmatpush.msrb.mxu2 %v583_v48  ;;  %620 = vmatpush.msrb.mxu3 %v583_v48 }
  0x42   : > { %601 = vmatpush.msrb.mxu2 %v582_v50  ;;  %621 = vmatpush.msrb.mxu3 %v582_v50 }
  0x44   : > { %602 = vmatpush.msrb.mxu2 %v581_v51  ;;  %622 = vmatpush.msrb.mxu3 %v581_v51 }
  0x46   : > { %603 = vmatpush.msrb.mxu2 %v580_v52  ;;  %623 = vmatpush.msrb.mxu3 %v580_v52 }
  0x48   : > { %604 = vmatpush.msrb.mxu2 %v579_v54  ;;  %624 = vmatpush.msrb.mxu3 %v579_v54 }
  0x4a   : > { %605 = vmatpush.msrb.mxu2 %v578_v57  ;;  %625 = vmatpush.msrb.mxu3 %v578_v57 }
  0x4c   : > { %606 = vmatpush.msrb.mxu2 %v577_v59  ;;  %626 = vmatpush.msrb.mxu3 %v577_v59  ;;  %v648_v59 = vld [vmem:[%s1175_s3] sm:$0x1] }
  0x4e   : > { %607 = vmatpush.msrb.mxu2 %v576_v60  ;;  %627 = vmatpush.msrb.mxu3 %v576_v60 }
  0xa9   : > { %v474_v47 = vpop.f32.mrf.mxu0 }
  0xaa   : > { %v502_v49 = vpop.f32.mrf.mxu1 }
  0xab   : > { %v1130_v2 = vadd.f32 %v502_v49, %v474_v47 }
  0xad   : > { %v557_v7 = vmul.f32 %v1130_v2, %v1130_v2 }
  0xaf   : > { %v484_v53 = vpop.f32.mrf.mxu2 }
  0xb0   : > { %v512_v55 = vpop.f32.mrf.mxu3 }
  0xb1   : > { %v476_v56 = vpop.f32.mrf.mxu0  ;;  %v1142_v12 = vadd.f32 %v512_v55, %v484_v53 }
  0xb2   : > { %v504_v58 = vpop.f32.mrf.mxu1 }
  0xb3   : > { %v1128_v1 = vadd.f32 %v504_v58, %v476_v56  ;;  %v561_v21 = vmul.f32 %v1142_v12, %v1142_v12 }
  0xb5   : > { %v558_v4 = vmul.f32 %v1128_v1, %v1128_v1  ;;  %v545_v8 = vadd.f32 %v1128_v1, %v1130_v2 }
  0xb7   : > { %v486_v61 = vpop.f32.mrf.mxu2  ;;  %v564_v13 = vadd.f32 %v558_v4, %v557_v7 }
  0xb8   : > { %v514_v62 = vpop.f32.mrf.mxu3 }
  0xb9   : > { %v479_v63 = vpop.f32.mrf.mxu0  ;;  %v515_v16 = vadd.f32 %v514_v62, %v486_v61  ;;  %v650_v62 = vld [vmem:[%s1176_s4] sm:$0x1] }
  0xba   : > { %v507_v0 = vpop.f32.mrf.mxu1 }
  0xbb   : > { %v1132_v3 = vadd.f32 %v507_v0, %v479_v63  ;;  %v562_v26 = vmul.f32 %v515_v16, %v515_v16 }
  0xbd   : > { %v559_v9 = vmul.f32 %v1132_v3, %v1132_v3  ;;  %v546_v14 = vadd.f32 %v545_v8, %v1132_v3 }
  0xbf   : > { %v489_v5 = vpop.f32.mrf.mxu2  ;;  %v565_v17 = vadd.f32 %v564_v13, %v559_v9 }
  0xc0   : > { %v517_v6 = vpop.f32.mrf.mxu3 }
  0xc1   : > { %v481_v10 = vpop.f32.mrf.mxu0  ;;  %v518_v18 = vadd.f32 %v517_v6, %v489_v5 }
  0xc2   : > { %v509_v11 = vpop.f32.mrf.mxu1 }
  0xc3   : > { %v510_v15 = vadd.f32 %v509_v11, %v481_v10  ;;  %v563_v27 = vmul.f32 %v518_v18, %v518_v18 }
  0xc5   : > { %v547_v19 = vadd.f32 %v546_v14, %v510_v15  ;;  %v560_v20 = vmul.f32 %v510_v15, %v510_v15 }
  0xc7   : > { %v548_v22 = vadd.f32 %v547_v19, %v1142_v12  ;;  %v566_v23 = vadd.f32 %v565_v17, %v560_v20  ;;  %v491_v24 = vpop.f32.mrf.mxu2 }
  0xc8   : > { %v519_v25 = vpop.f32.mrf.mxu3 }
  0xc9   : > { %v549_v28 = vadd.f32 %v548_v22, %v515_v16  ;;  %v567_v29 = vadd.f32 %v566_v23, %v561_v21 }
  0xcb   : > { %v568_v30 = vadd.f32 %v567_v29, %v562_v26  ;;  %v550_v31 = vadd.f32 %v549_v28, %v518_v18 }
  0xcd   : > { %v551_v32 = vrot.slane %v550_v31, 4  ;;  %v569_v33 = vadd.f32 %v568_v30, %v563_v27 }
  0xcf   : > { %v552_v34 = vadd.f32 %v551_v32, %v550_v31  ;;  %v570_v35 = vrot.slane %v569_v33, 4 }
  0xd1   : > { %v553_v36 = vrot.slane %v552_v34, 2  ;;  %v571_v37 = vadd.f32 %v570_v35, %v569_v33 }
  0xd3   : > { %v554_v38 = vadd.f32 %v553_v36, %v552_v34  ;;  %v572_v39 = vrot.slane %v571_v37, 2 }
  0xd5   : > { %v555_v40 = vrot.slane %v554_v38, 1  ;;  %v573_v41 = vadd.f32 %v572_v39, %v571_v37 }
  0xd7   : > { %v556_v42 = vadd.f32 %v555_v40, %v554_v38  ;;  %v574_v43 = vrot.slane %v573_v41, 1 }
  0xd9   : > { %608 = vmatmul.f32.vlgmr.msrb.gmra.mxu2 %v556_v42  ;;  %v575_v44 = vadd.f32 %v574_v43, %v573_v41 }
  0xdb   : > { %628 = vmatmul.f32.vlgmr.msrb.gmra.mxu3 %v575_v44 }
 0x15c   : > { %v609_v45 = vpop.f32.mrf.mxu2 }
 0x15d   : > { %v632_v46 = vmul.f32 0.0025510204, %v609_v45 }
 0x15e   : > { %v629_v47 = vpop.f32.mrf.mxu3 }
 0x15f   : > { %v634_v48 = vmul.f32 %v632_v46, %v632_v46  ;;  %v633_v49 = vmul.f32 0.0025510204, %v629_v47 }
 0x161   : > { %v635_v50 = vsub.f32 %v633_v49, %v634_v48 }
 0x163   : > { %v636_v51 = vmax.f32 %v635_v50, 0.0 }
 0x165   : > { %v637_v52 = vadd.f32 1e-05, %v636_v51 }
 0x167   : > { %931 = vrsqrt.f32 %v637_v52  ;;  %vm644_vm1 = vweird.f32 %v637_v52 }
 0x16d   : > { %v932_v53 = vpop.eup %931 }
 0x16e   : > { %v639_v54 = vmul.f32 %v932_v53, %v637_v52  ;;  %vm645_vm0 = vweird.f32 %v932_v53 }
 0x16f   : > { %vm646_vm2 = vmor %vm644_vm1, %vm645_vm0 }
 0x170   : > { %v640_v55 = vmul.f32 %v932_v53, %v639_v54 }
 0x172   : > { %v641_v56 = vmul.f32 0.5, %v640_v55 }
 0x174   : > { %v642_v57 = vsub.f32 1.5, %v641_v56 }
 0x176   : > { %v643_v58 = vmul.f32 %v932_v53, %v642_v57 }
 0x178   : > { %v647_v60 = vsel %vm646_vm2, %v932_v53, %v643_v58 }
 0x179   : > { %v649_v61 = vmul.f32 %v648_v59, %v647_v60 }
 0x17b   : > { %v651_v63 = vmul.f32 %v649_v61, %v632_v46  ;;  %v653_v0 = vperm.slane %v649_v61, 0 }
 0x17d   : > { %v652_v4 = vsub.f32 %v650_v62, %v651_v63  ;;  %v654_v5 = vmul.f32 %v653_v0, %v1130_v2  ;;  %v655_v6 = vmul.f32 %v653_v0, %v1128_v1  ;;  %v656_v7 = vmul.f32 %v653_v0, %v1132_v3 }
 0x17e   : > { %v657_v8 = vmul.f32 %v653_v0, %v510_v15  ;;  %v658_v10 = vmul.f32 %v653_v0, %v1142_v12  ;;  %v659_v11 = vmul.f32 %v653_v0, %v515_v16  ;;  %v660_v13 = vmul.f32 %v653_v0, %v518_v18 }
 0x17f   : > { %v662_v9 = vperm.slane %v652_v4, 0 }
 0x181   : > { %v664_v14 = vadd.f32 %v662_v9, %v654_v5  ;;  %v665_v17 = vadd.f32 %v662_v9, %v655_v6  ;;  %v666_v19 = vadd.f32 %v662_v9, %v656_v7  ;;  %v667_v20 = vadd.f32 %v662_v9, %v657_v8 }
 0x182   : > { %v668_v2 = vadd.f32 %v662_v9, %v658_v10  ;;  %v669_v21 = vadd.f32 %v662_v9, %v659_v11  ;;  %v670_v1 = vadd.f32 %v662_v9, %v660_v13 }
 0x183   : > { %v671_v22 = vmax.f32 %v664_v14, 0.0  ;;  %v672_v3 = vmax.f32 %v665_v17, 0.0  ;;  %v673_v15 = vmax.f32 %v666_v19, 0.0  ;;  %v674_v23 = vmax.f32 %v667_v20, 0.0 }
 0x184   : > { %v675_v24 = vmax.f32 %v668_v2, 0.0  ;;  %v676_v12 = vmax.f32 %v669_v21, 0.0  ;;  %v677_v16 = vmax.f32 %v670_v1, 0.0 }
 0x185   : > { %678 = vst [vmem:[%s274_s10] sm:$0xff] %v671_v22 }
 0x186   : > { %679 = vst [vmem:[%s274_s10 + $0x8] sm:$0xff] %v672_v3 }
 0x187   : > { %680 = vst [vmem:[%s274_s10 + $0x10] sm:$0xff] %v673_v15 }
 0x188   : > { %681 = vst [vmem:[%s274_s10 + $0x18] sm:$0xff] %v674_v23 }
 0x189   : > { %682 = vst [vmem:[%s274_s10 + $0x20] sm:$0xff] %v675_v24 }
 0x18a   : > { %683 = vst [vmem:[%s274_s10 + $0x28] sm:$0xff] %v676_v12 }
 0x18b   : > { %684 = vst [vmem:[%s274_s10 + $0x30] sm:$0xff] %v677_v16 }
 0x18c PF: > { %s15_s20 = sadd.s32 1, %s955_s20   ;;  %s1178_s18 = smov %s951_s19 }
 0x18d   : > { %p12_p5 = scmp.ge.s32.totalorder %s15_s20, 4   ;;  %s1179_s19 = smov %s1181_s21 }
 0x18f   :  { %14 = sbr.rel (!%p12_p5) target bundleno = 2 (0x2), region = 81 }

// kernel: inception_v4_stem.13
= control target key start
LH: loop header
LB: loop body
LE: loop exit
PB: predicated region body
PF: predicated region fallthrough
CT: control target
= control target key end

     0   :  { %s1494_s18 = smov 0   ;;  %s1496_s19 = smov 0   ;;  %s1823_s0 = inlined_call_operand.vmem [shape: bf16[2,56,640], index: 0, kind: input, shape index: {}]   ;;  %s1824_s1 = inlined_call_operand.vmem [shape: bf16[640,128], index: 1, kind: input, shape index: {}]   ;;  %s1825_s2 = inlined_call_operand.vmem [shape: f32[128,128], index: 2, kind: input, shape index: {}]   ;;  %s1826_s3 = inlined_call_operand.vmem [shape: f32[1,128], index: 3, kind: input, shape index: {}]   ;;  %s1827_s4 = inlined_call_operand.vmem [shape: f32[1,128], index: 4, kind: input, shape index: {}]   ;;  %s1828_s5 = inlined_call_operand.vmem [shape: f32[2,56,128], index: 5, kind: output, shape index: {}]  }
   0x1   :  { %s1498_s20 = smov 0  }
   0x2 LB: > { %s27_s21 = sadd.s32 1, %s1458_s19  ;;  %p1124_p0 = scmp.ge.s32.totalorder %s1462_s20, 1  ;;  %s1462_s20 = sphi %s1498_s20, %s15_s20   ;;  %s1458_s19 = sphi %s1496_s19, %s1830_s19   ;;  %s1454_s18 = sphi %s1494_s18, %s1829_s18  }
   0x3   : > { %p29_p1 = scmp.ge.s32.totalorder %s27_s21, 2  ;;  %p217_p2 = scmp.lt.s32.totalorder %s1462_s20, 3 }
   0x5   : > { %s1832_s21 = smov (%p29_p1, %s27_s21), 0  ;;  %p218_p3 = pnand %p1124_p0, %p217_p2 }
   0x6   : > { %p255_p4 = scmp.lt.s32.totalorder (!%p218_p3), %s1454_s18, 1 }
   0x7   : > { %221 = sbr.rel (%p218_p3) target bundleno = 453 (0x1c5), region = 40 }
   0xc   : > { %v1371_v0 = vld [vmem:[%s1824_s1 + $0x38] sm:$0xff]  ;;  %v1370_v3 = vld [vmem:[%s1824_s1 + $0x30] sm:$0xff]  ;;  %v1369_v6 = vld [vmem:[%s1824_s1 + $0x28] sm:$0xff]  ;;  %s1834_s18 = smov (!%p255_p4, %s1454_s18), 1 }
   0xd   : > { %v1379_v1 = vld [vmem:[%s1824_s1 + $0x78] sm:$0xff]  ;;  %730 = vmatpush.bf16.msra.mxu0 %v1371_v0  ;;  %1404 = vmatpush.bf16.msra.mxu3 %v1371_v0  ;;  %v1378_v4 = vld [vmem:[%s1824_s1 + $0x70] sm:$0xff]  ;;  %v1377_v7 = vld [vmem:[%s1824_s1 + $0x68] sm:$0xff]  ;;  %s1412_s8 = smul.u32 140, %s1834_s18 }
   0xe   : > { %v1387_v2 = vld [vmem:[%s1824_s1 + $0xb8] sm:$0xff]  ;;  %758 = vmatpush.bf16.msra.mxu1 %v1379_v1  ;;  %v1386_v5 = vld [vmem:[%s1824_s1 + $0xb0] sm:$0xff]  ;;  %v1385_v8 = vld [vmem:[%s1824_s1 + $0xa8] sm:$0xff]  ;;  %s1413_s13 = smul.u32 56, %s1834_s18 }
   0xf   : > { %786 = vmatpush.bf16.msra.mxu2 %v1387_v2  ;;  %v1368_v9 = vld [vmem:[%s1824_s1 + $0x20] sm:$0xff]  ;;  %v1367_v12 = vld [vmem:[%s1824_s1 + $0x18] sm:$0xff]  ;;  %v1366_v15 = vld [vmem:[%s1824_s1 + $0x10] sm:$0xff]  ;;  %s1579_s17 = scalar_lea.vmem %s1823_s0, %s1412_s8 }
  0x10   : > { %v1376_v10 = vld [vmem:[%s1824_s1 + $0x60] sm:$0xff]  ;;  %v1375_v13 = vld [vmem:[%s1824_s1 + $0x58] sm:$0xff]  ;;  %v1374_v16 = vld [vmem:[%s1824_s1 + $0x50] sm:$0xff]  ;;  %s274_s15 = scalar_lea.vmem %s1828_s5, %s1413_s13 }
  0x11   : > { %731 = vmatpush.bf16.msra.mxu0 %v1370_v3  ;;  %1405 = vmatpush.bf16.msra.mxu3 %v1370_v3  ;;  %v1384_v11 = vld [vmem:[%s1824_s1 + $0xa0] sm:$0xff]  ;;  %v1383_v14 = vld [vmem:[%s1824_s1 + $0x98] sm:$0xff]  ;;  %v1382_v17 = vld [vmem:[%s1824_s1 + $0x90] sm:$0xff] }
  0x12   : > { %759 = vmatpush.bf16.msra.mxu1 %v1378_v4  ;;  %v1365_v18 = vld [vmem:[%s1824_s1 + $0x8] sm:$0xff]  ;;  %v1364_v21 = vld [vmem:[%s1824_s1] sm:$0xff]  ;;  %v1351_v25 = vld [vmem:[%s1579_s17 + $0x10] sm:$0xf0] }
  0x13   : > { %787 = vmatpush.bf16.msra.mxu2 %v1386_v5  ;;  %v1373_v19 = vld [vmem:[%s1824_s1 + $0x48] sm:$0xff]  ;;  %v1372_v22 = vld [vmem:[%s1824_s1 + $0x40] sm:$0xff]  ;;  %v1169_v26 = vld [vmem:[%s1579_s17 + $0x50] sm:$0xf] }
  0x14   : > { %v1381_v20 = vld [vmem:[%s1824_s1 + $0x88] sm:$0xff]  ;;  %v1380_v23 = vld [vmem:[%s1824_s1 + $0x80] sm:$0xff]  ;;  %v1131_v29 = vld [vmem:[%s1579_s17 + $0x14] sm:$0xf0] }
  0x15   : > { %732 = vmatpush.bf16.msra.mxu0 %v1369_v6  ;;  %1406 = vmatpush.bf16.msra.mxu3 %v1369_v6  ;;  %v1129_v24 = vld [vmem:[%s1579_s17] sm:$0xf]  ;;  %v1361_v27 = vld [vmem:[%s1579_s17 + $0x60] sm:$0xf0]  ;;  %v1137_v30 = vld [vmem:[%s1579_s17 + $0x8] sm:$0xf] }
  0x16   : > { %760 = vmatpush.bf16.msra.mxu1 %v1377_v7  ;;  %v1349_v28 = vld [vmem:[%s1579_s17 + $0x4] sm:$0xf]  ;;  %v1352_v31 = vld [vmem:[%s1579_s17 + $0x18] sm:$0xf0]  ;;  %v1130_v34 = vor.u32 %v1351_v25, %v1129_v24  ;;  %v1170_v35 = vor.u32 %v1361_v27, %v1169_v26  ;;  %v1394_v38 = vld [vmem:[%s1824_s1 + $0xf0] sm:$0xff] }
  0x17   : > { %788 = vmatpush.bf16.msra.mxu2 %v1385_v8  ;;  %v1395_v32 = vld [vmem:[%s1824_s1 + $0xf8] sm:$0xff]  ;;  %v1134_v36 = vor.u32 %v1349_v28, %v1131_v29  ;;  %v1138_v37 = vor.u32 %v1352_v31, %v1137_v30  ;;  %v1402_v39 = vld [vmem:[%s1824_s1 + $0x130] sm:$0xff]  ;;  %v1393_v40 = vld [vmem:[%s1824_s1 + $0xe8] sm:$0xff] }
  0x18   : > { %v1403_v33 = vld [vmem:[%s1824_s1 + $0x138] sm:$0xff]  ;;  %v1401_v41 = vld [vmem:[%s1824_s1 + $0x128] sm:$0xff]  ;;  %v1392_v43 = vld [vmem:[%s1824_s1 + $0xe0] sm:$0xff] }
  0x19   : > { %733 = vmatpush.bf16.msra.mxu0 %v1368_v9  ;;  %1407 = vmatpush.bf16.msra.mxu3 %v1368_v9  ;;  %v1623_v42 = vld [vmem:[%s1579_s17 + $0x78] sm:$0xff]  ;;  %v1400_v44 = vld [vmem:[%s1824_s1 + $0x120] sm:$0xff]  ;;  %v1149_v46 = vld [vmem:[%s1579_s17 + $0x28] sm:$0xf] }
  0x1a   : > { %761 = vmatpush.bf16.msra.mxu1 %v1376_v10  ;;  %v445_v45 = vunpack.c.l.b16 %v1623_v42  ;;  %v1356_v47 = vld [vmem:[%s1579_s17 + $0x38] sm:$0xf0]  ;;  %v1354_v48 = vld [vmem:[%s1579_s17 + $0x2c] sm:$0xf]  ;;  %v1151_v49 = vld [vmem:[%s1579_s17 + $0x3c] sm:$0xf0] }
  0x1b   : > { %789 = vmatpush.bf16.msra.mxu2 %v1384_v11  ;;  %v1157_v50 = vld [vmem:[%s1579_s17 + $0x30] sm:$0xf]  ;;  %v1357_v51 = vld [vmem:[%s1579_s17 + $0x40] sm:$0xf0]  ;;  %v1391_v52 = vld [vmem:[%s1824_s1 + $0xd8] sm:$0xff]  ;;  %v1150_v54 = vor.u32 %v1356_v47, %v1149_v46  ;;  %v1154_v56 = vor.u32 %v1354_v48, %v1151_v49 }
  0x1c   : > { %v1399_v53 = vld [vmem:[%s1824_s1 + $0x118] sm:$0xff]  ;;  %v465_v55 = vpack.c.b16 %v445_v45, %v445_v45  ;;  %v1158_v57 = vor.u32 %v1357_v51, %v1157_v50  ;;  %v1390_v58 = vld [vmem:[%s1824_s1 + $0xd0] sm:$0xff]  ;;  %v1389_v60 = vld [vmem:[%s1824_s1 + $0xc8] sm:$0xff] }
  0x1d   : > { %734 = vmatpush.bf16.msra.mxu0 %v1367_v12  ;;  %1408 = vmatpush.bf16.msra.mxu3 %v1367_v12  ;;  %v1398_v59 = vld [vmem:[%s1824_s1 + $0x110] sm:$0xff]  ;;  %v1397_v61 = vld [vmem:[%s1824_s1 + $0x108] sm:$0xff]  ;;  %v1388_v62 = vld [vmem:[%s1824_s1 + $0xc0] sm:$0xff] }
  0x1e   : > { %762 = vmatpush.bf16.msra.mxu1 %v1375_v13  ;;  %v1396_v63 = vld [vmem:[%s1824_s1 + $0x100] sm:$0xff]  ;;  %v1359_v0 = vld [vmem:[%s1579_s17 + $0x54] sm:$0xf]  ;;  %v1350_v1 = vld [vmem:[%s1579_s17 + $0xc] sm:$0xf] }
  0x1f   : > { %790 = vmatpush.bf16.msra.mxu2 %v1383_v14  ;;  %v1139_v2 = vld [vmem:[%s1579_s17 + $0x1c] sm:$0xf0]  ;;  %v1145_v3 = vld [vmem:[%s1579_s17 + $0x10] sm:$0xf]  ;;  %v1353_v4 = vld [vmem:[%s1579_s17 + $0x20] sm:$0xf0]  ;;  %v446_v14 = vunpack.c.h.b16 %v1623_v42 }
  0x20   : > { %v1171_v5 = vld [vmem:[%s1579_s17 + $0x64] sm:$0xf0]  ;;  %v1177_v6 = vld [vmem:[%s1579_s17 + $0x58] sm:$0xf]  ;;  %v1362_v7 = vld [vmem:[%s1579_s17 + $0x68] sm:$0xf0]  ;;  %v1142_v8 = vor.u32 %v1350_v1, %v1139_v2  ;;  %v1146_v9 = vor.u32 %v1353_v4, %v1145_v3 }
  0x21   : > { %735 = vmatpush.bf16.msra.mxu0 %v1366_v15  ;;  %1409 = vmatpush.bf16.msra.mxu3 %v1366_v15  ;;  %v1174_v10 = vor.u32 %v1359_v0, %v1171_v5  ;;  %v1178_v11 = vor.u32 %v1362_v7, %v1177_v6  ;;  %v312_v12 = vld [vmem:[%s1579_s17 + $0x80] sm:$0xff]  ;;  %v1355_v13 = vld [vmem:[%s1579_s17 + $0x34] sm:$0xf]  ;;  %v1179_v24 = vld [vmem:[%s1579_s17 + $0x6c] sm:$0xf0] }
  0x22   : > { %763 = vmatpush.bf16.msra.mxu1 %v1374_v16  ;;  %v447_v15 = vunpack.c.l.b16 %v312_v12  ;;  %v1159_v16 = vld [vmem:[%s1579_s17 + $0x44] sm:$0xf0]  ;;  %v1185_v25 = vld [vmem:[%s1579_s17 + $0x60] sm:$0xf]  ;;  %v1363_v26 = vld [vmem:[%s1579_s17 + $0x70] sm:$0xf0]  ;;  %v448_v30 = vunpack.c.h.b16 %v312_v12 }
  0x23   : > { %791 = vmatpush.bf16.msra.mxu2 %v1382_v17  ;;  %v1165_v17 = vld [vmem:[%s1579_s17 + $0x38] sm:$0xf]  ;;  %v1186_v28 = vor.u32 %v1363_v26, %v1185_v25  ;;  %v313_v29 = vld [vmem:[%s1579_s17 + $0x88] sm:$0xf]  ;;  %v939_v47 = vld [vmem:[%s1825_s2 + $0x70] sm:$0xff] }
  0x24   : > { %v449_v31 = vunpack.c.l.b16 %v313_v29  ;;  %v940_v42 = vld [vmem:[%s1825_s2 + $0x78] sm:$0xff]  ;;  %v938_v48 = vld [vmem:[%s1825_s2 + $0x68] sm:$0xff]  ;;  %v933_v1 = vld [vmem:[%s1825_s2 + $0x40] sm:$0xff] }
  0x25   : > { %736 = vmatpush.bf16.msra.mxu0 %v1365_v18  ;;  %1410 = vmatpush.bf16.msra.mxu3 %v1365_v18  ;;  %v1358_v18 = vld [vmem:[%s1579_s17 + $0x48] sm:$0xf0]  ;;  %v932_v2 = vld [vmem:[%s1825_s2 + $0x38] sm:$0xff]  ;;  %v931_v7 = vld [vmem:[%s1825_s2 + $0x30] sm:$0xff] }
  0x26   : > { %764 = vmatpush.bf16.msra.mxu1 %v1373_v19  ;;  %v1162_v19 = vor.u32 %v1355_v13, %v1159_v16  ;;  %v929_v13 = vld [vmem:[%s1825_s2 + $0x20] sm:$0xff] }
  0x27   : > { %792 = vmatpush.bf16.msra.mxu2 %v1381_v20  ;;  %v1166_v20 = vor.u32 %v1358_v18, %v1165_v17  ;;  %v927_v17 = vld [vmem:[%s1825_s2 + $0x10] sm:$0xff] }
  0x29   : > { %737 = vmatpush.bf16.msra.mxu0 %v1364_v21  ;;  %1411 = vmatpush.bf16.msra.mxu3 %v1364_v21  ;;  %v466_v21 = vpack.c.b16 %v446_v14, %v446_v14  ;;  %v928_v14 = vld [vmem:[%s1825_s2 + $0x18] sm:$0xff] }
  0x2a   : > { %765 = vmatpush.bf16.msra.mxu1 %v1372_v22  ;;  %v467_v22 = vpack.c.b16 %v447_v15, %v447_v15 }
  0x2b   : > { %793 = vmatpush.bf16.msra.mxu2 %v1380_v23  ;;  %v1360_v23 = vld [vmem:[%s1579_s17 + $0x5c] sm:$0xf] }
  0x2c   : > { %738 = vmatmul.bf16.vlgmr.msra.gmra.mxu0 %v1130_v34  ;;  %748 = vmatmul.bf16.vlgmr.msra.gmra.mxu3 %v1170_v35  ;;  %v1182_v27 = vor.u32 %v1360_v23, %v1179_v24 }
  0x2d   : > { %814 = vmatpush.bf16.msrb.mxu3 %v1395_v32  ;;  %842 = vmatpush.bf16.msrb.mxu0 %v1403_v33  ;;  %v468_v32 = vpack.c.b16 %v448_v30, %v448_v30  ;;  %v469_v33 = vpack.c.b16 %v449_v31, %v449_v31 }
  0x2e   : > { %766 = vmatmul.bf16.vlgmr.msra.gmra.mxu1 %v1134_v36  ;;  %794 = vmatmul.bf16.vlgmr.msra.gmra.mxu2 %v1138_v37 }
  0x2f   : > { %961 = vmatpush.msrb.mxu2 %v940_v42  ;;  %941 = vmatpush.msrb.mxu1 %v940_v42 }
  0x31   : > { %815 = vmatpush.bf16.msrb.mxu3 %v1394_v38  ;;  %843 = vmatpush.bf16.msrb.mxu0 %v1402_v39 }
  0x32   : > { %962 = vmatpush.msrb.mxu2 %v939_v47  ;;  %942 = vmatpush.msrb.mxu1 %v939_v47 }
  0x34   : > { %963 = vmatpush.msrb.mxu2 %v938_v48  ;;  %943 = vmatpush.msrb.mxu1 %v938_v48 }
  0x35   : > { %816 = vmatpush.bf16.msrb.mxu3 %v1393_v40  ;;  %844 = vmatpush.bf16.msrb.mxu0 %v1401_v41 }
  0x39   : > { %817 = vmatpush.bf16.msrb.mxu3 %v1392_v43  ;;  %845 = vmatpush.bf16.msrb.mxu0 %v1400_v44 }
  0x3c   : > { %743 = vmatmul.bf16.gmra.mxu0 %v1150_v54  ;;  %753 = vmatmul.bf16.gmra.mxu3 %v465_v55  ;;  %v936_v54 = vld [vmem:[%s1825_s2 + $0x58] sm:$0xff] }
  0x3d   : > { %818 = vmatpush.bf16.msrb.mxu3 %v1391_v52  ;;  %846 = vmatpush.bf16.msrb.mxu0 %v1399_v53  ;;  %v937_v53 = vld [vmem:[%s1825_s2 + $0x60] sm:$0xff] }
  0x3e   : > { %771 = vmatmul.bf16.gmra.mxu1 %v1154_v56  ;;  %799 = vmatmul.bf16.gmra.mxu2 %v1158_v57 }
  0x3f   : > { %964 = vmatpush.msrb.mxu2 %v937_v53  ;;  %944 = vmatpush.msrb.mxu1 %v937_v53 }
  0x41   : > { %819 = vmatpush.bf16.msrb.mxu3 %v1390_v58  ;;  %847 = vmatpush.bf16.msrb.mxu0 %v1398_v59  ;;  %v935_v59 = vld [vmem:[%s1825_s2 + $0x50] sm:$0xff] }
  0x42   : > { %965 = vmatpush.msrb.mxu2 %v936_v54  ;;  %945 = vmatpush.msrb.mxu1 %v936_v54 }
  0x44   : > { %966 = vmatpush.msrb.mxu2 %v935_v59  ;;  %946 = vmatpush.msrb.mxu1 %v935_v59 }
  0x45   : > { %820 = vmatpush.bf16.msrb.mxu3 %v1389_v60  ;;  %848 = vmatpush.bf16.msrb.mxu0 %v1397_v61  ;;  %v934_v60 = vld [vmem:[%s1825_s2 + $0x48] sm:$0xff] }
  0x46   : > { %967 = vmatpush.msrb.mxu2 %v934_v60  ;;  %947 = vmatpush.msrb.mxu1 %v934_v60 }
  0x48   : > { %968 = vmatpush.msrb.mxu2 %v933_v1  ;;  %948 = vmatpush.msrb.mxu1 %v933_v1 }
  0x49   : > { %821 = vmatpush.bf16.msrb.mxu3 %v1388_v62  ;;  %849 = vmatpush.bf16.msrb.mxu0 %v1396_v63 }
  0x4a   : > { %969 = vmatpush.msrb.mxu2 %v932_v2  ;;  %949 = vmatpush.msrb.mxu1 %v932_v2 }
  0x4c   : > { %822 = vmatmul.bf16.vlgmr.msrb.gmra.mxu3 %v1142_v8  ;;  %850 = vmatmul.bf16.vlgmr.msrb.gmra.mxu0 %v1146_v9  ;;  %v930_v8 = vld [vmem:[%s1825_s2 + $0x28] sm:$0xff] }
  0x4d   : > { %970 = vmatpush.msrb.mxu2 %v931_v7  ;;  %950 = vmatpush.msrb.mxu1 %v931_v7 }
  0x4e   : > { %776 = vmatmul.bf16.gmra.mxu1 %v1174_v10  ;;  %804 = vmatmul.bf16.gmra.mxu2 %v1178_v11 }
  0x4f   : > { %971 = vmatpush.msrb.mxu2 %v930_v8  ;;  %951 = vmatpush.msrb.mxu1 %v930_v8 }
  0x51   : > { %972 = vmatpush.msrb.mxu2 %v929_v13  ;;  %952 = vmatpush.msrb.mxu1 %v929_v13 }
  0x53   : > { %973 = vmatpush.msrb.mxu2 %v928_v14  ;;  %953 = vmatpush.msrb.mxu1 %v928_v14 }
  0x55   : > { %974 = vmatpush.msrb.mxu2 %v927_v17  ;;  %954 = vmatpush.msrb.mxu1 %v927_v17 }
  0x5c   : > { %827 = vmatmul.bf16.gmra.mxu3 %v1162_v19  ;;  %855 = vmatmul.bf16.gmra.mxu0 %v1166_v20  ;;  %v926_v19 = vld [vmem:[%s1825_s2 + $0x8] sm:$0xff] }
  0x5d   : > { %975 = vmatpush.msrb.mxu2 %v926_v19  ;;  %955 = vmatpush.msrb.mxu1 %v926_v19 }
  0x5e   : > { %781 = vmatmul.bf16.gmra.mxu1 %v466_v21  ;;  %809 = vmatmul.bf16.gmra.mxu2 %v467_v22  ;;  %v925_v22 = vld [vmem:[%s1825_s2] sm:$0xff] }
  0x5f   : > { %976 = vmatpush.msrb.mxu2 %v925_v22  ;;  %956 = vmatpush.msrb.mxu1 %v925_v22 }
  0x6c   : > { %832 = vmatmul.bf16.gmra.mxu3 %v1182_v27  ;;  %860 = vmatmul.bf16.gmra.mxu0 %v1186_v28 }
  0x7c   : > { %837 = vmatmul.bf16.gmra.mxu3 %v468_v32  ;;  %865 = vmatmul.bf16.gmra.mxu0 %v469_v33 }
  0xa9   : > { %v739_v34 = vpop.f32.mrf.mxu0 }
  0xab   : > { %v767_v35 = vpop.f32.mrf.mxu1 }
  0xac   : > { %v768_v36 = vadd.f32 %v767_v35, %v739_v34 }
  0xaf   : > { %v1681_v37 = vpop.f32.mrf.mxu3 }
  0xb1   : > { %v795_v38 = vpop.f32.mrf.mxu2  ;;  %v1685_v40 = vpop.f32.mrf.mxu0 }
  0xb2   : > { %v1683_v39 = vadd.f32 %v795_v38, %v768_v36 }
  0xb3   : > { %v1687_v41 = vpop.f32.mrf.mxu1 }
  0xb4   : > { %v770_v20 = vadd.f32 %v1687_v41, %v1685_v40 }
  0xb7   : > { %v1692_v43 = vpop.f32.mrf.mxu3 }
  0xb9   : > { %v1694_v44 = vpop.f32.mrf.mxu2  ;;  %v1696_v45 = vpop.f32.mrf.mxu0 }
  0xba   : > { %v798_v23 = vadd.f32 %v1694_v44, %v770_v20 }
  0xbb   : > { %v1698_v46 = vpop.f32.mrf.mxu1 }
  0xbc   : > { %v773_v21 = vadd.f32 %v1698_v46, %v1696_v45 }
  0xbf   : > { %v1706_v49 = vpop.f32.mrf.mxu3 }
  0xc1   : > { %v1708_v50 = vpop.f32.mrf.mxu2  ;;  %v1710_v51 = vpop.f32.mrf.mxu0 }
  0xc2   : > { %v801_v25 = vadd.f32 %v1708_v50, %v773_v21 }
  0xc3   : > { %v1712_v52 = vpop.f32.mrf.mxu1 }
  0xc4   : > { %v775_v26 = vadd.f32 %v1712_v52, %v1710_v51 }
  0xc7   : > { %v756_v55 = vpop.f32.mrf.mxu3 }
  0xc9   : > { %v802_v56 = vpop.f32.mrf.mxu2  ;;  %v1720_v57 = vpop.f32.mrf.mxu0 }
  0xca   : > { %v803_v29 = vadd.f32 %v802_v56, %v775_v26 }
  0xcb   : > { %v777_v58 = vpop.f32.mrf.mxu1 }
  0xcc   : > { %v778_v30 = vadd.f32 %v777_v58, %v1681_v37 }
  0xcf   : > { %v823_v61 = vpop.f32.mrf.mxu3 }
  0xd0   : > { %v824_v31 = vadd.f32 %v823_v61, %v1683_v39 }
  0xd1   : > { %v805_v62 = vpop.f32.mrf.mxu2  ;;  %v853_v63 = vpop.f32.mrf.mxu0 }
  0xd2   : > { %v806_v33 = vadd.f32 %v805_v62, %v778_v30  ;;  %v1769_v38 = vadd.f32 %v1720_v57, %v824_v31 }
  0xd3   : > { %v779_v0 = vpop.f32.mrf.mxu1 }
  0xd4   : > { %v780_v34 = vadd.f32 %v779_v0, %v1692_v43  ;;  %v906_v43 = vmul.f32 %v1769_v38, %v1769_v38 }
  0xd7   : > { %v825_v3 = vpop.f32.mrf.mxu3 }
  0xd8   : > { %v826_v27 = vadd.f32 %v825_v3, %v798_v23 }
  0xd9   : > { %v807_v4 = vpop.f32.mrf.mxu2  ;;  %v856_v5 = vpop.f32.mrf.mxu0 }
  0xda   : > { %v1766_v35 = vadd.f32 %v853_v63, %v826_v27  ;;  %v808_v40 = vadd.f32 %v807_v4, %v780_v34 }
  0xdb   : > { %v782_v6 = vpop.f32.mrf.mxu1 }
  0xdc   : > { %v907_v37 = vmul.f32 %v1766_v35, %v1766_v35  ;;  %v894_v47 = vadd.f32 %v1766_v35, %v1769_v38  ;;  %v783_v51 = vadd.f32 %v782_v6, %v1706_v49 }
  0xde   : > { %v913_v52 = vadd.f32 %v907_v37, %v906_v43 }
  0xdf   : > { %v828_v9 = vpop.f32.mrf.mxu3 }
  0xe0   : > { %v829_v32 = vadd.f32 %v828_v9, %v801_v25 }
  0xe1   : > { %v810_v10 = vpop.f32.mrf.mxu2  ;;  %v858_v11 = vpop.f32.mrf.mxu0 }
  0xe2   : > { %v1771_v41 = vadd.f32 %v856_v5, %v829_v32  ;;  %v811_v56 = vadd.f32 %v810_v10, %v783_v51 }
  0xe3   : > { %v784_v12 = vpop.f32.mrf.mxu1 }
  0xe4   : > { %v908_v48 = vmul.f32 %v1771_v41, %v1771_v41  ;;  %v895_v53 = vadd.f32 %v894_v47, %v1771_v41 }
  0xe6   : > { %v914_v57 = vadd.f32 %v913_v52, %v908_v48 }
  0xe7   : > { %v830_v15 = vpop.f32.mrf.mxu3 }
  0xe8   : > { %v831_v36 = vadd.f32 %v830_v15, %v803_v29 }
  0xe9   : > { %v812_v16 = vpop.f32.mrf.mxu2  ;;  %v861_v18 = vpop.f32.mrf.mxu0 }
  0xea   : > { %v1775_v45 = vadd.f32 %v858_v11, %v831_v36  ;;  %v997_v36 = vld [vmem:[%s1826_s3] sm:$0x1] }
  0xec   : > { %v909_v54 = vmul.f32 %v1775_v45, %v1775_v45  ;;  %v896_v58 = vadd.f32 %v895_v53, %v1775_v45 }
  0xee   : > { %v915_v61 = vadd.f32 %v914_v57, %v909_v54 }
  0xef   : > { %v833_v24 = vpop.f32.mrf.mxu3 }
  0xf0   : > { %v834_v42 = vadd.f32 %v833_v24, %v806_v33 }
  0xf1   : > { %v863_v28 = vpop.f32.mrf.mxu0 }
  0xf2   : > { %v1783_v50 = vadd.f32 %v861_v18, %v834_v42 }
  0xf4   : > { %v910_v59 = vmul.f32 %v1783_v50, %v1783_v50  ;;  %v897_v62 = vadd.f32 %v896_v58, %v1783_v50 }
  0xf6   : > { %v916_v1 = vadd.f32 %v915_v61, %v910_v59 }
  0xf7   : > { %v835_v44 = vpop.f32.mrf.mxu3 }
  0xf8   : > { %v836_v39 = vadd.f32 %v835_v44, %v808_v40  ;;  %v999_v44 = vld [vmem:[%s1827_s4] sm:$0x1] }
  0xf9   : > { %v866_v46 = vpop.f32.mrf.mxu0 }
  0xfa   : > { %v1789_v55 = vadd.f32 %v863_v28, %v836_v39 }
  0xfc   : > { %v911_v49 = vmul.f32 %v1789_v55, %v1789_v55  ;;  %v898_v2 = vadd.f32 %v897_v62, %v1789_v55 }
  0xfe   : > { %v917_v4 = vadd.f32 %v916_v1, %v911_v49 }
  0xff   : > { %v838_v60 = vpop.f32.mrf.mxu3 }
 0x100   : > { %v839_v63 = vadd.f32 %v838_v60, %v811_v56 }
 0x101   : > { %v868_v0 = vpop.f32.mrf.mxu0 }
 0x102   : > { %v867_v3 = vadd.f32 %v866_v46, %v839_v63 }
 0x104   : > { %v899_v5 = vadd.f32 %v898_v2, %v867_v3  ;;  %v912_v6 = vmul.f32 %v867_v3, %v867_v3 }
 0x106   : > { %v900_v7 = vrot.slane %v899_v5, 4  ;;  %v918_v8 = vadd.f32 %v917_v4, %v912_v6 }
 0x107   : > { %v840_v9 = vpop.f32.mrf.mxu3 }
 0x108   : > { %v901_v10 = vadd.f32 %v900_v7, %v899_v5  ;;  %v919_v11 = vrot.slane %v918_v8, 4 }
 0x10a   : > { %v902_v12 = vrot.slane %v901_v10, 2  ;;  %v920_v13 = vadd.f32 %v919_v11, %v918_v8 }
 0x10c   : > { %v903_v14 = vadd.f32 %v902_v12, %v901_v10  ;;  %v921_v15 = vrot.slane %v920_v13, 2 }
 0x10e   : > { %v904_v16 = vrot.slane %v903_v14, 1  ;;  %v922_v17 = vadd.f32 %v921_v15, %v920_v13 }
 0x110   : > { %v905_v18 = vadd.f32 %v904_v16, %v903_v14  ;;  %v923_v19 = vrot.slane %v922_v17, 1 }
 0x112   : > { %957 = vmatmul.f32.vlgmr.msrb.gmra.mxu1 %v905_v18  ;;  %v924_v20 = vadd.f32 %v923_v19, %v922_v17 }
 0x114   : > { %977 = vmatmul.f32.vlgmr.msrb.gmra.mxu2 %v924_v20 }
 0x18f   : > { %v958_v21 = vpop.f32.mrf.mxu1 }
 0x190   : > { %v981_v22 = vmul.f32 0.0017006802, %v958_v21 }
 0x192   : > { %v983_v24 = vmul.f32 %v981_v22, %v981_v22 }
 0x197   : > { %v978_v23 = vpop.f32.mrf.mxu2 }
 0x198   : > { %v982_v25 = vmul.f32 0.0017006802, %v978_v23 }
 0x19a   : > { %v984_v26 = vsub.f32 %v982_v25, %v983_v24 }
 0x19c   : > { %v985_v27 = vmax.f32 %v984_v26, 0.0 }
 0x19e   : > { %v986_v28 = vadd.f32 1e-05, %v985_v27 }
 0x1a0   : > { %1438 = vrsqrt.f32 %v986_v28  ;;  %vm993_vm1 = vweird.f32 %v986_v28 }
 0x1a6   : > { %v1439_v29 = vpop.eup %1438 }
 0x1a7   : > { %v988_v30 = vmul.f32 %v1439_v29, %v986_v28  ;;  %vm994_vm0 = vweird.f32 %v1439_v29 }
 0x1a8   : > { %vm995_vm2 = vmor %vm993_vm1, %vm994_vm0 }
 0x1a9   : > { %v989_v31 = vmul.f32 %v1439_v29, %v988_v30 }
 0x1ab   : > { %v990_v32 = vmul.f32 0.5, %v989_v31 }
 0x1ad   : > { %v991_v33 = vsub.f32 1.5, %v990_v32 }
 0x1af   : > { %v992_v34 = vmul.f32 %v1439_v29, %v991_v33 }
 0x1b1   : > { %v996_v40 = vsel %vm995_vm2, %v1439_v29, %v992_v34 }
 0x1b2   : > { %v998_v42 = vmul.f32 %v997_v36, %v996_v40 }
 0x1b4   : > { %v1000_v37 = vmul.f32 %v998_v42, %v981_v22  ;;  %v1002_v39 = vperm.slane %v998_v42, 0 }
 0x1b6   : > { %v1001_v46 = vsub.f32 %v999_v44, %v1000_v37  ;;  %v1003_v43 = vmul.f32 %v1002_v39, %v1769_v38  ;;  %v1004_v47 = vmul.f32 %v1002_v39, %v1766_v35  ;;  %v1005_v48 = vmul.f32 %v1002_v39, %v1771_v41 }
 0x1b7   : > { %v1006_v51 = vmul.f32 %v1002_v39, %v1775_v45  ;;  %v1007_v53 = vmul.f32 %v1002_v39, %v1783_v50  ;;  %v1008_v54 = vmul.f32 %v1002_v39, %v1789_v55  ;;  %v1009_v56 = vmul.f32 %v1002_v39, %v867_v3 }
 0x1b8   : > { %v1011_v52 = vperm.slane %v1001_v46, 0 }
 0x1ba   : > { %v1013_v57 = vadd.f32 %v1011_v52, %v1003_v43  ;;  %v1014_v58 = vadd.f32 %v1011_v52, %v1004_v47  ;;  %v1015_v59 = vadd.f32 %v1011_v52, %v1005_v48  ;;  %v1016_v60 = vadd.f32 %v1011_v52, %v1006_v51 }
 0x1bb   : > { %v1017_v38 = vadd.f32 %v1011_v52, %v1007_v53  ;;  %v1018_v35 = vadd.f32 %v1011_v52, %v1008_v54  ;;  %v1019_v61 = vadd.f32 %v1011_v52, %v1009_v56 }
 0x1bc   : > { %v1020_v41 = vmax.f32 %v1013_v57, 0.0  ;;  %v1021_v62 = vmax.f32 %v1014_v58, 0.0  ;;  %v1022_v45 = vmax.f32 %v1015_v59, 0.0  ;;  %v1023_v49 = vmax.f32 %v1016_v60, 0.0 }
 0x1bd   : > { %v1024_v63 = vmax.f32 %v1017_v38, 0.0  ;;  %v1025_v50 = vmax.f32 %v1018_v35, 0.0  ;;  %v1026_v55 = vmax.f32 %v1019_v61, 0.0 }
 0x1be   : > { %1027 = vst [vmem:[%s274_s15] sm:$0xff] %v1020_v41 }
 0x1bf   : > { %1028 = vst [vmem:[%s274_s15 + $0x8] sm:$0xff] %v1021_v62 }
 0x1c0   : > { %1029 = vst [vmem:[%s274_s15 + $0x10] sm:$0xff] %v1022_v45 }
 0x1c1   : > { %1030 = vst [vmem:[%s274_s15 + $0x18] sm:$0xff] %v1023_v49 }
 0x1c2   : > { %1031 = vst [vmem:[%s274_s15 + $0x20] sm:$0xff] %v1024_v63 }
 0x1c3   : > { %1032 = vst [vmem:[%s274_s15 + $0x28] sm:$0xff] %v1025_v50 }
 0x1c4   : > { %1033 = vst [vmem:[%s274_s15 + $0x30] sm:$0xff] %v1026_v55 }
 0x1c5 PF: > { %s15_s20 = sadd.s32 1, %s1462_s20   ;;  %s1829_s18 = smov %s1458_s19 }
 0x1c6   : > { %p12_p5 = scmp.ge.s32.totalorder %s15_s20, 4   ;;  %s1830_s19 = smov %s1832_s21 }
 0x1c8   :  { %14 = sbr.rel (!%p12_p5) target bundleno = 2 (0x2), region = 81 }

// kernel: inception_v4_stem.15
= control target key start
LH: loop header
LB: loop body
LE: loop exit
PB: predicated region body
PF: predicated region fallthrough
CT: control target
= control target key end

     0   :  { %s1336_s18 = smov 0   ;;  %s1338_s19 = smov 0   ;;  %s1573_s0 = inlined_call_operand.vmem [shape: bf16[2,32,640], index: 0, kind: input, shape index: {}]   ;;  %s1574_s1 = inlined_call_operand.vmem [shape: bf16[640,128], index: 1, kind: input, shape index: {}]   ;;  %s1575_s2 = inlined_call_operand.vmem [shape: f32[128,128], index: 2, kind: input, shape index: {}]   ;;  %s1576_s3 = inlined_call_operand.vmem [shape: f32[1,128], index: 3, kind: input, shape index: {}]   ;;  %s1577_s4 = inlined_call_operand.vmem [shape: f32[1,128], index: 4, kind: input, shape index: {}]   ;;  %s1578_s5 = inlined_call_operand.vmem [shape: f32[2,32,128], index: 5, kind: output, shape index: {}]  }
   0x1   :  { %s1340_s20 = smov 0  }
   0x2 LB: > { %s27_s21 = sadd.s32 1, %s1300_s19  ;;  %p990_p0 = scmp.ge.s32.totalorder %s1304_s20, 1  ;;  %s1304_s20 = sphi %s1340_s20, %s15_s20   ;;  %s1300_s19 = sphi %s1338_s19, %s1580_s19   ;;  %s1296_s18 = sphi %s1336_s18, %s1579_s18  }
   0x3   : > { %p29_p1 = scmp.ge.s32.totalorder %s27_s21, 2  ;;  %p217_p2 = scmp.lt.s32.totalorder %s1304_s20, 3 }
   0x5   : > { %s1582_s21 = smov (%p29_p1, %s27_s21), 0  ;;  %p218_p3 = pnand %p990_p0, %p217_p2 }
   0x6   : > { %p255_p4 = scmp.lt.s32.totalorder (!%p218_p3), %s1296_s18, 1 }
   0x7   : > { %221 = sbr.rel (%p218_p3) target bundleno = 411 (0x19b), region = 40 }
   0xc   : > { %v1214_v0 = vld [vmem:[%s1574_s1 + $0x38] sm:$0xff]  ;;  %v1213_v4 = vld [vmem:[%s1574_s1 + $0x30] sm:$0xff]  ;;  %v1212_v8 = vld [vmem:[%s1574_s1 + $0x28] sm:$0xff]  ;;  %s1584_s18 = smov (!%p255_p4, %s1296_s18), 1 }
   0xd   : > { %v1222_v1 = vld [vmem:[%s1574_s1 + $0x78] sm:$0xff]  ;;  %671 = vmatpush.bf16.msra.mxu0 %v1214_v0  ;;  %v1221_v5 = vld [vmem:[%s1574_s1 + $0x70] sm:$0xff]  ;;  %v1220_v9 = vld [vmem:[%s1574_s1 + $0x68] sm:$0xff]  ;;  %s1255_s24 = smul.u32 80, %s1584_s18  ;;  %s1196_s13 = sshll.u32 %s1584_s18, 5 }
   0xe   : > { %v1230_v2 = vld [vmem:[%s1574_s1 + $0xb8] sm:$0xff]  ;;  %690 = vmatpush.bf16.msra.mxu1 %v1222_v1  ;;  %v1229_v6 = vld [vmem:[%s1574_s1 + $0xb0] sm:$0xff]  ;;  %v1228_v10 = vld [vmem:[%s1574_s1 + $0xa8] sm:$0xff]  ;;  %s274_s16 = scalar_lea.vmem %s1578_s5, %s1196_s13 }
   0xf   : > { %v1238_v3 = vld [vmem:[%s1574_s1 + $0xf8] sm:$0xff]  ;;  %709 = vmatpush.bf16.msra.mxu2 %v1230_v2  ;;  %v1237_v7 = vld [vmem:[%s1574_s1 + $0xf0] sm:$0xff]  ;;  %v1236_v11 = vld [vmem:[%s1574_s1 + $0xe8] sm:$0xff]  ;;  %s1442_s10 = scalar_lea.vmem %s1573_s0, %s1255_s24 }
  0x10   : > { %728 = vmatpush.bf16.msra.mxu3 %v1238_v3  ;;  %v1211_v12 = vld [vmem:[%s1574_s1 + $0x20] sm:$0xff]  ;;  %v1210_v16 = vld [vmem:[%s1574_s1 + $0x18] sm:$0xff]  ;;  %v1209_v20 = vld [vmem:[%s1574_s1 + $0x10] sm:$0xff] }
  0x11   : > { %672 = vmatpush.bf16.msra.mxu0 %v1213_v4  ;;  %v1219_v13 = vld [vmem:[%s1574_s1 + $0x60] sm:$0xff]  ;;  %v1218_v17 = vld [vmem:[%s1574_s1 + $0x58] sm:$0xff]  ;;  %v1217_v21 = vld [vmem:[%s1574_s1 + $0x50] sm:$0xff] }
  0x12   : > { %691 = vmatpush.bf16.msra.mxu1 %v1221_v5  ;;  %v1227_v14 = vld [vmem:[%s1574_s1 + $0xa0] sm:$0xff]  ;;  %v1226_v18 = vld [vmem:[%s1574_s1 + $0x98] sm:$0xff]  ;;  %v1225_v22 = vld [vmem:[%s1574_s1 + $0x90] sm:$0xff] }
  0x13   : > { %710 = vmatpush.bf16.msra.mxu2 %v1229_v6  ;;  %v1235_v15 = vld [vmem:[%s1574_s1 + $0xe0] sm:$0xff]  ;;  %v1234_v19 = vld [vmem:[%s1574_s1 + $0xd8] sm:$0xff]  ;;  %v1233_v23 = vld [vmem:[%s1574_s1 + $0xd0] sm:$0xff] }
  0x14   : > { %729 = vmatpush.bf16.msra.mxu3 %v1237_v7  ;;  %v1208_v24 = vld [vmem:[%s1574_s1 + $0x8] sm:$0xff]  ;;  %v1207_v28 = vld [vmem:[%s1574_s1] sm:$0xff]  ;;  %v1199_v33 = vld [vmem:[%s1442_s10 + $0x10] sm:$0xf0] }
  0x15   : > { %673 = vmatpush.bf16.msra.mxu0 %v1212_v8  ;;  %v1216_v25 = vld [vmem:[%s1574_s1 + $0x48] sm:$0xff]  ;;  %v1215_v29 = vld [vmem:[%s1574_s1 + $0x40] sm:$0xff]  ;;  %v998_v35 = vld [vmem:[%s1442_s10 + $0x14] sm:$0xf0] }
  0x16   : > { %692 = vmatpush.bf16.msra.mxu1 %v1220_v9  ;;  %v1224_v26 = vld [vmem:[%s1574_s1 + $0x88] sm:$0xff]  ;;  %v1223_v30 = vld [vmem:[%s1574_s1 + $0x80] sm:$0xff]  ;;  %v1200_v37 = vld [vmem:[%s1442_s10 + $0x18] sm:$0xf0] }
  0x17   : > { %711 = vmatpush.bf16.msra.mxu2 %v1228_v10  ;;  %v1232_v27 = vld [vmem:[%s1574_s1 + $0xc8] sm:$0xff]  ;;  %v1231_v31 = vld [vmem:[%s1574_s1 + $0xc0] sm:$0xff]  ;;  %v1246_v40 = vld [vmem:[%s1574_s1 + $0x138] sm:$0xff] }
  0x18   : > { %730 = vmatpush.bf16.msra.mxu3 %v1236_v11  ;;  %v996_v32 = vld [vmem:[%s1442_s10] sm:$0xf]  ;;  %v1197_v34 = vld [vmem:[%s1442_s10 + $0x4] sm:$0xf]  ;;  %v1004_v36 = vld [vmem:[%s1442_s10 + $0x8] sm:$0xf] }
  0x19   : > { %674 = vmatpush.bf16.msra.mxu0 %v1211_v12  ;;  %v1198_v38 = vld [vmem:[%s1442_s10 + $0xc] sm:$0xf]  ;;  %v1006_v39 = vld [vmem:[%s1442_s10 + $0x1c] sm:$0xf0]  ;;  %v997_v41 = vor.u32 %v1199_v33, %v996_v32  ;;  %v1001_v42 = vor.u32 %v1197_v34, %v998_v35  ;;  %v1005_v43 = vor.u32 %v1200_v37, %v1004_v36  ;;  %v1245_v45 = vld [vmem:[%s1574_s1 + $0x130] sm:$0xff] }
  0x1a   : > { %693 = vmatpush.bf16.msra.mxu1 %v1219_v13  ;;  %v1009_v44 = vor.u32 %v1198_v38, %v1006_v39  ;;  %v1244_v46 = vld [vmem:[%s1574_s1 + $0x128] sm:$0xff]  ;;  %v1243_v47 = vld [vmem:[%s1574_s1 + $0x120] sm:$0xff]  ;;  %v1204_v49 = vld [vmem:[%s1442_s10 + $0x38] sm:$0xf0] }
  0x1b   : > { %712 = vmatpush.bf16.msra.mxu2 %v1227_v14  ;;  %v1016_v48 = vld [vmem:[%s1442_s10 + $0x28] sm:$0xf]  ;;  %v1202_v50 = vld [vmem:[%s1442_s10 + $0x2c] sm:$0xf]  ;;  %v1018_v51 = vld [vmem:[%s1442_s10 + $0x3c] sm:$0xf0] }
  0x1c   : > { %731 = vmatpush.bf16.msra.mxu3 %v1235_v15  ;;  %v1024_v52 = vld [vmem:[%s1442_s10 + $0x30] sm:$0xf]  ;;  %v1205_v53 = vld [vmem:[%s1442_s10 + $0x40] sm:$0xf0]  ;;  %v1203_v54 = vld [vmem:[%s1442_s10 + $0x34] sm:$0xf]  ;;  %v1017_v57 = vor.u32 %v1204_v49, %v1016_v48  ;;  %v1021_v58 = vor.u32 %v1202_v50, %v1018_v51 }
  0x1d   : > { %675 = vmatpush.bf16.msra.mxu0 %v1210_v16  ;;  %v1026_v55 = vld [vmem:[%s1442_s10 + $0x44] sm:$0xf0]  ;;  %v1242_v56 = vld [vmem:[%s1574_s1 + $0x118] sm:$0xff]  ;;  %v1025_v59 = vor.u32 %v1205_v53, %v1024_v52  ;;  %v1241_v61 = vld [vmem:[%s1574_s1 + $0x110] sm:$0xff] }
  0x1e   : > { %694 = vmatpush.bf16.msra.mxu1 %v1218_v17  ;;  %v1029_v60 = vor.u32 %v1203_v54, %v1026_v55  ;;  %v1240_v62 = vld [vmem:[%s1574_s1 + $0x108] sm:$0xff]  ;;  %v1239_v63 = vld [vmem:[%s1574_s1 + $0x100] sm:$0xff]  ;;  %v1012_v0 = vld [vmem:[%s1442_s10 + $0x10] sm:$0xf] }
  0x1f   : > { %713 = vmatpush.bf16.msra.mxu2 %v1226_v18  ;;  %v1201_v1 = vld [vmem:[%s1442_s10 + $0x20] sm:$0xf0]  ;;  %v1032_v2 = vld [vmem:[%s1442_s10 + $0x38] sm:$0xf]  ;;  %v1206_v3 = vld [vmem:[%s1442_s10 + $0x48] sm:$0xf0] }
  0x20   : > { %732 = vmatpush.bf16.msra.mxu3 %v1234_v19  ;;  %v1013_v4 = vor.u32 %v1201_v1, %v1012_v0  ;;  %v1033_v5 = vor.u32 %v1206_v3, %v1032_v2  ;;  %v818_v7 = vld [vmem:[%s1575_s2 + $0x78] sm:$0xff]  ;;  %v817_v8 = vld [vmem:[%s1575_s2 + $0x70] sm:$0xff]  ;;  %v816_v9 = vld [vmem:[%s1575_s2 + $0x68] sm:$0xff] }
  0x21   : > { %676 = vmatpush.bf16.msra.mxu0 %v1209_v20  ;;  %v815_v10 = vld [vmem:[%s1575_s2 + $0x60] sm:$0xff]  ;;  %v814_v14 = vld [vmem:[%s1575_s2 + $0x58] sm:$0xff]  ;;  %v813_v16 = vld [vmem:[%s1575_s2 + $0x50] sm:$0xff] }
  0x22   : > { %695 = vmatpush.bf16.msra.mxu1 %v1217_v21  ;;  %v812_v17 = vld [vmem:[%s1575_s2 + $0x48] sm:$0xff]  ;;  %v811_v18 = vld [vmem:[%s1575_s2 + $0x40] sm:$0xff]  ;;  %v810_v21 = vld [vmem:[%s1575_s2 + $0x38] sm:$0xff] }
  0x23   : > { %714 = vmatpush.bf16.msra.mxu2 %v1225_v22  ;;  %v803_v33 = vld [vmem:[%s1575_s2] sm:$0xff] }
  0x24   : > { %733 = vmatpush.bf16.msra.mxu3 %v1233_v23  ;;  %v809_v23 = vld [vmem:[%s1575_s2 + $0x30] sm:$0xff] }
  0x25   : > { %677 = vmatpush.bf16.msra.mxu0 %v1208_v24 }
  0x26   : > { %696 = vmatpush.bf16.msra.mxu1 %v1216_v25  ;;  %v808_v25 = vld [vmem:[%s1575_s2 + $0x28] sm:$0xff] }
  0x27   : > { %715 = vmatpush.bf16.msra.mxu2 %v1224_v26  ;;  %v807_v26 = vld [vmem:[%s1575_s2 + $0x20] sm:$0xff] }
  0x28   : > { %734 = vmatpush.bf16.msra.mxu3 %v1232_v27  ;;  %v806_v27 = vld [vmem:[%s1575_s2 + $0x18] sm:$0xff] }
  0x29   : > { %678 = vmatpush.bf16.msra.mxu0 %v1207_v28 }
  0x2a   : > { %697 = vmatpush.bf16.msra.mxu1 %v1215_v29 }
  0x2b   : > { %716 = vmatpush.bf16.msra.mxu2 %v1223_v30  ;;  %v805_v30 = vld [vmem:[%s1575_s2 + $0x10] sm:$0xff] }
  0x2c   : > { %735 = vmatpush.bf16.msra.mxu3 %v1231_v31  ;;  %679 = vmatmul.bf16.vlgmr.msra.gmra.mxu0 %v997_v41  ;;  %v804_v31 = vld [vmem:[%s1575_s2 + $0x8] sm:$0xff] }
  0x2d   : > { %747 = vmatpush.bf16.msrb.mxu0 %v1246_v40  ;;  %698 = vmatmul.bf16.vlgmr.msra.gmra.mxu1 %v1001_v42 }
  0x2e   : > { %717 = vmatmul.bf16.vlgmr.msra.gmra.mxu2 %v1005_v43  ;;  %819 = vmatpush.msrb.mxu1 %v818_v7 }
  0x2f   : > { %736 = vmatmul.bf16.vlgmr.msra.gmra.mxu3 %v1009_v44  ;;  %839 = vmatpush.msrb.mxu2 %v818_v7 }
  0x30   : > { %1247 = vmatpush.bf16.msrb.mxu3 %v1246_v40  ;;  %820 = vmatpush.msrb.mxu1 %v817_v8 }
  0x31   : > { %748 = vmatpush.bf16.msrb.mxu0 %v1245_v45  ;;  %840 = vmatpush.msrb.mxu2 %v817_v8 }
  0x32   : > { %821 = vmatpush.msrb.mxu1 %v816_v9 }
  0x33   : > { %841 = vmatpush.msrb.mxu2 %v816_v9 }
  0x34   : > { %1248 = vmatpush.bf16.msrb.mxu3 %v1245_v45  ;;  %822 = vmatpush.msrb.mxu1 %v815_v10 }
  0x35   : > { %749 = vmatpush.bf16.msrb.mxu0 %v1244_v46  ;;  %842 = vmatpush.msrb.mxu2 %v815_v10 }
  0x36   : > { %823 = vmatpush.msrb.mxu1 %v814_v14 }
  0x37   : > { %843 = vmatpush.msrb.mxu2 %v814_v14 }
  0x38   : > { %1249 = vmatpush.bf16.msrb.mxu3 %v1244_v46  ;;  %824 = vmatpush.msrb.mxu1 %v813_v16 }
  0x39   : > { %750 = vmatpush.bf16.msrb.mxu0 %v1243_v47  ;;  %844 = vmatpush.msrb.mxu2 %v813_v16 }
  0x3a   : > { %825 = vmatpush.msrb.mxu1 %v812_v17 }
  0x3b   : > { %845 = vmatpush.msrb.mxu2 %v812_v17 }
  0x3c   : > { %1250 = vmatpush.bf16.msrb.mxu3 %v1243_v47  ;;  %684 = vmatmul.bf16.gmra.mxu0 %v1017_v57 }
  0x3d   : > { %751 = vmatpush.bf16.msrb.mxu0 %v1242_v56  ;;  %703 = vmatmul.bf16.gmra.mxu1 %v1021_v58 }
  0x3e   : > { %722 = vmatmul.bf16.gmra.mxu2 %v1025_v59  ;;  %826 = vmatpush.msrb.mxu1 %v811_v18 }
  0x3f   : > { %741 = vmatmul.bf16.gmra.mxu3 %v1029_v60  ;;  %846 = vmatpush.msrb.mxu2 %v811_v18 }
  0x40   : > { %1251 = vmatpush.bf16.msrb.mxu3 %v1242_v56  ;;  %827 = vmatpush.msrb.mxu1 %v810_v21 }
  0x41   : > { %752 = vmatpush.bf16.msrb.mxu0 %v1241_v61  ;;  %847 = vmatpush.msrb.mxu2 %v810_v21 }
  0x42   : > { %828 = vmatpush.msrb.mxu1 %v809_v23 }
  0x43   : > { %848 = vmatpush.msrb.mxu2 %v809_v23 }
  0x44   : > { %1252 = vmatpush.bf16.msrb.mxu3 %v1241_v61  ;;  %829 = vmatpush.msrb.mxu1 %v808_v25 }
  0x45   : > { %753 = vmatpush.bf16.msrb.mxu0 %v1240_v62  ;;  %849 = vmatpush.msrb.mxu2 %v808_v25 }
  0x46   : > { %830 = vmatpush.msrb.mxu1 %v807_v26 }
  0x47   : > { %850 = vmatpush.msrb.mxu2 %v807_v26 }
  0x48   : > { %1253 = vmatpush.bf16.msrb.mxu3 %v1240_v62  ;;  %831 = vmatpush.msrb.mxu1 %v806_v27 }
  0x49   : > { %754 = vmatpush.bf16.msrb.mxu0 %v1239_v63  ;;  %851 = vmatpush.msrb.mxu2 %v806_v27 }
  0x4a   : > { %832 = vmatpush.msrb.mxu1 %v805_v30 }
  0x4b   : > { %852 = vmatpush.msrb.mxu2 %v805_v30  ;;  %v875_v30 = vld [vmem:[%s1576_s3] sm:$0x1] }
  0x4c   : > { %1254 = vmatpush.bf16.msrb.mxu3 %v1239_v63  ;;  %755 = vmatmul.bf16.vlgmr.msrb.gmra.mxu0 %v1013_v4 }
  0x4d   : > { %833 = vmatpush.msrb.mxu1 %v804_v31  ;;  %853 = vmatpush.msrb.mxu2 %v804_v31 }
  0x4f   : > { %760 = vmatmul.bf16.vlgmr.msrb.gmra.mxu3 %v1033_v5  ;;  %834 = vmatpush.msrb.mxu1 %v803_v33 }
  0x50   : > { %854 = vmatpush.msrb.mxu2 %v803_v33  ;;  %v877_v33 = vld [vmem:[%s1577_s4] sm:$0x1] }
  0xa9   : > { %v680_v6 = vpop.f32.mrf.mxu0 }
  0xaa   : > { %v699_v11 = vpop.f32.mrf.mxu1 }
  0xab   : > { %v700_v36 = vadd.f32 %v699_v11, %v680_v6 }
  0xb1   : > { %v682_v13 = vpop.f32.mrf.mxu0  ;;  %v718_v15 = vpop.f32.mrf.mxu2 }
  0xb2   : > { %v737_v12 = vpop.f32.mrf.mxu3  ;;  %v701_v22 = vpop.f32.mrf.mxu1  ;;  %v719_v39 = vadd.f32 %v718_v15, %v700_v36 }
  0xb3   : > { %v702_v38 = vadd.f32 %v701_v22, %v682_v13 }
  0xb4   : > { %v738_v43 = vadd.f32 %v737_v12, %v719_v39 }
  0xb9   : > { %v685_v20 = vpop.f32.mrf.mxu0  ;;  %v720_v24 = vpop.f32.mrf.mxu2 }
  0xba   : > { %v739_v19 = vpop.f32.mrf.mxu3  ;;  %v704_v32 = vpop.f32.mrf.mxu1  ;;  %v721_v40 = vadd.f32 %v720_v24, %v702_v38 }
  0xbb   : > { %v705_v41 = vadd.f32 %v704_v32, %v685_v20 }
  0xbc   : > { %v740_v45 = vadd.f32 %v739_v19, %v721_v40 }
  0xc1   : > { %v687_v29 = vpop.f32.mrf.mxu0  ;;  %v723_v34 = vpop.f32.mrf.mxu2 }
  0xc2   : > { %v742_v28 = vpop.f32.mrf.mxu3  ;;  %v706_v42 = vpop.f32.mrf.mxu1  ;;  %v724_v44 = vadd.f32 %v723_v34, %v705_v41 }
  0xc3   : > { %v707_v48 = vadd.f32 %v706_v42, %v687_v29 }
  0xc4   : > { %v743_v52 = vadd.f32 %v742_v28, %v724_v44 }
  0xc9   : > { %v756_v37 = vpop.f32.mrf.mxu0  ;;  %v725_v46 = vpop.f32.mrf.mxu2 }
  0xca   : > { %v744_v35 = vpop.f32.mrf.mxu3  ;;  %v757_v49 = vadd.f32 %v756_v37, %v738_v43  ;;  %v726_v53 = vadd.f32 %v725_v46, %v707_v48 }
  0xcc   : > { %v790_v55 = vmul.f32 %v757_v49, %v757_v49  ;;  %v745_v58 = vadd.f32 %v744_v35, %v726_v53 }
  0xd1   : > { %v758_v50 = vpop.f32.mrf.mxu0 }
  0xd2   : > { %v761_v47 = vpop.f32.mrf.mxu3  ;;  %v759_v51 = vadd.f32 %v758_v50, %v740_v45 }
  0xd3   : > { %v762_v56 = vadd.f32 %v761_v47, %v743_v52 }
  0xd4   : > { %v791_v54 = vmul.f32 %v759_v51, %v759_v51  ;;  %v781_v57 = vadd.f32 %v759_v51, %v757_v49 }
  0xd5   : > { %v792_v61 = vmul.f32 %v762_v56, %v762_v56 }
  0xd6   : > { %v794_v59 = vadd.f32 %v791_v54, %v790_v55  ;;  %v782_v63 = vadd.f32 %v781_v57, %v762_v56 }
  0xd8   : > { %v795_v2 = vadd.f32 %v794_v59, %v792_v61 }
  0xda   : > { %v763_v60 = vpop.f32.mrf.mxu3 }
  0xdb   : > { %v764_v62 = vadd.f32 %v763_v60, %v745_v58 }
  0xdd   : > { %v783_v0 = vadd.f32 %v782_v63, %v764_v62  ;;  %v793_v1 = vmul.f32 %v764_v62, %v764_v62 }
  0xdf   : > { %v784_v3 = vrot.slane %v783_v0, 4  ;;  %v796_v4 = vadd.f32 %v795_v2, %v793_v1 }
  0xe1   : > { %v785_v5 = vadd.f32 %v784_v3, %v783_v0  ;;  %v797_v6 = vrot.slane %v796_v4, 4 }
  0xe3   : > { %v786_v7 = vrot.slane %v785_v5, 2  ;;  %v798_v8 = vadd.f32 %v797_v6, %v796_v4 }
  0xe5   : > { %v787_v9 = vadd.f32 %v786_v7, %v785_v5  ;;  %v799_v10 = vrot.slane %v798_v8, 2 }
  0xe7   : > { %v788_v11 = vrot.slane %v787_v9, 1  ;;  %v800_v12 = vadd.f32 %v799_v10, %v798_v8 }
  0xe9   : > { %v789_v13 = vadd.f32 %v788_v11, %v787_v9  ;;  %v801_v14 = vrot.slane %v800_v12, 1 }
  0xeb   : > { %835 = vmatmul.f32.vlgmr.msrb.gmra.mxu1 %v789_v13  ;;  %v802_v15 = vadd.f32 %v801_v14, %v800_v12 }
  0xed   : > { %855 = vmatmul.f32.vlgmr.msrb.gmra.mxu2 %v802_v15 }
 0x168   : > { %v836_v16 = vpop.f32.mrf.mxu1 }
 0x169   : > { %v859_v17 = vmul.f32 0.0033333334, %v836_v16 }
 0x16b   : > { %v861_v19 = vmul.f32 %v859_v17, %v859_v17 }
 0x170   : > { %v856_v18 = vpop.f32.mrf.mxu2 }
 0x171   : > { %v860_v20 = vmul.f32 0.0033333334, %v856_v18 }
 0x173   : > { %v862_v21 = vsub.f32 %v860_v20, %v861_v19 }
 0x175   : > { %v863_v22 = vmax.f32 %v862_v21, 0.0 }
 0x177   : > { %v864_v23 = vadd.f32 1e-05, %v863_v22 }
 0x179   : > { %1280 = vrsqrt.f32 %v864_v23  ;;  %vm871_vm1 = vweird.f32 %v864_v23 }
 0x17f   : > { %v1281_v24 = vpop.eup %1280 }
 0x180   : > { %v866_v25 = vmul.f32 %v1281_v24, %v864_v23  ;;  %vm872_vm0 = vweird.f32 %v1281_v24 }
 0x181   : > { %vm873_vm2 = vmor %vm871_vm1, %vm872_vm0 }
 0x182   : > { %v867_v26 = vmul.f32 %v1281_v24, %v866_v25 }
 0x184   : > { %v868_v27 = vmul.f32 0.5, %v867_v26 }
 0x186   : > { %v869_v28 = vsub.f32 1.5, %v868_v27 }
 0x188   : > { %v870_v29 = vmul.f32 %v1281_v24, %v869_v28 }
 0x18a   : > { %v874_v31 = vsel %vm873_vm2, %v1281_v24, %v870_v29 }
 0x18b   : > { %v876_v32 = vmul.f32 %v875_v30, %v874_v31 }
 0x18d   : > { %v878_v34 = vmul.f32 %v876_v32, %v859_v17  ;;  %v880_v35 = vperm.slane %v876_v32, 0 }
 0x18f   : > { %v879_v36 = vsub.f32 %v877_v33, %v878_v34  ;;  %v881_v37 = vmul.f32 %v880_v35, %v757_v49  ;;  %v882_v38 = vmul.f32 %v880_v35, %v759_v51  ;;  %v883_v39 = vmul.f32 %v880_v35, %v762_v56 }
 0x190   : > { %v884_v40 = vmul.f32 %v880_v35, %v764_v62 }
 0x191   : > { %v886_v41 = vperm.slane %v879_v36, 0 }
 0x193   : > { %v888_v42 = vadd.f32 %v886_v41, %v881_v37  ;;  %v889_v43 = vadd.f32 %v886_v41, %v882_v38  ;;  %v890_v44 = vadd.f32 %v886_v41, %v883_v39  ;;  %v891_v45 = vadd.f32 %v886_v41, %v884_v40 }
 0x195   : > { %v892_v46 = vmax.f32 %v888_v42, 0.0  ;;  %v893_v47 = vmax.f32 %v889_v43, 0.0  ;;  %v894_v48 = vmax.f32 %v890_v44, 0.0  ;;  %v895_v50 = vmax.f32 %v891_v45, 0.0 }
 0x197   : > { %896 = vst [vmem:[%s274_s16] sm:$0xff] %v892_v46 }
 0x198   : > { %897 = vst [vmem:[%s274_s16 + $0x8] sm:$0xff] %v893_v47 }
 0x199   : > { %898 = vst [vmem:[%s274_s16 + $0x10] sm:$0xff] %v894_v48 }
 0x19a   : > { %899 = vst [vmem:[%s274_s16 + $0x18] sm:$0xff] %v895_v50 }
 0x19b PF: > { %s15_s20 = sadd.s32 1, %s1304_s20   ;;  %s1579_s18 = smov %s1300_s19 }
 0x19c   : > { %p12_p5 = scmp.ge.s32.totalorder %s15_s20, 4   ;;  %s1580_s19 = smov %s1582_s21 }
 0x19e   :  { %14 = sbr.rel (!%p12_p5) target bundleno = 2 (0x2), region = 81 }

// kernel: inception_v4_stem.16
= control target key start
LH: loop header
LB: loop body
LE: loop exit
PB: predicated region body
PF: predicated region fallthrough
CT: control target
= control target key end

     0   :  { %s1310_s18 = smov 0   ;;  %s1312_s19 = smov 0   ;;  %s1565_s0 = inlined_call_operand.vmem [shape: bf16[2,56,512], index: 0, kind: input, shape index: {}]   ;;  %s1566_s1 = inlined_call_operand.vmem [shape: bf16[512,128], index: 1, kind: input, shape index: {}]   ;;  %s1567_s2 = inlined_call_operand.vmem [shape: f32[128,128], index: 2, kind: input, shape index: {}]   ;;  %s1568_s3 = inlined_call_operand.vmem [shape: f32[1,128], index: 3, kind: input, shape index: {}]   ;;  %s1569_s4 = inlined_call_operand.vmem [shape: f32[1,128], index: 4, kind: input, shape index: {}]   ;;  %s1570_s5 = inlined_call_operand.vmem [shape: f32[2,56,128], index: 5, kind: output, shape index: {}]  }
   0x1   :  { %s1314_s20 = smov 0  }
   0x2 LB: > { %s27_s21 = sadd.s32 1, %s1274_s19  ;;  %p1003_p0 = scmp.ge.s32.totalorder %s1278_s20, 1  ;;  %s1278_s20 = sphi %s1314_s20, %s15_s20   ;;  %s1274_s19 = sphi %s1312_s19, %s1572_s19   ;;  %s1270_s18 = sphi %s1310_s18, %s1571_s18  }
   0x3   : > { %p29_p1 = scmp.ge.s32.totalorder %s27_s21, 2  ;;  %p217_p2 = scmp.lt.s32.totalorder %s1278_s20, 3 }
   0x5   : > { %s1574_s21 = smov (%p29_p1, %s27_s21), 0  ;;  %p218_p3 = pnand %p1003_p0, %p217_p2 }
   0x6   : > { %p255_p4 = scmp.lt.s32.totalorder (!%p218_p3), %s1270_s18, 1 }
   0x7   : > { %221 = sbr.rel (%p218_p3) target bundleno = 417 (0x1a1), region = 40 }
   0xc   : > { %v1203_v0 = vld [vmem:[%s1566_s1 + $0x38] sm:$0xff]  ;;  %v1202_v4 = vld [vmem:[%s1566_s1 + $0x30] sm:$0xff]  ;;  %v1201_v8 = vld [vmem:[%s1566_s1 + $0x28] sm:$0xff]  ;;  %s1576_s18 = smov (!%p255_p4, %s1270_s18), 1 }
   0xd   : > { %v1211_v1 = vld [vmem:[%s1566_s1 + $0x78] sm:$0xff]  ;;  %637 = vmatpush.bf16.msra.mxu0 %v1203_v0  ;;  %v1210_v5 = vld [vmem:[%s1566_s1 + $0x70] sm:$0xff]  ;;  %v1209_v9 = vld [vmem:[%s1566_s1 + $0x68] sm:$0xff]  ;;  %s1228_s24 = smul.u32 112, %s1576_s18 }
   0xe   : > { %v1219_v2 = vld [vmem:[%s1566_s1 + $0xb8] sm:$0xff]  ;;  %665 = vmatpush.bf16.msra.mxu1 %v1211_v1  ;;  %v1218_v6 = vld [vmem:[%s1566_s1 + $0xb0] sm:$0xff]  ;;  %v1217_v10 = vld [vmem:[%s1566_s1 + $0xa8] sm:$0xff]  ;;  %s1229_s17 = smul.u32 56, %s1576_s18 }
   0xf   : > { %v1227_v3 = vld [vmem:[%s1566_s1 + $0xf8] sm:$0xff]  ;;  %693 = vmatpush.bf16.msra.mxu2 %v1219_v2  ;;  %v1226_v7 = vld [vmem:[%s1566_s1 + $0xf0] sm:$0xff]  ;;  %v1225_v11 = vld [vmem:[%s1566_s1 + $0xe8] sm:$0xff]  ;;  %s1416_s10 = scalar_lea.vmem %s1565_s0, %s1228_s24 }
  0x10   : > { %721 = vmatpush.bf16.msra.mxu3 %v1227_v3  ;;  %v1200_v12 = vld [vmem:[%s1566_s1 + $0x20] sm:$0xff]  ;;  %v1199_v16 = vld [vmem:[%s1566_s1 + $0x18] sm:$0xff]  ;;  %v1198_v20 = vld [vmem:[%s1566_s1 + $0x10] sm:$0xff]  ;;  %s274_s23 = scalar_lea.vmem %s1570_s5, %s1229_s17 }
  0x11   : > { %638 = vmatpush.bf16.msra.mxu0 %v1202_v4  ;;  %v1208_v13 = vld [vmem:[%s1566_s1 + $0x60] sm:$0xff]  ;;  %v1207_v17 = vld [vmem:[%s1566_s1 + $0x58] sm:$0xff]  ;;  %v1206_v21 = vld [vmem:[%s1566_s1 + $0x50] sm:$0xff] }
  0x12   : > { %666 = vmatpush.bf16.msra.mxu1 %v1210_v5  ;;  %v1216_v14 = vld [vmem:[%s1566_s1 + $0xa0] sm:$0xff]  ;;  %v1215_v18 = vld [vmem:[%s1566_s1 + $0x98] sm:$0xff]  ;;  %v1214_v22 = vld [vmem:[%s1566_s1 + $0x90] sm:$0xff] }
  0x13   : > { %694 = vmatpush.bf16.msra.mxu2 %v1218_v6  ;;  %v1224_v15 = vld [vmem:[%s1566_s1 + $0xe0] sm:$0xff]  ;;  %v1223_v19 = vld [vmem:[%s1566_s1 + $0xd8] sm:$0xff]  ;;  %v1222_v23 = vld [vmem:[%s1566_s1 + $0xd0] sm:$0xff] }
  0x14   : > { %722 = vmatpush.bf16.msra.mxu3 %v1226_v7  ;;  %v1197_v24 = vld [vmem:[%s1566_s1 + $0x8] sm:$0xff]  ;;  %v1196_v28 = vld [vmem:[%s1566_s1] sm:$0xff]  ;;  %v1186_v33 = vld [vmem:[%s1416_s10 + $0xc] sm:$0xf0] }
  0x15   : > { %639 = vmatpush.bf16.msra.mxu0 %v1201_v8  ;;  %v1205_v25 = vld [vmem:[%s1566_s1 + $0x48] sm:$0xff]  ;;  %v1204_v29 = vld [vmem:[%s1566_s1 + $0x40] sm:$0xff]  ;;  %v1010_v35 = vld [vmem:[%s1416_s10 + $0x10] sm:$0xf0] }
  0x16   : > { %667 = vmatpush.bf16.msra.mxu1 %v1209_v9  ;;  %v1213_v26 = vld [vmem:[%s1566_s1 + $0x88] sm:$0xff]  ;;  %v1212_v30 = vld [vmem:[%s1566_s1 + $0x80] sm:$0xff]  ;;  %v1187_v37 = vld [vmem:[%s1416_s10 + $0x14] sm:$0xf0] }
  0x17   : > { %695 = vmatpush.bf16.msra.mxu2 %v1217_v10  ;;  %v1221_v27 = vld [vmem:[%s1566_s1 + $0xc8] sm:$0xff]  ;;  %v1220_v31 = vld [vmem:[%s1566_s1 + $0xc0] sm:$0xff]  ;;  %v1018_v39 = vld [vmem:[%s1416_s10 + $0x18] sm:$0xf0] }
  0x18   : > { %723 = vmatpush.bf16.msra.mxu3 %v1225_v11  ;;  %v1008_v32 = vld [vmem:[%s1416_s10] sm:$0xf]  ;;  %v1184_v34 = vld [vmem:[%s1416_s10 + $0x4] sm:$0xf]  ;;  %v1016_v36 = vld [vmem:[%s1416_s10 + $0x8] sm:$0xf] }
  0x19   : > { %640 = vmatpush.bf16.msra.mxu0 %v1200_v12  ;;  %v1185_v38 = vld [vmem:[%s1416_s10 + $0xc] sm:$0xf]  ;;  %v1009_v40 = vor.u32 %v1186_v33, %v1008_v32  ;;  %v1013_v41 = vor.u32 %v1184_v34, %v1010_v35  ;;  %v1017_v42 = vor.u32 %v1187_v37, %v1016_v36  ;;  %v1024_v44 = vld [vmem:[%s1416_s10 + $0x20] sm:$0xf]  ;;  %v1190_v45 = vld [vmem:[%s1416_s10 + $0x2c] sm:$0xf0] }
  0x1a   : > { %668 = vmatpush.bf16.msra.mxu1 %v1208_v13  ;;  %v1021_v43 = vor.u32 %v1185_v38, %v1018_v39  ;;  %v1188_v46 = vld [vmem:[%s1416_s10 + $0x24] sm:$0xf]  ;;  %v1026_v47 = vld [vmem:[%s1416_s10 + $0x30] sm:$0xf0]  ;;  %v1032_v48 = vld [vmem:[%s1416_s10 + $0x28] sm:$0xf]  ;;  %v1025_v52 = vor.u32 %v1190_v45, %v1024_v44 }
  0x1b   : > { %696 = vmatpush.bf16.msra.mxu2 %v1216_v14  ;;  %v1191_v49 = vld [vmem:[%s1416_s10 + $0x34] sm:$0xf0]  ;;  %v1189_v50 = vld [vmem:[%s1416_s10 + $0x2c] sm:$0xf]  ;;  %v1034_v51 = vld [vmem:[%s1416_s10 + $0x38] sm:$0xf0]  ;;  %v1029_v53 = vor.u32 %v1188_v46, %v1026_v47 }
  0x1c   : > { %724 = vmatpush.bf16.msra.mxu3 %v1224_v15  ;;  %v1033_v54 = vor.u32 %v1191_v49, %v1032_v48  ;;  %v1037_v55 = vor.u32 %v1189_v50, %v1034_v51  ;;  %v1040_v56 = vld [vmem:[%s1416_s10 + $0x40] sm:$0xf]  ;;  %v1194_v57 = vld [vmem:[%s1416_s10 + $0x4c] sm:$0xf0]  ;;  %v1192_v58 = vld [vmem:[%s1416_s10 + $0x44] sm:$0xf] }
  0x1d   : > { %641 = vmatpush.bf16.msra.mxu0 %v1199_v16  ;;  %v1042_v59 = vld [vmem:[%s1416_s10 + $0x50] sm:$0xf0]  ;;  %v1048_v60 = vld [vmem:[%s1416_s10 + $0x48] sm:$0xf]  ;;  %v1195_v61 = vld [vmem:[%s1416_s10 + $0x54] sm:$0xf0]  ;;  %v1041_v0 = vor.u32 %v1194_v57, %v1040_v56 }
  0x1e   : > { %669 = vmatpush.bf16.msra.mxu1 %v1207_v17  ;;  %v1193_v62 = vld [vmem:[%s1416_s10 + $0x4c] sm:$0xf]  ;;  %v1050_v63 = vld [vmem:[%s1416_s10 + $0x58] sm:$0xf0]  ;;  %v1045_v1 = vor.u32 %v1192_v58, %v1042_v59  ;;  %v1049_v2 = vor.u32 %v1195_v61, %v1048_v60  ;;  %v305_v4 = vld [vmem:[%s1416_s10 + $0x60] sm:$0xff] }
  0x1f   : > { %697 = vmatpush.bf16.msra.mxu2 %v1215_v18  ;;  %v1053_v3 = vor.u32 %v1193_v62, %v1050_v63  ;;  %v306_v5 = vld [vmem:[%s1416_s10 + $0x68] sm:$0xff]  ;;  %v409_v6 = vunpack.c.l.b16 %v305_v4  ;;  %v410_v7 = vunpack.c.h.b16 %v305_v4  ;;  %v819_v14 = vld [vmem:[%s1567_s2 + $0x78] sm:$0xff]  ;;  %v818_v15 = vld [vmem:[%s1567_s2 + $0x70] sm:$0xff] }
  0x20   : > { %725 = vmatpush.bf16.msra.mxu3 %v1223_v19  ;;  %v411_v8 = vunpack.c.l.b16 %v306_v5  ;;  %v412_v9 = vunpack.c.h.b16 %v306_v5  ;;  %v817_v16 = vld [vmem:[%s1567_s2 + $0x68] sm:$0xff]  ;;  %v816_v17 = vld [vmem:[%s1567_s2 + $0x60] sm:$0xff]  ;;  %v815_v18 = vld [vmem:[%s1567_s2 + $0x58] sm:$0xff] }
  0x21   : > { %642 = vmatpush.bf16.msra.mxu0 %v1198_v20  ;;  %v425_v10 = vpack.c.b16 %v409_v6, %v409_v6  ;;  %v426_v11 = vpack.c.b16 %v410_v7, %v410_v7  ;;  %v814_v19 = vld [vmem:[%s1567_s2 + $0x50] sm:$0xff]  ;;  %v809_v34 = vld [vmem:[%s1567_s2 + $0x28] sm:$0xff]  ;;  %v808_v35 = vld [vmem:[%s1567_s2 + $0x20] sm:$0xff] }
  0x22   : > { %670 = vmatpush.bf16.msra.mxu1 %v1206_v21  ;;  %v427_v12 = vpack.c.b16 %v411_v8, %v411_v8  ;;  %v428_v13 = vpack.c.b16 %v412_v9, %v412_v9  ;;  %v807_v44 = vld [vmem:[%s1567_s2 + $0x18] sm:$0xff]  ;;  %v806_v45 = vld [vmem:[%s1567_s2 + $0x10] sm:$0xff]  ;;  %v805_v46 = vld [vmem:[%s1567_s2 + $0x8] sm:$0xff] }
  0x23   : > { %698 = vmatpush.bf16.msra.mxu2 %v1214_v22  ;;  %v813_v22 = vld [vmem:[%s1567_s2 + $0x48] sm:$0xff]  ;;  %v804_v47 = vld [vmem:[%s1567_s2] sm:$0xff] }
  0x24   : > { %726 = vmatpush.bf16.msra.mxu3 %v1222_v23  ;;  %v812_v23 = vld [vmem:[%s1567_s2 + $0x40] sm:$0xff] }
  0x25   : > { %643 = vmatpush.bf16.msra.mxu0 %v1197_v24 }
  0x26   : > { %671 = vmatpush.bf16.msra.mxu1 %v1205_v25 }
  0x27   : > { %699 = vmatpush.bf16.msra.mxu2 %v1213_v26 }
  0x28   : > { %727 = vmatpush.bf16.msra.mxu3 %v1221_v27 }
  0x29   : > { %644 = vmatpush.bf16.msra.mxu0 %v1196_v28  ;;  %v811_v28 = vld [vmem:[%s1567_s2 + $0x38] sm:$0xff] }
  0x2a   : > { %672 = vmatpush.bf16.msra.mxu1 %v1204_v29  ;;  %v810_v29 = vld [vmem:[%s1567_s2 + $0x30] sm:$0xff] }
  0x2b   : > { %700 = vmatpush.bf16.msra.mxu2 %v1212_v30 }
  0x2c   : > { %728 = vmatpush.bf16.msra.mxu3 %v1220_v31  ;;  %645 = vmatmul.bf16.vlgmr.msra.gmra.mxu0 %v1009_v40 }
  0x2d   : > { %673 = vmatmul.bf16.vlgmr.msra.gmra.mxu1 %v1013_v41  ;;  %820 = vmatpush.msrb.mxu0 %v819_v14 }
  0x2e   : > { %701 = vmatmul.bf16.vlgmr.msra.gmra.mxu2 %v1017_v42  ;;  %840 = vmatpush.msrb.mxu1 %v819_v14 }
  0x2f   : > { %729 = vmatmul.bf16.vlgmr.msra.gmra.mxu3 %v1021_v43  ;;  %821 = vmatpush.msrb.mxu0 %v818_v15 }
  0x30   : > { %841 = vmatpush.msrb.mxu1 %v818_v15 }
  0x31   : > { %822 = vmatpush.msrb.mxu0 %v817_v16 }
  0x32   : > { %842 = vmatpush.msrb.mxu1 %v817_v16 }
  0x33   : > { %823 = vmatpush.msrb.mxu0 %v816_v17 }
  0x34   : > { %843 = vmatpush.msrb.mxu1 %v816_v17 }
  0x35   : > { %824 = vmatpush.msrb.mxu0 %v815_v18 }
  0x36   : > { %844 = vmatpush.msrb.mxu1 %v815_v18 }
  0x37   : > { %825 = vmatpush.msrb.mxu0 %v814_v19 }
  0x38   : > { %845 = vmatpush.msrb.mxu1 %v814_v19 }
  0x39   : > { %826 = vmatpush.msrb.mxu0 %v813_v22 }
  0x3a   : > { %846 = vmatpush.msrb.mxu1 %v813_v22 }
  0x3b   : > { %827 = vmatpush.msrb.mxu0 %v812_v23 }
  0x3c   : > { %650 = vmatmul.bf16.gmra.mxu0 %v1025_v52  ;;  %847 = vmatpush.msrb.mxu1 %v812_v23 }
  0x3d   : > { %678 = vmatmul.bf16.gmra.mxu1 %v1029_v53  ;;  %828 = vmatpush.msrb.mxu0 %v811_v28 }
  0x3e   : > { %706 = vmatmul.bf16.gmra.mxu2 %v1033_v54  ;;  %848 = vmatpush.msrb.mxu1 %v811_v28 }
  0x3f   : > { %734 = vmatmul.bf16.gmra.mxu3 %v1037_v55  ;;  %829 = vmatpush.msrb.mxu0 %v810_v29 }
  0x40   : > { %849 = vmatpush.msrb.mxu1 %v810_v29 }
  0x41   : > { %830 = vmatpush.msrb.mxu0 %v809_v34 }
  0x42   : > { %850 = vmatpush.msrb.mxu1 %v809_v34 }
  0x43   : > { %831 = vmatpush.msrb.mxu0 %v808_v35 }
  0x44   : > { %851 = vmatpush.msrb.mxu1 %v808_v35 }
  0x45   : > { %832 = vmatpush.msrb.mxu0 %v807_v44 }
  0x46   : > { %852 = vmatpush.msrb.mxu1 %v807_v44 }
  0x47   : > { %833 = vmatpush.msrb.mxu0 %v806_v45 }
  0x48   : > { %853 = vmatpush.msrb.mxu1 %v806_v45 }
  0x49   : > { %834 = vmatpush.msrb.mxu0 %v805_v46 }
  0x4a   : > { %854 = vmatpush.msrb.mxu1 %v805_v46 }
  0x4b   : > { %835 = vmatpush.msrb.mxu0 %v804_v47 }
  0x4c   : > { %655 = vmatmul.bf16.gmra.mxu0 %v1041_v0  ;;  %855 = vmatpush.msrb.mxu1 %v804_v47 }
  0x4d   : > { %683 = vmatmul.bf16.gmra.mxu1 %v1045_v1 }
  0x4e   : > { %711 = vmatmul.bf16.gmra.mxu2 %v1049_v2 }
  0x4f   : > { %739 = vmatmul.bf16.gmra.mxu3 %v1053_v3 }
  0x5c   : > { %660 = vmatmul.bf16.gmra.mxu0 %v425_v10 }
  0x5d   : > { %688 = vmatmul.bf16.gmra.mxu1 %v426_v11 }
  0x5e   : > { %716 = vmatmul.bf16.gmra.mxu2 %v427_v12 }
  0x5f   : > { %744 = vmatmul.bf16.gmra.mxu3 %v428_v13 }
  0xa9   : > { %v646_v20 = vpop.f32.mrf.mxu0 }
  0xaa   : > { %v674_v21 = vpop.f32.mrf.mxu1 }
  0xab   : > { %v675_v48 = vadd.f32 %v674_v21, %v646_v20 }
  0xb1   : > { %v702_v24 = vpop.f32.mrf.mxu2  ;;  %v648_v26 = vpop.f32.mrf.mxu0 }
  0xb2   : > { %v730_v25 = vpop.f32.mrf.mxu3  ;;  %v676_v27 = vpop.f32.mrf.mxu1  ;;  %v703_v56 = vadd.f32 %v702_v24, %v675_v48 }
  0xb3   : > { %v677_v49 = vadd.f32 %v676_v27, %v648_v26 }
  0xb4   : > { %v1512_v62 = vadd.f32 %v730_v25, %v703_v56 }
  0xb6   : > { %v785_v9 = vmul.f32 %v1512_v62, %v1512_v62 }
  0xb9   : > { %v704_v30 = vpop.f32.mrf.mxu2  ;;  %v651_v32 = vpop.f32.mrf.mxu0 }
  0xba   : > { %v732_v31 = vpop.f32.mrf.mxu3  ;;  %v679_v33 = vpop.f32.mrf.mxu1  ;;  %v705_v51 = vadd.f32 %v704_v30, %v677_v49 }
  0xbb   : > { %v680_v50 = vadd.f32 %v679_v33, %v651_v32 }
  0xbc   : > { %v1510_v60 = vadd.f32 %v732_v31, %v705_v51 }
  0xbe   : > { %v786_v2 = vmul.f32 %v1510_v60, %v1510_v60  ;;  %v773_v10 = vadd.f32 %v1510_v60, %v1512_v62 }
  0xc0   : > { %v792_v13 = vadd.f32 %v786_v2, %v785_v9 }
  0xc1   : > { %v707_v36 = vpop.f32.mrf.mxu2  ;;  %v653_v38 = vpop.f32.mrf.mxu0 }
  0xc2   : > { %v735_v37 = vpop.f32.mrf.mxu3  ;;  %v681_v39 = vpop.f32.mrf.mxu1  ;;  %v708_v57 = vadd.f32 %v707_v36, %v680_v50 }
  0xc3   : > { %v682_v58 = vadd.f32 %v681_v39, %v653_v38 }
  0xc4   : > { %v1514_v63 = vadd.f32 %v735_v37, %v708_v57 }
  0xc6   : > { %v787_v11 = vmul.f32 %v1514_v63, %v1514_v63  ;;  %v774_v14 = vadd.f32 %v773_v10, %v1514_v63 }
  0xc8   : > { %v793_v18 = vadd.f32 %v792_v13, %v787_v11 }
  0xc9   : > { %v709_v40 = vpop.f32.mrf.mxu2  ;;  %v656_v42 = vpop.f32.mrf.mxu0 }
  0xca   : > { %v737_v41 = vpop.f32.mrf.mxu3  ;;  %v684_v43 = vpop.f32.mrf.mxu1  ;;  %v710_v61 = vadd.f32 %v709_v40, %v682_v58 }
  0xcb   : > { %v685_v59 = vadd.f32 %v684_v43, %v656_v42 }
  0xcc   : > { %v1518_v5 = vadd.f32 %v737_v41, %v710_v61 }
  0xce   : > { %v788_v15 = vmul.f32 %v1518_v5, %v1518_v5  ;;  %v775_v19 = vadd.f32 %v774_v14, %v1518_v5 }
  0xd0   : > { %v794_v23 = vadd.f32 %v793_v18, %v788_v15 }
  0xd1   : > { %v712_v52 = vpop.f32.mrf.mxu2  ;;  %v658_v54 = vpop.f32.mrf.mxu0 }
  0xd2   : > { %v740_v53 = vpop.f32.mrf.mxu3  ;;  %v686_v55 = vpop.f32.mrf.mxu1  ;;  %v713_v0 = vadd.f32 %v712_v52, %v685_v59 }
  0xd3   : > { %v687_v1 = vadd.f32 %v686_v55, %v658_v54 }
  0xd4   : > { %v1526_v12 = vadd.f32 %v740_v53, %v713_v0 }
  0xd6   : > { %v789_v20 = vmul.f32 %v1526_v12, %v1526_v12  ;;  %v776_v24 = vadd.f32 %v775_v19, %v1526_v12 }
  0xd8   : > { %v795_v29 = vadd.f32 %v794_v23, %v789_v20 }
  0xd9   : > { %v714_v3 = vpop.f32.mrf.mxu2  ;;  %v661_v7 = vpop.f32.mrf.mxu0 }
  0xda   : > { %v742_v4 = vpop.f32.mrf.mxu3  ;;  %v715_v6 = vadd.f32 %v714_v3, %v687_v1  ;;  %v689_v8 = vpop.f32.mrf.mxu1  ;;  %v876_v3 = vld [vmem:[%s1568_s3] sm:$0x1] }
  0xdb   : > { %v690_v17 = vadd.f32 %v689_v8, %v661_v7  ;;  %v878_v7 = vld [vmem:[%s1569_s4] sm:$0x1] }
  0xdc   : > { %v1531_v16 = vadd.f32 %v742_v4, %v715_v6 }
  0xde   : > { %v790_v25 = vmul.f32 %v1531_v16, %v1531_v16  ;;  %v777_v30 = vadd.f32 %v776_v24, %v1531_v16 }
  0xe0   : > { %v796_v32 = vadd.f32 %v795_v29, %v790_v25 }
  0xe1   : > { %v717_v21 = vpop.f32.mrf.mxu2  ;;  %v663_v27 = vpop.f32.mrf.mxu0 }
  0xe2   : > { %v745_v22 = vpop.f32.mrf.mxu3  ;;  %v718_v26 = vadd.f32 %v717_v21, %v690_v17  ;;  %v691_v28 = vpop.f32.mrf.mxu1 }
  0xe4   : > { %v746_v31 = vadd.f32 %v745_v22, %v718_v26 }
  0xe6   : > { %v778_v33 = vadd.f32 %v777_v30, %v746_v31  ;;  %v791_v34 = vmul.f32 %v746_v31, %v746_v31 }
  0xe8   : > { %v779_v35 = vrot.slane %v778_v33, 4  ;;  %v797_v36 = vadd.f32 %v796_v32, %v791_v34 }
  0xe9   : > { %v719_v37 = vpop.f32.mrf.mxu2 }
  0xea   : > { %v747_v38 = vpop.f32.mrf.mxu3  ;;  %v780_v39 = vadd.f32 %v779_v35, %v778_v33  ;;  %v798_v40 = vrot.slane %v797_v36, 4 }
  0xec   : > { %v781_v41 = vrot.slane %v780_v39, 2  ;;  %v799_v42 = vadd.f32 %v798_v40, %v797_v36 }
  0xee   : > { %v782_v43 = vadd.f32 %v781_v41, %v780_v39  ;;  %v800_v44 = vrot.slane %v799_v42, 2 }
  0xf0   : > { %v783_v45 = vrot.slane %v782_v43, 1  ;;  %v801_v46 = vadd.f32 %v800_v44, %v799_v42 }
  0xf2   : > { %v784_v47 = vadd.f32 %v783_v45, %v782_v43  ;;  %v802_v48 = vrot.slane %v801_v46, 1 }
  0xf4   : > { %836 = vmatmul.f32.vlgmr.msrb.gmra.mxu0 %v784_v47  ;;  %v803_v49 = vadd.f32 %v802_v48, %v801_v46 }
  0xf6   : > { %856 = vmatmul.f32.vlgmr.msrb.gmra.mxu1 %v803_v49 }
 0x171   : > { %v837_v50 = vpop.f32.mrf.mxu0 }
 0x172   : > { %v860_v51 = vmul.f32 0.0025510204, %v837_v50 }
 0x173   : > { %v857_v52 = vpop.f32.mrf.mxu1 }
 0x174   : > { %v862_v53 = vmul.f32 %v860_v51, %v860_v51  ;;  %v861_v54 = vmul.f32 0.0025510204, %v857_v52 }
 0x176   : > { %v863_v55 = vsub.f32 %v861_v54, %v862_v53 }
 0x178   : > { %v864_v56 = vmax.f32 %v863_v55, 0.0 }
 0x17a   : > { %v865_v57 = vadd.f32 1e-05, %v864_v56 }
 0x17c   : > { %1254 = vrsqrt.f32 %v865_v57  ;;  %vm872_vm1 = vweird.f32 %v865_v57 }
 0x182   : > { %v1255_v58 = vpop.eup %1254 }
 0x183   : > { %v867_v59 = vmul.f32 %v1255_v58, %v865_v57  ;;  %vm873_vm0 = vweird.f32 %v1255_v58 }
 0x184   : > { %vm874_vm2 = vmor %vm872_vm1, %vm873_vm0 }
 0x185   : > { %v868_v61 = vmul.f32 %v1255_v58, %v867_v59 }
 0x187   : > { %v869_v0 = vmul.f32 0.5, %v868_v61 }
 0x189   : > { %v870_v1 = vsub.f32 1.5, %v869_v0 }
 0x18b   : > { %v871_v2 = vmul.f32 %v1255_v58, %v870_v1 }
 0x18d   : > { %v875_v4 = vsel %vm874_vm2, %v1255_v58, %v871_v2 }
 0x18e   : > { %v877_v6 = vmul.f32 %v876_v3, %v875_v4 }
 0x190   : > { %v879_v8 = vmul.f32 %v877_v6, %v860_v51  ;;  %v881_v9 = vperm.slane %v877_v6, 0 }
 0x192   : > { %v880_v10 = vsub.f32 %v878_v7, %v879_v8  ;;  %v882_v11 = vmul.f32 %v881_v9, %v1512_v62  ;;  %v883_v13 = vmul.f32 %v881_v9, %v1510_v60  ;;  %v884_v14 = vmul.f32 %v881_v9, %v1514_v63 }
 0x193   : > { %v885_v15 = vmul.f32 %v881_v9, %v1518_v5  ;;  %v886_v18 = vmul.f32 %v881_v9, %v1526_v12  ;;  %v887_v19 = vmul.f32 %v881_v9, %v1531_v16  ;;  %v888_v20 = vmul.f32 %v881_v9, %v746_v31 }
 0x194   : > { %v890_v17 = vperm.slane %v880_v10, 0 }
 0x196   : > { %v892_v21 = vadd.f32 %v890_v17, %v882_v11  ;;  %v893_v22 = vadd.f32 %v890_v17, %v883_v13  ;;  %v894_v23 = vadd.f32 %v890_v17, %v884_v14  ;;  %v895_v24 = vadd.f32 %v890_v17, %v885_v15 }
 0x197   : > { %v896_v62 = vadd.f32 %v890_v17, %v886_v18  ;;  %v897_v60 = vadd.f32 %v890_v17, %v887_v19  ;;  %v898_v25 = vadd.f32 %v890_v17, %v888_v20 }
 0x198   : > { %v899_v63 = vmax.f32 %v892_v21, 0.0  ;;  %v900_v26 = vmax.f32 %v893_v22, 0.0  ;;  %v901_v5 = vmax.f32 %v894_v23, 0.0  ;;  %v902_v27 = vmax.f32 %v895_v24, 0.0 }
 0x199   : > { %v903_v28 = vmax.f32 %v896_v62, 0.0  ;;  %v904_v12 = vmax.f32 %v897_v60, 0.0  ;;  %v905_v16 = vmax.f32 %v898_v25, 0.0 }
 0x19a   : > { %906 = vst [vmem:[%s274_s23] sm:$0xff] %v899_v63 }
 0x19b   : > { %907 = vst [vmem:[%s274_s23 + $0x8] sm:$0xff] %v900_v26 }
 0x19c   : > { %908 = vst [vmem:[%s274_s23 + $0x10] sm:$0xff] %v901_v5 }
 0x19d   : > { %909 = vst [vmem:[%s274_s23 + $0x18] sm:$0xff] %v902_v27 }
 0x19e   : > { %910 = vst [vmem:[%s274_s23 + $0x20] sm:$0xff] %v903_v28 }
 0x19f   : > { %911 = vst [vmem:[%s274_s23 + $0x28] sm:$0xff] %v904_v12 }
 0x1a0   : > { %912 = vst [vmem:[%s274_s23 + $0x30] sm:$0xff] %v905_v16 }
 0x1a1 PF: > { %s15_s20 = sadd.s32 1, %s1278_s20   ;;  %s1571_s18 = smov %s1274_s19 }
 0x1a2   : > { %p12_p5 = scmp.ge.s32.totalorder %s15_s20, 4   ;;  %s1572_s19 = smov %s1574_s21 }
 0x1a4   :  { %14 = sbr.rel (!%p12_p5) target bundleno = 2 (0x2), region = 81 }

// kernel: inception_v4_stem.19
= control target key start
LH: loop header
LB: loop body
LE: loop exit
PB: predicated region body
PF: predicated region fallthrough
CT: control target
= control target key end

     0   :  { %s2271_s18 = smov 0   ;;  %s2273_s19 = smov 0   ;;  %s3063_s0 = inlined_call_operand.vmem [shape: bf16[2,8,1792], index: 0, kind: input, shape index: {}]   ;;  %s3064_s1 = inlined_call_operand.vmem [shape: bf16[1792,256], index: 1, kind: input, shape index: {}]   ;;  %s3065_s2 = inlined_call_operand.vmem [shape: f32[256,256], index: 2, kind: input, shape index: {}]   ;;  %s3066_s3 = inlined_call_operand.vmem [shape: f32[1,256], index: 3, kind: input, shape index: {}]   ;;  %s3067_s4 = inlined_call_operand.vmem [shape: f32[1,256], index: 4, kind: input, shape index: {}]   ;;  %s3068_s5 = inlined_call_operand.vmem [shape: f32[2,8,256], index: 5, kind: output, shape index: {}]  }
   0x1   :  { %s2275_s20 = smov 0   ;;  %s2277_s21 = smov 0  }
   0x2   :  { %s2279_s22 = smov 0  }
   0x3 LB: > { %s24_s23 = sadd.s32 1, %s2230_s20  ;;  %s27_s24 = sadd.s32 1, %s2234_s21  ;;  %s2238_s22 = sphi %s2279_s22, %s15_s22   ;;  %s2234_s21 = sphi %s2277_s21, %s3084_s21   ;;  %s2230_s20 = sphi %s2275_s20, %s3083_s20   ;;  %s2226_s19 = sphi %s2273_s19, %s3082_s19   ;;  %s2222_s18 = sphi %s2271_s18, %s3081_s18  }
   0x4   : > { %p25_p0 = scmp.ge.s32.totalorder %s24_s23, 2  ;;  %p1582_p1 = scmp.ge.s32.totalorder %s2238_s22, 1 }
   0x5   : > { %p218_p2 = scmp.lt.s32.totalorder %s2238_s22, 5 }
   0x6   : > { %s3086_s23 = smov (%p25_p0, %s24_s23), 0  ;;  %s3088_s24 = smov (!%p25_p0, %s27_s24), %s2234_s21 }
   0x7   : > { %p219_p3 = pnand %p1582_p1, %p218_p2  ;;  %p29_p4 = scmp.ge.s32.totalorder %s3088_s24, 2 }
   0x8   : > { %s256_s25 = smul.u32 (!%p219_p3), 7, %s2222_s18  ;;  %p257_p5 = scmp.lt.s32.totalorder (!%p219_p3), %s2226_s19, 1 }
   0x9   : > { %s3090_s24 = smov (%p29_p4, %s3088_s24), 0  ;;  %222 = sbr.rel (%p219_p3) target bundleno = 537 (0x219), region = 40 }
   0xa   : > { %s266_s26 = smul.u32 (!%p219_p3), 112, %s2222_s18  ;;  %p259_p6 = scmp.lt.s32.totalorder (!%p219_p3), %s256_s25, 13 }
   0xb   : > { %p1588_p8 = scmp.ne.s32.totalorder (!%p219_p3), %s2222_s18, 0 }
   0xc   : > { %p267_p7 = scmp.lt.s32.totalorder (!%p219_p3), %s266_s26, 223 }
   0xe   : > { %s3092_s19 = smov (!%p257_p5, %s2226_s19), 1  ;;  %s3094_s25 = smov (!%p259_p6, %s256_s25), 13 }
   0xf   : > { %s2154_s27 = smul.u32 14, %s3092_s19  ;;  %s2041_s28 = sshll.u32 %s3092_s19, 4 }
  0x10   : > { %s3096_s26 = smov (!%p267_p7, %s266_s26), 223  ;;  %s2308_s7 = scalar_lea.vmem %s3068_s5, %s2041_s28 }
  0x11   : > { %s262_s29 = sadd.s32 %s2154_s27, %s3094_s25  ;;  %s2040_s9 = sshll.u32 %s3096_s26, 3 }
  0x12   : > { %s1583_s8 = sshll.u32 %s262_s29, 2  ;;  %s2318_s15 = scalar_lea.vmem %s3064_s1, %s2040_s9 }
  0x13   : > { %s2313_s12 = scalar_lea.vmem %s3063_s0, %s1583_s8  ;;  %281 = sbr.rel (%p1588_p8) target bundleno = 27 (0x1b), region = 44 }
  0x18   : > { %v2240_v0 = vmov 0.0  }
  0x19   : > { %282 = vst [vmem:[#allocation2] sm:$0xff] %v2240_v0 }
  0x1a   : > { %283 = vst [vmem:[#allocation2 + $0x8] sm:$0xff] %v2240_v0 }
  0x1b PF: > { %v1647_v1 = vld [vmem:[%s2318_s15 + $0x70] sm:$0xf]  ;;  %v2057_v2 = vld [vmem:[%s2318_s15 + $0x74] sm:$0xf0]  ;;  %v1639_v10 = vld [vmem:[%s2318_s15 + $0x60] sm:$0xf] }
  0x1c   : > { %v1711_v3 = vld [vmem:[%s2318_s15 + $0xf0] sm:$0xf]  ;;  %v1648_v4 = vor.u32 %v2057_v2, %v1647_v1  ;;  %v2073_v5 = vld [vmem:[%s2318_s15 + $0xf4] sm:$0xf0]  ;;  %v2055_v11 = vld [vmem:[%s2318_s15 + $0x64] sm:$0xf0] }
  0x1d   : > { %v1775_v6 = vld [vmem:[%s2318_s15 + $0x170] sm:$0xf]  ;;  %v2089_v7 = vld [vmem:[%s2318_s15 + $0x174] sm:$0xf0]  ;;  %v1712_v8 = vor.u32 %v2073_v5, %v1711_v3  ;;  %v1703_v12 = vld [vmem:[%s2318_s15 + $0xe0] sm:$0xf]  ;;  %v1640_v13 = vor.u32 %v2055_v11, %v1639_v10 }
  0x1e   : > { %v1776_v9 = vor.u32 %v2089_v7, %v1775_v6  ;;  %987 = vmatpush.bf16.msra.mxu0 %v1648_v4  ;;  %v2071_v14 = vld [vmem:[%s2318_s15 + $0xe4] sm:$0xf0]  ;;  %v1767_v15 = vld [vmem:[%s2318_s15 + $0x160] sm:$0xf]  ;;  %v1631_v19 = vld [vmem:[%s2318_s15 + $0x50] sm:$0xf] }
  0x1f   : > { %v2087_v16 = vld [vmem:[%s2318_s15 + $0x164] sm:$0xf0]  ;;  %1000 = vmatpush.bf16.msra.mxu1 %v1712_v8  ;;  %v1704_v17 = vor.u32 %v2071_v14, %v1703_v12  ;;  %v2053_v20 = vld [vmem:[%s2318_s15 + $0x54] sm:$0xf0]  ;;  %v1695_v21 = vld [vmem:[%s2318_s15 + $0xd0] sm:$0xf] }
  0x20   : > { %1013 = vmatpush.bf16.msra.mxu2 %v1776_v9  ;;  %v1768_v18 = vor.u32 %v2087_v16, %v1767_v15  ;;  %v2069_v22 = vld [vmem:[%s2318_s15 + $0xd4] sm:$0xf0]  ;;  %v1759_v23 = vld [vmem:[%s2318_s15 + $0x150] sm:$0xf]  ;;  %v1632_v27 = vor.u32 %v2053_v20, %v1631_v19  ;;  %v1623_v29 = vld [vmem:[%s2318_s15 + $0x40] sm:$0xf] }
  0x21   : > { %v2085_v24 = vld [vmem:[%s2318_s15 + $0x154] sm:$0xf0]  ;;  %v1839_v25 = vld [vmem:[%s2318_s15 + $0x1f0] sm:$0xf]  ;;  %v2051_v30 = vld [vmem:[%s2318_s15 + $0x44] sm:$0xf0]  ;;  %v1696_v31 = vor.u32 %v2069_v22, %v1695_v21 }
  0x22   : > { %v2105_v26 = vld [vmem:[%s2318_s15 + $0x1f4] sm:$0xf0]  ;;  %988 = vmatpush.bf16.msra.mxu0 %v1640_v13  ;;  %v1760_v32 = vor.u32 %v2085_v24, %v1759_v23  ;;  %v1687_v33 = vld [vmem:[%s2318_s15 + $0xc0] sm:$0xf]  ;;  %v2067_v34 = vld [vmem:[%s2318_s15 + $0xc4] sm:$0xf0]  ;;  %v1624_v40 = vor.u32 %v2051_v30, %v1623_v29 }
  0x23   : > { %v1840_v28 = vor.u32 %v2105_v26, %v1839_v25  ;;  %1001 = vmatpush.bf16.msra.mxu1 %v1704_v17  ;;  %v1831_v35 = vld [vmem:[%s2318_s15 + $0x1e0] sm:$0xf]  ;;  %v2083_v37 = vld [vmem:[%s2318_s15 + $0x144] sm:$0xf0]  ;;  %v1823_v41 = vld [vmem:[%s2318_s15 + $0x1d0] sm:$0xf]  ;;  %v1688_v43 = vor.u32 %v2067_v34, %v1687_v33 }
  0x24   : > { %1014 = vmatpush.bf16.msra.mxu2 %v1768_v18  ;;  %v1751_v36 = vld [vmem:[%s2318_s15 + $0x140] sm:$0xf]  ;;  %v2103_v38 = vld [vmem:[%s2318_s15 + $0x1e4] sm:$0xf0]  ;;  %v2101_v42 = vld [vmem:[%s2318_s15 + $0x1d4] sm:$0xf0] }
  0x25   : > { %1026 = vmatpush.bf16.msra.mxu3 %v1840_v28  ;;  %v1832_v39 = vor.u32 %v2103_v38, %v1831_v35  ;;  %v1752_v44 = vor.u32 %v2083_v37, %v1751_v36  ;;  %v1615_v45 = vld [vmem:[%s2318_s15 + $0x30] sm:$0xf]  ;;  %v2049_v46 = vld [vmem:[%s2318_s15 + $0x34] sm:$0xf0]  ;;  %v1824_v51 = vor.u32 %v2101_v42, %v1823_v41  ;;  %v1815_v52 = vld [vmem:[%s2318_s15 + $0x1c0] sm:$0xf] }
  0x26   : > { %989 = vmatpush.bf16.msra.mxu0 %v1632_v27  ;;  %v1679_v47 = vld [vmem:[%s2318_s15 + $0xb0] sm:$0xf]  ;;  %v2065_v48 = vld [vmem:[%s2318_s15 + $0xb4] sm:$0xf0]  ;;  %v2099_v53 = vld [vmem:[%s2318_s15 + $0x1c4] sm:$0xf0]  ;;  %v1616_v54 = vor.u32 %v2049_v46, %v1615_v45 }
  0x27   : > { %1002 = vmatpush.bf16.msra.mxu1 %v1696_v31  ;;  %v1743_v49 = vld [vmem:[%s2318_s15 + $0x130] sm:$0xf]  ;;  %v2081_v50 = vld [vmem:[%s2318_s15 + $0x134] sm:$0xf0]  ;;  %v1680_v55 = vor.u32 %v2065_v48, %v1679_v47  ;;  %v1607_v57 = vld [vmem:[%s2318_s15 + $0x20] sm:$0xf]  ;;  %v1816_v63 = vor.u32 %v2099_v53, %v1815_v52 }
  0x28   : > { %1015 = vmatpush.bf16.msra.mxu2 %v1760_v32  ;;  %v1744_v56 = vor.u32 %v2081_v50, %v1743_v49  ;;  %v2047_v58 = vld [vmem:[%s2318_s15 + $0x24] sm:$0xf0]  ;;  %v1671_v59 = vld [vmem:[%s2318_s15 + $0xa0] sm:$0xf]  ;;  %v1807_v0 = vld [vmem:[%s2318_s15 + $0x1b0] sm:$0xf] }
  0x29   : > { %1027 = vmatpush.bf16.msra.mxu3 %v1832_v39  ;;  %v2063_v60 = vld [vmem:[%s2318_s15 + $0xa4] sm:$0xf0]  ;;  %v1735_v61 = vld [vmem:[%s2318_s15 + $0x120] sm:$0xf]  ;;  %v2097_v1 = vld [vmem:[%s2318_s15 + $0x1b4] sm:$0xf0]  ;;  %v1608_v2 = vor.u32 %v2047_v58, %v1607_v57 }
  0x2a   : > { %990 = vmatpush.bf16.msra.mxu0 %v1624_v40  ;;  %v2079_v62 = vld [vmem:[%s2318_s15 + $0x124] sm:$0xf0]  ;;  %v1672_v3 = vor.u32 %v2063_v60, %v1671_v59  ;;  %v1599_v5 = vld [vmem:[%s2318_s15 + $0x10] sm:$0xf]  ;;  %v2045_v6 = vld [vmem:[%s2318_s15 + $0x14] sm:$0xf0]  ;;  %v1808_v11 = vor.u32 %v2097_v1, %v1807_v0 }
  0x2b   : > { %1003 = vmatpush.bf16.msra.mxu1 %v1688_v43  ;;  %v1736_v4 = vor.u32 %v2079_v62, %v1735_v61  ;;  %v1663_v7 = vld [vmem:[%s2318_s15 + $0x90] sm:$0xf]  ;;  %v2061_v8 = vld [vmem:[%s2318_s15 + $0x94] sm:$0xf0]  ;;  %v1799_v12 = vld [vmem:[%s2318_s15 + $0x1a0] sm:$0xf]  ;;  %v1600_v14 = vor.u32 %v2045_v6, %v1599_v5 }
  0x2c   : > { %1016 = vmatpush.bf16.msra.mxu2 %v1752_v44  ;;  %v1727_v9 = vld [vmem:[%s2318_s15 + $0x110] sm:$0xf]  ;;  %v2077_v10 = vld [vmem:[%s2318_s15 + $0x114] sm:$0xf0]  ;;  %v2095_v13 = vld [vmem:[%s2318_s15 + $0x1a4] sm:$0xf0]  ;;  %v1664_v17 = vor.u32 %v2061_v8, %v1663_v7 }
  0x2d   : > { %1028 = vmatpush.bf16.msra.mxu3 %v1824_v51  ;;  %v1591_v15 = vld [vmem:[%s2318_s15] sm:$0xf]  ;;  %v2043_v16 = vld [vmem:[%s2318_s15 + $0x4] sm:$0xf0]  ;;  %v1728_v18 = vor.u32 %v2077_v10, %v1727_v9  ;;  %v1903_v21 = vld [vmem:[%s2318_s15 + $0x270] sm:$0xf]  ;;  %v1800_v25 = vor.u32 %v2095_v13, %v1799_v12 }
  0x2e   : > { %991 = vmatpush.bf16.msra.mxu0 %v1616_v54  ;;  %v1655_v19 = vld [vmem:[%s2318_s15 + $0x80] sm:$0xf]  ;;  %v2059_v20 = vld [vmem:[%s2318_s15 + $0x84] sm:$0xf0]  ;;  %v2121_v22 = vld [vmem:[%s2318_s15 + $0x274] sm:$0xf0]  ;;  %v1592_v29 = vor.u32 %v2043_v16, %v1591_v15 }
  0x2f   : > { %1004 = vmatpush.bf16.msra.mxu1 %v1680_v55  ;;  %v1967_v23 = vld [vmem:[%s2318_s15 + $0x2f0] sm:$0xf]  ;;  %v2137_v24 = vld [vmem:[%s2318_s15 + $0x2f4] sm:$0xf0]  ;;  %v1719_v26 = vld [vmem:[%s2318_s15 + $0x100] sm:$0xf]  ;;  %v1656_v33 = vor.u32 %v2059_v20, %v1655_v19  ;;  %v1904_v34 = vor.u32 %v2121_v22, %v1903_v21 }
  0x30   : > { %1017 = vmatpush.bf16.msra.mxu2 %v1744_v56  ;;  %v2075_v27 = vld [vmem:[%s2318_s15 + $0x104] sm:$0xf0]  ;;  %v2031_v28 = vld [vmem:[%s2318_s15 + $0x370] sm:$0xf]  ;;  %v2153_v30 = vld [vmem:[%s2318_s15 + $0x374] sm:$0xf0]  ;;  %v1968_v35 = vor.u32 %v2137_v24, %v1967_v23 }
  0x31   : > { %1029 = vmatpush.bf16.msra.mxu3 %v1816_v63  ;;  %v1791_v31 = vld [vmem:[%s2318_s15 + $0x190] sm:$0xf]  ;;  %v2093_v32 = vld [vmem:[%s2318_s15 + $0x194] sm:$0xf0]  ;;  %v1720_v36 = vor.u32 %v2075_v27, %v1719_v26  ;;  %v1895_v37 = vld [vmem:[%s2318_s15 + $0x260] sm:$0xf]  ;;  %v2032_v39 = vor.u32 %v2153_v30, %v2031_v28 }
  0x32   : > { %992 = vmatpush.bf16.msra.mxu0 %v1608_v2  ;;  %v2119_v38 = vld [vmem:[%s2318_s15 + $0x264] sm:$0xf0]  ;;  %v1959_v40 = vld [vmem:[%s2318_s15 + $0x2e0] sm:$0xf]  ;;  %v1792_v42 = vor.u32 %v2093_v32, %v1791_v31  ;;  %v2056_v48 = vld [vmem:[%s2318_s15 + $0x74] sm:$0xf] }
  0x33   : > { %1005 = vmatpush.bf16.msra.mxu1 %v1672_v3  ;;  %v2135_v41 = vld [vmem:[%s2318_s15 + $0x2e4] sm:$0xf0]  ;;  %v2023_v43 = vld [vmem:[%s2318_s15 + $0x360] sm:$0xf]  ;;  %v1896_v47 = vor.u32 %v2119_v38, %v1895_v37  ;;  %v1649_v49 = vld [vmem:[%s2318_s15 + $0x78] sm:$0xf0] }
  0x34   : > { %1018 = vmatpush.bf16.msra.mxu2 %v1736_v4  ;;  %v2151_v44 = vld [vmem:[%s2318_s15 + $0x364] sm:$0xf0]  ;;  %v1783_v45 = vld [vmem:[%s2318_s15 + $0x180] sm:$0xf]  ;;  %v1960_v51 = vor.u32 %v2135_v41, %v1959_v40  ;;  %v1887_v52 = vld [vmem:[%s2318_s15 + $0x250] sm:$0xf]  ;;  %v1652_v1 = vor.u32 %v2056_v48, %v1649_v49 }
  0x35   : > { %1030 = vmatpush.bf16.msra.mxu3 %v1808_v11  ;;  %v2091_v46 = vld [vmem:[%s2318_s15 + $0x184] sm:$0xf0]  ;;  %v2117_v53 = vld [vmem:[%s2318_s15 + $0x254] sm:$0xf0]  ;;  %v286_v55 = vld [vmem:[%s2313_s12] sm:$0xff]  ;;  %v2024_v57 = vor.u32 %v2151_v44, %v2023_v43  ;;  %p2037_p9 = scmp.ne.s32.totalorder %s2222_s18, 1 }
  0x36   : > { %993 = vmatpush.bf16.msra.mxu0 %v1600_v14  ;;  %v287_v50 = vld [vmem:[%s2313_s12 + $0x8] sm:$0xff]  ;;  %v1951_v58 = vld [vmem:[%s2318_s15 + $0x2d0] sm:$0xf]  ;;  %v2133_v59 = vld [vmem:[%s2318_s15 + $0x2d4] sm:$0xf0]  ;;  %v1784_v60 = vor.u32 %v2091_v46, %v1783_v45  ;;  %v406_v61 = vunpack.c.l.b16 %v286_v55  ;;  %v407_v62 = vunpack.c.h.b16 %v286_v55  ;;  %v1888_v3 = vor.u32 %v2117_v53, %v1887_v52 }
  0x37   : > { %1006 = vmatpush.bf16.msra.mxu1 %v1664_v17  ;;  %v408_v54 = vunpack.c.l.b16 %v287_v50  ;;  %v409_v56 = vunpack.c.h.b16 %v287_v50  ;;  %v2015_v63 = vld [vmem:[%s2318_s15 + $0x350] sm:$0xf]  ;;  %v2149_v0 = vld [vmem:[%s2318_s15 + $0x354] sm:$0xf0]  ;;  %v2054_v4 = vld [vmem:[%s2318_s15 + $0x64] sm:$0xf]  ;;  %v1952_v8 = vor.u32 %v2133_v59, %v1951_v58 }
  0x38   : > { %1019 = vmatpush.bf16.msra.mxu2 %v1728_v18  ;;  %v1641_v5 = vld [vmem:[%s2318_s15 + $0x68] sm:$0xf0]  ;;  %v2411_v6 = vpack.c.b16 %v406_v61, %v406_v61  ;;  %v2413_v7 = vpack.c.b16 %v407_v62, %v407_v62  ;;  %v1879_v9 = vld [vmem:[%s2318_s15 + $0x240] sm:$0xf]  ;;  %v2115_v10 = vld [vmem:[%s2318_s15 + $0x244] sm:$0xf0]  ;;  %v2016_v12 = vor.u32 %v2149_v0, %v2015_v63 }
  0x39   : > { %1031 = vmatpush.bf16.msra.mxu3 %v1800_v25  ;;  %v2407_v2 = vpack.c.b16 %v408_v54, %v408_v54  ;;  %v2418_v11 = vpack.c.b16 %v409_v56, %v409_v56  ;;  %v1943_v13 = vld [vmem:[%s2318_s15 + $0x2c0] sm:$0xf]  ;;  %v2131_v14 = vld [vmem:[%s2318_s15 + $0x2c4] sm:$0xf0]  ;;  %v1644_v17 = vor.u32 %v2054_v4, %v1641_v5  ;;  %v1880_v18 = vor.u32 %v2115_v10, %v1879_v9  ;;  %v2052_v19 = vld [vmem:[%s2318_s15 + $0x54] sm:$0xf] }
  0x3a   : > { %994 = vmatpush.bf16.msra.mxu0 %v1592_v29  ;;  %v2007_v15 = vld [vmem:[%s2318_s15 + $0x340] sm:$0xf]  ;;  %v2147_v16 = vld [vmem:[%s2318_s15 + $0x344] sm:$0xf0]  ;;  %v1633_v20 = vld [vmem:[%s2318_s15 + $0x58] sm:$0xf0]  ;;  %v1944_v21 = vor.u32 %v2131_v14, %v1943_v13 }
  0x3b   : > { %1007 = vmatpush.bf16.msra.mxu1 %v1656_v33  ;;  %v1871_v22 = vld [vmem:[%s2318_s15 + $0x230] sm:$0xf]  ;;  %v2113_v23 = vld [vmem:[%s2318_s15 + $0x234] sm:$0xf0]  ;;  %v2008_v24 = vor.u32 %v2147_v16, %v2007_v15  ;;  %v1636_v29 = vor.u32 %v2052_v19, %v1633_v20  ;;  %v2050_v31 = vld [vmem:[%s2318_s15 + $0x44] sm:$0xf] }
  0x3c   : > { %1020 = vmatpush.bf16.msra.mxu2 %v1720_v36  ;;  %v1935_v25 = vld [vmem:[%s2318_s15 + $0x2b0] sm:$0xf]  ;;  %v2129_v26 = vld [vmem:[%s2318_s15 + $0x2b4] sm:$0xf0]  ;;  %v1872_v30 = vor.u32 %v2113_v23, %v1871_v22  ;;  %v1625_v32 = vld [vmem:[%s2318_s15 + $0x48] sm:$0xf0] }
  0x3d   : > { %1032 = vmatpush.bf16.msra.mxu3 %v1792_v42  ;;  %995 = vmatmul.bf16.vlgmr.msra.gmra.mxu0 %v2411_v6  ;;  %v1999_v27 = vld [vmem:[%s2318_s15 + $0x330] sm:$0xf]  ;;  %v2145_v28 = vld [vmem:[%s2318_s15 + $0x334] sm:$0xf0]  ;;  %v1936_v33 = vor.u32 %v2129_v26, %v1935_v25  ;;  %v1927_v37 = vld [vmem:[%s2318_s15 + $0x2a0] sm:$0xf]  ;;  %v1628_v41 = vor.u32 %v2050_v31, %v1625_v32 }
  0x3e   : > { %1039 = vmatpush.bf16.msrb.mxu0 %v1904_v34  ;;  %1008 = vmatmul.bf16.vlgmr.msra.gmra.mxu1 %v2413_v7  ;;  %v1863_v34 = vld [vmem:[%s2318_s15 + $0x220] sm:$0xf]  ;;  %v2000_v36 = vor.u32 %v2145_v28, %v1999_v27  ;;  %v2127_v38 = vld [vmem:[%s2318_s15 + $0x2a4] sm:$0xf0]  ;;  %v2048_v43 = vld [vmem:[%s2318_s15 + $0x34] sm:$0xf] }
  0x3f   : > { %1052 = vmatpush.bf16.msrb.mxu1 %v1968_v35  ;;  %1021 = vmatmul.bf16.vlgmr.msra.gmra.mxu2 %v2407_v2  ;;  %v2111_v35 = vld [vmem:[%s2318_s15 + $0x224] sm:$0xf0]  ;;  %v1617_v44 = vld [vmem:[%s2318_s15 + $0x38] sm:$0xf0]  ;;  %v1928_v45 = vor.u32 %v2127_v38, %v1927_v37  ;;  %v1855_v46 = vld [vmem:[%s2318_s15 + $0x210] sm:$0xf] }
  0x40   : > { %1065 = vmatpush.bf16.msrb.mxu2 %v2032_v39  ;;  %v1991_v39 = vld [vmem:[%s2318_s15 + $0x320] sm:$0xf]  ;;  %v2143_v40 = vld [vmem:[%s2318_s15 + $0x324] sm:$0xf0]  ;;  %v1864_v42 = vor.u32 %v2111_v35, %v1863_v34  ;;  %v1919_v49 = vld [vmem:[%s2318_s15 + $0x290] sm:$0xf]  ;;  %v1620_v53 = vor.u32 %v2048_v43, %v1617_v44 }
  0x41   : > { %1033 = vmatpush.bf16.msra.mxu3 %v1784_v60  ;;  %v1992_v48 = vor.u32 %v2143_v40, %v1991_v39  ;;  %v2125_v50 = vld [vmem:[%s2318_s15 + $0x294] sm:$0xf0]  ;;  %v1847_v54 = vld [vmem:[%s2318_s15 + $0x200] sm:$0xf]  ;;  %v2107_v55 = vld [vmem:[%s2318_s15 + $0x204] sm:$0xf0] }
  0x42   : > { %1040 = vmatpush.bf16.msrb.mxu0 %v1896_v47  ;;  %v2109_v47 = vld [vmem:[%s2318_s15 + $0x214] sm:$0xf0]  ;;  %v1609_v58 = vld [vmem:[%s2318_s15 + $0x28] sm:$0xf0]  ;;  %v288_v59 = vld [vmem:[%s2313_s12 + $0x10] sm:$0xff]  ;;  %v1920_v60 = vor.u32 %v2125_v50, %v1919_v49  ;;  %v1848_v13 = vor.u32 %v2107_v55, %v1847_v54 }
  0x43   : > { %1053 = vmatpush.bf16.msrb.mxu1 %v1960_v51  ;;  %v1983_v51 = vld [vmem:[%s2318_s15 + $0x310] sm:$0xf]  ;;  %v2141_v52 = vld [vmem:[%s2318_s15 + $0x314] sm:$0xf0]  ;;  %v1856_v56 = vor.u32 %v2109_v47, %v1855_v46  ;;  %v1911_v61 = vld [vmem:[%s2318_s15 + $0x280] sm:$0xf]  ;;  %v411_v16 = vunpack.c.h.b16 %v288_v59 }
  0x44   : > { %1066 = vmatpush.bf16.msrb.mxu2 %v2024_v57  ;;  %1034 = vmatmul.bf16.vlgmr.msra.gmra.mxu3 %v2418_v11  ;;  %v2046_v57 = vld [vmem:[%s2318_s15 + $0x24] sm:$0xf]  ;;  %v2123_v62 = vld [vmem:[%s2318_s15 + $0x284] sm:$0xf0]  ;;  %v2072_v63 = vld [vmem:[%s2318_s15 + $0xf4] sm:$0xf]  ;;  %v1984_v0 = vor.u32 %v2141_v52, %v1983_v51 }
  0x45   : > { %1078 = vmatpush.bf16.msrb.mxu3 %v1652_v1  ;;  %v1713_v1 = vld [vmem:[%s2318_s15 + $0xf8] sm:$0xf0]  ;;  %v289_v4 = vld [vmem:[%s2313_s12 + $0x18] sm:$0xf]  ;;  %v2139_v9 = vld [vmem:[%s2318_s15 + $0x304] sm:$0xf0]  ;;  %v1612_v10 = vor.u32 %v2046_v57, %v1609_v58 }
  0x46   : > { %1041 = vmatpush.bf16.msrb.mxu0 %v1888_v3  ;;  %v2088_v3 = vld [vmem:[%s2318_s15 + $0x174] sm:$0xf]  ;;  %v1777_v5 = vld [vmem:[%s2318_s15 + $0x178] sm:$0xf0]  ;;  %v412_v19 = vunpack.c.l.b16 %v289_v4  ;;  %v1705_v25 = vld [vmem:[%s2318_s15 + $0xe8] sm:$0xf0] }
  0x47   : > { %1054 = vmatpush.bf16.msrb.mxu1 %v1952_v8  ;;  %v1975_v8 = vld [vmem:[%s2318_s15 + $0x300] sm:$0xf]  ;;  %v2044_v14 = vld [vmem:[%s2318_s15 + $0x14] sm:$0xf]  ;;  %v1601_v15 = vld [vmem:[%s2318_s15 + $0x18] sm:$0xf0]  ;;  %v1780_v22 = vor.u32 %v2088_v3, %v1777_v5 }
  0x48   : > { %1067 = vmatpush.bf16.msrb.mxu2 %v2016_v12  ;;  %v410_v12 = vunpack.c.l.b16 %v288_v59  ;;  %v2104_v20 = vld [vmem:[%s2318_s15 + $0x1f4] sm:$0xf]  ;;  %v1976_v23 = vor.u32 %v2139_v9, %v1975_v8  ;;  %v2086_v26 = vld [vmem:[%s2318_s15 + $0x164] sm:$0xf]  ;;  %v1769_v27 = vld [vmem:[%s2318_s15 + $0x168] sm:$0xf0]  ;;  %v2480_v35 = vpack.c.b16 %v412_v19, %v412_v19 }
  0x49   : > { %1079 = vmatpush.bf16.msrb.mxu3 %v1644_v17  ;;  %v1912_v17 = vor.u32 %v2123_v62, %v1911_v61  ;;  %v2042_v32 = vld [vmem:[%s2318_s15 + $0x4] sm:$0xf]  ;;  %v2120_v34 = vld [vmem:[%s2318_s15 + $0x274] sm:$0xf]  ;;  %v1905_v37 = vld [vmem:[%s2318_s15 + $0x278] sm:$0xf0]  ;;  %v1772_v40 = vor.u32 %v2086_v26, %v1769_v27 }
  0x4a   : > { %1042 = vmatpush.bf16.msrb.mxu0 %v1880_v18  ;;  %v1716_v18 = vor.u32 %v2072_v63, %v1713_v1  ;;  %v2473_v28 = vpack.c.b16 %v410_v12, %v410_v12  ;;  %v2102_v38 = vld [vmem:[%s2318_s15 + $0x1e4] sm:$0xf]  ;;  %v1833_v39 = vld [vmem:[%s2318_s15 + $0x1e8] sm:$0xf0]  ;;  %v2084_v43 = vld [vmem:[%s2318_s15 + $0x154] sm:$0xf]  ;;  %v1908_v46 = vor.u32 %v2120_v34, %v1905_v37 }
  0x4b   : > { %1055 = vmatpush.bf16.msrb.mxu1 %v1944_v21  ;;  %v1841_v21 = vld [vmem:[%s2318_s15 + $0x1f8] sm:$0xf0]  ;;  %v1836_v47 = vor.u32 %v2102_v38, %v1833_v39  ;;  %v1897_v50 = vld [vmem:[%s2318_s15 + $0x268] sm:$0xf0]  ;;  %v2100_v51 = vld [vmem:[%s2318_s15 + $0x1d4] sm:$0xf] }
  0x4c   : > { %1068 = vmatpush.bf16.msrb.mxu2 %v2008_v24  ;;  %v2070_v24 = vld [vmem:[%s2318_s15 + $0xe4] sm:$0xf]  ;;  %v1844_v31 = vor.u32 %v2104_v20, %v1841_v21  ;;  %v1761_v44 = vld [vmem:[%s2318_s15 + $0x158] sm:$0xf0]  ;;  %v1689_v55 = vld [vmem:[%s2318_s15 + $0xc8] sm:$0xf0] }
  0x4d   : > { %1080 = vmatpush.bf16.msrb.mxu3 %v1636_v29  ;;  %v1604_v29 = vor.u32 %v2044_v14, %v1601_v15  ;;  %v1825_v52 = vld [vmem:[%s2318_s15 + $0x1d8] sm:$0xf0]  ;;  %v2066_v54 = vld [vmem:[%s2318_s15 + $0xc4] sm:$0xf]  ;;  %v1753_v57 = vld [vmem:[%s2318_s15 + $0x148] sm:$0xf0] }
  0x4e   : > { %1043 = vmatpush.bf16.msrb.mxu0 %v1872_v30  ;;  %v2475_v30 = vpack.c.b16 %v411_v16, %v411_v16  ;;  %v1828_v59 = vor.u32 %v2100_v51, %v1825_v52  ;;  %v1692_v61 = vor.u32 %v2066_v54, %v1689_v55  ;;  %v1889_v62 = vld [vmem:[%s2318_s15 + $0x258] sm:$0xf0]  ;;  %v2098_v63 = vld [vmem:[%s2318_s15 + $0x1c4] sm:$0xf]  ;;  %v2064_v3 = vld [vmem:[%s2318_s15 + $0xb4] sm:$0xf] }
  0x4f   : > { %1056 = vmatpush.bf16.msrb.mxu1 %v1936_v33  ;;  %v1593_v33 = vld [vmem:[%s2318_s15 + $0x8] sm:$0xf0]  ;;  %v1681_v4 = vld [vmem:[%s2318_s15 + $0xb8] sm:$0xf0]  ;;  %v2080_v5 = vld [vmem:[%s2318_s15 + $0x134] sm:$0xf] }
  0x50   : > { %1069 = vmatpush.bf16.msrb.mxu2 %v2000_v36  ;;  %v1708_v36 = vor.u32 %v2070_v24, %v1705_v25  ;;  %v1745_v8 = vld [vmem:[%s2318_s15 + $0x138] sm:$0xf0]  ;;  %v2114_v12 = vld [vmem:[%s2318_s15 + $0x244] sm:$0xf]  ;;  %v1881_v14 = vld [vmem:[%s2318_s15 + $0x248] sm:$0xf0] }
  0x51   : > { %1081 = vmatpush.bf16.msrb.mxu3 %v1628_v41  ;;  %v2068_v41 = vld [vmem:[%s2318_s15 + $0xd4] sm:$0xf]  ;;  %v1809_v16 = vld [vmem:[%s2318_s15 + $0x1b8] sm:$0xf0]  ;;  %v2078_v19 = vld [vmem:[%s2318_s15 + $0x124] sm:$0xf]  ;;  %v1884_v21 = vor.u32 %v2114_v12, %v1881_v14 }
  0x52   : > { %1044 = vmatpush.bf16.msrb.mxu0 %v1864_v42  ;;  %v1697_v42 = vld [vmem:[%s2318_s15 + $0xd8] sm:$0xf0]  ;;  %v2096_v15 = vld [vmem:[%s2318_s15 + $0x1b4] sm:$0xf]  ;;  %v1737_v20 = vld [vmem:[%s2318_s15 + $0x128] sm:$0xf0] }
  0x53   : > { %1057 = vmatpush.bf16.msrb.mxu1 %v1928_v45  ;;  %v1596_v45 = vor.u32 %v2042_v32, %v1593_v33  ;;  %v1700_v49 = vor.u32 %v2068_v41, %v1697_v42  ;;  %v1873_v25 = vld [vmem:[%s2318_s15 + $0x238] sm:$0xf0]  ;;  %v2094_v26 = vld [vmem:[%s2318_s15 + $0x1a4] sm:$0xf]  ;;  %v1801_v27 = vld [vmem:[%s2318_s15 + $0x1a8] sm:$0xf0] }
  0x54   : > { %1070 = vmatpush.bf16.msrb.mxu2 %v1992_v48  ;;  %v2118_v48 = vld [vmem:[%s2318_s15 + $0x264] sm:$0xf]  ;;  %v1665_v32 = vld [vmem:[%s2318_s15 + $0x98] sm:$0xf0]  ;;  %v2076_v33 = vld [vmem:[%s2318_s15 + $0x114] sm:$0xf]  ;;  %v1804_v37 = vor.u32 %v2094_v26, %v1801_v27 }
  0x55   : > { %1082 = vmatpush.bf16.msrb.mxu3 %v1620_v53  ;;  %v1764_v53 = vor.u32 %v2084_v43, %v1761_v44  ;;  %v1900_v58 = vor.u32 %v2118_v48, %v1897_v50  ;;  %v1729_v34 = vld [vmem:[%s2318_s15 + $0x118] sm:$0xf0]  ;;  %v2110_v38 = vld [vmem:[%s2318_s15 + $0x224] sm:$0xf]  ;;  %v2092_v41 = vld [vmem:[%s2318_s15 + $0x194] sm:$0xf] }
  0x56   : > { %1045 = vmatpush.bf16.msrb.mxu0 %v1856_v56  ;;  %v2082_v56 = vld [vmem:[%s2318_s15 + $0x144] sm:$0xf]  ;;  %v1793_v42 = vld [vmem:[%s2318_s15 + $0x198] sm:$0xf0]  ;;  %v1732_v43 = vor.u32 %v2076_v33, %v1729_v34  ;;  %v2136_v48 = vld [vmem:[%s2318_s15 + $0x2f4] sm:$0xf] }
  0x57   : > { %1058 = vmatpush.bf16.msrb.mxu1 %v1920_v60  ;;  %v2116_v60 = vld [vmem:[%s2318_s15 + $0x254] sm:$0xf]  ;;  %v1756_v1 = vor.u32 %v2082_v56, %v1753_v57  ;;  %v2058_v44 = vld [vmem:[%s2318_s15 + $0x84] sm:$0xf]  ;;  %v2033_v51 = vld [vmem:[%s2318_s15 + $0x378] sm:$0xf0] }
  0x58   : > { %1071 = vmatpush.bf16.msrb.mxu2 %v1984_v0  ;;  %v1817_v0 = vld [vmem:[%s2318_s15 + $0x1c8] sm:$0xf0]  ;;  %v1892_v9 = vor.u32 %v2116_v60, %v1889_v62  ;;  %v2152_v50 = vld [vmem:[%s2318_s15 + $0x374] sm:$0xf]  ;;  %v1857_v56 = vld [vmem:[%s2318_s15 + $0x218] sm:$0xf0] }
  0x59   : > { %1083 = vmatpush.bf16.msrb.mxu3 %v1612_v10  ;;  %v1820_v10 = vor.u32 %v2098_v63, %v1817_v0  ;;  %v2108_v55 = vld [vmem:[%s2318_s15 + $0x214] sm:$0xf]  ;;  %v1785_v60 = vld [vmem:[%s2318_s15 + $0x188] sm:$0xf0]  ;;  %v2134_v62 = vld [vmem:[%s2318_s15 + $0x2e4] sm:$0xf] }
  0x5a   : > { %1046 = vmatpush.bf16.msrb.mxu0 %v1848_v13  ;;  %v1684_v13 = vor.u32 %v2064_v3, %v1681_v4  ;;  %v1961_v63 = vld [vmem:[%s2318_s15 + $0x2e8] sm:$0xf0]  ;;  %v2150_v0 = vld [vmem:[%s2318_s15 + $0x364] sm:$0xf]  ;;  %v1860_v3 = vor.u32 %v2108_v55, %v1857_v56  ;;  %v2132_v12 = vld [vmem:[%s2318_s15 + $0x2d4] sm:$0xf] }
  0x5b   : > { %1059 = vmatpush.bf16.msrb.mxu1 %v1912_v17  ;;  %v2062_v17 = vld [vmem:[%s2318_s15 + $0xa4] sm:$0xf]  ;;  %v2148_v14 = vld [vmem:[%s2318_s15 + $0x354] sm:$0xf] }
  0x5c   : > { %1072 = vmatpush.bf16.msrb.mxu2 %v1976_v23  ;;  %v2112_v23 = vld [vmem:[%s2318_s15 + $0x234] sm:$0xf]  ;;  %v2126_v27 = vld [vmem:[%s2318_s15 + $0x2a4] sm:$0xf] }
  0x5d   : > { %1047 = vmatmul.bf16.vlgmr.msrb.gmra.mxu0 %v2473_v28  ;;  %1084 = vmatpush.bf16.msrb.mxu3 %v1604_v29  ;;  %v1740_v29 = vor.u32 %v2078_v19, %v1737_v20  ;;  %v1945_v19 = vld [vmem:[%s2318_s15 + $0x2c8] sm:$0xf0]  ;;  %v2124_v34 = vld [vmem:[%s2318_s15 + $0x294] sm:$0xf] }
  0x5e   : > { %1091 = vmatpush.bf16.msra.mxu0 %v1716_v18  ;;  %1060 = vmatmul.bf16.vlgmr.msrb.gmra.mxu1 %v2475_v30  ;;  %v1673_v18 = vld [vmem:[%s2318_s15 + $0xa8] sm:$0xf0] }
  0x5f   : > { %1104 = vmatpush.bf16.msra.mxu1 %v1780_v22  ;;  %1073 = vmatmul.bf16.vlgmr.msrb.gmra.mxu2 %v2480_v35  ;;  %v1812_v22 = vor.u32 %v2096_v15, %v1809_v16  ;;  %v1676_v24 = vor.u32 %v2062_v17, %v1673_v18  ;;  %v2017_v15 = vld [vmem:[%s2318_s15 + $0x358] sm:$0xf0]  ;;  %v2130_v18 = vld [vmem:[%s2318_s15 + $0x2c4] sm:$0xf]  ;;  %v2009_v20 = vld [vmem:[%s2318_s15 + $0x348] sm:$0xf0] }
  0x60   : > { %1117 = vmatpush.bf16.msra.mxu2 %v1844_v31  ;;  %v2060_v31 = vld [vmem:[%s2318_s15 + $0x94] sm:$0xf]  ;;  %v2020_v17 = vor.u32 %v2148_v14, %v2017_v15 }
  0x61   : > { %1085 = vmatpush.bf16.msrb.mxu3 %v1596_v45  ;;  %v1668_v39 = vor.u32 %v2060_v31, %v1665_v32  ;;  %v1657_v45 = vld [vmem:[%s2318_s15 + $0x88] sm:$0xf0]  ;;  %v2142_v31 = vld [vmem:[%s2318_s15 + $0x324] sm:$0xf] }
  0x62   : > { %1092 = vmatpush.bf16.msra.mxu0 %v1708_v36  ;;  %v1876_v36 = vor.u32 %v2112_v23, %v1873_v25  ;;  %v1660_v54 = vor.u32 %v2058_v44, %v1657_v45  ;;  %v1937_v23 = vld [vmem:[%s2318_s15 + $0x2b8] sm:$0xf0]  ;;  %v1993_v32 = vld [vmem:[%s2318_s15 + $0x328] sm:$0xf0] }
  0x63   : > { %1105 = vmatpush.bf16.msra.mxu1 %v1772_v40  ;;  %v1865_v40 = vld [vmem:[%s2318_s15 + $0x228] sm:$0xf0]  ;;  %v2001_v25 = vld [vmem:[%s2318_s15 + $0x338] sm:$0xf0]  ;;  %v1996_v33 = vor.u32 %v2142_v31, %v1993_v32 }
  0x64   : > { %1118 = vmatpush.bf16.msra.mxu2 %v1836_v47  ;;  %1086 = vmatmul.bf16.vlgmr.msrb.gmra.mxu3 %v2411_v6  ;;  %v1748_v6 = vor.u32 %v2080_v5, %v1745_v8  ;;  %v1721_v47 = vld [vmem:[%s2318_s15 + $0x108] sm:$0xf0]  ;;  %v1868_v52 = vor.u32 %v2110_v38, %v1865_v40  ;;  %v2106_v5 = vld [vmem:[%s2318_s15 + $0x204] sm:$0xf]  ;;  %v1985_v38 = vld [vmem:[%s2318_s15 + $0x318] sm:$0xf0] }
  0x65   : > { %1130 = vmatpush.bf16.msra.mxu3 %v1908_v46  ;;  %v2074_v46 = vld [vmem:[%s2318_s15 + $0x104] sm:$0xf]  ;;  %v1849_v8 = vld [vmem:[%s2318_s15 + $0x208] sm:$0xf0] }
  0x66   : > { %1093 = vmatpush.bf16.msra.mxu0 %v1700_v49  ;;  %v1969_v49 = vld [vmem:[%s2318_s15 + $0x2f8] sm:$0xf0]  ;;  %v1724_v57 = vor.u32 %v2074_v46, %v1721_v47  ;;  %v1852_v16 = vor.u32 %v2106_v5, %v1849_v8  ;;  %v1977_v44 = vld [vmem:[%s2318_s15 + $0x308] sm:$0xf0] }
  0x67   : > { %1106 = vmatpush.bf16.msra.mxu1 %v1764_v53  ;;  %v1796_v53 = vor.u32 %v2092_v41, %v1793_v42  ;;  %v2122_v41 = vld [vmem:[%s2318_s15 + $0x284] sm:$0xf]  ;;  %v1913_v42 = vld [vmem:[%s2318_s15 + $0x288] sm:$0xf0] }
  0x68   : > { %1119 = vmatpush.bf16.msra.mxu2 %v1828_v59  ;;  %v2090_v59 = vld [vmem:[%s2318_s15 + $0x184] sm:$0xf]  ;;  %v1916_v45 = vor.u32 %v2122_v41, %v1913_v42 }
  0x69   : > { %1131 = vmatpush.bf16.msra.mxu3 %v1900_v58  ;;  %v1972_v58 = vor.u32 %v2136_v48, %v1969_v49  ;;  %v1788_v4 = vor.u32 %v2090_v59, %v1785_v60 }
  0x6a   : > { %1094 = vmatpush.bf16.msra.mxu0 %v1692_v61  ;;  %v2036_v61 = vor.u32 %v2152_v50, %v2033_v51 }
  0x6b   : > { %1107 = vmatpush.bf16.msra.mxu1 %v1756_v1  ;;  %v2025_v1 = vld [vmem:[%s2318_s15 + $0x368] sm:$0xf0] }
  0x6c   : > { %1120 = vmatpush.bf16.msra.mxu2 %v1820_v10  ;;  %v2028_v10 = vor.u32 %v2150_v0, %v2025_v1 }
  0x6d   : > { %1132 = vmatpush.bf16.msra.mxu3 %v1892_v9  ;;  %v1964_v9 = vor.u32 %v2134_v62, %v1961_v63  ;;  %v284_v62 = vld [vmem:[#allocation2] sm:$0xff] }
  0x6e   : > { %1095 = vmatpush.bf16.msra.mxu0 %v1684_v13  ;;  %v1953_v13 = vld [vmem:[%s2318_s15 + $0x2d8] sm:$0xf0] }
  0x6f   : > { %1108 = vmatpush.bf16.msra.mxu1 %v1748_v6  ;;  %v1956_v6 = vor.u32 %v2132_v12, %v1953_v13 }
  0x70   : > { %1121 = vmatpush.bf16.msra.mxu2 %v1812_v22  ;;  %v2128_v22 = vld [vmem:[%s2318_s15 + $0x2b4] sm:$0xf] }
  0x71   : > { %1133 = vmatpush.bf16.msra.mxu3 %v1884_v21 }
  0x72   : > { %1096 = vmatpush.bf16.msra.mxu0 %v1676_v24  ;;  %v2144_v24 = vld [vmem:[%s2318_s15 + $0x334] sm:$0xf] }
  0x73   : > { %1109 = vmatpush.bf16.msra.mxu1 %v1740_v29  ;;  %v2004_v26 = vor.u32 %v2144_v24, %v2001_v25  ;;  %v1929_v29 = vld [vmem:[%s2318_s15 + $0x2a8] sm:$0xf0] }
  0x74   : > { %1122 = vmatpush.bf16.msra.mxu2 %v1804_v37  ;;  %v2140_v37 = vld [vmem:[%s2318_s15 + $0x314] sm:$0xf] }
  0x75   : > { %1134 = vmatpush.bf16.msra.mxu3 %v1876_v36  ;;  %v1921_v36 = vld [vmem:[%s2318_s15 + $0x298] sm:$0xf0]  ;;  %v1988_v40 = vor.u32 %v2140_v37, %v1985_v38 }
  0x76   : > { %1097 = vmatpush.bf16.msra.mxu0 %v1668_v39  ;;  %v1924_v39 = vor.u32 %v2124_v34, %v1921_v36 }
  0x77   : > { %1110 = vmatpush.bf16.msra.mxu1 %v1732_v43  ;;  %v2138_v43 = vld [vmem:[%s2318_s15 + $0x304] sm:$0xf] }
  0x78   : > { %1123 = vmatpush.bf16.msra.mxu2 %v1796_v53  ;;  %v1980_v46 = vor.u32 %v2138_v43, %v1977_v44 }
  0x79   : > { %1135 = vmatpush.bf16.msra.mxu3 %v1868_v52 }
  0x7a   : > { %1098 = vmatpush.bf16.msra.mxu0 %v1660_v54 }
  0x7b   : > { %1111 = vmatpush.bf16.msra.mxu1 %v1724_v57 }
  0x7c   : > { %1124 = vmatpush.bf16.msra.mxu2 %v1788_v4 }
  0x7d   : > { %1136 = vmatpush.bf16.msra.mxu3 %v1860_v3  ;;  %1099 = vmatmul.bf16.vlgmr.msra.gmra.mxu0 %v2413_v7  ;;  %v2146_v7 = vld [vmem:[%s2318_s15 + $0x344] sm:$0xf] }
  0x7e   : > { %1143 = vmatpush.bf16.msrb.mxu0 %v1972_v58  ;;  %1112 = vmatmul.bf16.vlgmr.msra.gmra.mxu1 %v2407_v2  ;;  %v1948_v2 = vor.u32 %v2130_v18, %v1945_v19  ;;  %v2012_v21 = vor.u32 %v2146_v7, %v2009_v20 }
  0x7f   : > { %1156 = vmatpush.bf16.msrb.mxu1 %v2036_v61  ;;  %1125 = vmatmul.bf16.vlgmr.msra.gmra.mxu2 %v2418_v11  ;;  %v1940_v11 = vor.u32 %v2128_v22, %v1937_v23 }
  0x81   : > { %1137 = vmatpush.bf16.msra.mxu3 %v1852_v16 }
  0x82   : > { %1144 = vmatpush.bf16.msrb.mxu0 %v1964_v9 }
  0x83   : > { %1157 = vmatpush.bf16.msrb.mxu1 %v2028_v10 }
  0x84   : > { %1138 = vmatmul.bf16.vlgmr.msra.gmra.mxu3 %v2473_v28  ;;  %v1932_v28 = vor.u32 %v2126_v27, %v1929_v29 }
  0x86   : > { %1145 = vmatpush.bf16.msrb.mxu0 %v1956_v6 }
  0x87   : > { %1158 = vmatpush.bf16.msrb.mxu1 %v2020_v17 }
  0x8a   : > { %1146 = vmatpush.bf16.msrb.mxu0 %v1948_v2 }
  0x8b   : > { %1159 = vmatpush.bf16.msrb.mxu1 %v2012_v21  ;;  %v285_v21 = vld [vmem:[#allocation2 + $0x8] sm:$0xff] }
  0x8e   : > { %1147 = vmatpush.bf16.msrb.mxu0 %v1940_v11 }
  0x8f   : > { %1160 = vmatpush.bf16.msrb.mxu1 %v2004_v26 }
  0x92   : > { %1148 = vmatpush.bf16.msrb.mxu0 %v1932_v28 }
  0x93   : > { %1161 = vmatpush.bf16.msrb.mxu1 %v1996_v33 }
  0x96   : > { %1149 = vmatpush.bf16.msrb.mxu0 %v1924_v39 }
  0x97   : > { %1162 = vmatpush.bf16.msrb.mxu1 %v1988_v40 }
  0x9a   : > { %1150 = vmatpush.bf16.msrb.mxu0 %v1916_v45 }
  0x9b   : > { %1163 = vmatpush.bf16.msrb.mxu1 %v1980_v46 }
  0x9d   : > { %1151 = vmatmul.bf16.vlgmr.msrb.gmra.mxu0 %v2475_v30 }
  0x9e   : > { %1164 = vmatmul.bf16.vlgmr.msrb.gmra.mxu1 %v2480_v35 }
  0xba   : > { %v996_v47 = vpop.f32.mrf.mxu0 }
  0xbb   : > { %v1009_v48 = vpop.f32.mrf.mxu1 }
  0xbc   : > { %v1010_v54 = vadd.f32 %v1009_v48, %v996_v47 }
  0xc2   : > { %v1022_v49 = vpop.f32.mrf.mxu2  ;;  %v998_v50 = vpop.f32.mrf.mxu0 }
  0xc3   : > { %v1011_v52 = vpop.f32.mrf.mxu1  ;;  %v1023_v56 = vadd.f32 %v1022_v49, %v1010_v54 }
  0xc7   : > { %v1035_v51 = vpop.f32.mrf.mxu3 }
  0xc8   : > { %v1036_v57 = vadd.f32 %v1035_v51, %v1023_v56 }
  0xca   : > { %v1024_v53 = vpop.f32.mrf.mxu2 }
  0xcf   : > { %v1037_v55 = vpop.f32.mrf.mxu3 }
  0xda   : > { %v1048_v58 = vpop.f32.mrf.mxu0 }
  0xdb   : > { %v1049_v59 = vadd.f32 %v1048_v58, %v1036_v57  ;;  %v1061_v60 = vpop.f32.mrf.mxu1 }
  0xdd   : > { %v1062_v61 = vadd.f32 %v1061_v60, %v1049_v59 }
  0xe2   : > { %v1074_v63 = vpop.f32.mrf.mxu2  ;;  %v1050_v30 = vpop.f32.mrf.mxu0 }
  0xe3   : > { %v1075_v0 = vadd.f32 %v1074_v63, %v1062_v61  ;;  %v1063_v35 = vpop.f32.mrf.mxu1 }
  0xe5   : > { %v1169_v1 = vadd.f32 %v1075_v0, %v284_v62 }
  0xe7   : > { %1171 = vst [vmem:[#allocation2] sm:$0xff] %v1169_v1  ;;  %v1087_v3 = vpop.f32.mrf.mxu3 }
  0xea   : > { %v1076_v4 = vpop.f32.mrf.mxu2 }
  0xef   : > { %v1089_v5 = vpop.f32.mrf.mxu3 }
  0xfa   : > { %v1100_v8 = vpop.f32.mrf.mxu0 }
  0xfb   : > { %v1113_v9 = vpop.f32.mrf.mxu1  ;;  %v1101_v15 = vadd.f32 %v1100_v8, %v1087_v3 }
  0xfd   : > { %v1114_v6 = vadd.f32 %v1113_v9, %v1101_v15 }
 0x102   : > { %v1102_v10 = vpop.f32.mrf.mxu0  ;;  %v1126_v13 = vpop.f32.mrf.mxu2 }
 0x103   : > { %v1115_v12 = vpop.f32.mrf.mxu1  ;;  %v1127_v18 = vadd.f32 %v1126_v13, %v1114_v6 }
 0x107   : > { %v1139_v14 = vpop.f32.mrf.mxu3 }
 0x108   : > { %v1140_v19 = vadd.f32 %v1139_v14, %v1127_v18 }
 0x10a   : > { %v1128_v16 = vpop.f32.mrf.mxu2 }
 0x10f   : > { %v1141_v17 = vpop.f32.mrf.mxu3 }
 0x11a   : > { %v1152_v7 = vpop.f32.mrf.mxu0 }
 0x11b   : > { %v1153_v20 = vadd.f32 %v1152_v7, %v1140_v19  ;;  %v1165_v2 = vpop.f32.mrf.mxu1 }
 0x11d   : > { %v1166_v22 = vadd.f32 %v1165_v2, %v1153_v20 }
 0x11f   : > { %v1170_v23 = vadd.f32 %v1166_v22, %v285_v21  ;;  %1176 = sbr.rel (%p2037_p9) target bundleno = 537 (0x219), region = 48 }
 0x121   : > { %1172 = vst [vmem:[#allocation2 + $0x8] sm:$0xff] %v1170_v23 }
 0x122   : > { %v1154_v24 = vpop.f32.mrf.mxu0 }
 0x123   : > { %v1167_v25 = vpop.f32.mrf.mxu1 }
 0x124   : > { %v2581_v11 = vld [vmem:[%s3065_s2 + $0xf0] sm:$0xff]  ;;  %v2591_v27 = vld [vmem:[%s3065_s2 + $0xf8] sm:$0xff]  ;;  %v2603_v31 = vld [vmem:[%s3065_s2 + $0xe0] sm:$0xff]  ;;  %vm1475_vm6 = vcmask 1040384  }
 0x125   : > { %v2586_v26 = vld [vmem:[%s3065_s2 + $0x1f0] sm:$0xff]  ;;  %1269 = vmatpush.msra.mxu0 %v2581_v11  ;;  %v2598_v29 = vld [vmem:[%s3065_s2 + $0x1f8] sm:$0xff]  ;;  %v2608_v32 = vld [vmem:[%s3065_s2 + $0x1e0] sm:$0xff]  ;;  %1309 = vmatpush.msra.mxu2 %v2591_v27 }
 0x126   : > { %1289 = vmatpush.msra.mxu1 %v2586_v26  ;;  %1329 = vmatpush.msra.mxu3 %v2598_v29  ;;  %v2615_v28 = vld [vmem:[%s3065_s2 + $0xe8] sm:$0xff]  ;;  %v2625_v34 = vld [vmem:[%s3065_s2 + $0xd0] sm:$0xff]  ;;  %v2637_v37 = vld [vmem:[%s3065_s2 + $0xd8] sm:$0xff] }
 0x127   : > { %v2620_v33 = vld [vmem:[%s3065_s2 + $0x1e8] sm:$0xff]  ;;  %1270 = vmatpush.msra.mxu0 %v2603_v31  ;;  %v2632_v36 = vld [vmem:[%s3065_s2 + $0x1d0] sm:$0xff]  ;;  %v2642_v38 = vld [vmem:[%s3065_s2 + $0x1d8] sm:$0xff]  ;;  %1310 = vmatpush.msra.mxu2 %v2615_v28 }
 0x128   : > { %1290 = vmatpush.msra.mxu1 %v2608_v32  ;;  %1330 = vmatpush.msra.mxu3 %v2620_v33  ;;  %v2649_v39 = vld [vmem:[%s3065_s2 + $0xc0] sm:$0xff]  ;;  %v2661_v41 = vld [vmem:[%s3065_s2 + $0xc8] sm:$0xff]  ;;  %v2673_v43 = vld [vmem:[%s3065_s2 + $0xb0] sm:$0xff] }
 0x129   : > { %v2654_v40 = vld [vmem:[%s3065_s2 + $0x1c0] sm:$0xff]  ;;  %1271 = vmatpush.msra.mxu0 %v2625_v34  ;;  %v2666_v42 = vld [vmem:[%s3065_s2 + $0x1c8] sm:$0xff]  ;;  %1311 = vmatpush.msra.mxu2 %v2637_v37  ;;  %v2678_v44 = vld [vmem:[%s3065_s2 + $0x1b0] sm:$0xff] }
 0x12a   : > { %1291 = vmatpush.msra.mxu1 %v2632_v36  ;;  %1331 = vmatpush.msra.mxu3 %v2642_v38  ;;  %v2685_v45 = vld [vmem:[%s3065_s2 + $0xb8] sm:$0xff]  ;;  %v2697_v47 = vld [vmem:[%s3065_s2 + $0xa0] sm:$0xff]  ;;  %v2709_v49 = vld [vmem:[%s3065_s2 + $0xa8] sm:$0xff] }
 0x12b   : > { %1272 = vmatpush.msra.mxu0 %v2649_v39  ;;  %v2690_v46 = vld [vmem:[%s3065_s2 + $0x1b8] sm:$0xff]  ;;  %1312 = vmatpush.msra.mxu2 %v2661_v41  ;;  %v2702_v48 = vld [vmem:[%s3065_s2 + $0x1a0] sm:$0xff]  ;;  %v2714_v50 = vld [vmem:[%s3065_s2 + $0x1a8] sm:$0xff] }
 0x12c   : > { %1292 = vmatpush.msra.mxu1 %v2654_v40  ;;  %1332 = vmatpush.msra.mxu3 %v2666_v42  ;;  %v2721_v51 = vld [vmem:[%s3065_s2 + $0x90] sm:$0xff]  ;;  %v2733_v53 = vld [vmem:[%s3065_s2 + $0x98] sm:$0xff]  ;;  %v2745_v55 = vld [vmem:[%s3065_s2 + $0x80] sm:$0xff] }
 0x12d   : > { %1273 = vmatpush.msra.mxu0 %v2673_v43  ;;  %1313 = vmatpush.msra.mxu2 %v2685_v45  ;;  %v2726_v52 = vld [vmem:[%s3065_s2 + $0x190] sm:$0xff]  ;;  %v2738_v54 = vld [vmem:[%s3065_s2 + $0x198] sm:$0xff]  ;;  %v2750_v56 = vld [vmem:[%s3065_s2 + $0x180] sm:$0xff] }
 0x12e   : > { %1293 = vmatpush.msra.mxu1 %v2678_v44  ;;  %1333 = vmatpush.msra.mxu3 %v2690_v46  ;;  %v2757_v57 = vld [vmem:[%s3065_s2 + $0x88] sm:$0xff]  ;;  %v2769_v59 = vld [vmem:[%s3065_s2 + $0x70] sm:$0xff]  ;;  %v2781_v61 = vld [vmem:[%s3065_s2 + $0x78] sm:$0xff] }
 0x12f   : > { %1274 = vmatpush.msra.mxu0 %v2697_v47  ;;  %1314 = vmatpush.msra.mxu2 %v2709_v49  ;;  %v2762_v58 = vld [vmem:[%s3065_s2 + $0x188] sm:$0xff]  ;;  %v2774_v60 = vld [vmem:[%s3065_s2 + $0x170] sm:$0xff]  ;;  %v2786_v62 = vld [vmem:[%s3065_s2 + $0x178] sm:$0xff] }
 0x130   : > { %1294 = vmatpush.msra.mxu1 %v2702_v48  ;;  %1334 = vmatpush.msra.mxu3 %v2714_v50  ;;  %v2793_v63 = vld [vmem:[%s3065_s2 + $0x60] sm:$0xff]  ;;  %v2805_v0 = vld [vmem:[%s3065_s2 + $0x68] sm:$0xff]  ;;  %v2817_v1 = vld [vmem:[%s3065_s2 + $0x50] sm:$0xff] }
 0x131   : > { %1275 = vmatpush.msra.mxu0 %v2721_v51  ;;  %1315 = vmatpush.msra.mxu2 %v2733_v53  ;;  %v2798_v30 = vld [vmem:[%s3065_s2 + $0x160] sm:$0xff]  ;;  %v2810_v35 = vld [vmem:[%s3065_s2 + $0x168] sm:$0xff]  ;;  %v2822_v3 = vld [vmem:[%s3065_s2 + $0x150] sm:$0xff] }
 0x132   : > { %1295 = vmatpush.msra.mxu1 %v2726_v52  ;;  %1335 = vmatpush.msra.mxu3 %v2738_v54  ;;  %v2829_v4 = vld [vmem:[%s3065_s2 + $0x58] sm:$0xff]  ;;  %v2841_v8 = vld [vmem:[%s3065_s2 + $0x40] sm:$0xff]  ;;  %v2853_v10 = vld [vmem:[%s3065_s2 + $0x48] sm:$0xff] }
 0x133   : > { %1276 = vmatpush.msra.mxu0 %v2745_v55  ;;  %1316 = vmatpush.msra.mxu2 %v2757_v57  ;;  %v2834_v5 = vld [vmem:[%s3065_s2 + $0x158] sm:$0xff]  ;;  %v2846_v9 = vld [vmem:[%s3065_s2 + $0x140] sm:$0xff]  ;;  %v2858_v12 = vld [vmem:[%s3065_s2 + $0x148] sm:$0xff] }
 0x134   : > { %1296 = vmatpush.msra.mxu1 %v2750_v56  ;;  %1336 = vmatpush.msra.mxu3 %v2762_v58  ;;  %v2865_v13 = vld [vmem:[%s3065_s2 + $0x30] sm:$0xff]  ;;  %v2877_v15 = vld [vmem:[%s3065_s2 + $0x38] sm:$0xff]  ;;  %v2889_v6 = vld [vmem:[%s3065_s2 + $0x20] sm:$0xff] }
 0x135   : > { %1277 = vmatpush.msra.mxu0 %v2769_v59  ;;  %1317 = vmatpush.msra.mxu2 %v2781_v61  ;;  %v2870_v14 = vld [vmem:[%s3065_s2 + $0x130] sm:$0xff]  ;;  %v2882_v16 = vld [vmem:[%s3065_s2 + $0x138] sm:$0xff]  ;;  %v2894_v17 = vld [vmem:[%s3065_s2 + $0x120] sm:$0xff] }
 0x136   : > { %1297 = vmatpush.msra.mxu1 %v2774_v60  ;;  %1337 = vmatpush.msra.mxu3 %v2786_v62  ;;  %v2901_v18 = vld [vmem:[%s3065_s2 + $0x28] sm:$0xff]  ;;  %v2913_v7 = vld [vmem:[%s3065_s2 + $0x10] sm:$0xff]  ;;  %v2925_v2 = vld [vmem:[%s3065_s2 + $0x18] sm:$0xff] }
 0x137   : > { %1278 = vmatpush.msra.mxu0 %v2793_v63  ;;  %1318 = vmatpush.msra.mxu2 %v2805_v0  ;;  %3073 = vst [vmem:[#allocation3_spill] sm:$0xff] %v2901_v18  ;;  %v2906_v19 = vld [vmem:[%s3065_s2 + $0x128] sm:$0xff]  ;;  %v2918_v20 = vld [vmem:[%s3065_s2 + $0x110] sm:$0xff]  ;;  %v2930_v21 = vld [vmem:[%s3065_s2 + $0x118] sm:$0xff] }
 0x138   : > { %1298 = vmatpush.msra.mxu1 %v2798_v30  ;;  %1338 = vmatpush.msra.mxu3 %v2810_v35  ;;  %3074 = vst [vmem:[#allocation4_spill] sm:$0xff] %v2906_v19  ;;  %v2937_v22 = vld [vmem:[%s3065_s2] sm:$0xff]  ;;  %v2949_v24 = vld [vmem:[%s3065_s2 + $0x8] sm:$0xff] }
 0x139   : > { %1279 = vmatpush.msra.mxu0 %v2817_v1  ;;  %1319 = vmatpush.msra.mxu2 %v2829_v4  ;;  %3075 = vst [vmem:[#allocation5_spill] sm:$0xff] %v2925_v2  ;;  %v2942_v23 = vld [vmem:[%s3065_s2 + $0x100] sm:$0xff]  ;;  %v2954_v25 = vld [vmem:[%s3065_s2 + $0x108] sm:$0xff] }
 0x13a   : > { %1299 = vmatpush.msra.mxu1 %v2822_v3  ;;  %1339 = vmatpush.msra.mxu3 %v2834_v5  ;;  %3076 = vst [vmem:[#allocation6_spill] sm:$0xff] %v2930_v21 }
 0x13b   : > { %1280 = vmatpush.msra.mxu0 %v2841_v8  ;;  %1320 = vmatpush.msra.mxu2 %v2853_v10 }
 0x13c   : > { %1300 = vmatpush.msra.mxu1 %v2846_v9  ;;  %1340 = vmatpush.msra.mxu3 %v2858_v12 }
 0x13d   : > { %1281 = vmatpush.msra.mxu0 %v2865_v13  ;;  %1321 = vmatpush.msra.mxu2 %v2877_v15 }
 0x13e   : > { %1301 = vmatpush.msra.mxu1 %v2870_v14  ;;  %1341 = vmatpush.msra.mxu3 %v2882_v16 }
 0x13f   : > { %1282 = vmatpush.msra.mxu0 %v2889_v6  ;;  %1322 = vmatpush.msra.mxu2 %v2901_v18  ;;  %v2960_v18 = vld [vmem:[#allocation2 + $0x8] sm:$0xff] }
 0x140   : > { %1302 = vmatpush.msra.mxu1 %v2894_v17  ;;  %1342 = vmatpush.msra.mxu3 %v2906_v19  ;;  %v2958_v19 = vld [vmem:[#allocation2] sm:$0xff] }
 0x141   : > { %1283 = vmatpush.msra.mxu0 %v2913_v7  ;;  %1323 = vmatpush.msra.mxu2 %v2925_v2  ;;  %v1179_v2 = vrot.slane %v2958_v19, 4 }
 0x142   : > { %1303 = vmatpush.msra.mxu1 %v2918_v20  ;;  %1343 = vmatpush.msra.mxu3 %v2930_v21  ;;  %v1185_v21 = vrot.slane %v2960_v18, 4 }
 0x143   : > { %1284 = vmatpush.msra.mxu0 %v2937_v22  ;;  %1324 = vmatpush.msra.mxu2 %v2949_v24 }
 0x144   : > { %1304 = vmatpush.msra.mxu1 %v2942_v23  ;;  %1344 = vmatpush.msra.mxu3 %v2954_v25 }
 0x145   : > { %1349 = vmatpush.msrb.mxu0 %v2581_v11  ;;  %1389 = vmatpush.msrb.mxu2 %v2591_v27  ;;  %v1180_v11 = vadd.f32 %v1179_v2, %v2958_v19  ;;  %v1191_v27 = vmul.f32 %v2958_v19, %v2958_v19 }
 0x146   : > { %1369 = vmatpush.msrb.mxu1 %v2586_v26  ;;  %1409 = vmatpush.msrb.mxu3 %v2598_v29  ;;  %v1186_v26 = vadd.f32 %v1185_v21, %v2960_v18  ;;  %v1192_v29 = vmul.f32 %v2960_v18, %v2960_v18 }
 0x147   : > { %1350 = vmatpush.msrb.mxu0 %v2603_v31  ;;  %1390 = vmatpush.msrb.mxu2 %v2615_v28  ;;  %v1181_v31 = vrot.slane %v1180_v11, 2  ;;  %v1193_v28 = vrot.slane %v1191_v27, 4 }
 0x148   : > { %1370 = vmatpush.msrb.mxu1 %v2608_v32  ;;  %1410 = vmatpush.msrb.mxu3 %v2620_v33  ;;  %v1187_v32 = vrot.slane %v1186_v26, 2  ;;  %v1199_v33 = vrot.slane %v1192_v29, 4 }
 0x149   : > { %1351 = vmatpush.msrb.mxu0 %v2625_v34  ;;  %1391 = vmatpush.msrb.mxu2 %v2637_v37  ;;  %v1182_v34 = vadd.f32 %v1181_v31, %v1180_v11  ;;  %v1194_v37 = vadd.f32 %v1193_v28, %v1191_v27 }
 0x14a   : > { %1371 = vmatpush.msrb.mxu1 %v2632_v36  ;;  %1411 = vmatpush.msrb.mxu3 %v2642_v38  ;;  %v1188_v36 = vadd.f32 %v1187_v32, %v1186_v26  ;;  %v1200_v38 = vadd.f32 %v1199_v33, %v1192_v29 }
 0x14b   : > { %1352 = vmatpush.msrb.mxu0 %v2649_v39  ;;  %1392 = vmatpush.msrb.mxu2 %v2661_v41  ;;  %v1183_v39 = vrot.slane %v1182_v34, 1  ;;  %v1195_v41 = vrot.slane %v1194_v37, 2 }
 0x14c   : > { %1372 = vmatpush.msrb.mxu1 %v2654_v40  ;;  %1412 = vmatpush.msrb.mxu3 %v2666_v42  ;;  %v1189_v40 = vrot.slane %v1188_v36, 1  ;;  %v1201_v42 = vrot.slane %v1200_v38, 2 }
 0x14d   : > { %1353 = vmatpush.msrb.mxu0 %v2673_v43  ;;  %1393 = vmatpush.msrb.mxu2 %v2685_v45  ;;  %v1184_v43 = vadd.f32 %v1183_v39, %v1182_v34  ;;  %v1196_v45 = vadd.f32 %v1195_v41, %v1194_v37 }
 0x14e   : > { %1373 = vmatpush.msrb.mxu1 %v2678_v44  ;;  %1413 = vmatpush.msrb.mxu3 %v2690_v46  ;;  %v1190_v44 = vadd.f32 %v1189_v40, %v1188_v36  ;;  %v1202_v46 = vadd.f32 %v1201_v42, %v1200_v38  ;;  %v1469_v38 = vld [vmem:[%s3067_s4] sm:$0x3] }
 0x14f   : > { %1354 = vmatpush.msrb.mxu0 %v2697_v47  ;;  %1394 = vmatpush.msrb.mxu2 %v2709_v49  ;;  %v1197_v47 = vrot.slane %v1196_v45, 1  ;;  %v3077_v49 = vld [vmem:[#allocation3_spill] sm:$0xff] }
 0x150   : > { %1374 = vmatpush.msrb.mxu1 %v2702_v48  ;;  %1414 = vmatpush.msrb.mxu3 %v2714_v50  ;;  %v1203_v48 = vrot.slane %v1202_v46, 1  ;;  %v3078_v50 = vld [vmem:[#allocation4_spill] sm:$0xff] }
 0x151   : > { %1355 = vmatpush.msrb.mxu0 %v2721_v51  ;;  %1395 = vmatpush.msrb.mxu2 %v2733_v53  ;;  %v1198_v51 = vadd.f32 %v1197_v47, %v1196_v45  ;;  %v3079_v53 = vld [vmem:[#allocation5_spill] sm:$0xff] }
 0x152   : > { %1375 = vmatpush.msrb.mxu1 %v2726_v52  ;;  %1415 = vmatpush.msrb.mxu3 %v2738_v54  ;;  %v1204_v52 = vadd.f32 %v1203_v48, %v1202_v46  ;;  %v3080_v54 = vld [vmem:[#allocation6_spill] sm:$0xff] }
 0x153   : > { %1356 = vmatpush.msrb.mxu0 %v2745_v55  ;;  %1396 = vmatpush.msrb.mxu2 %v2757_v57 }
 0x154   : > { %1376 = vmatpush.msrb.mxu1 %v2750_v56  ;;  %1416 = vmatpush.msrb.mxu3 %v2762_v58 }
 0x155   : > { %1357 = vmatpush.msrb.mxu0 %v2769_v59  ;;  %1397 = vmatpush.msrb.mxu2 %v2781_v61 }
 0x156   : > { %1377 = vmatpush.msrb.mxu1 %v2774_v60  ;;  %1417 = vmatpush.msrb.mxu3 %v2786_v62 }
 0x157   : > { %1358 = vmatpush.msrb.mxu0 %v2793_v63  ;;  %1398 = vmatpush.msrb.mxu2 %v2805_v0 }
 0x158   : > { %1378 = vmatpush.msrb.mxu1 %v2798_v30  ;;  %1418 = vmatpush.msrb.mxu3 %v2810_v35 }
 0x159   : > { %1359 = vmatpush.msrb.mxu0 %v2817_v1  ;;  %1399 = vmatpush.msrb.mxu2 %v2829_v4 }
 0x15a   : > { %1379 = vmatpush.msrb.mxu1 %v2822_v3  ;;  %1419 = vmatpush.msrb.mxu3 %v2834_v5 }
 0x15b   : > { %1360 = vmatpush.msrb.mxu0 %v2841_v8  ;;  %1400 = vmatpush.msrb.mxu2 %v2853_v10 }
 0x15c   : > { %1380 = vmatpush.msrb.mxu1 %v2846_v9  ;;  %1420 = vmatpush.msrb.mxu3 %v2858_v12 }
 0x15d   : > { %1285 = vmatmul.f32.vlgmr.msra.gmra.mxu0 %v1184_v43  ;;  %1305 = vmatmul.f32.vlgmr.msra.gmra.mxu1 %v1190_v44 }
 0x15e   : > { %1325 = vmatmul.f32.vlgmr.msra.gmra.mxu2 %v1184_v43  ;;  %1345 = vmatmul.f32.vlgmr.msra.gmra.mxu3 %v1190_v44 }
 0x15f   : > { %1361 = vmatpush.msrb.mxu0 %v2865_v13  ;;  %1381 = vmatpush.msrb.mxu1 %v2870_v14 }
 0x160   : > { %1401 = vmatpush.msrb.mxu2 %v2877_v15  ;;  %1421 = vmatpush.msrb.mxu3 %v2882_v16 }
 0x161   : > { %1362 = vmatpush.msrb.mxu0 %v2889_v6  ;;  %1382 = vmatpush.msrb.mxu1 %v2894_v17 }
 0x162   : > { %1402 = vmatpush.msrb.mxu2 %v3077_v49  ;;  %1422 = vmatpush.msrb.mxu3 %v3078_v50 }
 0x163   : > { %1363 = vmatpush.msrb.mxu0 %v2913_v7  ;;  %1383 = vmatpush.msrb.mxu1 %v2918_v20 }
 0x164   : > { %1403 = vmatpush.msrb.mxu2 %v3079_v53  ;;  %1423 = vmatpush.msrb.mxu3 %v3080_v54 }
 0x165   : > { %1364 = vmatpush.msrb.mxu0 %v2937_v22  ;;  %1384 = vmatpush.msrb.mxu1 %v2942_v23 }
 0x166   : > { %1404 = vmatpush.msrb.mxu2 %v2949_v24  ;;  %1424 = vmatpush.msrb.mxu3 %v2954_v25  ;;  %v1461_v25 = vld [vmem:[%s3066_s3] sm:$0x3] }
 0x167   : > { %1365 = vmatmul.f32.vlgmr.msrb.gmra.mxu0 %v1198_v51  ;;  %1385 = vmatmul.f32.vlgmr.msrb.gmra.mxu1 %v1204_v52  ;;  %v1463_v27 = vperm.slane %v1461_v25, 0  ;;  %v1464_v29 = vperm.slane %v1461_v25, 1 }
 0x168   : > { %1405 = vmatmul.f32.vlgmr.msrb.gmra.mxu2 %v1198_v51  ;;  %1425 = vmatmul.f32.vlgmr.msrb.gmra.mxu3 %v1204_v52 }
 0x1da   : > { %v1286_v55 = vpop.f32.mrf.mxu0  ;;  %v1306_v56 = vpop.f32.mrf.mxu1 }
 0x1db   : > { %v1307_v57 = vadd.f32 %v1306_v56, %v1286_v55 }
 0x1dd   : > { %v1429_v58 = vmul.f32 0.010416667, %v1307_v57 }
 0x1df   : > { %v1433_v63 = vmul.f32 %v1429_v58, %v1429_v58 }
 0x1e1   : > { %v1326_v59 = vpop.f32.mrf.mxu2  ;;  %v1346_v60 = vpop.f32.mrf.mxu3 }
 0x1e2   : > { %v1347_v0 = vadd.f32 %v1346_v60, %v1326_v59 }
 0x1e4   : > { %v1366_v61 = vpop.f32.mrf.mxu0  ;;  %v1386_v62 = vpop.f32.mrf.mxu1  ;;  %v1430_v3 = vmul.f32 0.010416667, %v1347_v0 }
 0x1e5   : > { %v1387_v30 = vadd.f32 %v1386_v62, %v1366_v61 }
 0x1e6   : > { %v1434_v12 = vmul.f32 %v1430_v3, %v1430_v3 }
 0x1e7   : > { %v1431_v35 = vmul.f32 0.010416667, %v1387_v30 }
 0x1e9   : > { %v1435_v1 = vsub.f32 %v1431_v35, %v1433_v63 }
 0x1eb   : > { %v1437_v4 = vmax.f32 %v1435_v1, 0.0  ;;  %v1406_v5 = vpop.f32.mrf.mxu2  ;;  %v1426_v8 = vpop.f32.mrf.mxu3 }
 0x1ec   : > { %v1427_v9 = vadd.f32 %v1426_v8, %v1406_v5 }
 0x1ed   : > { %v1439_v10 = vadd.f32 1e-05, %v1437_v4 }
 0x1ee   : > { %v1432_v13 = vmul.f32 0.010416667, %v1427_v9 }
 0x1ef   : > { %2196 = vrsqrt.f32 %v1439_v10  ;;  %vm1447_vm1 = vweird.f32 %v1439_v10 }
 0x1f0   : > { %v1436_v14 = vsub.f32 %v1432_v13, %v1434_v12 }
 0x1f2   : > { %v1438_v15 = vmax.f32 %v1436_v14, 0.0 }
 0x1f4   : > { %v1440_v16 = vadd.f32 1e-05, %v1438_v15 }
 0x1f5   : > { %v2197_v6 = vpop.eup %2196 }
 0x1f6   : > { %v1442_v17 = vmul.f32 %v2197_v6, %v1439_v10  ;;  %2198 = vrsqrt.f32 %v1440_v16  ;;  %vm1448_vm0 = vweird.f32 %v2197_v6  ;;  %vm1457_vm4 = vweird.f32 %v1440_v16 }
 0x1f7   : > { %vm1449_vm3 = vmor %vm1447_vm1, %vm1448_vm0 }
 0x1f8   : > { %v1443_v7 = vmul.f32 %v2197_v6, %v1442_v17 }
 0x1fa   : > { %v1444_v20 = vmul.f32 0.5, %v1443_v7 }
 0x1fc   : > { %v2199_v2 = vpop.eup %2198  ;;  %v1445_v21 = vsub.f32 1.5, %v1444_v20 }
 0x1fd   : > { %v1452_v22 = vmul.f32 %v2199_v2, %v1440_v16  ;;  %vm1458_vm2 = vweird.f32 %v2199_v2 }
 0x1fe   : > { %v1446_v24 = vmul.f32 %v2197_v6, %v1445_v21  ;;  %vm1459_vm5 = vmor %vm1457_vm4, %vm1458_vm2 }
 0x1ff   : > { %v1453_v23 = vmul.f32 %v2199_v2, %v1452_v22 }
 0x200   : > { %v1450_v31 = vsel %vm1449_vm3, %v2197_v6, %v1446_v24 }
 0x201   : > { %v1454_v11 = vmul.f32 0.5, %v1453_v23  ;;  %v1467_v33 = vmul.f32 %v1463_v27, %v1450_v31 }
 0x203   : > { %v1455_v26 = vsub.f32 1.5, %v1454_v11  ;;  %v1470_v37 = vmul.f32 %v1467_v33, %v1429_v58  ;;  %v1479_v40 = vperm.slane %v1467_v33, 0 }
 0x205   : > { %v1456_v32 = vmul.f32 %v2199_v2, %v1455_v26  ;;  %v1481_v44 = vmul.f32 %v1479_v40, %v2958_v19 }
 0x207   : > { %v1460_v28 = vsel %vm1459_vm5, %v2199_v2, %v1456_v32 }
 0x208   : > { %v1468_v34 = vmul.f32 %v1464_v29, %v1460_v28 }
 0x20a   : > { %v1471_v36 = vmul.f32 %v1468_v34, %v1430_v3  ;;  %v1480_v41 = vperm.slane %v1468_v34, 0 }
 0x20c   : > { %v1474_v39 = vrot.slane %v1471_v36, 7  ;;  %v1482_v45 = vmul.f32 %v1480_v41, %v2960_v18 }
 0x20e   : > { %v1476_v42 = vsel %vm1475_vm6, %v1470_v37, %v1474_v39 }
 0x20f   : > { %v1478_v43 = vsub.f32 %v1469_v38, %v1476_v42 }
 0x211   : > { %v1484_v46 = vperm.slane %v1478_v43, 0  ;;  %v1485_v47 = vperm.slane %v1478_v43, 1 }
 0x213   : > { %v1488_v48 = vadd.f32 %v1484_v46, %v1481_v44  ;;  %v1489_v49 = vadd.f32 %v1485_v47, %v1482_v45 }
 0x215   : > { %v1490_v50 = vmax.f32 %v1488_v48, 0.0  ;;  %v1491_v51 = vmax.f32 %v1489_v49, 0.0 }
 0x217   : > { %1492 = vst [vmem:[%s2308_s7] sm:$0xff] %v1490_v50 }
 0x218   : > { %1493 = vst [vmem:[%s2308_s7 + $0x8] sm:$0xff] %v1491_v51 }
 0x219 PF: > { %s15_s22 = sadd.s32 1, %s2238_s22   ;;  %s3081_s18 = smov %s2230_s20 }
 0x21a   : > { %p12_p10 = scmp.ge.s32.totalorder %s15_s22, 6   ;;  %s3082_s19 = smov %s2234_s21 }
 0x21b   : > { %s3083_s20 = smov %s3086_s23  ;;  %s3084_s21 = smov %s3090_s24 }
 0x21c   :  { %14 = sbr.rel (!%p12_p10) target bundleno = 3 (0x3), region = 81 }

</bundles_post_ra>
